<compile_context>
chip_gen: v7x
topology: tpu7x:2x2x1
jax: 0.10.0
libtpu: 0.0.40
codegen_flags: <defaults>
</compile_context>

<pallas_src>
import jax
import jax.numpy as jnp
import numpy as np
from jax import lax
from jax.experimental import pallas as pl
from jax.experimental.pallas import tpu as pltpu

H = 32          # LSTM hidden size
G = 4 * H       # 128: packed (i, f, g, o) gate width per direction


# ------------------------------------------------------------------ in-kernel helpers
def _conv1d_relu(x, w_ref, b_ref, seq_len):
    """Conv1d(k=3, pad=1) + ReLU over flattened rows x: (N, Cin), N = BB*L (b-major)."""
    n = x.shape[0]
    row = lax.broadcasted_iota(jnp.int32, (n, 1), 0)
    t = row % seq_len
    x_prev = jnp.where(t == 0, 0.0, pltpu.roll(x, 1, axis=0))            # x[t-1]
    x_next = jnp.where(t == seq_len - 1, 0.0, pltpu.roll(x, n - 1, axis=0))  # x[t+1]
    acc = jnp.dot(x_prev, w_ref[0], preferred_element_type=jnp.float32)
    acc = acc + jnp.dot(x, w_ref[1], preferred_element_type=jnp.float32)
    acc = acc + jnp.dot(x_next, w_ref[2], preferred_element_type=jnp.float32)
    return jnp.maximum(acc + b_ref[...], 0.0)


# ------------------------------------------------------------------ fused kernel
def _upsampler_kernel(x_ref,
                      ew1_ref, eb1_ref, ew2_ref, eb2_ref,
                      wih_ref, whhf_ref, whhb_ref, blstm_ref,
                      dw1_ref, db1_ref, dw2_ref, db2_ref,
                      o_ref,
                      gx_ref, hl_ref):
    BB, L, Cin = x_ref.shape
    N = BB * L

    # ---------------- encoder (2x Conv1d + ReLU), whole batch block at once ----
    x = x_ref[...].reshape(N, Cin)
    h = _conv1d_relu(x, ew1_ref, eb1_ref, L)          # (N, 16)
    h = _conv1d_relu(h, ew2_ref, eb2_ref, L)          # (N, 32)

    # ---------------- BiLSTM ----------------------------------------------------
    # Input contribution of all 4 gates for BOTH directions: one (N,32)x(32,256).
    gx = jnp.dot(h, wih_ref[...], preferred_element_type=jnp.float32) + blstm_ref[...]
    gx_ref[...] = gx.reshape(BB, L, 2 * G)

    whh_f = whhf_ref[...]     # (H, 4H) — loaded once, lives in vregs
    whh_b = whhb_ref[...]     # (H, 4H)

    def cell(gate_x, h_prev, c_prev, whh):
        g = gate_x + jnp.dot(h_prev, whh, preferred_element_type=jnp.float32)
        i = jax.nn.sigmoid(g[:, 0 * H:1 * H])
        f = jax.nn.sigmoid(g[:, 1 * H:2 * H])
        gg = jnp.tanh(g[:, 2 * H:3 * H])
        o = jax.nn.sigmoid(g[:, 3 * H:4 * H])
        c = f * c_prev + i * gg
        return o * jnp.tanh(c), c

    h_f = jnp.zeros((BB, H), jnp.float32)
    c_f = jnp.zeros((BB, H), jnp.float32)
    h_b = jnp.zeros((BB, H), jnp.float32)
    c_b = jnp.zeros((BB, H), jnp.float32)

    # Fully unrolled (L is small & static). Forward step t and backward step
    # L-1-t are interleaved so the two independent recurrences hide each
    # other's MXU/EUP latency; the h stores are off the serial carry chain.
    for t in range(L):
        tb = L - 1 - t
        gxf = gx_ref[:, pl.ds(t, 1), pl.ds(0, G)].reshape(BB, G)
        gxb = gx_ref[:, pl.ds(tb, 1), pl.ds(G, G)].reshape(BB, G)
        h_f, c_f = cell(gxf, h_f, c_f, whh_f)
        h_b, c_b = cell(gxb, h_b, c_b, whh_b)
        hl_ref[:, pl.ds(t, 1), pl.ds(0, H)] = h_f.reshape(BB, 1, H)
        hl_ref[:, pl.ds(tb, 1), pl.ds(H, H)] = h_b.reshape(BB, 1, H)

    # ---------------- decoder (2x Conv1d + ReLU) --------------------------------
    hcat = hl_ref[...].reshape(N, 2 * H)              # (N, 64) = [h_fwd | h_bwd]
    d = _conv1d_relu(hcat, dw1_ref, db1_ref, L)       # (N, 16)
    d = _conv1d_relu(d, dw2_ref, db2_ref, L)          # (N, 64)
    o_ref[...] = d.reshape(o_ref.shape)


# ------------------------------------------------------------------ wrapper
def _const_spec(shape):
    zeros = (0,) * len(shape)
    return pl.BlockSpec(shape, lambda i: zeros)


def upsampler_forward(x, p, *, bb=None):
    """x: (B, L, 64) -> (B, L, 64). p holds taps/gates in the format below."""
    B, L, Cin = x.shape
    if bb is None:
        bb = B                      # one batch block; set bb < B to shard across cores
    assert B % bb == 0

    # pack LSTM weights: per-gate (4, In, H) -> lane-packed (In, 4H); fwd|bwd concat
    def pack_w(w4):                 # (4, In, H) -> (In, 4H)
        return jnp.transpose(w4, (1, 0, 2)).reshape(w4.shape[1], 4 * H)

    def pack_b(b4):                 # (4, 1, H) -> (1, 4H)
        return jnp.transpose(b4, (1, 0, 2)).reshape(1, 4 * H)

    wih = jnp.concatenate([pack_w(p["wih_f"]), pack_w(p["wih_b"])], axis=1)   # (32, 256)
    whh_f = pack_w(p["whh_f"])                                                # (32, 128)
    whh_b = pack_w(p["whh_b"])                                                # (32, 128)
    b_lstm = jnp.concatenate([pack_b(p["b_f"]), pack_b(p["b_b"])], axis=1)    # (1, 256)

    Cout = p["dec_w2"].shape[2]

    return pl.pallas_call(
        _upsampler_kernel,
        out_shape=jax.ShapeDtypeStruct((B, L, Cout), jnp.float32),
        grid=(B // bb,),
        in_specs=[
            pl.BlockSpec((bb, L, Cin), lambda i: (i, 0, 0)),
            _const_spec(p["enc_w1"].shape), _const_spec(p["enc_b1"].shape),
            _const_spec(p["enc_w2"].shape), _const_spec(p["enc_b2"].shape),
            _const_spec(wih.shape), _const_spec(whh_f.shape),
            _const_spec(whh_b.shape), _const_spec(b_lstm.shape),
            _const_spec(p["dec_w1"].shape), _const_spec(p["dec_b1"].shape),
            _const_spec(p["dec_w2"].shape), _const_spec(p["dec_b2"].shape),
        ],
        out_specs=pl.BlockSpec((bb, L, Cout), lambda i: (i, 0, 0)),
        scratch_shapes=[pltpu.VMEM((bb, L, 2 * G), jnp.float32),    # packed gate inputs
                        pltpu.VMEM((bb, L, 2 * H), jnp.float32)],   # BiLSTM hidden states
        compiler_params=pltpu.CompilerParams(dimension_semantics=("parallel",)),
    )(x, p["enc_w1"], p["enc_b1"], p["enc_w2"], p["enc_b2"],
      wih, whh_f, whh_b, b_lstm,
      p["dec_w1"], p["dec_b1"], p["dec_w2"], p["dec_b2"])


# ------------------------------------------------------------------ pure-JAX reference
def _conv_ref(x, w_taps, bias):
    L = x.shape[1]
    xp = jnp.pad(x, ((0, 0), (1, 1), (0, 0)))
    hi = jax.lax.Precision.HIGHEST
    out = (jnp.einsum('blc,cd->bld', xp[:, 0:L], w_taps[0], precision=hi)
           + jnp.einsum('blc,cd->bld', xp[:, 1:L + 1], w_taps[1], precision=hi)
           + jnp.einsum('blc,cd->bld', xp[:, 2:L + 2], w_taps[2], precision=hi)
           + bias)
    return jnp.maximum(out, 0.0)


def _lstm_dir_ref(x, wih4, whh4, b4, reverse):
    if reverse:
        x = x[:, ::-1]
    B = x.shape[0]

    def step(carry, xt):
        h, c = carry
        g = [xt @ wih4[k] + h @ whh4[k] + b4[k] for k in range(4)]
        i, f = jax.nn.sigmoid(g[0]), jax.nn.sigmoid(g[1])
        gg, o = jnp.tanh(g[2]), jax.nn.sigmoid(g[3])
        c = f * c + i * gg
        h = o * jnp.tanh(c)
        return (h, c), h

    h0 = jnp.zeros((B, H), jnp.float32)
    c0 = jnp.zeros((B, H), jnp.float32)
    _, hs = lax.scan(step, (h0, c0), jnp.swapaxes(x, 0, 1))
    hs = jnp.swapaxes(hs, 0, 1)
    if reverse:
        hs = hs[:, ::-1]
    return hs


def upsampler_ref(x, p):
    h = _conv_ref(x, p["enc_w1"], p["enc_b1"])
    h = _conv_ref(h, p["enc_w2"], p["enc_b2"])
    hf = _lstm_dir_ref(h, p["wih_f"], p["whh_f"], p["b_f"], reverse=False)
    hb = _lstm_dir_ref(h, p["wih_b"], p["whh_b"], p["b_b"], reverse=True)
    h = jnp.concatenate([hf, hb], axis=-1)
    h = _conv_ref(h, p["dec_w1"], p["dec_b1"])
    h = _conv_ref(h, p["dec_w2"], p["dec_b2"])
    return h


# ------------------------------------------------------------------ main
if __name__ == "__main__":
    key = jax.random.PRNGKey(0)
    B, L = 2, 16
    keys = jax.random.split(key, 16)

    def u(k, shape, fan_in):
        bound = 1.0 / np.sqrt(fan_in)
        return jax.random.uniform(k, shape, jnp.float32, -bound, bound)

    params = {
        # encoder: Conv1d(64->16,k3,p1) + ReLU, Conv1d(16->32,k3,p1) + ReLU
        "enc_w1": u(keys[0], (3, 64, 16), 64 * 3), "enc_b1": u(keys[1], (1, 16), 64 * 3),
        "enc_w2": u(keys[2], (3, 16, 32), 16 * 3), "enc_b2": u(keys[3], (1, 32), 16 * 3),
        # decoder: Conv1d(64->16,k3,p1) + ReLU, Conv1d(16->64,k3,p1) + ReLU
        "dec_w1": u(keys[4], (3, 64, 16), 64 * 3), "dec_b1": u(keys[5], (1, 16), 64 * 3),
        "dec_w2": u(keys[6], (3, 16, 64), 16 * 3), "dec_b2": u(keys[7], (1, 64), 16 * 3),
        # bidirectional LSTM(32 -> 32), per-gate packed (i,f,g,o); bias = b_ih + b_hh
        "wih_f": u(keys[8], (4, 32, H), H), "whh_f": u(keys[9], (4, H, H), H),
        "b_f": u(keys[10], (4, 1, H), H),
        "wih_b": u(keys[11], (4, 32, H), H), "whh_b": u(keys[12], (4, H, H), H),
        "b_b": u(keys[13], (4, 1, H), H),
    }

    x = jax.random.normal(keys[14], (B, L, 64), jnp.float32)

    out = jax.block_until_ready(upsampler_forward(x, params))
    ref = jax.block_until_ready(upsampler_ref(x, params))

    assert out.shape == (B, L, 64), out.shape
    np.testing.assert_allclose(np.asarray(out), np.asarray(ref), rtol=1e-3, atol=1e-3)
    print("KERNEL_OK")
</pallas_src>

<mosaic_0001>
module attributes {stable_mosaic.version = 11 : i64} {
  func.func @_upsampler_kernel(%arg0: i32, %arg1: memref<2x16x64xf32, #tpu.memory_space<vmem>>, %arg2: memref<3x64x16xf32, #tpu.memory_space<vmem>>, %arg3: memref<1x16xf32, #tpu.memory_space<vmem>>, %arg4: memref<3x16x32xf32, #tpu.memory_space<vmem>>, %arg5: memref<1x32xf32, #tpu.memory_space<vmem>>, %arg6: memref<32x256xf32, #tpu.memory_space<vmem>>, %arg7: memref<32x128xf32, #tpu.memory_space<vmem>>, %arg8: memref<32x128xf32, #tpu.memory_space<vmem>>, %arg9: memref<1x256xf32, #tpu.memory_space<vmem>>, %arg10: memref<3x64x16xf32, #tpu.memory_space<vmem>>, %arg11: memref<1x16xf32, #tpu.memory_space<vmem>>, %arg12: memref<3x16x64xf32, #tpu.memory_space<vmem>>, %arg13: memref<1x64xf32, #tpu.memory_space<vmem>>, %arg14: memref<2x16x64xf32, #tpu.memory_space<vmem>>, %arg15: memref<2x16x256xf32, #tpu.memory_space<vmem>>, %arg16: memref<2x16x64xf32, #tpu.memory_space<vmem>>) attributes {dimension_semantics = [#tpu.dimension_semantics<parallel>], iteration_bounds = array<i64: 1>, scalar_prefetch = 0 : i64, scratch_operands = 2 : i64, tpu.core_type = #tpu.core_type<tc>, window_params = [{transform_indices = @transform_0, window_bounds = array<i64: 2, 16, 64>}, {pipeline_mode = #tpu.pipeline_mode<synchronous>, transform_indices = @transform_1, window_bounds = array<i64: 3, 64, 16>}, {pipeline_mode = #tpu.pipeline_mode<synchronous>, transform_indices = @transform_2, window_bounds = array<i64: 1, 16>}, {pipeline_mode = #tpu.pipeline_mode<synchronous>, transform_indices = @transform_3, window_bounds = array<i64: 3, 16, 32>}, {pipeline_mode = #tpu.pipeline_mode<synchronous>, transform_indices = @transform_4, window_bounds = array<i64: 1, 32>}, {pipeline_mode = #tpu.pipeline_mode<synchronous>, transform_indices = @transform_5, window_bounds = array<i64: 32, 256>}, {pipeline_mode = #tpu.pipeline_mode<synchronous>, transform_indices = @transform_6, window_bounds = array<i64: 32, 128>}, {pipeline_mode = #tpu.pipeline_mode<synchronous>, transform_indices = @transform_7, window_bounds = array<i64: 32, 128>}, {pipeline_mode = #tpu.pipeline_mode<synchronous>, transform_indices = @transform_8, window_bounds = array<i64: 1, 256>}, {pipeline_mode = #tpu.pipeline_mode<synchronous>, transform_indices = @transform_9, window_bounds = array<i64: 3, 64, 16>}, {pipeline_mode = #tpu.pipeline_mode<synchronous>, transform_indices = @transform_10, window_bounds = array<i64: 1, 16>}, {pipeline_mode = #tpu.pipeline_mode<synchronous>, transform_indices = @transform_11, window_bounds = array<i64: 3, 16, 64>}, {pipeline_mode = #tpu.pipeline_mode<synchronous>, transform_indices = @transform_12, window_bounds = array<i64: 1, 64>}, {transform_indices = @transform_13, window_bounds = array<i64: 2, 16, 64>}]} {
    %c0 = arith.constant 0 : index
    %c0_0 = arith.constant 0 : index
    %c0_1 = arith.constant 0 : index
    %0 = vector.load %arg1[%c0, %c0_0, %c0_1] : memref<2x16x64xf32, #tpu.memory_space<vmem>>, vector<2x16x64xf32>
    %1 = vector.shape_cast %0 : vector<2x16x64xf32> to vector<32x64xf32>
    %2 = tpu.iota {dimensions = array<i32: 0>} : vector<32x1xi32>
    %c16_i32 = arith.constant 16 : i32
    %c0_i32 = arith.constant 0 : i32
    %3 = arith.cmpi eq, %c16_i32, %c0_i32 : i32
    %c1_i32 = arith.constant 1 : i32
    %4 = arith.select %3, %c1_i32, %c16_i32 : i32
    %5 = vector.broadcast %4 : i32 to vector<32x1xi32>
    %6 = arith.remsi %2, %5 : vector<32x1xi32>
    %c0_i32_2 = arith.constant 0 : i32
    %7 = vector.broadcast %c0_i32_2 : i32 to vector<32x1xi32>
    %8 = arith.cmpi ne, %6, %7 : vector<32x1xi32>
    %c0_i32_3 = arith.constant 0 : i32
    %9 = vector.broadcast %c0_i32_3 : i32 to vector<32x1xi32>
    %10 = arith.cmpi slt, %6, %9 : vector<32x1xi32>
    %c0_i32_4 = arith.constant 0 : i32
    %11 = arith.cmpi slt, %4, %c0_i32_4 : i32
    %12 = vector.broadcast %11 : i1 to vector<32x1xi1>
    %13 = vector.broadcast %12 : vector<32x1xi1> to vector<32x1xi1>
    %14 = arith.xori %10, %13 : vector<32x1xi1>
    %15 = arith.andi %14, %8 : vector<32x1xi1>
    %16 = vector.broadcast %4 : i32 to vector<32x1xi32>
    %17 = arith.addi %6, %16 : vector<32x1xi32>
    %18 = arith.select %15, %17, %6 : vector<32x1xi1>, vector<32x1xi32>
    %c0_i32_5 = arith.constant 0 : i32
    %19 = vector.broadcast %c0_i32_5 : i32 to vector<32x1xi32>
    %20 = arith.cmpi eq, %18, %19 : vector<32x1xi32>
    %c1_i32_6 = arith.constant 1 : i32
    %21 = tpu.dynamic_rotate %1 by %c1_i32_6 dim 0 : vector<32x64xf32>, i32 -> vector<32x64xf32>
    %cst = arith.constant 0.000000e+00 : f32
    %22 = vector.shape_cast %20 : vector<32x1xi1> to vector<32x1xi1>
    %23 = vector.broadcast %22 : vector<32x1xi1> to vector<32x64xi1>
    %24 = vector.broadcast %cst : f32 to vector<32x64xf32>
    %25 = arith.select %23, %24, %21 : vector<32x64xi1>, vector<32x64xf32>
    %c15_i32 = arith.constant 15 : i32
    %26 = vector.broadcast %c15_i32 : i32 to vector<32x1xi32>
    %27 = arith.cmpi eq, %18, %26 : vector<32x1xi32>
    %c31_i32 = arith.constant 31 : i32
    %28 = tpu.dynamic_rotate %1 by %c31_i32 dim 0 : vector<32x64xf32>, i32 -> vector<32x64xf32>
    %cst_7 = arith.constant 0.000000e+00 : f32
    %29 = vector.shape_cast %27 : vector<32x1xi1> to vector<32x1xi1>
    %30 = vector.broadcast %29 : vector<32x1xi1> to vector<32x64xi1>
    %31 = vector.broadcast %cst_7 : f32 to vector<32x64xf32>
    %32 = arith.select %30, %31, %28 : vector<32x64xi1>, vector<32x64xf32>
    %c0_8 = arith.constant 0 : index
    %c0_9 = arith.constant 0 : index
    %c0_10 = arith.constant 0 : index
    %33 = vector.load %arg2[%c0_8, %c0_9, %c0_10] : memref<3x64x16xf32, #tpu.memory_space<vmem>>, vector<1x64x16xf32>
    %34 = vector.shape_cast %33 : vector<1x64x16xf32> to vector<64x16xf32>
    %cst_11 = arith.constant dense<0.000000e+00> : vector<32x16xf32>
    %35 = tpu.matmul %25, %34, %cst_11 {dimension_numbers = #tpu.dot_dimension_numbers<[1], [0], [0], [1], [0, 0, 1, 1], [], []>} : vector<32x64xf32>, vector<64x16xf32>, vector<32x16xf32> -> vector<32x16xf32>
    %c1 = arith.constant 1 : index
    %c0_12 = arith.constant 0 : index
    %c0_13 = arith.constant 0 : index
    %36 = vector.load %arg2[%c1, %c0_12, %c0_13] : memref<3x64x16xf32, #tpu.memory_space<vmem>>, vector<1x64x16xf32>
    %37 = vector.shape_cast %36 : vector<1x64x16xf32> to vector<64x16xf32>
    %cst_14 = arith.constant dense<0.000000e+00> : vector<32x16xf32>
    %38 = tpu.matmul %1, %37, %cst_14 {dimension_numbers = #tpu.dot_dimension_numbers<[1], [0], [0], [1], [0, 0, 1, 1], [], []>} : vector<32x64xf32>, vector<64x16xf32>, vector<32x16xf32> -> vector<32x16xf32>
    %39 = arith.addf %35, %38 : vector<32x16xf32>
    %c2 = arith.constant 2 : index
    %c0_15 = arith.constant 0 : index
    %c0_16 = arith.constant 0 : index
    %40 = vector.load %arg2[%c2, %c0_15, %c0_16] : memref<3x64x16xf32, #tpu.memory_space<vmem>>, vector<1x64x16xf32>
    %41 = vector.shape_cast %40 : vector<1x64x16xf32> to vector<64x16xf32>
    %cst_17 = arith.constant dense<0.000000e+00> : vector<32x16xf32>
    %42 = tpu.matmul %32, %41, %cst_17 {dimension_numbers = #tpu.dot_dimension_numbers<[1], [0], [0], [1], [0, 0, 1, 1], [], []>} : vector<32x64xf32>, vector<64x16xf32>, vector<32x16xf32> -> vector<32x16xf32>
    %43 = arith.addf %39, %42 : vector<32x16xf32>
    %c0_18 = arith.constant 0 : index
    %c0_19 = arith.constant 0 : index
    %44 = vector.load %arg3[%c0_18, %c0_19] : memref<1x16xf32, #tpu.memory_space<vmem>>, vector<1x16xf32>
    %45 = vector.broadcast %44 : vector<1x16xf32> to vector<32x16xf32>
    %46 = arith.addf %43, %45 : vector<32x16xf32>
    %cst_20 = arith.constant 0.000000e+00 : f32
    %47 = vector.broadcast %cst_20 : f32 to vector<32x16xf32>
    %48 = arith.maximumf %46, %47 : vector<32x16xf32>
    %49 = tpu.iota {dimensions = array<i32: 0>} : vector<32x1xi32>
    %c16_i32_21 = arith.constant 16 : i32
    %c0_i32_22 = arith.constant 0 : i32
    %50 = arith.cmpi eq, %c16_i32_21, %c0_i32_22 : i32
    %c1_i32_23 = arith.constant 1 : i32
    %51 = arith.select %50, %c1_i32_23, %c16_i32_21 : i32
    %52 = vector.broadcast %51 : i32 to vector<32x1xi32>
    %53 = arith.remsi %49, %52 : vector<32x1xi32>
    %c0_i32_24 = arith.constant 0 : i32
    %54 = vector.broadcast %c0_i32_24 : i32 to vector<32x1xi32>
    %55 = arith.cmpi ne, %53, %54 : vector<32x1xi32>
    %c0_i32_25 = arith.constant 0 : i32
    %56 = vector.broadcast %c0_i32_25 : i32 to vector<32x1xi32>
    %57 = arith.cmpi slt, %53, %56 : vector<32x1xi32>
    %c0_i32_26 = arith.constant 0 : i32
    %58 = arith.cmpi slt, %51, %c0_i32_26 : i32
    %59 = vector.broadcast %58 : i1 to vector<32x1xi1>
    %60 = vector.broadcast %59 : vector<32x1xi1> to vector<32x1xi1>
    %61 = arith.xori %57, %60 : vector<32x1xi1>
    %62 = arith.andi %61, %55 : vector<32x1xi1>
    %63 = vector.broadcast %51 : i32 to vector<32x1xi32>
    %64 = arith.addi %53, %63 : vector<32x1xi32>
    %65 = arith.select %62, %64, %53 : vector<32x1xi1>, vector<32x1xi32>
    %c0_i32_27 = arith.constant 0 : i32
    %66 = vector.broadcast %c0_i32_27 : i32 to vector<32x1xi32>
    %67 = arith.cmpi eq, %65, %66 : vector<32x1xi32>
    %c1_i32_28 = arith.constant 1 : i32
    %68 = tpu.dynamic_rotate %48 by %c1_i32_28 dim 0 : vector<32x16xf32>, i32 -> vector<32x16xf32>
    %cst_29 = arith.constant 0.000000e+00 : f32
    %69 = vector.shape_cast %67 : vector<32x1xi1> to vector<32x1xi1>
    %70 = vector.broadcast %69 : vector<32x1xi1> to vector<32x16xi1>
    %71 = vector.broadcast %cst_29 : f32 to vector<32x16xf32>
    %72 = arith.select %70, %71, %68 : vector<32x16xi1>, vector<32x16xf32>
    %c15_i32_30 = arith.constant 15 : i32
    %73 = vector.broadcast %c15_i32_30 : i32 to vector<32x1xi32>
    %74 = arith.cmpi eq, %65, %73 : vector<32x1xi32>
    %c31_i32_31 = arith.constant 31 : i32
    %75 = tpu.dynamic_rotate %48 by %c31_i32_31 dim 0 : vector<32x16xf32>, i32 -> vector<32x16xf32>
    %cst_32 = arith.constant 0.000000e+00 : f32
    %76 = vector.shape_cast %74 : vector<32x1xi1> to vector<32x1xi1>
    %77 = vector.broadcast %76 : vector<32x1xi1> to vector<32x16xi1>
    %78 = vector.broadcast %cst_32 : f32 to vector<32x16xf32>
    %79 = arith.select %77, %78, %75 : vector<32x16xi1>, vector<32x16xf32>
    %c0_33 = arith.constant 0 : index
    %c0_34 = arith.constant 0 : index
    %c0_35 = arith.constant 0 : index
    %80 = vector.load %arg4[%c0_33, %c0_34, %c0_35] : memref<3x16x32xf32, #tpu.memory_space<vmem>>, vector<1x16x32xf32>
    %81 = vector.shape_cast %80 : vector<1x16x32xf32> to vector<16x32xf32>
    %cst_36 = arith.constant dense<0.000000e+00> : vector<32x32xf32>
    %82 = tpu.matmul %72, %81, %cst_36 {dimension_numbers = #tpu.dot_dimension_numbers<[1], [0], [0], [1], [0, 0, 1, 1], [], []>} : vector<32x16xf32>, vector<16x32xf32>, vector<32x32xf32> -> vector<32x32xf32>
    %c1_37 = arith.constant 1 : index
    %c0_38 = arith.constant 0 : index
    %c0_39 = arith.constant 0 : index
    %83 = vector.load %arg4[%c1_37, %c0_38, %c0_39] : memref<3x16x32xf32, #tpu.memory_space<vmem>>, vector<1x16x32xf32>
    %84 = vector.shape_cast %83 : vector<1x16x32xf32> to vector<16x32xf32>
    %cst_40 = arith.constant dense<0.000000e+00> : vector<32x32xf32>
    %85 = tpu.matmul %48, %84, %cst_40 {dimension_numbers = #tpu.dot_dimension_numbers<[1], [0], [0], [1], [0, 0, 1, 1], [], []>} : vector<32x16xf32>, vector<16x32xf32>, vector<32x32xf32> -> vector<32x32xf32>
    %86 = arith.addf %82, %85 : vector<32x32xf32>
    %c2_41 = arith.constant 2 : index
    %c0_42 = arith.constant 0 : index
    %c0_43 = arith.constant 0 : index
    %87 = vector.load %arg4[%c2_41, %c0_42, %c0_43] : memref<3x16x32xf32, #tpu.memory_space<vmem>>, vector<1x16x32xf32>
    %88 = vector.shape_cast %87 : vector<1x16x32xf32> to vector<16x32xf32>
    %cst_44 = arith.constant dense<0.000000e+00> : vector<32x32xf32>
    %89 = tpu.matmul %79, %88, %cst_44 {dimension_numbers = #tpu.dot_dimension_numbers<[1], [0], [0], [1], [0, 0, 1, 1], [], []>} : vector<32x16xf32>, vector<16x32xf32>, vector<32x32xf32> -> vector<32x32xf32>
    %90 = arith.addf %86, %89 : vector<32x32xf32>
    %c0_45 = arith.constant 0 : index
    %c0_46 = arith.constant 0 : index
    %91 = vector.load %arg5[%c0_45, %c0_46] : memref<1x32xf32, #tpu.memory_space<vmem>>, vector<1x32xf32>
    %92 = vector.broadcast %91 : vector<1x32xf32> to vector<32x32xf32>
    %93 = arith.addf %90, %92 : vector<32x32xf32>
    %cst_47 = arith.constant 0.000000e+00 : f32
    %94 = vector.broadcast %cst_47 : f32 to vector<32x32xf32>
    %95 = arith.maximumf %93, %94 : vector<32x32xf32>
    %c0_48 = arith.constant 0 : index
    %c0_49 = arith.constant 0 : index
    %96 = vector.load %arg6[%c0_48, %c0_49] : memref<32x256xf32, #tpu.memory_space<vmem>>, vector<32x256xf32>
    %cst_50 = arith.constant dense<0.000000e+00> : vector<32x256xf32>
    %97 = tpu.matmul %95, %96, %cst_50 {dimension_numbers = #tpu.dot_dimension_numbers<[1], [0], [0], [1], [0, 0, 1, 1], [], []>} : vector<32x32xf32>, vector<32x256xf32>, vector<32x256xf32> -> vector<32x256xf32>
    %c0_51 = arith.constant 0 : index
    %c0_52 = arith.constant 0 : index
    %98 = vector.load %arg9[%c0_51, %c0_52] : memref<1x256xf32, #tpu.memory_space<vmem>>, vector<1x256xf32>
    %99 = vector.broadcast %98 : vector<1x256xf32> to vector<32x256xf32>
    %100 = arith.addf %97, %99 : vector<32x256xf32>
    %101 = vector.shape_cast %100 : vector<32x256xf32> to vector<2x16x256xf32>
    %c0_53 = arith.constant 0 : index
    %c0_54 = arith.constant 0 : index
    %c0_55 = arith.constant 0 : index
    %102 = vector.load %arg15[%c0_53, %c0_54, %c0_55] : memref<2x16x256xf32, #tpu.memory_space<vmem>>, vector<2x16x256xf32>
    tpu.vector_store %arg15[%c0_53, %c0_54, %c0_55], %101 {strides = array<i32>} : memref<2x16x256xf32, #tpu.memory_space<vmem>>, vector<2x16x256xf32>,
    %c0_56 = arith.constant 0 : index
    %c0_57 = arith.constant 0 : index
    %103 = vector.load %arg7[%c0_56, %c0_57] : memref<32x128xf32, #tpu.memory_space<vmem>>, vector<32x128xf32>
    %c0_58 = arith.constant 0 : index
    %c0_59 = arith.constant 0 : index
    %104 = vector.load %arg8[%c0_58, %c0_59] : memref<32x128xf32, #tpu.memory_space<vmem>>, vector<32x128xf32>
    %cst_60 = arith.constant 0.000000e+00 : f32
    %105 = vector.broadcast %cst_60 : f32 to vector<2x32xf32>
    %cst_61 = arith.constant 0.000000e+00 : f32
    %106 = vector.broadcast %cst_61 : f32 to vector<2x32xf32>
    %cst_62 = arith.constant 0.000000e+00 : f32
    %107 = vector.broadcast %cst_62 : f32 to vector<2x32xf32>
    %cst_63 = arith.constant 0.000000e+00 : f32
    %108 = vector.broadcast %cst_63 : f32 to vector<2x32xf32>
    %c0_64 = arith.constant 0 : index
    %c0_65 = arith.constant 0 : index
    %c0_66 = arith.constant 0 : index
    %109 = vector.load %arg15[%c0_64, %c0_65, %c0_66] : memref<2x16x256xf32, #tpu.memory_space<vmem>>, vector<2x1x128xf32>
    %110 = vector.shape_cast %109 : vector<2x1x128xf32> to vector<2x128xf32>
    %c0_67 = arith.constant 0 : index
    %c15 = arith.constant 15 : index
    %c128 = arith.constant 128 : index
    %111 = vector.load %arg15[%c0_67, %c15, %c128] : memref<2x16x256xf32, #tpu.memory_space<vmem>>, vector<2x1x128xf32>
    %112 = vector.shape_cast %111 : vector<2x1x128xf32> to vector<2x128xf32>
    %cst_68 = arith.constant dense<0.000000e+00> : vector<2x128xf32>
    %113 = tpu.matmul %105, %103, %cst_68 {dimension_numbers = #tpu.dot_dimension_numbers<[1], [0], [0], [1], [0, 0, 1, 1], [], []>} : vector<2x32xf32>, vector<32x128xf32>, vector<2x128xf32> -> vector<2x128xf32>
    %114 = arith.addf %110, %113 : vector<2x128xf32>
    %115 = vector.extract_strided_slice %114 {offsets = [0, 0], sizes = [2, 32], strides = [1, 1]} : vector<2x128xf32> to vector<2x32xf32>
    %116 = arith.negf %115 : vector<2x32xf32>
    %117 = math.exp %116 : vector<2x32xf32>
    %cst_69 = arith.constant 1.000000e+00 : f32
    %118 = vector.broadcast %cst_69 : f32 to vector<2x32xf32>
    %119 = arith.addf %118, %117 : vector<2x32xf32>
    %120 = arith.divf %118, %119 : vector<2x32xf32>
    %121 = vector.extract_strided_slice %114 {offsets = [0, 32], sizes = [2, 32], strides = [1, 1]} : vector<2x128xf32> to vector<2x32xf32>
    %122 = arith.negf %121 : vector<2x32xf32>
    %123 = math.exp %122 : vector<2x32xf32>
    %cst_70 = arith.constant 1.000000e+00 : f32
    %124 = vector.broadcast %cst_70 : f32 to vector<2x32xf32>
    %125 = arith.addf %124, %123 : vector<2x32xf32>
    %126 = arith.divf %124, %125 : vector<2x32xf32>
    %127 = vector.extract_strided_slice %114 {offsets = [0, 64], sizes = [2, 32], strides = [1, 1]} : vector<2x128xf32> to vector<2x32xf32>
    %128 = math.tanh %127 : vector<2x32xf32>
    %129 = vector.extract_strided_slice %114 {offsets = [0, 96], sizes = [2, 32], strides = [1, 1]} : vector<2x128xf32> to vector<2x32xf32>
    %130 = arith.negf %129 : vector<2x32xf32>
    %131 = math.exp %130 : vector<2x32xf32>
    %cst_71 = arith.constant 1.000000e+00 : f32
    %132 = vector.broadcast %cst_71 : f32 to vector<2x32xf32>
    %133 = arith.addf %132, %131 : vector<2x32xf32>
    %134 = arith.divf %132, %133 : vector<2x32xf32>
    %135 = arith.mulf %126, %106 : vector<2x32xf32>
    %136 = arith.mulf %120, %128 : vector<2x32xf32>
    %137 = arith.addf %135, %136 : vector<2x32xf32>
    %138 = math.tanh %137 : vector<2x32xf32>
    %139 = arith.mulf %134, %138 : vector<2x32xf32>
    %cst_72 = arith.constant dense<0.000000e+00> : vector<2x128xf32>
    %140 = tpu.matmul %107, %104, %cst_72 {dimension_numbers = #tpu.dot_dimension_numbers<[1], [0], [0], [1], [0, 0, 1, 1], [], []>} : vector<2x32xf32>, vector<32x128xf32>, vector<2x128xf32> -> vector<2x128xf32>
    %141 = arith.addf %112, %140 : vector<2x128xf32>
    %142 = vector.extract_strided_slice %141 {offsets = [0, 0], sizes = [2, 32], strides = [1, 1]} : vector<2x128xf32> to vector<2x32xf32>
    %143 = arith.negf %142 : vector<2x32xf32>
    %144 = math.exp %143 : vector<2x32xf32>
    %cst_73 = arith.constant 1.000000e+00 : f32
    %145 = vector.broadcast %cst_73 : f32 to vector<2x32xf32>
    %146 = arith.addf %145, %144 : vector<2x32xf32>
    %147 = arith.divf %145, %146 : vector<2x32xf32>
    %148 = vector.extract_strided_slice %141 {offsets = [0, 32], sizes = [2, 32], strides = [1, 1]} : vector<2x128xf32> to vector<2x32xf32>
    %149 = arith.negf %148 : vector<2x32xf32>
    %150 = math.exp %149 : vector<2x32xf32>
    %cst_74 = arith.constant 1.000000e+00 : f32
    %151 = vector.broadcast %cst_74 : f32 to vector<2x32xf32>
    %152 = arith.addf %151, %150 : vector<2x32xf32>
    %153 = arith.divf %151, %152 : vector<2x32xf32>
    %154 = vector.extract_strided_slice %141 {offsets = [0, 64], sizes = [2, 32], strides = [1, 1]} : vector<2x128xf32> to vector<2x32xf32>
    %155 = math.tanh %154 : vector<2x32xf32>
    %156 = vector.extract_strided_slice %141 {offsets = [0, 96], sizes = [2, 32], strides = [1, 1]} : vector<2x128xf32> to vector<2x32xf32>
    %157 = arith.negf %156 : vector<2x32xf32>
    %158 = math.exp %157 : vector<2x32xf32>
    %cst_75 = arith.constant 1.000000e+00 : f32
    %159 = vector.broadcast %cst_75 : f32 to vector<2x32xf32>
    %160 = arith.addf %159, %158 : vector<2x32xf32>
    %161 = arith.divf %159, %160 : vector<2x32xf32>
    %162 = arith.mulf %153, %108 : vector<2x32xf32>
    %163 = arith.mulf %147, %155 : vector<2x32xf32>
    %164 = arith.addf %162, %163 : vector<2x32xf32>
    %165 = math.tanh %164 : vector<2x32xf32>
    %166 = arith.mulf %161, %165 : vector<2x32xf32>
    %167 = vector.shape_cast %139 : vector<2x32xf32> to vector<2x1x32xf32>
    %c0_76 = arith.constant 0 : index
    %c0_77 = arith.constant 0 : index
    %c0_78 = arith.constant 0 : index
    %168 = vector.load %arg16[%c0_76, %c0_77, %c0_78] : memref<2x16x64xf32, #tpu.memory_space<vmem>>, vector<2x1x32xf32>
    tpu.vector_store %arg16[%c0_76, %c0_77, %c0_78], %167 {strides = array<i32>} : memref<2x16x64xf32, #tpu.memory_space<vmem>>, vector<2x1x32xf32>,
    %169 = vector.shape_cast %166 : vector<2x32xf32> to vector<2x1x32xf32>
    %c0_79 = arith.constant 0 : index
    %c15_80 = arith.constant 15 : index
    %c32 = arith.constant 32 : index
    %170 = vector.load %arg16[%c0_79, %c15_80, %c32] : memref<2x16x64xf32, #tpu.memory_space<vmem>>, vector<2x1x32xf32>
    tpu.vector_store %arg16[%c0_79, %c15_80, %c32], %169 {strides = array<i32>} : memref<2x16x64xf32, #tpu.memory_space<vmem>>, vector<2x1x32xf32>,
    %c0_81 = arith.constant 0 : index
    %c1_82 = arith.constant 1 : index
    %c0_83 = arith.constant 0 : index
    %171 = vector.load %arg15[%c0_81, %c1_82, %c0_83] : memref<2x16x256xf32, #tpu.memory_space<vmem>>, vector<2x1x128xf32>
    %172 = vector.shape_cast %171 : vector<2x1x128xf32> to vector<2x128xf32>
    %c0_84 = arith.constant 0 : index
    %c14 = arith.constant 14 : index
    %c128_85 = arith.constant 128 : index
    %173 = vector.load %arg15[%c0_84, %c14, %c128_85] : memref<2x16x256xf32, #tpu.memory_space<vmem>>, vector<2x1x128xf32>
    %174 = vector.shape_cast %173 : vector<2x1x128xf32> to vector<2x128xf32>
    %cst_86 = arith.constant dense<0.000000e+00> : vector<2x128xf32>
    %175 = tpu.matmul %139, %103, %cst_86 {dimension_numbers = #tpu.dot_dimension_numbers<[1], [0], [0], [1], [0, 0, 1, 1], [], []>} : vector<2x32xf32>, vector<32x128xf32>, vector<2x128xf32> -> vector<2x128xf32>
    %176 = arith.addf %172, %175 : vector<2x128xf32>
    %177 = vector.extract_strided_slice %176 {offsets = [0, 0], sizes = [2, 32], strides = [1, 1]} : vector<2x128xf32> to vector<2x32xf32>
    %178 = arith.negf %177 : vector<2x32xf32>
    %179 = math.exp %178 : vector<2x32xf32>
    %cst_87 = arith.constant 1.000000e+00 : f32
    %180 = vector.broadcast %cst_87 : f32 to vector<2x32xf32>
    %181 = arith.addf %180, %179 : vector<2x32xf32>
    %182 = arith.divf %180, %181 : vector<2x32xf32>
    %183 = vector.extract_strided_slice %176 {offsets = [0, 32], sizes = [2, 32], strides = [1, 1]} : vector<2x128xf32> to vector<2x32xf32>
    %184 = arith.negf %183 : vector<2x32xf32>
    %185 = math.exp %184 : vector<2x32xf32>
    %cst_88 = arith.constant 1.000000e+00 : f32
    %186 = vector.broadcast %cst_88 : f32 to vector<2x32xf32>
    %187 = arith.addf %186, %185 : vector<2x32xf32>
    %188 = arith.divf %186, %187 : vector<2x32xf32>
    %189 = vector.extract_strided_slice %176 {offsets = [0, 64], sizes = [2, 32], strides = [1, 1]} : vector<2x128xf32> to vector<2x32xf32>
    %190 = math.tanh %189 : vector<2x32xf32>
    %191 = vector.extract_strided_slice %176 {offsets = [0, 96], sizes = [2, 32], strides = [1, 1]} : vector<2x128xf32> to vector<2x32xf32>
    %192 = arith.negf %191 : vector<2x32xf32>
    %193 = math.exp %192 : vector<2x32xf32>
    %cst_89 = arith.constant 1.000000e+00 : f32
    %194 = vector.broadcast %cst_89 : f32 to vector<2x32xf32>
    %195 = arith.addf %194, %193 : vector<2x32xf32>
    %196 = arith.divf %194, %195 : vector<2x32xf32>
    %197 = arith.mulf %188, %137 : vector<2x32xf32>
    %198 = arith.mulf %182, %190 : vector<2x32xf32>
    %199 = arith.addf %197, %198 : vector<2x32xf32>
    %200 = math.tanh %199 : vector<2x32xf32>
    %201 = arith.mulf %196, %200 : vector<2x32xf32>
    %cst_90 = arith.constant dense<0.000000e+00> : vector<2x128xf32>
    %202 = tpu.matmul %166, %104, %cst_90 {dimension_numbers = #tpu.dot_dimension_numbers<[1], [0], [0], [1], [0, 0, 1, 1], [], []>} : vector<2x32xf32>, vector<32x128xf32>, vector<2x128xf32> -> vector<2x128xf32>
    %203 = arith.addf %174, %202 : vector<2x128xf32>
    %204 = vector.extract_strided_slice %203 {offsets = [0, 0], sizes = [2, 32], strides = [1, 1]} : vector<2x128xf32> to vector<2x32xf32>
    %205 = arith.negf %204 : vector<2x32xf32>
    %206 = math.exp %205 : vector<2x32xf32>
    %cst_91 = arith.constant 1.000000e+00 : f32
    %207 = vector.broadcast %cst_91 : f32 to vector<2x32xf32>
    %208 = arith.addf %207, %206 : vector<2x32xf32>
    %209 = arith.divf %207, %208 : vector<2x32xf32>
    %210 = vector.extract_strided_slice %203 {offsets = [0, 32], sizes = [2, 32], strides = [1, 1]} : vector<2x128xf32> to vector<2x32xf32>
    %211 = arith.negf %210 : vector<2x32xf32>
    %212 = math.exp %211 : vector<2x32xf32>
    %cst_92 = arith.constant 1.000000e+00 : f32
    %213 = vector.broadcast %cst_92 : f32 to vector<2x32xf32>
    %214 = arith.addf %213, %212 : vector<2x32xf32>
    %215 = arith.divf %213, %214 : vector<2x32xf32>
    %216 = vector.extract_strided_slice %203 {offsets = [0, 64], sizes = [2, 32], strides = [1, 1]} : vector<2x128xf32> to vector<2x32xf32>
    %217 = math.tanh %216 : vector<2x32xf32>
    %218 = vector.extract_strided_slice %203 {offsets = [0, 96], sizes = [2, 32], strides = [1, 1]} : vector<2x128xf32> to vector<2x32xf32>
    %219 = arith.negf %218 : vector<2x32xf32>
    %220 = math.exp %219 : vector<2x32xf32>
    %cst_93 = arith.constant 1.000000e+00 : f32
    %221 = vector.broadcast %cst_93 : f32 to vector<2x32xf32>
    %222 = arith.addf %221, %220 : vector<2x32xf32>
    %223 = arith.divf %221, %222 : vector<2x32xf32>
    %224 = arith.mulf %215, %164 : vector<2x32xf32>
    %225 = arith.mulf %209, %217 : vector<2x32xf32>
    %226 = arith.addf %224, %225 : vector<2x32xf32>
    %227 = math.tanh %226 : vector<2x32xf32>
    %228 = arith.mulf %223, %227 : vector<2x32xf32>
    %229 = vector.shape_cast %201 : vector<2x32xf32> to vector<2x1x32xf32>
    %c0_94 = arith.constant 0 : index
    %c1_95 = arith.constant 1 : index
    %c0_96 = arith.constant 0 : index
    %230 = vector.load %arg16[%c0_94, %c1_95, %c0_96] : memref<2x16x64xf32, #tpu.memory_space<vmem>>, vector<2x1x32xf32>
    tpu.vector_store %arg16[%c0_94, %c1_95, %c0_96], %229 {strides = array<i32>} : memref<2x16x64xf32, #tpu.memory_space<vmem>>, vector<2x1x32xf32>,
    %231 = vector.shape_cast %228 : vector<2x32xf32> to vector<2x1x32xf32>
    %c0_97 = arith.constant 0 : index
    %c14_98 = arith.constant 14 : index
    %c32_99 = arith.constant 32 : index
    %232 = vector.load %arg16[%c0_97, %c14_98, %c32_99] : memref<2x16x64xf32, #tpu.memory_space<vmem>>, vector<2x1x32xf32>
    tpu.vector_store %arg16[%c0_97, %c14_98, %c32_99], %231 {strides = array<i32>} : memref<2x16x64xf32, #tpu.memory_space<vmem>>, vector<2x1x32xf32>,
    %c0_100 = arith.constant 0 : index
    %c2_101 = arith.constant 2 : index
    %c0_102 = arith.constant 0 : index
    %233 = vector.load %arg15[%c0_100, %c2_101, %c0_102] : memref<2x16x256xf32, #tpu.memory_space<vmem>>, vector<2x1x128xf32>
    %234 = vector.shape_cast %233 : vector<2x1x128xf32> to vector<2x128xf32>
    %c0_103 = arith.constant 0 : index
    %c13 = arith.constant 13 : index
    %c128_104 = arith.constant 128 : index
    %235 = vector.load %arg15[%c0_103, %c13, %c128_104] : memref<2x16x256xf32, #tpu.memory_space<vmem>>, vector<2x1x128xf32>
    %236 = vector.shape_cast %235 : vector<2x1x128xf32> to vector<2x128xf32>
    %cst_105 = arith.constant dense<0.000000e+00> : vector<2x128xf32>
    %237 = tpu.matmul %201, %103, %cst_105 {dimension_numbers = #tpu.dot_dimension_numbers<[1], [0], [0], [1], [0, 0, 1, 1], [], []>} : vector<2x32xf32>, vector<32x128xf32>, vector<2x128xf32> -> vector<2x128xf32>
    %238 = arith.addf %234, %237 : vector<2x128xf32>
    %239 = vector.extract_strided_slice %238 {offsets = [0, 0], sizes = [2, 32], strides = [1, 1]} : vector<2x128xf32> to vector<2x32xf32>
    %240 = arith.negf %239 : vector<2x32xf32>
    %241 = math.exp %240 : vector<2x32xf32>
    %cst_106 = arith.constant 1.000000e+00 : f32
    %242 = vector.broadcast %cst_106 : f32 to vector<2x32xf32>
    %243 = arith.addf %242, %241 : vector<2x32xf32>
    %244 = arith.divf %242, %243 : vector<2x32xf32>
    %245 = vector.extract_strided_slice %238 {offsets = [0, 32], sizes = [2, 32], strides = [1, 1]} : vector<2x128xf32> to vector<2x32xf32>
    %246 = arith.negf %245 : vector<2x32xf32>
    %247 = math.exp %246 : vector<2x32xf32>
    %cst_107 = arith.constant 1.000000e+00 : f32
    %248 = vector.broadcast %cst_107 : f32 to vector<2x32xf32>
    %249 = arith.addf %248, %247 : vector<2x32xf32>
    %250 = arith.divf %248, %249 : vector<2x32xf32>
    %251 = vector.extract_strided_slice %238 {offsets = [0, 64], sizes = [2, 32], strides = [1, 1]} : vector<2x128xf32> to vector<2x32xf32>
    %252 = math.tanh %251 : vector<2x32xf32>
    %253 = vector.extract_strided_slice %238 {offsets = [0, 96], sizes = [2, 32], strides = [1, 1]} : vector<2x128xf32> to vector<2x32xf32>
    %254 = arith.negf %253 : vector<2x32xf32>
    %255 = math.exp %254 : vector<2x32xf32>
    %cst_108 = arith.constant 1.000000e+00 : f32
    %256 = vector.broadcast %cst_108 : f32 to vector<2x32xf32>
    %257 = arith.addf %256, %255 : vector<2x32xf32>
    %258 = arith.divf %256, %257 : vector<2x32xf32>
    %259 = arith.mulf %250, %199 : vector<2x32xf32>
    %260 = arith.mulf %244, %252 : vector<2x32xf32>
    %261 = arith.addf %259, %260 : vector<2x32xf32>
    %262 = math.tanh %261 : vector<2x32xf32>
    %263 = arith.mulf %258, %262 : vector<2x32xf32>
    %cst_109 = arith.constant dense<0.000000e+00> : vector<2x128xf32>
    %264 = tpu.matmul %228, %104, %cst_109 {dimension_numbers = #tpu.dot_dimension_numbers<[1], [0], [0], [1], [0, 0, 1, 1], [], []>} : vector<2x32xf32>, vector<32x128xf32>, vector<2x128xf32> -> vector<2x128xf32>
    %265 = arith.addf %236, %264 : vector<2x128xf32>
    %266 = vector.extract_strided_slice %265 {offsets = [0, 0], sizes = [2, 32], strides = [1, 1]} : vector<2x128xf32> to vector<2x32xf32>
    %267 = arith.negf %266 : vector<2x32xf32>
    %268 = math.exp %267 : vector<2x32xf32>
    %cst_110 = arith.constant 1.000000e+00 : f32
    %269 = vector.broadcast %cst_110 : f32 to vector<2x32xf32>
    %270 = arith.addf %269, %268 : vector<2x32xf32>
    %271 = arith.divf %269, %270 : vector<2x32xf32>
    %272 = vector.extract_strided_slice %265 {offsets = [0, 32], sizes = [2, 32], strides = [1, 1]} : vector<2x128xf32> to vector<2x32xf32>
    %273 = arith.negf %272 : vector<2x32xf32>
    %274 = math.exp %273 : vector<2x32xf32>
    %cst_111 = arith.constant 1.000000e+00 : f32
    %275 = vector.broadcast %cst_111 : f32 to vector<2x32xf32>
    %276 = arith.addf %275, %274 : vector<2x32xf32>
    %277 = arith.divf %275, %276 : vector<2x32xf32>
    %278 = vector.extract_strided_slice %265 {offsets = [0, 64], sizes = [2, 32], strides = [1, 1]} : vector<2x128xf32> to vector<2x32xf32>
    %279 = math.tanh %278 : vector<2x32xf32>
    %280 = vector.extract_strided_slice %265 {offsets = [0, 96], sizes = [2, 32], strides = [1, 1]} : vector<2x128xf32> to vector<2x32xf32>
    %281 = arith.negf %280 : vector<2x32xf32>
    %282 = math.exp %281 : vector<2x32xf32>
    %cst_112 = arith.constant 1.000000e+00 : f32
    %283 = vector.broadcast %cst_112 : f32 to vector<2x32xf32>
    %284 = arith.addf %283, %282 : vector<2x32xf32>
    %285 = arith.divf %283, %284 : vector<2x32xf32>
    %286 = arith.mulf %277, %226 : vector<2x32xf32>
    %287 = arith.mulf %271, %279 : vector<2x32xf32>
    %288 = arith.addf %286, %287 : vector<2x32xf32>
    %289 = math.tanh %288 : vector<2x32xf32>
    %290 = arith.mulf %285, %289 : vector<2x32xf32>
    %291 = vector.shape_cast %263 : vector<2x32xf32> to vector<2x1x32xf32>
    %c0_113 = arith.constant 0 : index
    %c2_114 = arith.constant 2 : index
    %c0_115 = arith.constant 0 : index
    %292 = vector.load %arg16[%c0_113, %c2_114, %c0_115] : memref<2x16x64xf32, #tpu.memory_space<vmem>>, vector<2x1x32xf32>
    tpu.vector_store %arg16[%c0_113, %c2_114, %c0_115], %291 {strides = array<i32>} : memref<2x16x64xf32, #tpu.memory_space<vmem>>, vector<2x1x32xf32>,
    %293 = vector.shape_cast %290 : vector<2x32xf32> to vector<2x1x32xf32>
    %c0_116 = arith.constant 0 : index
    %c13_117 = arith.constant 13 : index
    %c32_118 = arith.constant 32 : index
    %294 = vector.load %arg16[%c0_116, %c13_117, %c32_118] : memref<2x16x64xf32, #tpu.memory_space<vmem>>, vector<2x1x32xf32>
    tpu.vector_store %arg16[%c0_116, %c13_117, %c32_118], %293 {strides = array<i32>} : memref<2x16x64xf32, #tpu.memory_space<vmem>>, vector<2x1x32xf32>,
    %c0_119 = arith.constant 0 : index
    %c3 = arith.constant 3 : index
    %c0_120 = arith.constant 0 : index
    %295 = vector.load %arg15[%c0_119, %c3, %c0_120] : memref<2x16x256xf32, #tpu.memory_space<vmem>>, vector<2x1x128xf32>
    %296 = vector.shape_cast %295 : vector<2x1x128xf32> to vector<2x128xf32>
    %c0_121 = arith.constant 0 : index
    %c12 = arith.constant 12 : index
    %c128_122 = arith.constant 128 : index
    %297 = vector.load %arg15[%c0_121, %c12, %c128_122] : memref<2x16x256xf32, #tpu.memory_space<vmem>>, vector<2x1x128xf32>
    %298 = vector.shape_cast %297 : vector<2x1x128xf32> to vector<2x128xf32>
    %cst_123 = arith.constant dense<0.000000e+00> : vector<2x128xf32>
    %299 = tpu.matmul %263, %103, %cst_123 {dimension_numbers = #tpu.dot_dimension_numbers<[1], [0], [0], [1], [0, 0, 1, 1], [], []>} : vector<2x32xf32>, vector<32x128xf32>, vector<2x128xf32> -> vector<2x128xf32>
    %300 = arith.addf %296, %299 : vector<2x128xf32>
    %301 = vector.extract_strided_slice %300 {offsets = [0, 0], sizes = [2, 32], strides = [1, 1]} : vector<2x128xf32> to vector<2x32xf32>
    %302 = arith.negf %301 : vector<2x32xf32>
    %303 = math.exp %302 : vector<2x32xf32>
    %cst_124 = arith.constant 1.000000e+00 : f32
    %304 = vector.broadcast %cst_124 : f32 to vector<2x32xf32>
    %305 = arith.addf %304, %303 : vector<2x32xf32>
    %306 = arith.divf %304, %305 : vector<2x32xf32>
    %307 = vector.extract_strided_slice %300 {offsets = [0, 32], sizes = [2, 32], strides = [1, 1]} : vector<2x128xf32> to vector<2x32xf32>
    %308 = arith.negf %307 : vector<2x32xf32>
    %309 = math.exp %308 : vector<2x32xf32>
    %cst_125 = arith.constant 1.000000e+00 : f32
    %310 = vector.broadcast %cst_125 : f32 to vector<2x32xf32>
    %311 = arith.addf %310, %309 : vector<2x32xf32>
    %312 = arith.divf %310, %311 : vector<2x32xf32>
    %313 = vector.extract_strided_slice %300 {offsets = [0, 64], sizes = [2, 32], strides = [1, 1]} : vector<2x128xf32> to vector<2x32xf32>
    %314 = math.tanh %313 : vector<2x32xf32>
    %315 = vector.extract_strided_slice %300 {offsets = [0, 96], sizes = [2, 32], strides = [1, 1]} : vector<2x128xf32> to vector<2x32xf32>
    %316 = arith.negf %315 : vector<2x32xf32>
    %317 = math.exp %316 : vector<2x32xf32>
    %cst_126 = arith.constant 1.000000e+00 : f32
    %318 = vector.broadcast %cst_126 : f32 to vector<2x32xf32>
    %319 = arith.addf %318, %317 : vector<2x32xf32>
    %320 = arith.divf %318, %319 : vector<2x32xf32>
    %321 = arith.mulf %312, %261 : vector<2x32xf32>
    %322 = arith.mulf %306, %314 : vector<2x32xf32>
    %323 = arith.addf %321, %322 : vector<2x32xf32>
    %324 = math.tanh %323 : vector<2x32xf32>
    %325 = arith.mulf %320, %324 : vector<2x32xf32>
    %cst_127 = arith.constant dense<0.000000e+00> : vector<2x128xf32>
    %326 = tpu.matmul %290, %104, %cst_127 {dimension_numbers = #tpu.dot_dimension_numbers<[1], [0], [0], [1], [0, 0, 1, 1], [], []>} : vector<2x32xf32>, vector<32x128xf32>, vector<2x128xf32> -> vector<2x128xf32>
    %327 = arith.addf %298, %326 : vector<2x128xf32>
    %328 = vector.extract_strided_slice %327 {offsets = [0, 0], sizes = [2, 32], strides = [1, 1]} : vector<2x128xf32> to vector<2x32xf32>
    %329 = arith.negf %328 : vector<2x32xf32>
    %330 = math.exp %329 : vector<2x32xf32>
    %cst_128 = arith.constant 1.000000e+00 : f32
    %331 = vector.broadcast %cst_128 : f32 to vector<2x32xf32>
    %332 = arith.addf %331, %330 : vector<2x32xf32>
    %333 = arith.divf %331, %332 : vector<2x32xf32>
    %334 = vector.extract_strided_slice %327 {offsets = [0, 32], sizes = [2, 32], strides = [1, 1]} : vector<2x128xf32> to vector<2x32xf32>
    %335 = arith.negf %334 : vector<2x32xf32>
    %336 = math.exp %335 : vector<2x32xf32>
    %cst_129 = arith.constant 1.000000e+00 : f32
    %337 = vector.broadcast %cst_129 : f32 to vector<2x32xf32>
    %338 = arith.addf %337, %336 : vector<2x32xf32>
    %339 = arith.divf %337, %338 : vector<2x32xf32>
    %340 = vector.extract_strided_slice %327 {offsets = [0, 64], sizes = [2, 32], strides = [1, 1]} : vector<2x128xf32> to vector<2x32xf32>
    %341 = math.tanh %340 : vector<2x32xf32>
    %342 = vector.extract_strided_slice %327 {offsets = [0, 96], sizes = [2, 32], strides = [1, 1]} : vector<2x128xf32> to vector<2x32xf32>
    %343 = arith.negf %342 : vector<2x32xf32>
    %344 = math.exp %343 : vector<2x32xf32>
    %cst_130 = arith.constant 1.000000e+00 : f32
    %345 = vector.broadcast %cst_130 : f32 to vector<2x32xf32>
    %346 = arith.addf %345, %344 : vector<2x32xf32>
    %347 = arith.divf %345, %346 : vector<2x32xf32>
    %348 = arith.mulf %339, %288 : vector<2x32xf32>
    %349 = arith.mulf %333, %341 : vector<2x32xf32>
    %350 = arith.addf %348, %349 : vector<2x32xf32>
    %351 = math.tanh %350 : vector<2x32xf32>
    %352 = arith.mulf %347, %351 : vector<2x32xf32>
    %353 = vector.shape_cast %325 : vector<2x32xf32> to vector<2x1x32xf32>
    %c0_131 = arith.constant 0 : index
    %c3_132 = arith.constant 3 : index
    %c0_133 = arith.constant 0 : index
    %354 = vector.load %arg16[%c0_131, %c3_132, %c0_133] : memref<2x16x64xf32, #tpu.memory_space<vmem>>, vector<2x1x32xf32>
    tpu.vector_store %arg16[%c0_131, %c3_132, %c0_133], %353 {strides = array<i32>} : memref<2x16x64xf32, #tpu.memory_space<vmem>>, vector<2x1x32xf32>,
    %355 = vector.shape_cast %352 : vector<2x32xf32> to vector<2x1x32xf32>
    %c0_134 = arith.constant 0 : index
    %c12_135 = arith.constant 12 : index
    %c32_136 = arith.constant 32 : index
    %356 = vector.load %arg16[%c0_134, %c12_135, %c32_136] : memref<2x16x64xf32, #tpu.memory_space<vmem>>, vector<2x1x32xf32>
    tpu.vector_store %arg16[%c0_134, %c12_135, %c32_136], %355 {strides = array<i32>} : memref<2x16x64xf32, #tpu.memory_space<vmem>>, vector<2x1x32xf32>,
    %c0_137 = arith.constant 0 : index
    %c4 = arith.constant 4 : index
    %c0_138 = arith.constant 0 : index
    %357 = vector.load %arg15[%c0_137, %c4, %c0_138] : memref<2x16x256xf32, #tpu.memory_space<vmem>>, vector<2x1x128xf32>
    %358 = vector.shape_cast %357 : vector<2x1x128xf32> to vector<2x128xf32>
    %c0_139 = arith.constant 0 : index
    %c11 = arith.constant 11 : index
    %c128_140 = arith.constant 128 : index
    %359 = vector.load %arg15[%c0_139, %c11, %c128_140] : memref<2x16x256xf32, #tpu.memory_space<vmem>>, vector<2x1x128xf32>
    %360 = vector.shape_cast %359 : vector<2x1x128xf32> to vector<2x128xf32>
    %cst_141 = arith.constant dense<0.000000e+00> : vector<2x128xf32>
    %361 = tpu.matmul %325, %103, %cst_141 {dimension_numbers = #tpu.dot_dimension_numbers<[1], [0], [0], [1], [0, 0, 1, 1], [], []>} : vector<2x32xf32>, vector<32x128xf32>, vector<2x128xf32> -> vector<2x128xf32>
    %362 = arith.addf %358, %361 : vector<2x128xf32>
    %363 = vector.extract_strided_slice %362 {offsets = [0, 0], sizes = [2, 32], strides = [1, 1]} : vector<2x128xf32> to vector<2x32xf32>
    %364 = arith.negf %363 : vector<2x32xf32>
    %365 = math.exp %364 : vector<2x32xf32>
    %cst_142 = arith.constant 1.000000e+00 : f32
    %366 = vector.broadcast %cst_142 : f32 to vector<2x32xf32>
    %367 = arith.addf %366, %365 : vector<2x32xf32>
    %368 = arith.divf %366, %367 : vector<2x32xf32>
    %369 = vector.extract_strided_slice %362 {offsets = [0, 32], sizes = [2, 32], strides = [1, 1]} : vector<2x128xf32> to vector<2x32xf32>
    %370 = arith.negf %369 : vector<2x32xf32>
    %371 = math.exp %370 : vector<2x32xf32>
    %cst_143 = arith.constant 1.000000e+00 : f32
    %372 = vector.broadcast %cst_143 : f32 to vector<2x32xf32>
    %373 = arith.addf %372, %371 : vector<2x32xf32>
    %374 = arith.divf %372, %373 : vector<2x32xf32>
    %375 = vector.extract_strided_slice %362 {offsets = [0, 64], sizes = [2, 32], strides = [1, 1]} : vector<2x128xf32> to vector<2x32xf32>
    %376 = math.tanh %375 : vector<2x32xf32>
    %377 = vector.extract_strided_slice %362 {offsets = [0, 96], sizes = [2, 32], strides = [1, 1]} : vector<2x128xf32> to vector<2x32xf32>
    %378 = arith.negf %377 : vector<2x32xf32>
    %379 = math.exp %378 : vector<2x32xf32>
    %cst_144 = arith.constant 1.000000e+00 : f32
    %380 = vector.broadcast %cst_144 : f32 to vector<2x32xf32>
    %381 = arith.addf %380, %379 : vector<2x32xf32>
    %382 = arith.divf %380, %381 : vector<2x32xf32>
    %383 = arith.mulf %374, %323 : vector<2x32xf32>
    %384 = arith.mulf %368, %376 : vector<2x32xf32>
    %385 = arith.addf %383, %384 : vector<2x32xf32>
    %386 = math.tanh %385 : vector<2x32xf32>
    %387 = arith.mulf %382, %386 : vector<2x32xf32>
    %cst_145 = arith.constant dense<0.000000e+00> : vector<2x128xf32>
    %388 = tpu.matmul %352, %104, %cst_145 {dimension_numbers = #tpu.dot_dimension_numbers<[1], [0], [0], [1], [0, 0, 1, 1], [], []>} : vector<2x32xf32>, vector<32x128xf32>, vector<2x128xf32> -> vector<2x128xf32>
    %389 = arith.addf %360, %388 : vector<2x128xf32>
    %390 = vector.extract_strided_slice %389 {offsets = [0, 0], sizes = [2, 32], strides = [1, 1]} : vector<2x128xf32> to vector<2x32xf32>
    %391 = arith.negf %390 : vector<2x32xf32>
    %392 = math.exp %391 : vector<2x32xf32>
    %cst_146 = arith.constant 1.000000e+00 : f32
    %393 = vector.broadcast %cst_146 : f32 to vector<2x32xf32>
    %394 = arith.addf %393, %392 : vector<2x32xf32>
    %395 = arith.divf %393, %394 : vector<2x32xf32>
    %396 = vector.extract_strided_slice %389 {offsets = [0, 32], sizes = [2, 32], strides = [1, 1]} : vector<2x128xf32> to vector<2x32xf32>
    %397 = arith.negf %396 : vector<2x32xf32>
    %398 = math.exp %397 : vector<2x32xf32>
    %cst_147 = arith.constant 1.000000e+00 : f32
    %399 = vector.broadcast %cst_147 : f32 to vector<2x32xf32>
    %400 = arith.addf %399, %398 : vector<2x32xf32>
    %401 = arith.divf %399, %400 : vector<2x32xf32>
    %402 = vector.extract_strided_slice %389 {offsets = [0, 64], sizes = [2, 32], strides = [1, 1]} : vector<2x128xf32> to vector<2x32xf32>
    %403 = math.tanh %402 : vector<2x32xf32>
    %404 = vector.extract_strided_slice %389 {offsets = [0, 96], sizes = [2, 32], strides = [1, 1]} : vector<2x128xf32> to vector<2x32xf32>
    %405 = arith.negf %404 : vector<2x32xf32>
    %406 = math.exp %405 : vector<2x32xf32>
    %cst_148 = arith.constant 1.000000e+00 : f32
    %407 = vector.broadcast %cst_148 : f32 to vector<2x32xf32>
    %408 = arith.addf %407, %406 : vector<2x32xf32>
    %409 = arith.divf %407, %408 : vector<2x32xf32>
    %410 = arith.mulf %401, %350 : vector<2x32xf32>
    %411 = arith.mulf %395, %403 : vector<2x32xf32>
    %412 = arith.addf %410, %411 : vector<2x32xf32>
    %413 = math.tanh %412 : vector<2x32xf32>
    %414 = arith.mulf %409, %413 : vector<2x32xf32>
    %415 = vector.shape_cast %387 : vector<2x32xf32> to vector<2x1x32xf32>
    %c0_149 = arith.constant 0 : index
    %c4_150 = arith.constant 4 : index
    %c0_151 = arith.constant 0 : index
    %416 = vector.load %arg16[%c0_149, %c4_150, %c0_151] : memref<2x16x64xf32, #tpu.memory_space<vmem>>, vector<2x1x32xf32>
    tpu.vector_store %arg16[%c0_149, %c4_150, %c0_151], %415 {strides = array<i32>} : memref<2x16x64xf32, #tpu.memory_space<vmem>>, vector<2x1x32xf32>,
    %417 = vector.shape_cast %414 : vector<2x32xf32> to vector<2x1x32xf32>
    %c0_152 = arith.constant 0 : index
    %c11_153 = arith.constant 11 : index
    %c32_154 = arith.constant 32 : index
    %418 = vector.load %arg16[%c0_152, %c11_153, %c32_154] : memref<2x16x64xf32, #tpu.memory_space<vmem>>, vector<2x1x32xf32>
    tpu.vector_store %arg16[%c0_152, %c11_153, %c32_154], %417 {strides = array<i32>} : memref<2x16x64xf32, #tpu.memory_space<vmem>>, vector<2x1x32xf32>,
    %c0_155 = arith.constant 0 : index
    %c5 = arith.constant 5 : index
    %c0_156 = arith.constant 0 : index
    %419 = vector.load %arg15[%c0_155, %c5, %c0_156] : memref<2x16x256xf32, #tpu.memory_space<vmem>>, vector<2x1x128xf32>
    %420 = vector.shape_cast %419 : vector<2x1x128xf32> to vector<2x128xf32>
    %c0_157 = arith.constant 0 : index
    %c10 = arith.constant 10 : index
    %c128_158 = arith.constant 128 : index
    %421 = vector.load %arg15[%c0_157, %c10, %c128_158] : memref<2x16x256xf32, #tpu.memory_space<vmem>>, vector<2x1x128xf32>
    %422 = vector.shape_cast %421 : vector<2x1x128xf32> to vector<2x128xf32>
    %cst_159 = arith.constant dense<0.000000e+00> : vector<2x128xf32>
    %423 = tpu.matmul %387, %103, %cst_159 {dimension_numbers = #tpu.dot_dimension_numbers<[1], [0], [0], [1], [0, 0, 1, 1], [], []>} : vector<2x32xf32>, vector<32x128xf32>, vector<2x128xf32> -> vector<2x128xf32>
    %424 = arith.addf %420, %423 : vector<2x128xf32>
    %425 = vector.extract_strided_slice %424 {offsets = [0, 0], sizes = [2, 32], strides = [1, 1]} : vector<2x128xf32> to vector<2x32xf32>
    %426 = arith.negf %425 : vector<2x32xf32>
    %427 = math.exp %426 : vector<2x32xf32>
    %cst_160 = arith.constant 1.000000e+00 : f32
    %428 = vector.broadcast %cst_160 : f32 to vector<2x32xf32>
    %429 = arith.addf %428, %427 : vector<2x32xf32>
    %430 = arith.divf %428, %429 : vector<2x32xf32>
    %431 = vector.extract_strided_slice %424 {offsets = [0, 32], sizes = [2, 32], strides = [1, 1]} : vector<2x128xf32> to vector<2x32xf32>
    %432 = arith.negf %431 : vector<2x32xf32>
    %433 = math.exp %432 : vector<2x32xf32>
    %cst_161 = arith.constant 1.000000e+00 : f32
    %434 = vector.broadcast %cst_161 : f32 to vector<2x32xf32>
    %435 = arith.addf %434, %433 : vector<2x32xf32>
    %436 = arith.divf %434, %435 : vector<2x32xf32>
    %437 = vector.extract_strided_slice %424 {offsets = [0, 64], sizes = [2, 32], strides = [1, 1]} : vector<2x128xf32> to vector<2x32xf32>
    %438 = math.tanh %437 : vector<2x32xf32>
    %439 = vector.extract_strided_slice %424 {offsets = [0, 96], sizes = [2, 32], strides = [1, 1]} : vector<2x128xf32> to vector<2x32xf32>
    %440 = arith.negf %439 : vector<2x32xf32>
    %441 = math.exp %440 : vector<2x32xf32>
    %cst_162 = arith.constant 1.000000e+00 : f32
    %442 = vector.broadcast %cst_162 : f32 to vector<2x32xf32>
    %443 = arith.addf %442, %441 : vector<2x32xf32>
    %444 = arith.divf %442, %443 : vector<2x32xf32>
    %445 = arith.mulf %436, %385 : vector<2x32xf32>
    %446 = arith.mulf %430, %438 : vector<2x32xf32>
    %447 = arith.addf %445, %446 : vector<2x32xf32>
    %448 = math.tanh %447 : vector<2x32xf32>
    %449 = arith.mulf %444, %448 : vector<2x32xf32>
    %cst_163 = arith.constant dense<0.000000e+00> : vector<2x128xf32>
    %450 = tpu.matmul %414, %104, %cst_163 {dimension_numbers = #tpu.dot_dimension_numbers<[1], [0], [0], [1], [0, 0, 1, 1], [], []>} : vector<2x32xf32>, vector<32x128xf32>, vector<2x128xf32> -> vector<2x128xf32>
    %451 = arith.addf %422, %450 : vector<2x128xf32>
    %452 = vector.extract_strided_slice %451 {offsets = [0, 0], sizes = [2, 32], strides = [1, 1]} : vector<2x128xf32> to vector<2x32xf32>
    %453 = arith.negf %452 : vector<2x32xf32>
    %454 = math.exp %453 : vector<2x32xf32>
    %cst_164 = arith.constant 1.000000e+00 : f32
    %455 = vector.broadcast %cst_164 : f32 to vector<2x32xf32>
    %456 = arith.addf %455, %454 : vector<2x32xf32>
    %457 = arith.divf %455, %456 : vector<2x32xf32>
    %458 = vector.extract_strided_slice %451 {offsets = [0, 32], sizes = [2, 32], strides = [1, 1]} : vector<2x128xf32> to vector<2x32xf32>
    %459 = arith.negf %458 : vector<2x32xf32>
    %460 = math.exp %459 : vector<2x32xf32>
    %cst_165 = arith.constant 1.000000e+00 : f32
    %461 = vector.broadcast %cst_165 : f32 to vector<2x32xf32>
    %462 = arith.addf %461, %460 : vector<2x32xf32>
    %463 = arith.divf %461, %462 : vector<2x32xf32>
    %464 = vector.extract_strided_slice %451 {offsets = [0, 64], sizes = [2, 32], strides = [1, 1]} : vector<2x128xf32> to vector<2x32xf32>
    %465 = math.tanh %464 : vector<2x32xf32>
    %466 = vector.extract_strided_slice %451 {offsets = [0, 96], sizes = [2, 32], strides = [1, 1]} : vector<2x128xf32> to vector<2x32xf32>
    %467 = arith.negf %466 : vector<2x32xf32>
    %468 = math.exp %467 : vector<2x32xf32>
    %cst_166 = arith.constant 1.000000e+00 : f32
    %469 = vector.broadcast %cst_166 : f32 to vector<2x32xf32>
    %470 = arith.addf %469, %468 : vector<2x32xf32>
    %471 = arith.divf %469, %470 : vector<2x32xf32>
    %472 = arith.mulf %463, %412 : vector<2x32xf32>
    %473 = arith.mulf %457, %465 : vector<2x32xf32>
    %474 = arith.addf %472, %473 : vector<2x32xf32>
    %475 = math.tanh %474 : vector<2x32xf32>
    %476 = arith.mulf %471, %475 : vector<2x32xf32>
    %477 = vector.shape_cast %449 : vector<2x32xf32> to vector<2x1x32xf32>
    %c0_167 = arith.constant 0 : index
    %c5_168 = arith.constant 5 : index
    %c0_169 = arith.constant 0 : index
    %478 = vector.load %arg16[%c0_167, %c5_168, %c0_169] : memref<2x16x64xf32, #tpu.memory_space<vmem>>, vector<2x1x32xf32>
    tpu.vector_store %arg16[%c0_167, %c5_168, %c0_169], %477 {strides = array<i32>} : memref<2x16x64xf32, #tpu.memory_space<vmem>>, vector<2x1x32xf32>,
    %479 = vector.shape_cast %476 : vector<2x32xf32> to vector<2x1x32xf32>
    %c0_170 = arith.constant 0 : index
    %c10_171 = arith.constant 10 : index
    %c32_172 = arith.constant 32 : index
    %480 = vector.load %arg16[%c0_170, %c10_171, %c32_172] : memref<2x16x64xf32, #tpu.memory_space<vmem>>, vector<2x1x32xf32>
    tpu.vector_store %arg16[%c0_170, %c10_171, %c32_172], %479 {strides = array<i32>} : memref<2x16x64xf32, #tpu.memory_space<vmem>>, vector<2x1x32xf32>,
    %c0_173 = arith.constant 0 : index
    %c6 = arith.constant 6 : index
    %c0_174 = arith.constant 0 : index
    %481 = vector.load %arg15[%c0_173, %c6, %c0_174] : memref<2x16x256xf32, #tpu.memory_space<vmem>>, vector<2x1x128xf32>
    %482 = vector.shape_cast %481 : vector<2x1x128xf32> to vector<2x128xf32>
    %c0_175 = arith.constant 0 : index
    %c9 = arith.constant 9 : index
    %c128_176 = arith.constant 128 : index
    %483 = vector.load %arg15[%c0_175, %c9, %c128_176] : memref<2x16x256xf32, #tpu.memory_space<vmem>>, vector<2x1x128xf32>
    %484 = vector.shape_cast %483 : vector<2x1x128xf32> to vector<2x128xf32>
    %cst_177 = arith.constant dense<0.000000e+00> : vector<2x128xf32>
    %485 = tpu.matmul %449, %103, %cst_177 {dimension_numbers = #tpu.dot_dimension_numbers<[1], [0], [0], [1], [0, 0, 1, 1], [], []>} : vector<2x32xf32>, vector<32x128xf32>, vector<2x128xf32> -> vector<2x128xf32>
    %486 = arith.addf %482, %485 : vector<2x128xf32>
    %487 = vector.extract_strided_slice %486 {offsets = [0, 0], sizes = [2, 32], strides = [1, 1]} : vector<2x128xf32> to vector<2x32xf32>
    %488 = arith.negf %487 : vector<2x32xf32>
    %489 = math.exp %488 : vector<2x32xf32>
    %cst_178 = arith.constant 1.000000e+00 : f32
    %490 = vector.broadcast %cst_178 : f32 to vector<2x32xf32>
    %491 = arith.addf %490, %489 : vector<2x32xf32>
    %492 = arith.divf %490, %491 : vector<2x32xf32>
    %493 = vector.extract_strided_slice %486 {offsets = [0, 32], sizes = [2, 32], strides = [1, 1]} : vector<2x128xf32> to vector<2x32xf32>
    %494 = arith.negf %493 : vector<2x32xf32>
    %495 = math.exp %494 : vector<2x32xf32>
    %cst_179 = arith.constant 1.000000e+00 : f32
    %496 = vector.broadcast %cst_179 : f32 to vector<2x32xf32>
    %497 = arith.addf %496, %495 : vector<2x32xf32>
    %498 = arith.divf %496, %497 : vector<2x32xf32>
    %499 = vector.extract_strided_slice %486 {offsets = [0, 64], sizes = [2, 32], strides = [1, 1]} : vector<2x128xf32> to vector<2x32xf32>
    %500 = math.tanh %499 : vector<2x32xf32>
    %501 = vector.extract_strided_slice %486 {offsets = [0, 96], sizes = [2, 32], strides = [1, 1]} : vector<2x128xf32> to vector<2x32xf32>
    %502 = arith.negf %501 : vector<2x32xf32>
    %503 = math.exp %502 : vector<2x32xf32>
    %cst_180 = arith.constant 1.000000e+00 : f32
    %504 = vector.broadcast %cst_180 : f32 to vector<2x32xf32>
    %505 = arith.addf %504, %503 : vector<2x32xf32>
    %506 = arith.divf %504, %505 : vector<2x32xf32>
    %507 = arith.mulf %498, %447 : vector<2x32xf32>
    %508 = arith.mulf %492, %500 : vector<2x32xf32>
    %509 = arith.addf %507, %508 : vector<2x32xf32>
    %510 = math.tanh %509 : vector<2x32xf32>
    %511 = arith.mulf %506, %510 : vector<2x32xf32>
    %cst_181 = arith.constant dense<0.000000e+00> : vector<2x128xf32>
    %512 = tpu.matmul %476, %104, %cst_181 {dimension_numbers = #tpu.dot_dimension_numbers<[1], [0], [0], [1], [0, 0, 1, 1], [], []>} : vector<2x32xf32>, vector<32x128xf32>, vector<2x128xf32> -> vector<2x128xf32>
    %513 = arith.addf %484, %512 : vector<2x128xf32>
    %514 = vector.extract_strided_slice %513 {offsets = [0, 0], sizes = [2, 32], strides = [1, 1]} : vector<2x128xf32> to vector<2x32xf32>
    %515 = arith.negf %514 : vector<2x32xf32>
    %516 = math.exp %515 : vector<2x32xf32>
    %cst_182 = arith.constant 1.000000e+00 : f32
    %517 = vector.broadcast %cst_182 : f32 to vector<2x32xf32>
    %518 = arith.addf %517, %516 : vector<2x32xf32>
    %519 = arith.divf %517, %518 : vector<2x32xf32>
    %520 = vector.extract_strided_slice %513 {offsets = [0, 32], sizes = [2, 32], strides = [1, 1]} : vector<2x128xf32> to vector<2x32xf32>
    %521 = arith.negf %520 : vector<2x32xf32>
    %522 = math.exp %521 : vector<2x32xf32>
    %cst_183 = arith.constant 1.000000e+00 : f32
    %523 = vector.broadcast %cst_183 : f32 to vector<2x32xf32>
    %524 = arith.addf %523, %522 : vector<2x32xf32>
    %525 = arith.divf %523, %524 : vector<2x32xf32>
    %526 = vector.extract_strided_slice %513 {offsets = [0, 64], sizes = [2, 32], strides = [1, 1]} : vector<2x128xf32> to vector<2x32xf32>
    %527 = math.tanh %526 : vector<2x32xf32>
    %528 = vector.extract_strided_slice %513 {offsets = [0, 96], sizes = [2, 32], strides = [1, 1]} : vector<2x128xf32> to vector<2x32xf32>
    %529 = arith.negf %528 : vector<2x32xf32>
    %530 = math.exp %529 : vector<2x32xf32>
    %cst_184 = arith.constant 1.000000e+00 : f32
    %531 = vector.broadcast %cst_184 : f32 to vector<2x32xf32>
    %532 = arith.addf %531, %530 : vector<2x32xf32>
    %533 = arith.divf %531, %532 : vector<2x32xf32>
    %534 = arith.mulf %525, %474 : vector<2x32xf32>
    %535 = arith.mulf %519, %527 : vector<2x32xf32>
    %536 = arith.addf %534, %535 : vector<2x32xf32>
    %537 = math.tanh %536 : vector<2x32xf32>
    %538 = arith.mulf %533, %537 : vector<2x32xf32>
    %539 = vector.shape_cast %511 : vector<2x32xf32> to vector<2x1x32xf32>
    %c0_185 = arith.constant 0 : index
    %c6_186 = arith.constant 6 : index
    %c0_187 = arith.constant 0 : index
    %540 = vector.load %arg16[%c0_185, %c6_186, %c0_187] : memref<2x16x64xf32, #tpu.memory_space<vmem>>, vector<2x1x32xf32>
    tpu.vector_store %arg16[%c0_185, %c6_186, %c0_187], %539 {strides = array<i32>} : memref<2x16x64xf32, #tpu.memory_space<vmem>>, vector<2x1x32xf32>,
    %541 = vector.shape_cast %538 : vector<2x32xf32> to vector<2x1x32xf32>
    %c0_188 = arith.constant 0 : index
    %c9_189 = arith.constant 9 : index
    %c32_190 = arith.constant 32 : index
    %542 = vector.load %arg16[%c0_188, %c9_189, %c32_190] : memref<2x16x64xf32, #tpu.memory_space<vmem>>, vector<2x1x32xf32>
    tpu.vector_store %arg16[%c0_188, %c9_189, %c32_190], %541 {strides = array<i32>} : memref<2x16x64xf32, #tpu.memory_space<vmem>>, vector<2x1x32xf32>,
    %c0_191 = arith.constant 0 : index
    %c7 = arith.constant 7 : index
    %c0_192 = arith.constant 0 : index
    %543 = vector.load %arg15[%c0_191, %c7, %c0_192] : memref<2x16x256xf32, #tpu.memory_space<vmem>>, vector<2x1x128xf32>
    %544 = vector.shape_cast %543 : vector<2x1x128xf32> to vector<2x128xf32>
    %c0_193 = arith.constant 0 : index
    %c8 = arith.constant 8 : index
    %c128_194 = arith.constant 128 : index
    %545 = vector.load %arg15[%c0_193, %c8, %c128_194] : memref<2x16x256xf32, #tpu.memory_space<vmem>>, vector<2x1x128xf32>
    %546 = vector.shape_cast %545 : vector<2x1x128xf32> to vector<2x128xf32>
    %cst_195 = arith.constant dense<0.000000e+00> : vector<2x128xf32>
    %547 = tpu.matmul %511, %103, %cst_195 {dimension_numbers = #tpu.dot_dimension_numbers<[1], [0], [0], [1], [0, 0, 1, 1], [], []>} : vector<2x32xf32>, vector<32x128xf32>, vector<2x128xf32> -> vector<2x128xf32>
    %548 = arith.addf %544, %547 : vector<2x128xf32>
    %549 = vector.extract_strided_slice %548 {offsets = [0, 0], sizes = [2, 32], strides = [1, 1]} : vector<2x128xf32> to vector<2x32xf32>
    %550 = arith.negf %549 : vector<2x32xf32>
    %551 = math.exp %550 : vector<2x32xf32>
    %cst_196 = arith.constant 1.000000e+00 : f32
    %552 = vector.broadcast %cst_196 : f32 to vector<2x32xf32>
    %553 = arith.addf %552, %551 : vector<2x32xf32>
    %554 = arith.divf %552, %553 : vector<2x32xf32>
    %555 = vector.extract_strided_slice %548 {offsets = [0, 32], sizes = [2, 32], strides = [1, 1]} : vector<2x128xf32> to vector<2x32xf32>
    %556 = arith.negf %555 : vector<2x32xf32>
    %557 = math.exp %556 : vector<2x32xf32>
    %cst_197 = arith.constant 1.000000e+00 : f32
    %558 = vector.broadcast %cst_197 : f32 to vector<2x32xf32>
    %559 = arith.addf %558, %557 : vector<2x32xf32>
    %560 = arith.divf %558, %559 : vector<2x32xf32>
    %561 = vector.extract_strided_slice %548 {offsets = [0, 64], sizes = [2, 32], strides = [1, 1]} : vector<2x128xf32> to vector<2x32xf32>
    %562 = math.tanh %561 : vector<2x32xf32>
    %563 = vector.extract_strided_slice %548 {offsets = [0, 96], sizes = [2, 32], strides = [1, 1]} : vector<2x128xf32> to vector<2x32xf32>
    %564 = arith.negf %563 : vector<2x32xf32>
    %565 = math.exp %564 : vector<2x32xf32>
    %cst_198 = arith.constant 1.000000e+00 : f32
    %566 = vector.broadcast %cst_198 : f32 to vector<2x32xf32>
    %567 = arith.addf %566, %565 : vector<2x32xf32>
    %568 = arith.divf %566, %567 : vector<2x32xf32>
    %569 = arith.mulf %560, %509 : vector<2x32xf32>
    %570 = arith.mulf %554, %562 : vector<2x32xf32>
    %571 = arith.addf %569, %570 : vector<2x32xf32>
    %572 = math.tanh %571 : vector<2x32xf32>
    %573 = arith.mulf %568, %572 : vector<2x32xf32>
    %cst_199 = arith.constant dense<0.000000e+00> : vector<2x128xf32>
    %574 = tpu.matmul %538, %104, %cst_199 {dimension_numbers = #tpu.dot_dimension_numbers<[1], [0], [0], [1], [0, 0, 1, 1], [], []>} : vector<2x32xf32>, vector<32x128xf32>, vector<2x128xf32> -> vector<2x128xf32>
    %575 = arith.addf %546, %574 : vector<2x128xf32>
    %576 = vector.extract_strided_slice %575 {offsets = [0, 0], sizes = [2, 32], strides = [1, 1]} : vector<2x128xf32> to vector<2x32xf32>
    %577 = arith.negf %576 : vector<2x32xf32>
    %578 = math.exp %577 : vector<2x32xf32>
    %cst_200 = arith.constant 1.000000e+00 : f32
    %579 = vector.broadcast %cst_200 : f32 to vector<2x32xf32>
    %580 = arith.addf %579, %578 : vector<2x32xf32>
    %581 = arith.divf %579, %580 : vector<2x32xf32>
    %582 = vector.extract_strided_slice %575 {offsets = [0, 32], sizes = [2, 32], strides = [1, 1]} : vector<2x128xf32> to vector<2x32xf32>
    %583 = arith.negf %582 : vector<2x32xf32>
    %584 = math.exp %583 : vector<2x32xf32>
    %cst_201 = arith.constant 1.000000e+00 : f32
    %585 = vector.broadcast %cst_201 : f32 to vector<2x32xf32>
    %586 = arith.addf %585, %584 : vector<2x32xf32>
    %587 = arith.divf %585, %586 : vector<2x32xf32>
    %588 = vector.extract_strided_slice %575 {offsets = [0, 64], sizes = [2, 32], strides = [1, 1]} : vector<2x128xf32> to vector<2x32xf32>
    %589 = math.tanh %588 : vector<2x32xf32>
    %590 = vector.extract_strided_slice %575 {offsets = [0, 96], sizes = [2, 32], strides = [1, 1]} : vector<2x128xf32> to vector<2x32xf32>
    %591 = arith.negf %590 : vector<2x32xf32>
    %592 = math.exp %591 : vector<2x32xf32>
    %cst_202 = arith.constant 1.000000e+00 : f32
    %593 = vector.broadcast %cst_202 : f32 to vector<2x32xf32>
    %594 = arith.addf %593, %592 : vector<2x32xf32>
    %595 = arith.divf %593, %594 : vector<2x32xf32>
    %596 = arith.mulf %587, %536 : vector<2x32xf32>
    %597 = arith.mulf %581, %589 : vector<2x32xf32>
    %598 = arith.addf %596, %597 : vector<2x32xf32>
    %599 = math.tanh %598 : vector<2x32xf32>
    %600 = arith.mulf %595, %599 : vector<2x32xf32>
    %601 = vector.shape_cast %573 : vector<2x32xf32> to vector<2x1x32xf32>
    %c0_203 = arith.constant 0 : index
    %c7_204 = arith.constant 7 : index
    %c0_205 = arith.constant 0 : index
    %602 = vector.load %arg16[%c0_203, %c7_204, %c0_205] : memref<2x16x64xf32, #tpu.memory_space<vmem>>, vector<2x1x32xf32>
    tpu.vector_store %arg16[%c0_203, %c7_204, %c0_205], %601 {strides = array<i32>} : memref<2x16x64xf32, #tpu.memory_space<vmem>>, vector<2x1x32xf32>,
    %603 = vector.shape_cast %600 : vector<2x32xf32> to vector<2x1x32xf32>
    %c0_206 = arith.constant 0 : index
    %c8_207 = arith.constant 8 : index
    %c32_208 = arith.constant 32 : index
    %604 = vector.load %arg16[%c0_206, %c8_207, %c32_208] : memref<2x16x64xf32, #tpu.memory_space<vmem>>, vector<2x1x32xf32>
    tpu.vector_store %arg16[%c0_206, %c8_207, %c32_208], %603 {strides = array<i32>} : memref<2x16x64xf32, #tpu.memory_space<vmem>>, vector<2x1x32xf32>,
    %c0_209 = arith.constant 0 : index
    %c8_210 = arith.constant 8 : index
    %c0_211 = arith.constant 0 : index
    %605 = vector.load %arg15[%c0_209, %c8_210, %c0_211] : memref<2x16x256xf32, #tpu.memory_space<vmem>>, vector<2x1x128xf32>
    %606 = vector.shape_cast %605 : vector<2x1x128xf32> to vector<2x128xf32>
    %c0_212 = arith.constant 0 : index
    %c7_213 = arith.constant 7 : index
    %c128_214 = arith.constant 128 : index
    %607 = vector.load %arg15[%c0_212, %c7_213, %c128_214] : memref<2x16x256xf32, #tpu.memory_space<vmem>>, vector<2x1x128xf32>
    %608 = vector.shape_cast %607 : vector<2x1x128xf32> to vector<2x128xf32>
    %cst_215 = arith.constant dense<0.000000e+00> : vector<2x128xf32>
    %609 = tpu.matmul %573, %103, %cst_215 {dimension_numbers = #tpu.dot_dimension_numbers<[1], [0], [0], [1], [0, 0, 1, 1], [], []>} : vector<2x32xf32>, vector<32x128xf32>, vector<2x128xf32> -> vector<2x128xf32>
    %610 = arith.addf %606, %609 : vector<2x128xf32>
    %611 = vector.extract_strided_slice %610 {offsets = [0, 0], sizes = [2, 32], strides = [1, 1]} : vector<2x128xf32> to vector<2x32xf32>
    %612 = arith.negf %611 : vector<2x32xf32>
    %613 = math.exp %612 : vector<2x32xf32>
    %cst_216 = arith.constant 1.000000e+00 : f32
    %614 = vector.broadcast %cst_216 : f32 to vector<2x32xf32>
    %615 = arith.addf %614, %613 : vector<2x32xf32>
    %616 = arith.divf %614, %615 : vector<2x32xf32>
    %617 = vector.extract_strided_slice %610 {offsets = [0, 32], sizes = [2, 32], strides = [1, 1]} : vector<2x128xf32> to vector<2x32xf32>
    %618 = arith.negf %617 : vector<2x32xf32>
    %619 = math.exp %618 : vector<2x32xf32>
    %cst_217 = arith.constant 1.000000e+00 : f32
    %620 = vector.broadcast %cst_217 : f32 to vector<2x32xf32>
    %621 = arith.addf %620, %619 : vector<2x32xf32>
    %622 = arith.divf %620, %621 : vector<2x32xf32>
    %623 = vector.extract_strided_slice %610 {offsets = [0, 64], sizes = [2, 32], strides = [1, 1]} : vector<2x128xf32> to vector<2x32xf32>
    %624 = math.tanh %623 : vector<2x32xf32>
    %625 = vector.extract_strided_slice %610 {offsets = [0, 96], sizes = [2, 32], strides = [1, 1]} : vector<2x128xf32> to vector<2x32xf32>
    %626 = arith.negf %625 : vector<2x32xf32>
    %627 = math.exp %626 : vector<2x32xf32>
    %cst_218 = arith.constant 1.000000e+00 : f32
    %628 = vector.broadcast %cst_218 : f32 to vector<2x32xf32>
    %629 = arith.addf %628, %627 : vector<2x32xf32>
    %630 = arith.divf %628, %629 : vector<2x32xf32>
    %631 = arith.mulf %622, %571 : vector<2x32xf32>
    %632 = arith.mulf %616, %624 : vector<2x32xf32>
    %633 = arith.addf %631, %632 : vector<2x32xf32>
    %634 = math.tanh %633 : vector<2x32xf32>
    %635 = arith.mulf %630, %634 : vector<2x32xf32>
    %cst_219 = arith.constant dense<0.000000e+00> : vector<2x128xf32>
    %636 = tpu.matmul %600, %104, %cst_219 {dimension_numbers = #tpu.dot_dimension_numbers<[1], [0], [0], [1], [0, 0, 1, 1], [], []>} : vector<2x32xf32>, vector<32x128xf32>, vector<2x128xf32> -> vector<2x128xf32>
    %637 = arith.addf %608, %636 : vector<2x128xf32>
    %638 = vector.extract_strided_slice %637 {offsets = [0, 0], sizes = [2, 32], strides = [1, 1]} : vector<2x128xf32> to vector<2x32xf32>
    %639 = arith.negf %638 : vector<2x32xf32>
    %640 = math.exp %639 : vector<2x32xf32>
    %cst_220 = arith.constant 1.000000e+00 : f32
    %641 = vector.broadcast %cst_220 : f32 to vector<2x32xf32>
    %642 = arith.addf %641, %640 : vector<2x32xf32>
    %643 = arith.divf %641, %642 : vector<2x32xf32>
    %644 = vector.extract_strided_slice %637 {offsets = [0, 32], sizes = [2, 32], strides = [1, 1]} : vector<2x128xf32> to vector<2x32xf32>
    %645 = arith.negf %644 : vector<2x32xf32>
    %646 = math.exp %645 : vector<2x32xf32>
    %cst_221 = arith.constant 1.000000e+00 : f32
    %647 = vector.broadcast %cst_221 : f32 to vector<2x32xf32>
    %648 = arith.addf %647, %646 : vector<2x32xf32>
    %649 = arith.divf %647, %648 : vector<2x32xf32>
    %650 = vector.extract_strided_slice %637 {offsets = [0, 64], sizes = [2, 32], strides = [1, 1]} : vector<2x128xf32> to vector<2x32xf32>
    %651 = math.tanh %650 : vector<2x32xf32>
    %652 = vector.extract_strided_slice %637 {offsets = [0, 96], sizes = [2, 32], strides = [1, 1]} : vector<2x128xf32> to vector<2x32xf32>
    %653 = arith.negf %652 : vector<2x32xf32>
    %654 = math.exp %653 : vector<2x32xf32>
    %cst_222 = arith.constant 1.000000e+00 : f32
    %655 = vector.broadcast %cst_222 : f32 to vector<2x32xf32>
    %656 = arith.addf %655, %654 : vector<2x32xf32>
    %657 = arith.divf %655, %656 : vector<2x32xf32>
    %658 = arith.mulf %649, %598 : vector<2x32xf32>
    %659 = arith.mulf %643, %651 : vector<2x32xf32>
    %660 = arith.addf %658, %659 : vector<2x32xf32>
    %661 = math.tanh %660 : vector<2x32xf32>
    %662 = arith.mulf %657, %661 : vector<2x32xf32>
    %663 = vector.shape_cast %635 : vector<2x32xf32> to vector<2x1x32xf32>
    %c0_223 = arith.constant 0 : index
    %c8_224 = arith.constant 8 : index
    %c0_225 = arith.constant 0 : index
    %664 = vector.load %arg16[%c0_223, %c8_224, %c0_225] : memref<2x16x64xf32, #tpu.memory_space<vmem>>, vector<2x1x32xf32>
    tpu.vector_store %arg16[%c0_223, %c8_224, %c0_225], %663 {strides = array<i32>} : memref<2x16x64xf32, #tpu.memory_space<vmem>>, vector<2x1x32xf32>,
    %665 = vector.shape_cast %662 : vector<2x32xf32> to vector<2x1x32xf32>
    %c0_226 = arith.constant 0 : index
    %c7_227 = arith.constant 7 : index
    %c32_228 = arith.constant 32 : index
    %666 = vector.load %arg16[%c0_226, %c7_227, %c32_228] : memref<2x16x64xf32, #tpu.memory_space<vmem>>, vector<2x1x32xf32>
    tpu.vector_store %arg16[%c0_226, %c7_227, %c32_228], %665 {strides = array<i32>} : memref<2x16x64xf32, #tpu.memory_space<vmem>>, vector<2x1x32xf32>,
    %c0_229 = arith.constant 0 : index
    %c9_230 = arith.constant 9 : index
    %c0_231 = arith.constant 0 : index
    %667 = vector.load %arg15[%c0_229, %c9_230, %c0_231] : memref<2x16x256xf32, #tpu.memory_space<vmem>>, vector<2x1x128xf32>
    %668 = vector.shape_cast %667 : vector<2x1x128xf32> to vector<2x128xf32>
    %c0_232 = arith.constant 0 : index
    %c6_233 = arith.constant 6 : index
    %c128_234 = arith.constant 128 : index
    %669 = vector.load %arg15[%c0_232, %c6_233, %c128_234] : memref<2x16x256xf32, #tpu.memory_space<vmem>>, vector<2x1x128xf32>
    %670 = vector.shape_cast %669 : vector<2x1x128xf32> to vector<2x128xf32>
    %cst_235 = arith.constant dense<0.000000e+00> : vector<2x128xf32>
    %671 = tpu.matmul %635, %103, %cst_235 {dimension_numbers = #tpu.dot_dimension_numbers<[1], [0], [0], [1], [0, 0, 1, 1], [], []>} : vector<2x32xf32>, vector<32x128xf32>, vector<2x128xf32> -> vector<2x128xf32>
    %672 = arith.addf %668, %671 : vector<2x128xf32>
    %673 = vector.extract_strided_slice %672 {offsets = [0, 0], sizes = [2, 32], strides = [1, 1]} : vector<2x128xf32> to vector<2x32xf32>
    %674 = arith.negf %673 : vector<2x32xf32>
    %675 = math.exp %674 : vector<2x32xf32>
    %cst_236 = arith.constant 1.000000e+00 : f32
    %676 = vector.broadcast %cst_236 : f32 to vector<2x32xf32>
    %677 = arith.addf %676, %675 : vector<2x32xf32>
    %678 = arith.divf %676, %677 : vector<2x32xf32>
    %679 = vector.extract_strided_slice %672 {offsets = [0, 32], sizes = [2, 32], strides = [1, 1]} : vector<2x128xf32> to vector<2x32xf32>
    %680 = arith.negf %679 : vector<2x32xf32>
    %681 = math.exp %680 : vector<2x32xf32>
    %cst_237 = arith.constant 1.000000e+00 : f32
    %682 = vector.broadcast %cst_237 : f32 to vector<2x32xf32>
    %683 = arith.addf %682, %681 : vector<2x32xf32>
    %684 = arith.divf %682, %683 : vector<2x32xf32>
    %685 = vector.extract_strided_slice %672 {offsets = [0, 64], sizes = [2, 32], strides = [1, 1]} : vector<2x128xf32> to vector<2x32xf32>
    %686 = math.tanh %685 : vector<2x32xf32>
    %687 = vector.extract_strided_slice %672 {offsets = [0, 96], sizes = [2, 32], strides = [1, 1]} : vector<2x128xf32> to vector<2x32xf32>
    %688 = arith.negf %687 : vector<2x32xf32>
    %689 = math.exp %688 : vector<2x32xf32>
    %cst_238 = arith.constant 1.000000e+00 : f32
    %690 = vector.broadcast %cst_238 : f32 to vector<2x32xf32>
    %691 = arith.addf %690, %689 : vector<2x32xf32>
    %692 = arith.divf %690, %691 : vector<2x32xf32>
    %693 = arith.mulf %684, %633 : vector<2x32xf32>
    %694 = arith.mulf %678, %686 : vector<2x32xf32>
    %695 = arith.addf %693, %694 : vector<2x32xf32>
    %696 = math.tanh %695 : vector<2x32xf32>
    %697 = arith.mulf %692, %696 : vector<2x32xf32>
    %cst_239 = arith.constant dense<0.000000e+00> : vector<2x128xf32>
    %698 = tpu.matmul %662, %104, %cst_239 {dimension_numbers = #tpu.dot_dimension_numbers<[1], [0], [0], [1], [0, 0, 1, 1], [], []>} : vector<2x32xf32>, vector<32x128xf32>, vector<2x128xf32> -> vector<2x128xf32>
    %699 = arith.addf %670, %698 : vector<2x128xf32>
    %700 = vector.extract_strided_slice %699 {offsets = [0, 0], sizes = [2, 32], strides = [1, 1]} : vector<2x128xf32> to vector<2x32xf32>
    %701 = arith.negf %700 : vector<2x32xf32>
    %702 = math.exp %701 : vector<2x32xf32>
    %cst_240 = arith.constant 1.000000e+00 : f32
    %703 = vector.broadcast %cst_240 : f32 to vector<2x32xf32>
    %704 = arith.addf %703, %702 : vector<2x32xf32>
    %705 = arith.divf %703, %704 : vector<2x32xf32>
    %706 = vector.extract_strided_slice %699 {offsets = [0, 32], sizes = [2, 32], strides = [1, 1]} : vector<2x128xf32> to vector<2x32xf32>
    %707 = arith.negf %706 : vector<2x32xf32>
    %708 = math.exp %707 : vector<2x32xf32>
    %cst_241 = arith.constant 1.000000e+00 : f32
    %709 = vector.broadcast %cst_241 : f32 to vector<2x32xf32>
    %710 = arith.addf %709, %708 : vector<2x32xf32>
    %711 = arith.divf %709, %710 : vector<2x32xf32>
    %712 = vector.extract_strided_slice %699 {offsets = [0, 64], sizes = [2, 32], strides = [1, 1]} : vector<2x128xf32> to vector<2x32xf32>
    %713 = math.tanh %712 : vector<2x32xf32>
    %714 = vector.extract_strided_slice %699 {offsets = [0, 96], sizes = [2, 32], strides = [1, 1]} : vector<2x128xf32> to vector<2x32xf32>
    %715 = arith.negf %714 : vector<2x32xf32>
    %716 = math.exp %715 : vector<2x32xf32>
    %cst_242 = arith.constant 1.000000e+00 : f32
    %717 = vector.broadcast %cst_242 : f32 to vector<2x32xf32>
    %718 = arith.addf %717, %716 : vector<2x32xf32>
    %719 = arith.divf %717, %718 : vector<2x32xf32>
    %720 = arith.mulf %711, %660 : vector<2x32xf32>
    %721 = arith.mulf %705, %713 : vector<2x32xf32>
    %722 = arith.addf %720, %721 : vector<2x32xf32>
    %723 = math.tanh %722 : vector<2x32xf32>
    %724 = arith.mulf %719, %723 : vector<2x32xf32>
    %725 = vector.shape_cast %697 : vector<2x32xf32> to vector<2x1x32xf32>
    %c0_243 = arith.constant 0 : index
    %c9_244 = arith.constant 9 : index
    %c0_245 = arith.constant 0 : index
    %726 = vector.load %arg16[%c0_243, %c9_244, %c0_245] : memref<2x16x64xf32, #tpu.memory_space<vmem>>, vector<2x1x32xf32>
    tpu.vector_store %arg16[%c0_243, %c9_244, %c0_245], %725 {strides = array<i32>} : memref<2x16x64xf32, #tpu.memory_space<vmem>>, vector<2x1x32xf32>,
    %727 = vector.shape_cast %724 : vector<2x32xf32> to vector<2x1x32xf32>
    %c0_246 = arith.constant 0 : index
    %c6_247 = arith.constant 6 : index
    %c32_248 = arith.constant 32 : index
    %728 = vector.load %arg16[%c0_246, %c6_247, %c32_248] : memref<2x16x64xf32, #tpu.memory_space<vmem>>, vector<2x1x32xf32>
    tpu.vector_store %arg16[%c0_246, %c6_247, %c32_248], %727 {strides = array<i32>} : memref<2x16x64xf32, #tpu.memory_space<vmem>>, vector<2x1x32xf32>,
    %c0_249 = arith.constant 0 : index
    %c10_250 = arith.constant 10 : index
    %c0_251 = arith.constant 0 : index
    %729 = vector.load %arg15[%c0_249, %c10_250, %c0_251] : memref<2x16x256xf32, #tpu.memory_space<vmem>>, vector<2x1x128xf32>
    %730 = vector.shape_cast %729 : vector<2x1x128xf32> to vector<2x128xf32>
    %c0_252 = arith.constant 0 : index
    %c5_253 = arith.constant 5 : index
    %c128_254 = arith.constant 128 : index
    %731 = vector.load %arg15[%c0_252, %c5_253, %c128_254] : memref<2x16x256xf32, #tpu.memory_space<vmem>>, vector<2x1x128xf32>
    %732 = vector.shape_cast %731 : vector<2x1x128xf32> to vector<2x128xf32>
    %cst_255 = arith.constant dense<0.000000e+00> : vector<2x128xf32>
    %733 = tpu.matmul %697, %103, %cst_255 {dimension_numbers = #tpu.dot_dimension_numbers<[1], [0], [0], [1], [0, 0, 1, 1], [], []>} : vector<2x32xf32>, vector<32x128xf32>, vector<2x128xf32> -> vector<2x128xf32>
    %734 = arith.addf %730, %733 : vector<2x128xf32>
    %735 = vector.extract_strided_slice %734 {offsets = [0, 0], sizes = [2, 32], strides = [1, 1]} : vector<2x128xf32> to vector<2x32xf32>
    %736 = arith.negf %735 : vector<2x32xf32>
    %737 = math.exp %736 : vector<2x32xf32>
    %cst_256 = arith.constant 1.000000e+00 : f32
    %738 = vector.broadcast %cst_256 : f32 to vector<2x32xf32>
    %739 = arith.addf %738, %737 : vector<2x32xf32>
    %740 = arith.divf %738, %739 : vector<2x32xf32>
    %741 = vector.extract_strided_slice %734 {offsets = [0, 32], sizes = [2, 32], strides = [1, 1]} : vector<2x128xf32> to vector<2x32xf32>
    %742 = arith.negf %741 : vector<2x32xf32>
    %743 = math.exp %742 : vector<2x32xf32>
    %cst_257 = arith.constant 1.000000e+00 : f32
    %744 = vector.broadcast %cst_257 : f32 to vector<2x32xf32>
    %745 = arith.addf %744, %743 : vector<2x32xf32>
    %746 = arith.divf %744, %745 : vector<2x32xf32>
    %747 = vector.extract_strided_slice %734 {offsets = [0, 64], sizes = [2, 32], strides = [1, 1]} : vector<2x128xf32> to vector<2x32xf32>
    %748 = math.tanh %747 : vector<2x32xf32>
    %749 = vector.extract_strided_slice %734 {offsets = [0, 96], sizes = [2, 32], strides = [1, 1]} : vector<2x128xf32> to vector<2x32xf32>
    %750 = arith.negf %749 : vector<2x32xf32>
    %751 = math.exp %750 : vector<2x32xf32>
    %cst_258 = arith.constant 1.000000e+00 : f32
    %752 = vector.broadcast %cst_258 : f32 to vector<2x32xf32>
    %753 = arith.addf %752, %751 : vector<2x32xf32>
    %754 = arith.divf %752, %753 : vector<2x32xf32>
    %755 = arith.mulf %746, %695 : vector<2x32xf32>
    %756 = arith.mulf %740, %748 : vector<2x32xf32>
    %757 = arith.addf %755, %756 : vector<2x32xf32>
    %758 = math.tanh %757 : vector<2x32xf32>
    %759 = arith.mulf %754, %758 : vector<2x32xf32>
    %cst_259 = arith.constant dense<0.000000e+00> : vector<2x128xf32>
    %760 = tpu.matmul %724, %104, %cst_259 {dimension_numbers = #tpu.dot_dimension_numbers<[1], [0], [0], [1], [0, 0, 1, 1], [], []>} : vector<2x32xf32>, vector<32x128xf32>, vector<2x128xf32> -> vector<2x128xf32>
    %761 = arith.addf %732, %760 : vector<2x128xf32>
    %762 = vector.extract_strided_slice %761 {offsets = [0, 0], sizes = [2, 32], strides = [1, 1]} : vector<2x128xf32> to vector<2x32xf32>
    %763 = arith.negf %762 : vector<2x32xf32>
    %764 = math.exp %763 : vector<2x32xf32>
    %cst_260 = arith.constant 1.000000e+00 : f32
    %765 = vector.broadcast %cst_260 : f32 to vector<2x32xf32>
    %766 = arith.addf %765, %764 : vector<2x32xf32>
    %767 = arith.divf %765, %766 : vector<2x32xf32>
    %768 = vector.extract_strided_slice %761 {offsets = [0, 32], sizes = [2, 32], strides = [1, 1]} : vector<2x128xf32> to vector<2x32xf32>
    %769 = arith.negf %768 : vector<2x32xf32>
    %770 = math.exp %769 : vector<2x32xf32>
    %cst_261 = arith.constant 1.000000e+00 : f32
    %771 = vector.broadcast %cst_261 : f32 to vector<2x32xf32>
    %772 = arith.addf %771, %770 : vector<2x32xf32>
    %773 = arith.divf %771, %772 : vector<2x32xf32>
    %774 = vector.extract_strided_slice %761 {offsets = [0, 64], sizes = [2, 32], strides = [1, 1]} : vector<2x128xf32> to vector<2x32xf32>
    %775 = math.tanh %774 : vector<2x32xf32>
    %776 = vector.extract_strided_slice %761 {offsets = [0, 96], sizes = [2, 32], strides = [1, 1]} : vector<2x128xf32> to vector<2x32xf32>
    %777 = arith.negf %776 : vector<2x32xf32>
    %778 = math.exp %777 : vector<2x32xf32>
    %cst_262 = arith.constant 1.000000e+00 : f32
    %779 = vector.broadcast %cst_262 : f32 to vector<2x32xf32>
    %780 = arith.addf %779, %778 : vector<2x32xf32>
    %781 = arith.divf %779, %780 : vector<2x32xf32>
    %782 = arith.mulf %773, %722 : vector<2x32xf32>
    %783 = arith.mulf %767, %775 : vector<2x32xf32>
    %784 = arith.addf %782, %783 : vector<2x32xf32>
    %785 = math.tanh %784 : vector<2x32xf32>
    %786 = arith.mulf %781, %785 : vector<2x32xf32>
    %787 = vector.shape_cast %759 : vector<2x32xf32> to vector<2x1x32xf32>
    %c0_263 = arith.constant 0 : index
    %c10_264 = arith.constant 10 : index
    %c0_265 = arith.constant 0 : index
    %788 = vector.load %arg16[%c0_263, %c10_264, %c0_265] : memref<2x16x64xf32, #tpu.memory_space<vmem>>, vector<2x1x32xf32>
    tpu.vector_store %arg16[%c0_263, %c10_264, %c0_265], %787 {strides = array<i32>} : memref<2x16x64xf32, #tpu.memory_space<vmem>>, vector<2x1x32xf32>,
    %789 = vector.shape_cast %786 : vector<2x32xf32> to vector<2x1x32xf32>
    %c0_266 = arith.constant 0 : index
    %c5_267 = arith.constant 5 : index
    %c32_268 = arith.constant 32 : index
    %790 = vector.load %arg16[%c0_266, %c5_267, %c32_268] : memref<2x16x64xf32, #tpu.memory_space<vmem>>, vector<2x1x32xf32>
    tpu.vector_store %arg16[%c0_266, %c5_267, %c32_268], %789 {strides = array<i32>} : memref<2x16x64xf32, #tpu.memory_space<vmem>>, vector<2x1x32xf32>,
    %c0_269 = arith.constant 0 : index
    %c11_270 = arith.constant 11 : index
    %c0_271 = arith.constant 0 : index
    %791 = vector.load %arg15[%c0_269, %c11_270, %c0_271] : memref<2x16x256xf32, #tpu.memory_space<vmem>>, vector<2x1x128xf32>
    %792 = vector.shape_cast %791 : vector<2x1x128xf32> to vector<2x128xf32>
    %c0_272 = arith.constant 0 : index
    %c4_273 = arith.constant 4 : index
    %c128_274 = arith.constant 128 : index
    %793 = vector.load %arg15[%c0_272, %c4_273, %c128_274] : memref<2x16x256xf32, #tpu.memory_space<vmem>>, vector<2x1x128xf32>
    %794 = vector.shape_cast %793 : vector<2x1x128xf32> to vector<2x128xf32>
    %cst_275 = arith.constant dense<0.000000e+00> : vector<2x128xf32>
    %795 = tpu.matmul %759, %103, %cst_275 {dimension_numbers = #tpu.dot_dimension_numbers<[1], [0], [0], [1], [0, 0, 1, 1], [], []>} : vector<2x32xf32>, vector<32x128xf32>, vector<2x128xf32> -> vector<2x128xf32>
    %796 = arith.addf %792, %795 : vector<2x128xf32>
    %797 = vector.extract_strided_slice %796 {offsets = [0, 0], sizes = [2, 32], strides = [1, 1]} : vector<2x128xf32> to vector<2x32xf32>
    %798 = arith.negf %797 : vector<2x32xf32>
    %799 = math.exp %798 : vector<2x32xf32>
    %cst_276 = arith.constant 1.000000e+00 : f32
    %800 = vector.broadcast %cst_276 : f32 to vector<2x32xf32>
    %801 = arith.addf %800, %799 : vector<2x32xf32>
    %802 = arith.divf %800, %801 : vector<2x32xf32>
    %803 = vector.extract_strided_slice %796 {offsets = [0, 32], sizes = [2, 32], strides = [1, 1]} : vector<2x128xf32> to vector<2x32xf32>
    %804 = arith.negf %803 : vector<2x32xf32>
    %805 = math.exp %804 : vector<2x32xf32>
    %cst_277 = arith.constant 1.000000e+00 : f32
    %806 = vector.broadcast %cst_277 : f32 to vector<2x32xf32>
    %807 = arith.addf %806, %805 : vector<2x32xf32>
    %808 = arith.divf %806, %807 : vector<2x32xf32>
    %809 = vector.extract_strided_slice %796 {offsets = [0, 64], sizes = [2, 32], strides = [1, 1]} : vector<2x128xf32> to vector<2x32xf32>
    %810 = math.tanh %809 : vector<2x32xf32>
    %811 = vector.extract_strided_slice %796 {offsets = [0, 96], sizes = [2, 32], strides = [1, 1]} : vector<2x128xf32> to vector<2x32xf32>
    %812 = arith.negf %811 : vector<2x32xf32>
    %813 = math.exp %812 : vector<2x32xf32>
    %cst_278 = arith.constant 1.000000e+00 : f32
    %814 = vector.broadcast %cst_278 : f32 to vector<2x32xf32>
    %815 = arith.addf %814, %813 : vector<2x32xf32>
    %816 = arith.divf %814, %815 : vector<2x32xf32>
    %817 = arith.mulf %808, %757 : vector<2x32xf32>
    %818 = arith.mulf %802, %810 : vector<2x32xf32>
    %819 = arith.addf %817, %818 : vector<2x32xf32>
    %820 = math.tanh %819 : vector<2x32xf32>
    %821 = arith.mulf %816, %820 : vector<2x32xf32>
    %cst_279 = arith.constant dense<0.000000e+00> : vector<2x128xf32>
    %822 = tpu.matmul %786, %104, %cst_279 {dimension_numbers = #tpu.dot_dimension_numbers<[1], [0], [0], [1], [0, 0, 1, 1], [], []>} : vector<2x32xf32>, vector<32x128xf32>, vector<2x128xf32> -> vector<2x128xf32>
    %823 = arith.addf %794, %822 : vector<2x128xf32>
    %824 = vector.extract_strided_slice %823 {offsets = [0, 0], sizes = [2, 32], strides = [1, 1]} : vector<2x128xf32> to vector<2x32xf32>
    %825 = arith.negf %824 : vector<2x32xf32>
    %826 = math.exp %825 : vector<2x32xf32>
    %cst_280 = arith.constant 1.000000e+00 : f32
    %827 = vector.broadcast %cst_280 : f32 to vector<2x32xf32>
    %828 = arith.addf %827, %826 : vector<2x32xf32>
    %829 = arith.divf %827, %828 : vector<2x32xf32>
    %830 = vector.extract_strided_slice %823 {offsets = [0, 32], sizes = [2, 32], strides = [1, 1]} : vector<2x128xf32> to vector<2x32xf32>
    %831 = arith.negf %830 : vector<2x32xf32>
    %832 = math.exp %831 : vector<2x32xf32>
    %cst_281 = arith.constant 1.000000e+00 : f32
    %833 = vector.broadcast %cst_281 : f32 to vector<2x32xf32>
    %834 = arith.addf %833, %832 : vector<2x32xf32>
    %835 = arith.divf %833, %834 : vector<2x32xf32>
    %836 = vector.extract_strided_slice %823 {offsets = [0, 64], sizes = [2, 32], strides = [1, 1]} : vector<2x128xf32> to vector<2x32xf32>
    %837 = math.tanh %836 : vector<2x32xf32>
    %838 = vector.extract_strided_slice %823 {offsets = [0, 96], sizes = [2, 32], strides = [1, 1]} : vector<2x128xf32> to vector<2x32xf32>
    %839 = arith.negf %838 : vector<2x32xf32>
    %840 = math.exp %839 : vector<2x32xf32>
    %cst_282 = arith.constant 1.000000e+00 : f32
    %841 = vector.broadcast %cst_282 : f32 to vector<2x32xf32>
    %842 = arith.addf %841, %840 : vector<2x32xf32>
    %843 = arith.divf %841, %842 : vector<2x32xf32>
    %844 = arith.mulf %835, %784 : vector<2x32xf32>
    %845 = arith.mulf %829, %837 : vector<2x32xf32>
    %846 = arith.addf %844, %845 : vector<2x32xf32>
    %847 = math.tanh %846 : vector<2x32xf32>
    %848 = arith.mulf %843, %847 : vector<2x32xf32>
    %849 = vector.shape_cast %821 : vector<2x32xf32> to vector<2x1x32xf32>
    %c0_283 = arith.constant 0 : index
    %c11_284 = arith.constant 11 : index
    %c0_285 = arith.constant 0 : index
    %850 = vector.load %arg16[%c0_283, %c11_284, %c0_285] : memref<2x16x64xf32, #tpu.memory_space<vmem>>, vector<2x1x32xf32>
    tpu.vector_store %arg16[%c0_283, %c11_284, %c0_285], %849 {strides = array<i32>} : memref<2x16x64xf32, #tpu.memory_space<vmem>>, vector<2x1x32xf32>,
    %851 = vector.shape_cast %848 : vector<2x32xf32> to vector<2x1x32xf32>
    %c0_286 = arith.constant 0 : index
    %c4_287 = arith.constant 4 : index
    %c32_288 = arith.constant 32 : index
    %852 = vector.load %arg16[%c0_286, %c4_287, %c32_288] : memref<2x16x64xf32, #tpu.memory_space<vmem>>, vector<2x1x32xf32>
    tpu.vector_store %arg16[%c0_286, %c4_287, %c32_288], %851 {strides = array<i32>} : memref<2x16x64xf32, #tpu.memory_space<vmem>>, vector<2x1x32xf32>,
    %c0_289 = arith.constant 0 : index
    %c12_290 = arith.constant 12 : index
    %c0_291 = arith.constant 0 : index
    %853 = vector.load %arg15[%c0_289, %c12_290, %c0_291] : memref<2x16x256xf32, #tpu.memory_space<vmem>>, vector<2x1x128xf32>
    %854 = vector.shape_cast %853 : vector<2x1x128xf32> to vector<2x128xf32>
    %c0_292 = arith.constant 0 : index
    %c3_293 = arith.constant 3 : index
    %c128_294 = arith.constant 128 : index
    %855 = vector.load %arg15[%c0_292, %c3_293, %c128_294] : memref<2x16x256xf32, #tpu.memory_space<vmem>>, vector<2x1x128xf32>
    %856 = vector.shape_cast %855 : vector<2x1x128xf32> to vector<2x128xf32>
    %cst_295 = arith.constant dense<0.000000e+00> : vector<2x128xf32>
    %857 = tpu.matmul %821, %103, %cst_295 {dimension_numbers = #tpu.dot_dimension_numbers<[1], [0], [0], [1], [0, 0, 1, 1], [], []>} : vector<2x32xf32>, vector<32x128xf32>, vector<2x128xf32> -> vector<2x128xf32>
    %858 = arith.addf %854, %857 : vector<2x128xf32>
    %859 = vector.extract_strided_slice %858 {offsets = [0, 0], sizes = [2, 32], strides = [1, 1]} : vector<2x128xf32> to vector<2x32xf32>
    %860 = arith.negf %859 : vector<2x32xf32>
    %861 = math.exp %860 : vector<2x32xf32>
    %cst_296 = arith.constant 1.000000e+00 : f32
    %862 = vector.broadcast %cst_296 : f32 to vector<2x32xf32>
    %863 = arith.addf %862, %861 : vector<2x32xf32>
    %864 = arith.divf %862, %863 : vector<2x32xf32>
    %865 = vector.extract_strided_slice %858 {offsets = [0, 32], sizes = [2, 32], strides = [1, 1]} : vector<2x128xf32> to vector<2x32xf32>
    %866 = arith.negf %865 : vector<2x32xf32>
    %867 = math.exp %866 : vector<2x32xf32>
    %cst_297 = arith.constant 1.000000e+00 : f32
    %868 = vector.broadcast %cst_297 : f32 to vector<2x32xf32>
    %869 = arith.addf %868, %867 : vector<2x32xf32>
    %870 = arith.divf %868, %869 : vector<2x32xf32>
    %871 = vector.extract_strided_slice %858 {offsets = [0, 64], sizes = [2, 32], strides = [1, 1]} : vector<2x128xf32> to vector<2x32xf32>
    %872 = math.tanh %871 : vector<2x32xf32>
    %873 = vector.extract_strided_slice %858 {offsets = [0, 96], sizes = [2, 32], strides = [1, 1]} : vector<2x128xf32> to vector<2x32xf32>
    %874 = arith.negf %873 : vector<2x32xf32>
    %875 = math.exp %874 : vector<2x32xf32>
    %cst_298 = arith.constant 1.000000e+00 : f32
    %876 = vector.broadcast %cst_298 : f32 to vector<2x32xf32>
    %877 = arith.addf %876, %875 : vector<2x32xf32>
    %878 = arith.divf %876, %877 : vector<2x32xf32>
    %879 = arith.mulf %870, %819 : vector<2x32xf32>
    %880 = arith.mulf %864, %872 : vector<2x32xf32>
    %881 = arith.addf %879, %880 : vector<2x32xf32>
    %882 = math.tanh %881 : vector<2x32xf32>
    %883 = arith.mulf %878, %882 : vector<2x32xf32>
    %cst_299 = arith.constant dense<0.000000e+00> : vector<2x128xf32>
    %884 = tpu.matmul %848, %104, %cst_299 {dimension_numbers = #tpu.dot_dimension_numbers<[1], [0], [0], [1], [0, 0, 1, 1], [], []>} : vector<2x32xf32>, vector<32x128xf32>, vector<2x128xf32> -> vector<2x128xf32>
    %885 = arith.addf %856, %884 : vector<2x128xf32>
    %886 = vector.extract_strided_slice %885 {offsets = [0, 0], sizes = [2, 32], strides = [1, 1]} : vector<2x128xf32> to vector<2x32xf32>
    %887 = arith.negf %886 : vector<2x32xf32>
    %888 = math.exp %887 : vector<2x32xf32>
    %cst_300 = arith.constant 1.000000e+00 : f32
    %889 = vector.broadcast %cst_300 : f32 to vector<2x32xf32>
    %890 = arith.addf %889, %888 : vector<2x32xf32>
    %891 = arith.divf %889, %890 : vector<2x32xf32>
    %892 = vector.extract_strided_slice %885 {offsets = [0, 32], sizes = [2, 32], strides = [1, 1]} : vector<2x128xf32> to vector<2x32xf32>
    %893 = arith.negf %892 : vector<2x32xf32>
    %894 = math.exp %893 : vector<2x32xf32>
    %cst_301 = arith.constant 1.000000e+00 : f32
    %895 = vector.broadcast %cst_301 : f32 to vector<2x32xf32>
    %896 = arith.addf %895, %894 : vector<2x32xf32>
    %897 = arith.divf %895, %896 : vector<2x32xf32>
    %898 = vector.extract_strided_slice %885 {offsets = [0, 64], sizes = [2, 32], strides = [1, 1]} : vector<2x128xf32> to vector<2x32xf32>
    %899 = math.tanh %898 : vector<2x32xf32>
    %900 = vector.extract_strided_slice %885 {offsets = [0, 96], sizes = [2, 32], strides = [1, 1]} : vector<2x128xf32> to vector<2x32xf32>
    %901 = arith.negf %900 : vector<2x32xf32>
    %902 = math.exp %901 : vector<2x32xf32>
    %cst_302 = arith.constant 1.000000e+00 : f32
    %903 = vector.broadcast %cst_302 : f32 to vector<2x32xf32>
    %904 = arith.addf %903, %902 : vector<2x32xf32>
    %905 = arith.divf %903, %904 : vector<2x32xf32>
    %906 = arith.mulf %897, %846 : vector<2x32xf32>
    %907 = arith.mulf %891, %899 : vector<2x32xf32>
    %908 = arith.addf %906, %907 : vector<2x32xf32>
    %909 = math.tanh %908 : vector<2x32xf32>
    %910 = arith.mulf %905, %909 : vector<2x32xf32>
    %911 = vector.shape_cast %883 : vector<2x32xf32> to vector<2x1x32xf32>
    %c0_303 = arith.constant 0 : index
    %c12_304 = arith.constant 12 : index
    %c0_305 = arith.constant 0 : index
    %912 = vector.load %arg16[%c0_303, %c12_304, %c0_305] : memref<2x16x64xf32, #tpu.memory_space<vmem>>, vector<2x1x32xf32>
    tpu.vector_store %arg16[%c0_303, %c12_304, %c0_305], %911 {strides = array<i32>} : memref<2x16x64xf32, #tpu.memory_space<vmem>>, vector<2x1x32xf32>,
    %913 = vector.shape_cast %910 : vector<2x32xf32> to vector<2x1x32xf32>
    %c0_306 = arith.constant 0 : index
    %c3_307 = arith.constant 3 : index
    %c32_308 = arith.constant 32 : index
    %914 = vector.load %arg16[%c0_306, %c3_307, %c32_308] : memref<2x16x64xf32, #tpu.memory_space<vmem>>, vector<2x1x32xf32>
    tpu.vector_store %arg16[%c0_306, %c3_307, %c32_308], %913 {strides = array<i32>} : memref<2x16x64xf32, #tpu.memory_space<vmem>>, vector<2x1x32xf32>,
    %c0_309 = arith.constant 0 : index
    %c13_310 = arith.constant 13 : index
    %c0_311 = arith.constant 0 : index
    %915 = vector.load %arg15[%c0_309, %c13_310, %c0_311] : memref<2x16x256xf32, #tpu.memory_space<vmem>>, vector<2x1x128xf32>
    %916 = vector.shape_cast %915 : vector<2x1x128xf32> to vector<2x128xf32>
    %c0_312 = arith.constant 0 : index
    %c2_313 = arith.constant 2 : index
    %c128_314 = arith.constant 128 : index
    %917 = vector.load %arg15[%c0_312, %c2_313, %c128_314] : memref<2x16x256xf32, #tpu.memory_space<vmem>>, vector<2x1x128xf32>
    %918 = vector.shape_cast %917 : vector<2x1x128xf32> to vector<2x128xf32>
    %cst_315 = arith.constant dense<0.000000e+00> : vector<2x128xf32>
    %919 = tpu.matmul %883, %103, %cst_315 {dimension_numbers = #tpu.dot_dimension_numbers<[1], [0], [0], [1], [0, 0, 1, 1], [], []>} : vector<2x32xf32>, vector<32x128xf32>, vector<2x128xf32> -> vector<2x128xf32>
    %920 = arith.addf %916, %919 : vector<2x128xf32>
    %921 = vector.extract_strided_slice %920 {offsets = [0, 0], sizes = [2, 32], strides = [1, 1]} : vector<2x128xf32> to vector<2x32xf32>
    %922 = arith.negf %921 : vector<2x32xf32>
    %923 = math.exp %922 : vector<2x32xf32>
    %cst_316 = arith.constant 1.000000e+00 : f32
    %924 = vector.broadcast %cst_316 : f32 to vector<2x32xf32>
    %925 = arith.addf %924, %923 : vector<2x32xf32>
    %926 = arith.divf %924, %925 : vector<2x32xf32>
    %927 = vector.extract_strided_slice %920 {offsets = [0, 32], sizes = [2, 32], strides = [1, 1]} : vector<2x128xf32> to vector<2x32xf32>
    %928 = arith.negf %927 : vector<2x32xf32>
    %929 = math.exp %928 : vector<2x32xf32>
    %cst_317 = arith.constant 1.000000e+00 : f32
    %930 = vector.broadcast %cst_317 : f32 to vector<2x32xf32>
    %931 = arith.addf %930, %929 : vector<2x32xf32>
    %932 = arith.divf %930, %931 : vector<2x32xf32>
    %933 = vector.extract_strided_slice %920 {offsets = [0, 64], sizes = [2, 32], strides = [1, 1]} : vector<2x128xf32> to vector<2x32xf32>
    %934 = math.tanh %933 : vector<2x32xf32>
    %935 = vector.extract_strided_slice %920 {offsets = [0, 96], sizes = [2, 32], strides = [1, 1]} : vector<2x128xf32> to vector<2x32xf32>
    %936 = arith.negf %935 : vector<2x32xf32>
    %937 = math.exp %936 : vector<2x32xf32>
    %cst_318 = arith.constant 1.000000e+00 : f32
    %938 = vector.broadcast %cst_318 : f32 to vector<2x32xf32>
    %939 = arith.addf %938, %937 : vector<2x32xf32>
    %940 = arith.divf %938, %939 : vector<2x32xf32>
    %941 = arith.mulf %932, %881 : vector<2x32xf32>
    %942 = arith.mulf %926, %934 : vector<2x32xf32>
    %943 = arith.addf %941, %942 : vector<2x32xf32>
    %944 = math.tanh %943 : vector<2x32xf32>
    %945 = arith.mulf %940, %944 : vector<2x32xf32>
    %cst_319 = arith.constant dense<0.000000e+00> : vector<2x128xf32>
    %946 = tpu.matmul %910, %104, %cst_319 {dimension_numbers = #tpu.dot_dimension_numbers<[1], [0], [0], [1], [0, 0, 1, 1], [], []>} : vector<2x32xf32>, vector<32x128xf32>, vector<2x128xf32> -> vector<2x128xf32>
    %947 = arith.addf %918, %946 : vector<2x128xf32>
    %948 = vector.extract_strided_slice %947 {offsets = [0, 0], sizes = [2, 32], strides = [1, 1]} : vector<2x128xf32> to vector<2x32xf32>
    %949 = arith.negf %948 : vector<2x32xf32>
    %950 = math.exp %949 : vector<2x32xf32>
    %cst_320 = arith.constant 1.000000e+00 : f32
    %951 = vector.broadcast %cst_320 : f32 to vector<2x32xf32>
    %952 = arith.addf %951, %950 : vector<2x32xf32>
    %953 = arith.divf %951, %952 : vector<2x32xf32>
    %954 = vector.extract_strided_slice %947 {offsets = [0, 32], sizes = [2, 32], strides = [1, 1]} : vector<2x128xf32> to vector<2x32xf32>
    %955 = arith.negf %954 : vector<2x32xf32>
    %956 = math.exp %955 : vector<2x32xf32>
    %cst_321 = arith.constant 1.000000e+00 : f32
    %957 = vector.broadcast %cst_321 : f32 to vector<2x32xf32>
    %958 = arith.addf %957, %956 : vector<2x32xf32>
    %959 = arith.divf %957, %958 : vector<2x32xf32>
    %960 = vector.extract_strided_slice %947 {offsets = [0, 64], sizes = [2, 32], strides = [1, 1]} : vector<2x128xf32> to vector<2x32xf32>
    %961 = math.tanh %960 : vector<2x32xf32>
    %962 = vector.extract_strided_slice %947 {offsets = [0, 96], sizes = [2, 32], strides = [1, 1]} : vector<2x128xf32> to vector<2x32xf32>
    %963 = arith.negf %962 : vector<2x32xf32>
    %964 = math.exp %963 : vector<2x32xf32>
    %cst_322 = arith.constant 1.000000e+00 : f32
    %965 = vector.broadcast %cst_322 : f32 to vector<2x32xf32>
    %966 = arith.addf %965, %964 : vector<2x32xf32>
    %967 = arith.divf %965, %966 : vector<2x32xf32>
    %968 = arith.mulf %959, %908 : vector<2x32xf32>
    %969 = arith.mulf %953, %961 : vector<2x32xf32>
    %970 = arith.addf %968, %969 : vector<2x32xf32>
    %971 = math.tanh %970 : vector<2x32xf32>
    %972 = arith.mulf %967, %971 : vector<2x32xf32>
    %973 = vector.shape_cast %945 : vector<2x32xf32> to vector<2x1x32xf32>
    %c0_323 = arith.constant 0 : index
    %c13_324 = arith.constant 13 : index
    %c0_325 = arith.constant 0 : index
    %974 = vector.load %arg16[%c0_323, %c13_324, %c0_325] : memref<2x16x64xf32, #tpu.memory_space<vmem>>, vector<2x1x32xf32>
    tpu.vector_store %arg16[%c0_323, %c13_324, %c0_325], %973 {strides = array<i32>} : memref<2x16x64xf32, #tpu.memory_space<vmem>>, vector<2x1x32xf32>,
    %975 = vector.shape_cast %972 : vector<2x32xf32> to vector<2x1x32xf32>
    %c0_326 = arith.constant 0 : index
    %c2_327 = arith.constant 2 : index
    %c32_328 = arith.constant 32 : index
    %976 = vector.load %arg16[%c0_326, %c2_327, %c32_328] : memref<2x16x64xf32, #tpu.memory_space<vmem>>, vector<2x1x32xf32>
    tpu.vector_store %arg16[%c0_326, %c2_327, %c32_328], %975 {strides = array<i32>} : memref<2x16x64xf32, #tpu.memory_space<vmem>>, vector<2x1x32xf32>,
    %c0_329 = arith.constant 0 : index
    %c14_330 = arith.constant 14 : index
    %c0_331 = arith.constant 0 : index
    %977 = vector.load %arg15[%c0_329, %c14_330, %c0_331] : memref<2x16x256xf32, #tpu.memory_space<vmem>>, vector<2x1x128xf32>
    %978 = vector.shape_cast %977 : vector<2x1x128xf32> to vector<2x128xf32>
    %c0_332 = arith.constant 0 : index
    %c1_333 = arith.constant 1 : index
    %c128_334 = arith.constant 128 : index
    %979 = vector.load %arg15[%c0_332, %c1_333, %c128_334] : memref<2x16x256xf32, #tpu.memory_space<vmem>>, vector<2x1x128xf32>
    %980 = vector.shape_cast %979 : vector<2x1x128xf32> to vector<2x128xf32>
    %cst_335 = arith.constant dense<0.000000e+00> : vector<2x128xf32>
    %981 = tpu.matmul %945, %103, %cst_335 {dimension_numbers = #tpu.dot_dimension_numbers<[1], [0], [0], [1], [0, 0, 1, 1], [], []>} : vector<2x32xf32>, vector<32x128xf32>, vector<2x128xf32> -> vector<2x128xf32>
    %982 = arith.addf %978, %981 : vector<2x128xf32>
    %983 = vector.extract_strided_slice %982 {offsets = [0, 0], sizes = [2, 32], strides = [1, 1]} : vector<2x128xf32> to vector<2x32xf32>
    %984 = arith.negf %983 : vector<2x32xf32>
    %985 = math.exp %984 : vector<2x32xf32>
    %cst_336 = arith.constant 1.000000e+00 : f32
    %986 = vector.broadcast %cst_336 : f32 to vector<2x32xf32>
    %987 = arith.addf %986, %985 : vector<2x32xf32>
    %988 = arith.divf %986, %987 : vector<2x32xf32>
    %989 = vector.extract_strided_slice %982 {offsets = [0, 32], sizes = [2, 32], strides = [1, 1]} : vector<2x128xf32> to vector<2x32xf32>
    %990 = arith.negf %989 : vector<2x32xf32>
    %991 = math.exp %990 : vector<2x32xf32>
    %cst_337 = arith.constant 1.000000e+00 : f32
    %992 = vector.broadcast %cst_337 : f32 to vector<2x32xf32>
    %993 = arith.addf %992, %991 : vector<2x32xf32>
    %994 = arith.divf %992, %993 : vector<2x32xf32>
    %995 = vector.extract_strided_slice %982 {offsets = [0, 64], sizes = [2, 32], strides = [1, 1]} : vector<2x128xf32> to vector<2x32xf32>
    %996 = math.tanh %995 : vector<2x32xf32>
    %997 = vector.extract_strided_slice %982 {offsets = [0, 96], sizes = [2, 32], strides = [1, 1]} : vector<2x128xf32> to vector<2x32xf32>
    %998 = arith.negf %997 : vector<2x32xf32>
    %999 = math.exp %998 : vector<2x32xf32>
    %cst_338 = arith.constant 1.000000e+00 : f32
    %1000 = vector.broadcast %cst_338 : f32 to vector<2x32xf32>
    %1001 = arith.addf %1000, %999 : vector<2x32xf32>
    %1002 = arith.divf %1000, %1001 : vector<2x32xf32>
    %1003 = arith.mulf %994, %943 : vector<2x32xf32>
    %1004 = arith.mulf %988, %996 : vector<2x32xf32>
    %1005 = arith.addf %1003, %1004 : vector<2x32xf32>
    %1006 = math.tanh %1005 : vector<2x32xf32>
    %1007 = arith.mulf %1002, %1006 : vector<2x32xf32>
    %cst_339 = arith.constant dense<0.000000e+00> : vector<2x128xf32>
    %1008 = tpu.matmul %972, %104, %cst_339 {dimension_numbers = #tpu.dot_dimension_numbers<[1], [0], [0], [1], [0, 0, 1, 1], [], []>} : vector<2x32xf32>, vector<32x128xf32>, vector<2x128xf32> -> vector<2x128xf32>
    %1009 = arith.addf %980, %1008 : vector<2x128xf32>
    %1010 = vector.extract_strided_slice %1009 {offsets = [0, 0], sizes = [2, 32], strides = [1, 1]} : vector<2x128xf32> to vector<2x32xf32>
    %1011 = arith.negf %1010 : vector<2x32xf32>
    %1012 = math.exp %1011 : vector<2x32xf32>
    %cst_340 = arith.constant 1.000000e+00 : f32
    %1013 = vector.broadcast %cst_340 : f32 to vector<2x32xf32>
    %1014 = arith.addf %1013, %1012 : vector<2x32xf32>
    %1015 = arith.divf %1013, %1014 : vector<2x32xf32>
    %1016 = vector.extract_strided_slice %1009 {offsets = [0, 32], sizes = [2, 32], strides = [1, 1]} : vector<2x128xf32> to vector<2x32xf32>
    %1017 = arith.negf %1016 : vector<2x32xf32>
    %1018 = math.exp %1017 : vector<2x32xf32>
    %cst_341 = arith.constant 1.000000e+00 : f32
    %1019 = vector.broadcast %cst_341 : f32 to vector<2x32xf32>
    %1020 = arith.addf %1019, %1018 : vector<2x32xf32>
    %1021 = arith.divf %1019, %1020 : vector<2x32xf32>
    %1022 = vector.extract_strided_slice %1009 {offsets = [0, 64], sizes = [2, 32], strides = [1, 1]} : vector<2x128xf32> to vector<2x32xf32>
    %1023 = math.tanh %1022 : vector<2x32xf32>
    %1024 = vector.extract_strided_slice %1009 {offsets = [0, 96], sizes = [2, 32], strides = [1, 1]} : vector<2x128xf32> to vector<2x32xf32>
    %1025 = arith.negf %1024 : vector<2x32xf32>
    %1026 = math.exp %1025 : vector<2x32xf32>
    %cst_342 = arith.constant 1.000000e+00 : f32
    %1027 = vector.broadcast %cst_342 : f32 to vector<2x32xf32>
    %1028 = arith.addf %1027, %1026 : vector<2x32xf32>
    %1029 = arith.divf %1027, %1028 : vector<2x32xf32>
    %1030 = arith.mulf %1021, %970 : vector<2x32xf32>
    %1031 = arith.mulf %1015, %1023 : vector<2x32xf32>
    %1032 = arith.addf %1030, %1031 : vector<2x32xf32>
    %1033 = math.tanh %1032 : vector<2x32xf32>
    %1034 = arith.mulf %1029, %1033 : vector<2x32xf32>
    %1035 = vector.shape_cast %1007 : vector<2x32xf32> to vector<2x1x32xf32>
    %c0_343 = arith.constant 0 : index
    %c14_344 = arith.constant 14 : index
    %c0_345 = arith.constant 0 : index
    %1036 = vector.load %arg16[%c0_343, %c14_344, %c0_345] : memref<2x16x64xf32, #tpu.memory_space<vmem>>, vector<2x1x32xf32>
    tpu.vector_store %arg16[%c0_343, %c14_344, %c0_345], %1035 {strides = array<i32>} : memref<2x16x64xf32, #tpu.memory_space<vmem>>, vector<2x1x32xf32>,
    %1037 = vector.shape_cast %1034 : vector<2x32xf32> to vector<2x1x32xf32>
    %c0_346 = arith.constant 0 : index
    %c1_347 = arith.constant 1 : index
    %c32_348 = arith.constant 32 : index
    %1038 = vector.load %arg16[%c0_346, %c1_347, %c32_348] : memref<2x16x64xf32, #tpu.memory_space<vmem>>, vector<2x1x32xf32>
    tpu.vector_store %arg16[%c0_346, %c1_347, %c32_348], %1037 {strides = array<i32>} : memref<2x16x64xf32, #tpu.memory_space<vmem>>, vector<2x1x32xf32>,
    %c0_349 = arith.constant 0 : index
    %c15_350 = arith.constant 15 : index
    %c0_351 = arith.constant 0 : index
    %1039 = vector.load %arg15[%c0_349, %c15_350, %c0_351] : memref<2x16x256xf32, #tpu.memory_space<vmem>>, vector<2x1x128xf32>
    %1040 = vector.shape_cast %1039 : vector<2x1x128xf32> to vector<2x128xf32>
    %c0_352 = arith.constant 0 : index
    %c0_353 = arith.constant 0 : index
    %c128_354 = arith.constant 128 : index
    %1041 = vector.load %arg15[%c0_352, %c0_353, %c128_354] : memref<2x16x256xf32, #tpu.memory_space<vmem>>, vector<2x1x128xf32>
    %1042 = vector.shape_cast %1041 : vector<2x1x128xf32> to vector<2x128xf32>
    %cst_355 = arith.constant dense<0.000000e+00> : vector<2x128xf32>
    %1043 = tpu.matmul %1007, %103, %cst_355 {dimension_numbers = #tpu.dot_dimension_numbers<[1], [0], [0], [1], [0, 0, 1, 1], [], []>} : vector<2x32xf32>, vector<32x128xf32>, vector<2x128xf32> -> vector<2x128xf32>
    %1044 = arith.addf %1040, %1043 : vector<2x128xf32>
    %1045 = vector.extract_strided_slice %1044 {offsets = [0, 0], sizes = [2, 32], strides = [1, 1]} : vector<2x128xf32> to vector<2x32xf32>
    %1046 = arith.negf %1045 : vector<2x32xf32>
    %1047 = math.exp %1046 : vector<2x32xf32>
    %cst_356 = arith.constant 1.000000e+00 : f32
    %1048 = vector.broadcast %cst_356 : f32 to vector<2x32xf32>
    %1049 = arith.addf %1048, %1047 : vector<2x32xf32>
    %1050 = arith.divf %1048, %1049 : vector<2x32xf32>
    %1051 = vector.extract_strided_slice %1044 {offsets = [0, 32], sizes = [2, 32], strides = [1, 1]} : vector<2x128xf32> to vector<2x32xf32>
    %1052 = arith.negf %1051 : vector<2x32xf32>
    %1053 = math.exp %1052 : vector<2x32xf32>
    %cst_357 = arith.constant 1.000000e+00 : f32
    %1054 = vector.broadcast %cst_357 : f32 to vector<2x32xf32>
    %1055 = arith.addf %1054, %1053 : vector<2x32xf32>
    %1056 = arith.divf %1054, %1055 : vector<2x32xf32>
    %1057 = vector.extract_strided_slice %1044 {offsets = [0, 64], sizes = [2, 32], strides = [1, 1]} : vector<2x128xf32> to vector<2x32xf32>
    %1058 = math.tanh %1057 : vector<2x32xf32>
    %1059 = vector.extract_strided_slice %1044 {offsets = [0, 96], sizes = [2, 32], strides = [1, 1]} : vector<2x128xf32> to vector<2x32xf32>
    %1060 = arith.negf %1059 : vector<2x32xf32>
    %1061 = math.exp %1060 : vector<2x32xf32>
    %cst_358 = arith.constant 1.000000e+00 : f32
    %1062 = vector.broadcast %cst_358 : f32 to vector<2x32xf32>
    %1063 = arith.addf %1062, %1061 : vector<2x32xf32>
    %1064 = arith.divf %1062, %1063 : vector<2x32xf32>
    %1065 = arith.mulf %1056, %1005 : vector<2x32xf32>
    %1066 = arith.mulf %1050, %1058 : vector<2x32xf32>
    %1067 = arith.addf %1065, %1066 : vector<2x32xf32>
    %1068 = math.tanh %1067 : vector<2x32xf32>
    %1069 = arith.mulf %1064, %1068 : vector<2x32xf32>
    %cst_359 = arith.constant dense<0.000000e+00> : vector<2x128xf32>
    %1070 = tpu.matmul %1034, %104, %cst_359 {dimension_numbers = #tpu.dot_dimension_numbers<[1], [0], [0], [1], [0, 0, 1, 1], [], []>} : vector<2x32xf32>, vector<32x128xf32>, vector<2x128xf32> -> vector<2x128xf32>
    %1071 = arith.addf %1042, %1070 : vector<2x128xf32>
    %1072 = vector.extract_strided_slice %1071 {offsets = [0, 0], sizes = [2, 32], strides = [1, 1]} : vector<2x128xf32> to vector<2x32xf32>
    %1073 = arith.negf %1072 : vector<2x32xf32>
    %1074 = math.exp %1073 : vector<2x32xf32>
    %cst_360 = arith.constant 1.000000e+00 : f32
    %1075 = vector.broadcast %cst_360 : f32 to vector<2x32xf32>
    %1076 = arith.addf %1075, %1074 : vector<2x32xf32>
    %1077 = arith.divf %1075, %1076 : vector<2x32xf32>
    %1078 = vector.extract_strided_slice %1071 {offsets = [0, 32], sizes = [2, 32], strides = [1, 1]} : vector<2x128xf32> to vector<2x32xf32>
    %1079 = arith.negf %1078 : vector<2x32xf32>
    %1080 = math.exp %1079 : vector<2x32xf32>
    %cst_361 = arith.constant 1.000000e+00 : f32
    %1081 = vector.broadcast %cst_361 : f32 to vector<2x32xf32>
    %1082 = arith.addf %1081, %1080 : vector<2x32xf32>
    %1083 = arith.divf %1081, %1082 : vector<2x32xf32>
    %1084 = vector.extract_strided_slice %1071 {offsets = [0, 64], sizes = [2, 32], strides = [1, 1]} : vector<2x128xf32> to vector<2x32xf32>
    %1085 = math.tanh %1084 : vector<2x32xf32>
    %1086 = vector.extract_strided_slice %1071 {offsets = [0, 96], sizes = [2, 32], strides = [1, 1]} : vector<2x128xf32> to vector<2x32xf32>
    %1087 = arith.negf %1086 : vector<2x32xf32>
    %1088 = math.exp %1087 : vector<2x32xf32>
    %cst_362 = arith.constant 1.000000e+00 : f32
    %1089 = vector.broadcast %cst_362 : f32 to vector<2x32xf32>
    %1090 = arith.addf %1089, %1088 : vector<2x32xf32>
    %1091 = arith.divf %1089, %1090 : vector<2x32xf32>
    %1092 = arith.mulf %1083, %1032 : vector<2x32xf32>
    %1093 = arith.mulf %1077, %1085 : vector<2x32xf32>
    %1094 = arith.addf %1092, %1093 : vector<2x32xf32>
    %1095 = math.tanh %1094 : vector<2x32xf32>
    %1096 = arith.mulf %1091, %1095 : vector<2x32xf32>
    %1097 = vector.shape_cast %1069 : vector<2x32xf32> to vector<2x1x32xf32>
    %c0_363 = arith.constant 0 : index
    %c15_364 = arith.constant 15 : index
    %c0_365 = arith.constant 0 : index
    %1098 = vector.load %arg16[%c0_363, %c15_364, %c0_365] : memref<2x16x64xf32, #tpu.memory_space<vmem>>, vector<2x1x32xf32>
    tpu.vector_store %arg16[%c0_363, %c15_364, %c0_365], %1097 {strides = array<i32>} : memref<2x16x64xf32, #tpu.memory_space<vmem>>, vector<2x1x32xf32>,
    %1099 = vector.shape_cast %1096 : vector<2x32xf32> to vector<2x1x32xf32>
    %c0_366 = arith.constant 0 : index
    %c0_367 = arith.constant 0 : index
    %c32_368 = arith.constant 32 : index
    %1100 = vector.load %arg16[%c0_366, %c0_367, %c32_368] : memref<2x16x64xf32, #tpu.memory_space<vmem>>, vector<2x1x32xf32>
    tpu.vector_store %arg16[%c0_366, %c0_367, %c32_368], %1099 {strides = array<i32>} : memref<2x16x64xf32, #tpu.memory_space<vmem>>, vector<2x1x32xf32>,
    %c0_369 = arith.constant 0 : index
    %c0_370 = arith.constant 0 : index
    %c0_371 = arith.constant 0 : index
    %1101 = vector.load %arg16[%c0_369, %c0_370, %c0_371] : memref<2x16x64xf32, #tpu.memory_space<vmem>>, vector<2x16x64xf32>
    %1102 = vector.shape_cast %1101 : vector<2x16x64xf32> to vector<32x64xf32>
    %1103 = tpu.iota {dimensions = array<i32: 0>} : vector<32x1xi32>
    %c16_i32_372 = arith.constant 16 : i32
    %c0_i32_373 = arith.constant 0 : i32
    %1104 = arith.cmpi eq, %c16_i32_372, %c0_i32_373 : i32
    %c1_i32_374 = arith.constant 1 : i32
    %1105 = arith.select %1104, %c1_i32_374, %c16_i32_372 : i32
    %1106 = vector.broadcast %1105 : i32 to vector<32x1xi32>
    %1107 = arith.remsi %1103, %1106 : vector<32x1xi32>
    %c0_i32_375 = arith.constant 0 : i32
    %1108 = vector.broadcast %c0_i32_375 : i32 to vector<32x1xi32>
    %1109 = arith.cmpi ne, %1107, %1108 : vector<32x1xi32>
    %c0_i32_376 = arith.constant 0 : i32
    %1110 = vector.broadcast %c0_i32_376 : i32 to vector<32x1xi32>
    %1111 = arith.cmpi slt, %1107, %1110 : vector<32x1xi32>
    %c0_i32_377 = arith.constant 0 : i32
    %1112 = arith.cmpi slt, %1105, %c0_i32_377 : i32
    %1113 = vector.broadcast %1112 : i1 to vector<32x1xi1>
    %1114 = vector.broadcast %1113 : vector<32x1xi1> to vector<32x1xi1>
    %1115 = arith.xori %1111, %1114 : vector<32x1xi1>
    %1116 = arith.andi %1115, %1109 : vector<32x1xi1>
    %1117 = vector.broadcast %1105 : i32 to vector<32x1xi32>
    %1118 = arith.addi %1107, %1117 : vector<32x1xi32>
    %1119 = arith.select %1116, %1118, %1107 : vector<32x1xi1>, vector<32x1xi32>
    %c0_i32_378 = arith.constant 0 : i32
    %1120 = vector.broadcast %c0_i32_378 : i32 to vector<32x1xi32>
    %1121 = arith.cmpi eq, %1119, %1120 : vector<32x1xi32>
    %c1_i32_379 = arith.constant 1 : i32
    %1122 = tpu.dynamic_rotate %1102 by %c1_i32_379 dim 0 : vector<32x64xf32>, i32 -> vector<32x64xf32>
    %cst_380 = arith.constant 0.000000e+00 : f32
    %1123 = vector.shape_cast %1121 : vector<32x1xi1> to vector<32x1xi1>
    %1124 = vector.broadcast %1123 : vector<32x1xi1> to vector<32x64xi1>
    %1125 = vector.broadcast %cst_380 : f32 to vector<32x64xf32>
    %1126 = arith.select %1124, %1125, %1122 : vector<32x64xi1>, vector<32x64xf32>
    %c15_i32_381 = arith.constant 15 : i32
    %1127 = vector.broadcast %c15_i32_381 : i32 to vector<32x1xi32>
    %1128 = arith.cmpi eq, %1119, %1127 : vector<32x1xi32>
    %c31_i32_382 = arith.constant 31 : i32
    %1129 = tpu.dynamic_rotate %1102 by %c31_i32_382 dim 0 : vector<32x64xf32>, i32 -> vector<32x64xf32>
    %cst_383 = arith.constant 0.000000e+00 : f32
    %1130 = vector.shape_cast %1128 : vector<32x1xi1> to vector<32x1xi1>
    %1131 = vector.broadcast %1130 : vector<32x1xi1> to vector<32x64xi1>
    %1132 = vector.broadcast %cst_383 : f32 to vector<32x64xf32>
    %1133 = arith.select %1131, %1132, %1129 : vector<32x64xi1>, vector<32x64xf32>
    %c0_384 = arith.constant 0 : index
    %c0_385 = arith.constant 0 : index
    %c0_386 = arith.constant 0 : index
    %1134 = vector.load %arg10[%c0_384, %c0_385, %c0_386] : memref<3x64x16xf32, #tpu.memory_space<vmem>>, vector<1x64x16xf32>
    %1135 = vector.shape_cast %1134 : vector<1x64x16xf32> to vector<64x16xf32>
    %cst_387 = arith.constant dense<0.000000e+00> : vector<32x16xf32>
    %1136 = tpu.matmul %1126, %1135, %cst_387 {dimension_numbers = #tpu.dot_dimension_numbers<[1], [0], [0], [1], [0, 0, 1, 1], [], []>} : vector<32x64xf32>, vector<64x16xf32>, vector<32x16xf32> -> vector<32x16xf32>
    %c1_388 = arith.constant 1 : index
    %c0_389 = arith.constant 0 : index
    %c0_390 = arith.constant 0 : index
    %1137 = vector.load %arg10[%c1_388, %c0_389, %c0_390] : memref<3x64x16xf32, #tpu.memory_space<vmem>>, vector<1x64x16xf32>
    %1138 = vector.shape_cast %1137 : vector<1x64x16xf32> to vector<64x16xf32>
    %cst_391 = arith.constant dense<0.000000e+00> : vector<32x16xf32>
    %1139 = tpu.matmul %1102, %1138, %cst_391 {dimension_numbers = #tpu.dot_dimension_numbers<[1], [0], [0], [1], [0, 0, 1, 1], [], []>} : vector<32x64xf32>, vector<64x16xf32>, vector<32x16xf32> -> vector<32x16xf32>
    %1140 = arith.addf %1136, %1139 : vector<32x16xf32>
    %c2_392 = arith.constant 2 : index
    %c0_393 = arith.constant 0 : index
    %c0_394 = arith.constant 0 : index
    %1141 = vector.load %arg10[%c2_392, %c0_393, %c0_394] : memref<3x64x16xf32, #tpu.memory_space<vmem>>, vector<1x64x16xf32>
    %1142 = vector.shape_cast %1141 : vector<1x64x16xf32> to vector<64x16xf32>
    %cst_395 = arith.constant dense<0.000000e+00> : vector<32x16xf32>
    %1143 = tpu.matmul %1133, %1142, %cst_395 {dimension_numbers = #tpu.dot_dimension_numbers<[1], [0], [0], [1], [0, 0, 1, 1], [], []>} : vector<32x64xf32>, vector<64x16xf32>, vector<32x16xf32> -> vector<32x16xf32>
    %1144 = arith.addf %1140, %1143 : vector<32x16xf32>
    %c0_396 = arith.constant 0 : index
    %c0_397 = arith.constant 0 : index
    %1145 = vector.load %arg11[%c0_396, %c0_397] : memref<1x16xf32, #tpu.memory_space<vmem>>, vector<1x16xf32>
    %1146 = vector.broadcast %1145 : vector<1x16xf32> to vector<32x16xf32>
    %1147 = arith.addf %1144, %1146 : vector<32x16xf32>
    %cst_398 = arith.constant 0.000000e+00 : f32
    %1148 = vector.broadcast %cst_398 : f32 to vector<32x16xf32>
    %1149 = arith.maximumf %1147, %1148 : vector<32x16xf32>
    %1150 = tpu.iota {dimensions = array<i32: 0>} : vector<32x1xi32>
    %c16_i32_399 = arith.constant 16 : i32
    %c0_i32_400 = arith.constant 0 : i32
    %1151 = arith.cmpi eq, %c16_i32_399, %c0_i32_400 : i32
    %c1_i32_401 = arith.constant 1 : i32
    %1152 = arith.select %1151, %c1_i32_401, %c16_i32_399 : i32
    %1153 = vector.broadcast %1152 : i32 to vector<32x1xi32>
    %1154 = arith.remsi %1150, %1153 : vector<32x1xi32>
    %c0_i32_402 = arith.constant 0 : i32
    %1155 = vector.broadcast %c0_i32_402 : i32 to vector<32x1xi32>
    %1156 = arith.cmpi ne, %1154, %1155 : vector<32x1xi32>
    %c0_i32_403 = arith.constant 0 : i32
    %1157 = vector.broadcast %c0_i32_403 : i32 to vector<32x1xi32>
    %1158 = arith.cmpi slt, %1154, %1157 : vector<32x1xi32>
    %c0_i32_404 = arith.constant 0 : i32
    %1159 = arith.cmpi slt, %1152, %c0_i32_404 : i32
    %1160 = vector.broadcast %1159 : i1 to vector<32x1xi1>
    %1161 = vector.broadcast %1160 : vector<32x1xi1> to vector<32x1xi1>
    %1162 = arith.xori %1158, %1161 : vector<32x1xi1>
    %1163 = arith.andi %1162, %1156 : vector<32x1xi1>
    %1164 = vector.broadcast %1152 : i32 to vector<32x1xi32>
    %1165 = arith.addi %1154, %1164 : vector<32x1xi32>
    %1166 = arith.select %1163, %1165, %1154 : vector<32x1xi1>, vector<32x1xi32>
    %c0_i32_405 = arith.constant 0 : i32
    %1167 = vector.broadcast %c0_i32_405 : i32 to vector<32x1xi32>
    %1168 = arith.cmpi eq, %1166, %1167 : vector<32x1xi32>
    %c1_i32_406 = arith.constant 1 : i32
    %1169 = tpu.dynamic_rotate %1149 by %c1_i32_406 dim 0 : vector<32x16xf32>, i32 -> vector<32x16xf32>
    %cst_407 = arith.constant 0.000000e+00 : f32
    %1170 = vector.shape_cast %1168 : vector<32x1xi1> to vector<32x1xi1>
    %1171 = vector.broadcast %1170 : vector<32x1xi1> to vector<32x16xi1>
    %1172 = vector.broadcast %cst_407 : f32 to vector<32x16xf32>
    %1173 = arith.select %1171, %1172, %1169 : vector<32x16xi1>, vector<32x16xf32>
    %c15_i32_408 = arith.constant 15 : i32
    %1174 = vector.broadcast %c15_i32_408 : i32 to vector<32x1xi32>
    %1175 = arith.cmpi eq, %1166, %1174 : vector<32x1xi32>
    %c31_i32_409 = arith.constant 31 : i32
    %1176 = tpu.dynamic_rotate %1149 by %c31_i32_409 dim 0 : vector<32x16xf32>, i32 -> vector<32x16xf32>
    %cst_410 = arith.constant 0.000000e+00 : f32
    %1177 = vector.shape_cast %1175 : vector<32x1xi1> to vector<32x1xi1>
    %1178 = vector.broadcast %1177 : vector<32x1xi1> to vector<32x16xi1>
    %1179 = vector.broadcast %cst_410 : f32 to vector<32x16xf32>
    %1180 = arith.select %1178, %1179, %1176 : vector<32x16xi1>, vector<32x16xf32>
    %c0_411 = arith.constant 0 : index
    %c0_412 = arith.constant 0 : index
    %c0_413 = arith.constant 0 : index
    %1181 = vector.load %arg12[%c0_411, %c0_412, %c0_413] : memref<3x16x64xf32, #tpu.memory_space<vmem>>, vector<1x16x64xf32>
    %1182 = vector.shape_cast %1181 : vector<1x16x64xf32> to vector<16x64xf32>
    %cst_414 = arith.constant dense<0.000000e+00> : vector<32x64xf32>
    %1183 = tpu.matmul %1173, %1182, %cst_414 {dimension_numbers = #tpu.dot_dimension_numbers<[1], [0], [0], [1], [0, 0, 1, 1], [], []>} : vector<32x16xf32>, vector<16x64xf32>, vector<32x64xf32> -> vector<32x64xf32>
    %c1_415 = arith.constant 1 : index
    %c0_416 = arith.constant 0 : index
    %c0_417 = arith.constant 0 : index
    %1184 = vector.load %arg12[%c1_415, %c0_416, %c0_417] : memref<3x16x64xf32, #tpu.memory_space<vmem>>, vector<1x16x64xf32>
    %1185 = vector.shape_cast %1184 : vector<1x16x64xf32> to vector<16x64xf32>
    %cst_418 = arith.constant dense<0.000000e+00> : vector<32x64xf32>
    %1186 = tpu.matmul %1149, %1185, %cst_418 {dimension_numbers = #tpu.dot_dimension_numbers<[1], [0], [0], [1], [0, 0, 1, 1], [], []>} : vector<32x16xf32>, vector<16x64xf32>, vector<32x64xf32> -> vector<32x64xf32>
    %1187 = arith.addf %1183, %1186 : vector<32x64xf32>
    %c2_419 = arith.constant 2 : index
    %c0_420 = arith.constant 0 : index
    %c0_421 = arith.constant 0 : index
    %1188 = vector.load %arg12[%c2_419, %c0_420, %c0_421] : memref<3x16x64xf32, #tpu.memory_space<vmem>>, vector<1x16x64xf32>
    %1189 = vector.shape_cast %1188 : vector<1x16x64xf32> to vector<16x64xf32>
    %cst_422 = arith.constant dense<0.000000e+00> : vector<32x64xf32>
    %1190 = tpu.matmul %1180, %1189, %cst_422 {dimension_numbers = #tpu.dot_dimension_numbers<[1], [0], [0], [1], [0, 0, 1, 1], [], []>} : vector<32x16xf32>, vector<16x64xf32>, vector<32x64xf32> -> vector<32x64xf32>
    %1191 = arith.addf %1187, %1190 : vector<32x64xf32>
    %c0_423 = arith.constant 0 : index
    %c0_424 = arith.constant 0 : index
    %1192 = vector.load %arg13[%c0_423, %c0_424] : memref<1x64xf32, #tpu.memory_space<vmem>>, vector<1x64xf32>
    %1193 = vector.broadcast %1192 : vector<1x64xf32> to vector<32x64xf32>
    %1194 = arith.addf %1191, %1193 : vector<32x64xf32>
    %cst_425 = arith.constant 0.000000e+00 : f32
    %1195 = vector.broadcast %cst_425 : f32 to vector<32x64xf32>
    %1196 = arith.maximumf %1194, %1195 : vector<32x64xf32>
    %1197 = vector.shape_cast %1196 : vector<32x64xf32> to vector<2x16x64xf32>
    %c0_426 = arith.constant 0 : index
    %c0_427 = arith.constant 0 : index
    %c0_428 = arith.constant 0 : index
    %1198 = vector.load %arg14[%c0_426, %c0_427, %c0_428] : memref<2x16x64xf32, #tpu.memory_space<vmem>>, vector<2x16x64xf32>
    tpu.vector_store %arg14[%c0_426, %c0_427, %c0_428], %1197 {strides = array<i32>} : memref<2x16x64xf32, #tpu.memory_space<vmem>>, vector<2x16x64xf32>,
    return
  }
  func.func @transform_0(%arg0: i32) -> (i32, i32, i32) {
    %c0_i32 = arith.constant 0 : i32
    %c0_i32_0 = arith.constant 0 : i32
    %c0_i32_1 = arith.constant 0 : i32
    return %arg0, %c0_i32, %c0_i32_0 : i32, i32, i32
  }
  func.func @transform_1(%arg0: i32) -> (i32, i32, i32) {
    %c0_i32 = arith.constant 0 : i32
    %c0_i32_0 = arith.constant 0 : i32
    %c0_i32_1 = arith.constant 0 : i32
    %c0_i32_2 = arith.constant 0 : i32
    return %c0_i32, %c0_i32_0, %c0_i32_1 : i32, i32, i32
  }
  func.func @transform_2(%arg0: i32) -> (i32, i32) {
    %c0_i32 = arith.constant 0 : i32
    %c0_i32_0 = arith.constant 0 : i32
    %c0_i32_1 = arith.constant 0 : i32
    return %c0_i32, %c0_i32_0 : i32, i32
  }
  func.func @transform_3(%arg0: i32) -> (i32, i32, i32) {
    %c0_i32 = arith.constant 0 : i32
    %c0_i32_0 = arith.constant 0 : i32
    %c0_i32_1 = arith.constant 0 : i32
    %c0_i32_2 = arith.constant 0 : i32
    return %c0_i32, %c0_i32_0, %c0_i32_1 : i32, i32, i32
  }
  func.func @transform_4(%arg0: i32) -> (i32, i32) {
    %c0_i32 = arith.constant 0 : i32
    %c0_i32_0 = arith.constant 0 : i32
    %c0_i32_1 = arith.constant 0 : i32
    return %c0_i32, %c0_i32_0 : i32, i32
  }
  func.func @transform_5(%arg0: i32) -> (i32, i32) {
    %c0_i32 = arith.constant 0 : i32
    %c0_i32_0 = arith.constant 0 : i32
    %c0_i32_1 = arith.constant 0 : i32
    return %c0_i32, %c0_i32_0 : i32, i32
  }
  func.func @transform_6(%arg0: i32) -> (i32, i32) {
    %c0_i32 = arith.constant 0 : i32
    %c0_i32_0 = arith.constant 0 : i32
    %c0_i32_1 = arith.constant 0 : i32
    return %c0_i32, %c0_i32_0 : i32, i32
  }
  func.func @transform_7(%arg0: i32) -> (i32, i32) {
    %c0_i32 = arith.constant 0 : i32
    %c0_i32_0 = arith.constant 0 : i32
    %c0_i32_1 = arith.constant 0 : i32
    return %c0_i32, %c0_i32_0 : i32, i32
  }
  func.func @transform_8(%arg0: i32) -> (i32, i32) {
    %c0_i32 = arith.constant 0 : i32
    %c0_i32_0 = arith.constant 0 : i32
    %c0_i32_1 = arith.constant 0 : i32
    return %c0_i32, %c0_i32_0 : i32, i32
  }
  func.func @transform_9(%arg0: i32) -> (i32, i32, i32) {
    %c0_i32 = arith.constant 0 : i32
    %c0_i32_0 = arith.constant 0 : i32
    %c0_i32_1 = arith.constant 0 : i32
    %c0_i32_2 = arith.constant 0 : i32
    return %c0_i32, %c0_i32_0, %c0_i32_1 : i32, i32, i32
  }
  func.func @transform_10(%arg0: i32) -> (i32, i32) {
    %c0_i32 = arith.constant 0 : i32
    %c0_i32_0 = arith.constant 0 : i32
    %c0_i32_1 = arith.constant 0 : i32
    return %c0_i32, %c0_i32_0 : i32, i32
  }
  func.func @transform_11(%arg0: i32) -> (i32, i32, i32) {
    %c0_i32 = arith.constant 0 : i32
    %c0_i32_0 = arith.constant 0 : i32
    %c0_i32_1 = arith.constant 0 : i32
    %c0_i32_2 = arith.constant 0 : i32
    return %c0_i32, %c0_i32_0, %c0_i32_1 : i32, i32, i32
  }
  func.func @transform_12(%arg0: i32) -> (i32, i32) {
    %c0_i32 = arith.constant 0 : i32
    %c0_i32_0 = arith.constant 0 : i32
    %c0_i32_1 = arith.constant 0 : i32
    return %c0_i32, %c0_i32_0 : i32, i32
  }
  func.func @transform_13(%arg0: i32) -> (i32, i32, i32) {
    %c0_i32 = arith.constant 0 : i32
    %c0_i32_0 = arith.constant 0 : i32
    %c0_i32_1 = arith.constant 0 : i32
    return %arg0, %c0_i32, %c0_i32_0 : i32, i32, i32
  }
}

</mosaic_0001>

<bundles_post_ra>
// kernel: tpu_custom_call.1
= control target key start
LH: loop header
LB: loop body
LE: loop exit
PB: predicated region body
PF: predicated region fallthrough
CT: control target
= control target key end

     0   :  { %vm169_vm0 = vcmask 523264   ;;  %v49_v12 = vlaneseq  ;;  %s9800_s0 = inlined_call_operand.vmem [shape: f32[2,16,64], index: 0, kind: input, shape index: {}]   ;;  %s9801_s1 = inlined_call_operand.vmem [shape: f32[3,64,16], index: 1, kind: input, shape index: {}]   ;;  %s9802_s2 = inlined_call_operand.vmem [shape: f32[1,16], index: 2, kind: input, shape index: {}]   ;;  %s9803_s3 = inlined_call_operand.vmem [shape: f32[3,16,32], index: 3, kind: input, shape index: {}]   ;;  %s9804_s4 = inlined_call_operand.vmem [shape: f32[1,32], index: 4, kind: input, shape index: {}]   ;;  %s9805_s5 = inlined_call_operand.vmem [shape: f32[32,256], index: 5, kind: input, shape index: {}]   ;;  %s9806_s6 = inlined_call_operand.vmem [shape: f32[32,128], index: 6, kind: input, shape index: {}]   ;;  %s9807_s7 = inlined_call_operand.vmem [shape: f32[32,128], index: 7, kind: input, shape index: {}]   ;;  %s9808_s8 = inlined_call_operand.vmem [shape: f32[1,256], index: 8, kind: input, shape index: {}]   ;;  %s9809_s9 = inlined_call_operand.vmem [shape: f32[3,64,16], index: 9, kind: input, shape index: {}]   ;;  %s9810_s10 = inlined_call_operand.vmem [shape: f32[1,16], index: 10, kind: input, shape index: {}]   ;;  %s9811_s11 = inlined_call_operand.vmem [shape: f32[3,16,64], index: 11, kind: input, shape index: {}]   ;;  %s9812_s12 = inlined_call_operand.vmem [shape: f32[1,64], index: 12, kind: input, shape index: {}]   ;;  %s9813_s13 = inlined_call_operand.hbm [shape: f32[2,16,64], index: 13, kind: output, shape index: {}]  }
   0x1   :  { %v6234_v0 = vld [vmem:[%s9801_s1 + $0x40] sm:$0xff]  ;;  %v6235_v1 = vld [vmem:[%s9801_s1 + $0x48] sm:$0xff]  ;;  %v6236_v2 = vld [vmem:[%s9801_s1 + $0x50] sm:$0xff] }
   0x2   :  { %v7236_v3 = vpack.c.bf16 %v6235_v1, %v6234_v0  ;;  %v6237_v4 = vld [vmem:[%s9801_s1 + $0x58] sm:$0xff]  ;;  %v6238_v6 = vld [vmem:[%s9801_s1 + $0x60] sm:$0xff]  ;;  %v6239_v7 = vld [vmem:[%s9801_s1 + $0x68] sm:$0xff] }
   0x3   :  { %v7240_v5 = vpack.c.bf16 %v6237_v4, %v6236_v2  ;;  %v8231_v8 = vld [vmem:[%s9800_s0] sm:$0xff]  ;;  %v7244_v9 = vpack.c.bf16 %v6239_v7, %v6238_v6  ;;  %v6240_v10 = vld [vmem:[%s9801_s1 + $0x70] sm:$0xff]  ;;  %v6241_v11 = vld [vmem:[%s9801_s1 + $0x78] sm:$0xff] }
   0x4   :  { %7237 = vmatprep.subr.bf16.mxu0 %v7236_v3  ;;  %6708 = vmatprep.mubr.msk.f32.mxu0 %vm169_vm0, %v8231_v8  ;;  %v7248_v13 = vpack.c.bf16 %v6241_v11, %v6240_v10 }
   0x5   :  { %7239 = vmatpush3.bf16.msra.mxu0 %v7236_v3 }
   0x6   :  { %7241 = vmatprep.subr.bf16.mxu0 %v7240_v5 }
   0x9   :  { %7243 = vmatpush3.bf16.msra.mxu0 %v7240_v5 }
   0xa   :  { %7245 = vmatprep.subr.bf16.mxu0 %v7244_v9 }
   0xb   :  { %18 = vsyncpa [#allocation5], 0  ;;  %v152_v14 = vld [vmem:[%s9801_s1] sm:$0xff]  ;;  %v153_v15 = vld [vmem:[%s9801_s1 + $0x8] sm:$0xff]  ;;  %v8247_v16 = vshrl.u32 %v49_v12, 7  ;;  %v106_v19 = vrot.slane %v8231_v8, 7 }
   0xc   :  { %v8252_v17 = vld [vmem:[%s9800_s0 + $0x18] sm:$0xff]  ;;  %v7252_v18 = vpack.c.bf16 %v153_v15, %v152_v14  ;;  %v154_v20 = vld [vmem:[%s9801_s1 + $0x10] sm:$0xff]  ;;  %v8267_v24 = vld [vmem:[%s9800_s0 + $0x8] sm:$0xff]  ;;  %v9847_v29 = vmov 0  ;;  %v9850_v45 = vmov 0  ;;  %v131_v48 = vrot.slane %v8231_v8, 1 }
   0xd   :  { %9846 = vst [vmem:[#allocation7_spill] sm:$0xff] %v8247_v16  ;;  %7247 = vmatpush3.bf16.msra.mxu0 %v7244_v9  ;;  %v155_v21 = vld [vmem:[%s9801_s1 + $0x18] sm:$0xff]  ;;  %v109_v22 = vrot.slane %v8252_v17, 7  ;;  %v58_v23 = vand.u32 15, %v8247_v16  ;;  %vm110_vm1 = vcmp.lt.s32.totalorder %v8247_v16, 1  ;;  %v8272_v26 = vld [vmem:[%s9800_s0 + $0x10] sm:$0xff] }
   0xe   :  { %7249 = vmatprep.subr.bf16.mxu0 %v7248_v13  ;;  %v7256_v25 = vpack.c.bf16 %v155_v21, %v154_v20  ;;  %v156_v27 = vld [vmem:[%s9801_s1 + $0x20] sm:$0xff]  ;;  %v157_v28 = vld [vmem:[%s9801_s1 + $0x28] sm:$0xff]  ;;  %v158_v33 = vld [vmem:[%s9801_s1 + $0x30] sm:$0xff]  ;;  %v52_v35 = vadd.s32 16, %v8247_v16  ;;  %v108_v37 = vrot.slane %v8272_v26, 7  ;;  %v107_v41 = vrot.slane %v8267_v24, 7 }
   0xf   :  { %vm8280_vm2 = vcmp.eq.s32.totalorder %v58_v23, 0  ;;  %v114_v30 = vsel %vm110_vm1, %v109_v22, %v106_v19  ;;  %v7260_v31 = vpack.c.bf16 %v157_v28, %v156_v27  ;;  %v159_v34 = vld [vmem:[%s9801_s1 + $0x38] sm:$0xff]  ;;  %v6250_v38 = vld [vmem:[%s9801_s1 + $0x80] sm:$0xff]  ;;  %v6251_v39 = vld [vmem:[%s9801_s1 + $0x88] sm:$0xff]  ;;  %v132_v49 = vrot.slane %v8267_v24, 1  ;;  %s8136_s14 = smov 32  }
  0x10   :  { %v9848_v29 = vsel %vm8280_vm2, 4294967295, %v9847_v29  ;;  %v123_v32 = vsel %vm8280_vm2, 0.0, %v114_v30  ;;  %v7264_v36 = vpack.c.bf16 %v159_v34, %v158_v33  ;;  %v72_v40 = vand.u32 15, %v52_v35  ;;  %v6252_v43 = vld [vmem:[%s9801_s1 + $0x90] sm:$0xff]  ;;  %v6253_v44 = vld [vmem:[%s9801_s1 + $0x98] sm:$0xff]  ;;  %v6254_v52 = vld [vmem:[%s9801_s1 + $0xa0] sm:$0xff] }
  0x11   :  { %7251 = vmatpush3.bf16.msra.mxu0 %v7248_v13  ;;  %9849 = vst [vmem:[#allocation8_spill] sm:$0xff] %v9848_v29  ;;  %v7268_v42 = vpack.c.bf16 %v6251_v39, %v6250_v38  ;;  %v112_v46 = vsel %vm110_vm1, %v107_v41, %v108_v37  ;;  %v113_v47 = vsel %vm110_vm1, %v106_v19, %v107_v41  ;;  %v6255_v53 = vld [vmem:[%s9801_s1 + $0xa8] sm:$0xff]  ;;  %vm135_vm4 = vcmp.lt.s32.totalorder %v8247_v16, 7  ;;  %v6256_v58 = vld [vmem:[%s9801_s1 + $0xb0] sm:$0xff]  ;;  %v6257_v59 = vld [vmem:[%s9801_s1 + $0xb8] sm:$0xff]  ;;  %s8137_s23 = smov [#allocation4]  }
  0x12   :  { %7253 = vmatprep.subr.bf16.mxu0 %v7252_v18  ;;  %vm8316_vm3 = vcmp.eq.s32.totalorder %v72_v40, 0  ;;  %v7272_v50 = vpack.c.bf16 %v6253_v44, %v6252_v43  ;;  %v111_v54 = vsel %vm110_vm1, %v108_v37, %v109_v22  ;;  %v7276_v55 = vpack.c.bf16 %v6255_v53, %v6254_v52  ;;  %v6263_v9 = vld [vmem:[%s9803_s3 + $0x10] sm:$0xff]  ;;  %v6264_v10 = vld [vmem:[%s9803_s3 + $0x18] sm:$0xff]  ;;  %v513_v12 = vld [vmem:[%s9803_s3] sm:$0xff] }
  0x13   :  { %v9851_v45 = vsel %vm8316_vm3, 4294967295, %v9850_v45  ;;  %v125_v51 = vsel %vm8316_vm3, 0.0, %v112_v46  ;;  %v138_v56 = vsel %vm135_vm4, %v131_v48, %v132_v49  ;;  %v51_v57 = vadd.s32 8, %v8247_v16  ;;  %v514_v13 = vld [vmem:[%s9803_s3 + $0x8] sm:$0xff]  ;;  %v6262_v15 = vld [vmem:[%s9802_s2] ss:$0 sm:$0xff] }
  0x14   :  { %6709 = vmatmul.mubr.msk.f32.vlgmr.msra.gmra.mrb[0].mxu0 %vm169_vm0, %v8267_v24  ;;  %9852 = vst [vmem:[#allocation9_spill] sm:$0xff] %v9851_v45  ;;  %v133_v60 = vrot.slane %v8272_v26, 1  ;;  %v7280_v61 = vpack.c.bf16 %v6257_v59, %v6256_v58  ;;  %v53_v63 = vadd.s32 24, %v8247_v16  ;;  %v134_v0 = vrot.slane %v8252_v17, 1  ;;  %v6273_v21 = vld [vmem:[%s9803_s3 + $0x20] sm:$0xff]  ;;  %v6274_v22 = vld [vmem:[%s9803_s3 + $0x28] sm:$0xff] }
  0x15   :  { %7255 = vmatpush3.bf16.msra.mxu0 %v7252_v18  ;;  %6711 = vmatprep.mubr.msk.f32.mxu0 %vm169_vm0, %v8272_v26  ;;  %v65_v62 = vand.u32 15, %v51_v57  ;;  %v9853_v1 = vmov 0  ;;  %v9856_v6 = vmov 0  ;;  %v7284_v11 = vpack.c.bf16 %v6264_v10, %v6263_v9  ;;  %v833_v43 = vld [vmem:[%s9805_s5 + $0x8] sm:$0xff]  ;;  %v835_v44 = vld [vmem:[%s9805_s5 + $0x18] sm:$0xff]  ;;  %v964_v9 = vld [vmem:[%s9806_s6 + $0x10] sm:$0xff] }
  0x16   :  { %7257 = vmatprep.subr.bf16.mxu0 %v7256_v25  ;;  %v137_v2 = vsel %vm135_vm4, %v132_v49, %v133_v60  ;;  %v79_v3 = vand.u32 15, %v53_v63  ;;  %v136_v5 = vsel %vm135_vm4, %v133_v60, %v134_v0  ;;  %v139_v7 = vsel %vm135_vm4, %v134_v0, %v131_v48  ;;  %v837_v60 = vld [vmem:[%s9805_s5 + $0x28] sm:$0xff]  ;;  %v836_v63 = vld [vmem:[%s9805_s5 + $0x20] sm:$0xff]  ;;  %v838_v0 = vld [vmem:[%s9805_s5 + $0x30] sm:$0xff]  ;;  %s6223_s2 = sshll.u32 %s8137_s23, 4  ;;  %s6224_s2 = int_to_ptr.vmem [resolvable:$true] %s6223_s2 }
  0x17   :  { %vm8353_vm5 = vcmp.eq.s32.totalorder %v65_v62, 15  ;;  %7285 = vmatprep.subr.bf16.mxu1 %v7284_v11  ;;  %v7288_v14 = vpack.c.bf16 %v514_v13, %v513_v12  ;;  %vm518_vm7 = vcmask 130048   ;;  %v7296_v53 = vpack.c.bf16 %v835_v44, %v833_v43  ;;  %v965_v10 = vld [vmem:[%s9806_s6 + $0x18] sm:$0xff]  ;;  %v6279_v12 = vld [vmem:[%s9804_s4] ss:$0 sm:$0xff]  ;;  %p8113_p1 = scmp.lt.s32.totalorder %s6224_s2, %s6224_s2 }
  0x18   :  { %6712 = vmatmul.mubr.msk.f32.gmra.mrb[2].mxu0 %vm169_vm0, %v8252_v17  ;;  %v9854_v1 = vsel %vm8353_vm5, 4294967295, %v9853_v1  ;;  %v149_v4 = vsel %vm8353_vm5, 0.0, %v137_v2  ;;  %vm8363_vm6 = vcmp.eq.s32.totalorder %v79_v3, 15  ;;  %7287 = vmatpush3.bf16.msra.mxu1 %v7284_v11  ;;  %v7302_v2 = vpack.c.bf16 %v838_v0, %v836_v63 }
  0x19   :  { %7259 = vmatpush3.bf16.msra.mxu0 %v7256_v25  ;;  %6730 = vmatprep.mubr.msk.f32.mxu0 %vm169_vm0, %v123_v32  ;;  %9855 = vst [vmem:[#allocation10_spill] sm:$0xff] %v9854_v1  ;;  %v9857_v6 = vsel %vm8363_vm6, 4294967295, %v9856_v6  ;;  %v151_v8 = vsel %vm8363_vm6, 0.0, %v139_v7  ;;  %v9814_v3 = vmov 0.0   ;;  %v9818_v7 = vmov 0.0|0.0  }
  0x1a   :  { %7261 = vmatprep.subr.bf16.mxu0 %v7260_v31  ;;  %9858 = vst [vmem:[#allocation11_spill] sm:$0xff] %v9857_v6  ;;  %7289 = vmatprep.subr.bf16.mxu1 %v7288_v14  ;;  %v8474_v11 = vpack.c.bf16 %v965_v10, %v964_v9  ;;  %vm8134_vm8 = vmmov 0   ;;  %vm852_vm9 = vcmask 261120   ;;  %vm1252_vm10 = vcmask 1041409  }
  0x1b   :  { %vm1233_vm11 = vcmask 253952   ;;  %vm1244_vm12 = vcmask 516352  }
  0x1d   :  { %7263 = vmatpush3.bf16.msra.mxu0 %v7260_v31  ;;  %v7292_v31 = vpack.c.bf16 %v6274_v22, %v6273_v21 }
  0x1e   :  { %7265 = vmatprep.subr.bf16.mxu0 %v7264_v36 }
  0x21   :  { %7267 = vmatpush3.bf16.msra.mxu0 %v7264_v36 }
  0x22   :  { %7269 = vmatprep.subr.bf16.mxu0 %v7268_v42 }
  0x24   :  { %6731 = vmatmul.mubr.msk.f32.vlgmr.msra.gmra.mrb[0].mxu0 %vm169_vm0, %v113_v47 }
  0x25   :  { %7271 = vmatpush3.bf16.msra.mxu0 %v7268_v42  ;;  %6733 = vmatprep.mubr.msk.f32.mxu0 %vm169_vm0, %v125_v51 }
  0x26   :  { %7273 = vmatprep.subr.bf16.mxu0 %v7272_v50 }
  0x28   :  { %6734 = vmatmul.mubr.msk.f32.gmra.mrb[2].mxu0 %vm169_vm0, %v111_v54 }
  0x29   :  { %7275 = vmatpush3.bf16.msra.mxu0 %v7272_v50  ;;  %6752 = vmatprep.mubr.msk.f32.mxu0 %vm169_vm0, %v138_v56  ;;  %v834_v56 = vld [vmem:[%s9805_s5 + $0x10] sm:$0xff] }
  0x2a   :  { %7277 = vmatprep.subr.bf16.mxu0 %v7276_v55 }
  0x2d   :  { %7279 = vmatpush3.bf16.msra.mxu0 %v7276_v55  ;;  %v832_v55 = vld [vmem:[%s9805_s5] sm:$0xff] }
  0x2e   :  { %7281 = vmatprep.subr.bf16.mxu0 %v7280_v61  ;;  %v7298_v57 = vpack.c.bf16 %v834_v56, %v832_v55 }
  0x31   :  { %7283 = vmatpush3.bf16.msra.mxu0 %v7280_v61  ;;  %v839_v61 = vld [vmem:[%s9805_s5 + $0x38] sm:$0xff] }
  0x32   :  { %v7300_v62 = vpack.c.bf16 %v839_v61, %v837_v60  ;;  %7328 = vmatprep.subr.bf16.mxu0 %v9818_v7 }
  0x34   :  { %6753 = vmatmul.mubr.msk.f32.vlgmr.msra.gmra.mrb[0].mxu0 %vm169_vm0, %v149_v4  ;;  %v962_v4 = vld [vmem:[%s9806_s6] sm:$0xff] }
  0x35   :  { %6755 = vmatprep.mubr.msk.f32.mxu0 %vm169_vm0, %v136_v5  ;;  %v963_v5 = vld [vmem:[%s9806_s6 + $0x8] sm:$0xff] }
  0x38   :  { %6756 = vmatmul.mubr.msk.f32.gmra.mrb[2].mxu0 %vm169_vm0, %v151_v8  ;;  %v8463_v8 = vpack.c.bf16 %v963_v5, %v962_v4 }
  0x39   :  { %6840 = vmatprep.mubr.msk.f32.mxu0 %vm8134_vm8, %v9814_v3 }
  0x3a   :  { %7330 = vmatpush3.bf16.msra.mxu0 %v8463_v8 }
  0x3b   :  { %7331 = vmatprep.subr.bf16.mxu0 %v9818_v7 }
  0x3e   :  { %7333 = vmatpush3.bf16.msra.mxu0 %v8474_v11 }
  0x3f   :  { %7340 = vmatprep.subr.bf16.mxu0 %v9818_v7 }
 0x107   :  { %v6754_v17 = vpop.f32.mrb[0].mxu0 }
 0x108   :  { %v482_v18 = vadd.f32 %v6754_v17, %v6262_v15  ;;  %v451_v19 = vpop.f32.mrb[1].mxu0 }
 0x109   :  { %v481_v20 = vadd.f32 %v6262_v15, %v451_v19 }
 0x10a   :  { %v486_v23 = vmax.f32 %v482_v18, 0.0 }
 0x10b   :  { %v485_v24 = vmax.f32 %v481_v20, 0.0  ;;  %v6757_v25 = vpop.f32.mrb[2].mxu0 }
 0x10c   :  { %v490_v26 = vrot.slane %v486_v23, 7  ;;  %v502_v27 = vrot.slane %v486_v23, 1  ;;  %v484_v28 = vadd.f32 %v6757_v25, %v6262_v15  ;;  %v461_v30 = vpop.f32.mrb[3].mxu0 }
 0x10d   :  { %v489_v32 = vrot.slane %v485_v24, 7  ;;  %v501_v33 = vrot.slane %v485_v24, 1  ;;  %v483_v34 = vadd.f32 %v6262_v15, %v461_v30  ;;  %6762 = vmatprep.mubr.msk.f32.mxu1 %vm518_vm7, %v485_v24  ;;  %v968_v30 = vld [vmem:[%s9807_s7 + $0x10] sm:$0xff] }
 0x10e   :  { %v488_v35 = vmax.f32 %v484_v28, 0.0  ;;  %6763 = vmatmul.mubr.msk.f32.vlgmr.msra.gmra.mrb[0].mxu1 %vm518_vm7, %v486_v23 }
 0x10f   :  { %v487_v36 = vmax.f32 %v483_v34, 0.0  ;;  %7291 = vmatpush3.bf16.msra.mxu1 %v7288_v14  ;;  %v495_v37 = vsel %vm110_vm1, %v489_v32, %v490_v26  ;;  %v507_v38 = vsel %vm135_vm4, %v501_v33, %v502_v27  ;;  %v840_v34 = vld [vmem:[%s9808_s8] sm:$0x3]  ;;  %s8135_s8 = smov 64  }
 0x110   :  { %v492_v39 = vrot.slane %v488_v35, 7  ;;  %v504_v40 = vrot.slane %v488_v35, 1  ;;  %7293 = vmatprep.subr.bf16.mxu1 %v7292_v31 }
 0x111   :  { %v491_v41 = vrot.slane %v487_v36, 7  ;;  %v503_v42 = vrot.slane %v487_v36, 1  ;;  %6765 = vmatprep.mubr.msk.f32.mxu1 %vm518_vm7, %v487_v36 }
 0x112   :  { %6766 = vmatmul.mubr.msk.f32.gmra.mrb[2].mxu1 %vm518_vm7, %v488_v35  ;;  %v496_v46 = vsel %vm110_vm1, %v492_v39, %v489_v32  ;;  %v508_v47 = vsel %vm135_vm4, %v504_v40, %v501_v33  ;;  %v844_v33 = vsub.s32 0, %v8247_v16  ;;  %v848_v35 = vsub.s32 1, %v8247_v16 }
 0x113   :  { %v497_v48 = vsel %vm8280_vm2, 0.0, %v496_v46  ;;  %v494_v49 = vsel %vm110_vm1, %v490_v26, %v491_v41  ;;  %v493_v50 = vsel %vm110_vm1, %v491_v41, %v492_v39  ;;  %v506_v51 = vsel %vm135_vm4, %v502_v27, %v503_v42  ;;  %v966_v26 = vld [vmem:[%s9807_s7] sm:$0xff]  ;;  %v967_v27 = vld [vmem:[%s9807_s7 + $0x8] sm:$0xff] }
 0x114   :  { %6772 = vmatprep.mubr.msk.f32.mxu1 %vm518_vm7, %v497_v48  ;;  %v505_v52 = vsel %vm135_vm4, %v503_v42, %v504_v40  ;;  %v499_v54 = vsel %vm8316_vm3, 0.0, %v494_v49  ;;  %v510_v58 = vsel %vm8353_vm5, 0.0, %v506_v51  ;;  %v512_v59 = vsel %vm8363_vm6, 0.0, %v508_v47 }
 0x115   :  { %v8502_v28 = vpack.c.bf16 %v967_v27, %v966_v26  ;;  %v845_v36 = vrot.slane %v840_v34, %v844_v33 }
 0x116   :  { %6773 = vmatmul.mubr.msk.f32.vlgmr.msra.gmra.mrb[0].mxu1 %vm518_vm7, %v495_v37  ;;  %v849_v37 = vrot.slane %v840_v34, %v848_v35 }
 0x117   :  { %7295 = vmatpush3.bf16.msra.mxu1 %v7292_v31  ;;  %6775 = vmatprep.mubr.msk.f32.mxu1 %vm518_vm7, %v499_v54  ;;  %v969_v31 = vld [vmem:[%s9807_s7 + $0x18] sm:$0xff] }
 0x118   :  { %7297 = vmatprep.subr.bf16.mxu1 %v7296_v53  ;;  %v8512_v32 = vpack.c.bf16 %v969_v31, %v968_v30 }
 0x11a   :  { %6776 = vmatmul.mubr.msk.f32.gmra.mrb[2].mxu1 %vm518_vm7, %v493_v50 }
 0x11b   :  { %6782 = vmatprep.mubr.msk.f32.mxu1 %vm518_vm7, %v507_v38 }
 0x11e   :  { %6783 = vmatmul.mubr.msk.f32.vlgmr.msra.gmra.mrb[0].mxu1 %vm518_vm7, %v510_v58 }
 0x11f   :  { %6785 = vmatprep.mubr.msk.f32.mxu1 %vm518_vm7, %v505_v52  ;;  %7299 = vmatpush1.bf16.msra.mxu1 %v7298_v57 }
 0x120   :  { %7301 = vmatprep.subr.bf16.mxu1 %v7300_v62 }
 0x122   :  { %6786 = vmatmul.mubr.msk.f32.gmra.mrb[2].mxu1 %vm518_vm7, %v512_v59 }
 0x123   :  { %7303 = vmatpush1.bf16.msra.mxu1 %v7302_v2  ;;  %929 = vmatprep.mubr.f32.mxu1 %v9814_v3 }
 0x124   :  { %7304 = vmatprep.subr.bf16.mxu1 %v9818_v7 }
 0x1f1   :  { %v6784_v13 = vpop.f32.mrb[0].mxu1 }
 0x1f2   :  { %v794_v14 = vpop.f32.mrb[1].mxu1  ;;  %v825_v17 = vadd.f32 %v6784_v13, %v6279_v12 }
 0x1f3   :  { %v824_v15 = vadd.f32 %v6279_v12, %v794_v14 }
 0x1f4   :  { %v829_v21 = vmax.f32 %v825_v17, 0.0 }
 0x1f5   :  { %v828_v18 = vmax.f32 %v824_v15, 0.0  ;;  %v6787_v19 = vpop.f32.mrb[2].mxu1 }
 0x1f6   :  { %v804_v20 = vpop.f32.mrb[3].mxu1  ;;  %v827_v23 = vadd.f32 %v6787_v19, %v6279_v12 }
 0x1f7   :  { %6280 = vmatmul.mubr.msk.f32.vlgmr.msra.gmra.mrb[4].mxu1 %vm852_vm9, %v828_v18  ;;  %v826_v22 = vadd.f32 %v6279_v12, %v804_v20 }
 0x1f8   :  { %7306 = vmatpush3.bf16.msra.mxu1 %v8463_v8  ;;  %935 = vmatprep.mubr.f32.mxu1 %v9814_v3  ;;  %v831_v25 = vmax.f32 %v827_v23, 0.0 }
 0x1f9   :  { %7307 = vmatprep.subr.bf16.mxu1 %v9818_v7  ;;  %v830_v24 = vmax.f32 %v826_v22, 0.0 }
 0x1fb   :  { %6281 = vmatmul.mubr.msk.f32.gmra.mrb[6].mxu1 %vm852_vm9, %v829_v21 }
 0x1fc   :  { %941 = vmatprep.mubr.f32.mxu1 %v9814_v3  ;;  %7309 = vmatpush3.bf16.msra.mxu1 %v8474_v11 }
 0x1fd   :  { %7310 = vmatprep.subr.bf16.mxu1 %v9818_v7 }
 0x1ff   :  { %6282 = vmatmul.mubr.msk.f32.gmra.mrb[8].mxu1 %vm852_vm9, %v830_v24 }
 0x200   :  { %947 = vmatprep.mubr.f32.mxu1 %v9814_v3 }
 0x203   :  { %6283 = vmatmul.mubr.msk.f32.gmra.mrb[10].mxu1 %vm852_vm9, %v831_v25 }
 0x204   :  { %6796 = vmatprep.mubr.msk.f32.mxu1 %vm8134_vm8, %v9814_v3 }
 0x207   :  { %6797 = vmatmul.mubr.f32.vlgmr.msra.gmra.mrb[12].mxu1 %v9814_v3 }
 0x208   :  { %7312 = vmatpush3.bf16.msra.mxu1 %v8502_v28  ;;  %6807 = vmatprep.mubr.msk.f32.mxu1 %vm8134_vm8, %v9814_v3 }
 0x209   :  { %7313 = vmatprep.subr.bf16.mxu1 %v9818_v7 }
 0x20c   :  { %7315 = vmatpush3.bf16.msra.mxu1 %v8512_v32 }
 0x20d   :  { %7316 = vmatprep.subr.bf16.mxu1 %v9818_v7 }
 0x20f   :  { %6808 = vmatmul.mubr.f32.vlgmr.msra.gmra.mrb[14].mxu1 %v9814_v3 }
 0x210   :  { %7318 = vmatpush3.bf16.msra.mxu1 %v8463_v8  ;;  %6818 = vmatprep.mubr.msk.f32.mxu1 %vm8134_vm8, %v9814_v3 }
 0x211   :  { %7319 = vmatprep.subr.bf16.mxu1 %v9818_v7 }
 0x214   :  { %7321 = vmatpush3.bf16.msra.mxu1 %v8474_v11 }
 0x215   :  { %7322 = vmatprep.subr.bf16.mxu1 %v9818_v7 }
 0x2ca   :  { %v931_v38 = vpop.f32.mrb[4].mxu1 }
 0x2cb   :  { %v932_v39 = vadd.f32 %v931_v38, %v845_v36  ;;  %v933_v40 = vpop.f32.mrb[5].mxu1 }
 0x2cc   :  { %v934_v41 = vadd.f32 %v933_v40, %v849_v37 }
 0x2cd   :  { %954 = vst [vmem:[#allocation2] sm:$0xff] %v932_v39 }
 0x2ce   :  { %955 = vst [vmem:[#allocation2 + $0x8] sm:$0xff] %v934_v41  ;;  %v937_v42 = vpop.f32.mrb[6].mxu1 }
 0x2cf   :  { %v938_v43 = vadd.f32 %v937_v42, %v845_v36  ;;  %v939_v44 = vpop.f32.mrb[7].mxu1 }
 0x2d0   :  { %v940_v46 = vadd.f32 %v939_v44, %v849_v37 }
 0x2d1   :  { %956 = vst [vmem:[#allocation2 + $0x10] sm:$0xff] %v938_v43 }
 0x2d2   :  { %957 = vst [vmem:[#allocation2 + $0x18] sm:$0xff] %v940_v46  ;;  %v943_v47 = vpop.f32.mrb[8].mxu1 }
 0x2d3   :  { %v944_v48 = vadd.f32 %v943_v47, %v845_v36  ;;  %v945_v49 = vpop.f32.mrb[9].mxu1 }
 0x2d4   :  { %v946_v50 = vadd.f32 %v945_v49, %v849_v37  ;;  %v970_v60 = vld [vmem:[#allocation2] ss:$0 sm:$0xff] }
 0x2d5   :  { %958 = vst [vmem:[#allocation2 + $0x20] sm:$0xff] %v944_v48  ;;  %v3806_v29 = vld [vmem:[#allocation2 + $0xd] ss:$0 sm:$0xff] }
 0x2d6   :  { %959 = vst [vmem:[#allocation2 + $0x28] sm:$0xff] %v946_v50  ;;  %v949_v51 = vpop.f32.mrb[10].mxu1 }
 0x2d7   :  { %v950_v52 = vadd.f32 %v949_v51, %v845_v36  ;;  %v951_v53 = vpop.f32.mrb[11].mxu1 }
 0x2d8   :  { %v952_v54 = vadd.f32 %v951_v53, %v849_v37 }
 0x2d9   :  { %960 = vst [vmem:[#allocation2 + $0x30] sm:$0xff] %v950_v52  ;;  %v972_v5 = vld [vmem:[#allocation2 + $0x1f] ss:$0 sm:$0xff] }
 0x2da   :  { %961 = vst [vmem:[#allocation2 + $0x38] sm:$0xff] %v952_v54  ;;  %v1043_v55 = vpop.f32.mrb[12].mxu1 }
 0x2db   :  { %v1048_v56 = vrot.slane %v1043_v55, 1  ;;  %v6798_v57 = vpop.f32.mrb[13].mxu1  ;;  %v1051_v61 = vadd.f32 %v1043_v55, %v970_v60 }
 0x2dc   :  { %v971_v58 = vld [vmem:[#allocation2 + $0x20] ss:$0 sm:$0xff] }
 0x2dd   :  { %v1052_v59 = vadd.f32 %v1048_v56, %v971_v58  ;;  %v6284_v17 = vmul.f32 -1.442695, %v1051_v61 }
 0x2df   :  { %7596 = vtanh.f32 %v1052_v59  ;;  %v6285_v15 = vmul.f32 -1.442695, %v1052_v59 }
 0x2e0   :  { %7598 = vtanh.f32 %v1051_v61 }
 0x2e1   :  { %v973_v2 = vld [vmem:[#allocation2 + $0x3f] ss:$0 sm:$0xff] }
 0x2e2   :  { %v1167_v62 = vpop.f32.mrb[14].mxu1 }
 0x2e3   :  { %v1172_v63 = vrot.slane %v1167_v62, 1  ;;  %v6809_v0 = vpop.f32.mrb[15].mxu1  ;;  %v1175_v9 = vadd.f32 %v1167_v62, %v972_v5 }
 0x2e5   :  { %v1176_v4 = vadd.f32 %v1172_v63, %v973_v2  ;;  %v6286_v19 = vmul.f32 -1.442695, %v1175_v9 }
 0x2e7   :  { %7600 = vtanh.f32 %v1176_v4  ;;  %v6287_v18 = vmul.f32 -1.442695, %v1176_v4 }
 0x2e8   :  { %7602 = vtanh.f32 %v1175_v9 }
 0x2e9   :  { %v7597_v10 = vpop.eup %7596  ;;  %7604 = vpow2.f32 %v6285_v15 }
 0x2ea   :  { %1073 = vrot.lane.b32.xlu0 %v7597_v10, %s8135_s8  ;;  %v7599_v12 = vpop.eup %7598  ;;  %7606 = vpow2.f32 %v6284_v17 }
 0x2eb   :  { %7608 = vpow2.f32 %v6287_v18 }
 0x2ec   :  { %7610 = vpow2.f32 %v6286_v19 }
 0x2ee   :  { %1071 = vrot.lane.b32.xlu0 %v7599_v12, %s8135_s8 }
 0x2f1   :  { %v7601_v13 = vpop.eup %7600 }
 0x2f2   :  { %1197 = vrot.lane.b32.xlu1 %v7601_v13, %s8135_s8  ;;  %v7603_v14 = vpop.eup %7602 }
 0x2f3   :  { %v7605_v20 = vpop.eup %7604 }
 0x2f4   :  { %v1060_v21 = vadd.f32 1.0, %v7605_v20  ;;  %v7607_v22 = vpop.eup %7606  ;;  %v1248_v20 = vld [vmem:[#allocation2 + $0x21] ss:$0 sm:$0xff] }
 0x2f5   :  { %v1059_v23 = vadd.f32 1.0, %v7607_v22  ;;  %v7609_v24 = vpop.eup %7608  ;;  %v1247_v22 = vld [vmem:[#allocation2 + $0x1] ss:$0 sm:$0xff] }
 0x2f6   :  { %1195 = vrot.lane.b32.xlu1 %v7603_v14, %s8135_s8  ;;  %7612 = vrcp.f32 %v1060_v21  ;;  %v1184_v25 = vadd.f32 1.0, %v7609_v24  ;;  %v7611_v26 = vpop.eup %7610 }
 0x2f7   :  { %7614 = vrcp.f32 %v1059_v23  ;;  %v1183_v27 = vadd.f32 1.0, %v7611_v26 }
 0x2f8   :  { %7616 = vrcp.f32 %v1184_v25 }
 0x2f9   :  { %7618 = vrcp.f32 %v1183_v27  ;;  %v1250_v27 = vld [vmem:[#allocation2 + $0x3e] ss:$0 sm:$0xff] }
 0x300   :  { %v7613_v30 = vpop.eup %7612 }
 0x301   :  { %v7615_v34 = vpop.eup %7614  ;;  %v1068_v43 = vmul.f32 0.0, %v7613_v30 }
 0x302   :  { %v7617_v37 = vpop.eup %7616  ;;  %v1067_v47 = vmul.f32 0.0, %v7615_v34 }
 0x303   :  { %v7619_v40 = vpop.eup %7618  ;;  %v1192_v50 = vmul.f32 0.0, %v7617_v37 }
 0x304   :  { %v1191_v53 = vmul.f32 0.0, %v7619_v40 }
 0x35c   :  { %v1074_v31 = vpop.permute.xlu0 %1073 }
 0x35d   :  { %v1078_v33 = vmul.f32 %v7613_v30, %v1074_v31  ;;  %v1249_v31 = vld [vmem:[#allocation2 + $0x1e] ss:$0 sm:$0xff] }
 0x35f   :  { %1083 = vrot.lane.b32.xlu0 %v1078_v33, %s8136_s14 }
 0x360   :  { %v1072_v35 = vpop.permute.xlu0 %1071 }
 0x361   :  { %v1077_v36 = vmul.f32 %v7615_v34, %v1072_v35 }
 0x363   :  { %1081 = vrot.lane.b32.xlu1 %v1077_v36, %s8136_s14 }
 0x364   :  { %v1198_v38 = vpop.permute.xlu1 %1197 }
 0x365   :  { %v1202_v39 = vmul.f32 %v7617_v37, %v1198_v38 }
 0x367   :  { %1207 = vrot.lane.b32.xlu0 %v1202_v39, %s8136_s14 }
 0x368   :  { %v1196_v41 = vpop.permute.xlu1 %1195 }
 0x369   :  { %v1201_v42 = vmul.f32 %v7619_v40, %v1196_v41 }
 0x36b   :  { %1205 = vrot.lane.b32.xlu1 %v1201_v42, %s8136_s14 }
 0x3d1   :  { %v1084_v44 = vpop.permute.xlu0 %1083 }
 0x3d2   :  { %v8539_v46 = vadd.f32 %v1084_v44, %v1068_v43 }
 0x3d4   :  { %7620 = vtanh.f32 %v8539_v46 }
 0x3d5   :  { %v1082_v48 = vpop.permute.xlu1 %1081 }
 0x3d6   :  { %v8542_v49 = vadd.f32 %v1082_v48, %v1067_v47 }
 0x3d8   :  { %7622 = vtanh.f32 %v8542_v49 }
 0x3d9   :  { %v1208_v51 = vpop.permute.xlu0 %1207 }
 0x3da   :  { %v8545_v52 = vadd.f32 %v1208_v51, %v1192_v50 }
 0x3dc   :  { %7624 = vtanh.f32 %v8545_v52 }
 0x3dd   :  { %v1206_v54 = vpop.permute.xlu1 %1205 }
 0x3de   :  { %v7621_v55 = vpop.eup %7620  ;;  %v8548_v56 = vadd.f32 %v1206_v54, %v1191_v53 }
 0x3df   :  { %1095 = vrot.lane.b32.xlu0 %v7621_v55, %s8135_s8 }
 0x3e0   :  { %7626 = vtanh.f32 %v8548_v56 }
 0x3e2   :  { %v7623_v57 = vpop.eup %7622 }
 0x3e3   :  { %1093 = vrot.lane.b32.xlu1 %v7623_v57, %s8135_s8 }
 0x3e6   :  { %v7625_v58 = vpop.eup %7624 }
 0x3e7   :  { %1219 = vrot.lane.b32.xlu0 %v7625_v58, %s8135_s8 }
 0x3ea   :  { %v7627_v59 = vpop.eup %7626 }
 0x3eb   :  { %1217 = vrot.lane.b32.xlu1 %v7627_v59, %s8135_s8 }
 0x451   :  { %v1096_v60 = vpop.permute.xlu0 %1095 }
 0x452   :  { %v8555_v61 = vmul.f32 %v7613_v30, %v1096_v60 }
 0x454   :  { %v1251_v63 = vrot.slane %v8555_v61, 7 }
 0x455   :  { %v1094_v62 = vpop.permute.xlu1 %1093 }
 0x456   :  { %v8558_v0 = vmul.f32 %v7615_v34, %v1094_v62 }
 0x458   :  { %v1253_v2 = vsel %vm1252_vm10, %v1251_v63, %v8558_v0 }
 0x459   :  { %v1220_v4 = vpop.permute.xlu0 %1219  ;;  %1254 = vrot.lane.b32.xlu0 %v1253_v2, %s8136_s14 }
 0x45a   :  { %v8563_v5 = vmul.f32 %v7617_v37, %v1220_v4 }
 0x45c   :  { %v1382_v10 = vrot.slane %v8563_v5, 7 }
 0x45d   :  { %v1218_v9 = vpop.permute.xlu1 %1217 }
 0x45e   :  { %v8566_v12 = vmul.f32 %v7619_v40, %v1218_v9 }
 0x460   :  { %v1383_v13 = vsel %vm1252_vm10, %v1382_v10, %v8566_v12 }
 0x461   :  { %1384 = vrot.lane.b32.xlu1 %v1383_v13, %s8136_s14 }
 0x4cb   :  { %v1255_v14 = vpop.permute.xlu0 %1254 }
 0x4cc   :  { %6819 = vmatmul.mubr.msk.f32.vlgmr.msra.gmra.mrb[16].mxu1 %vm852_vm9, %v1255_v14 }
 0x4cd   :  { %7324 = vmatpush3.bf16.msra.mxu1 %v8502_v28  ;;  %6829 = vmatprep.mubr.msk.f32.mxu1 %vm8134_vm8, %v9814_v3 }
 0x4ce   :  { %7325 = vmatprep.subr.bf16.mxu1 %v9818_v7 }
 0x4d1   :  { %7327 = vmatpush3.bf16.msra.mxu1 %v8512_v32 }
 0x4d2   :  { %7334 = vmatprep.subr.bf16.mxu1 %v9818_v7 }
 0x4d3   :  { %v1385_v15 = vpop.permute.xlu1 %1384 }
 0x4d4   :  { %6830 = vmatmul.mubr.msk.f32.vlgmr.msra.gmra.mrb[18].mxu1 %vm852_vm9, %v1385_v15 }
 0x4d5   :  { %7336 = vmatpush3.bf16.msra.mxu1 %v8502_v28  ;;  %6851 = vmatprep.mubr.msk.f32.mxu1 %vm8134_vm8, %v9814_v3 }
 0x4d6   :  { %7337 = vmatprep.subr.bf16.mxu1 %v9818_v7 }
 0x4d9   :  { %7339 = vmatpush3.bf16.msra.mxu1 %v8512_v32 }
 0x4da   :  { %7346 = vmatprep.subr.bf16.mxu1 %v9818_v7 }
 0x59f   :  { %v1324_v17 = vpop.f32.mrb[16].mxu1 }
 0x5a0   :  { %v1329_v18 = vrot.slane %v1324_v17, 1  ;;  %v6820_v19 = vpop.f32.mrb[17].mxu1  ;;  %v1332_v23 = vadd.f32 %v1324_v17, %v1247_v22 }
 0x5a2   :  { %v1333_v21 = vadd.f32 %v1329_v18, %v1248_v20  ;;  %v6289_v39 = vmul.f32 -1.442695, %v1332_v23 }
 0x5a4   :  { %7628 = vtanh.f32 %v1333_v21  ;;  %v6290_v38 = vmul.f32 -1.442695, %v1333_v21 }
 0x5a5   :  { %7630 = vtanh.f32 %v1332_v23 }
 0x5a7   :  { %v1454_v24 = vpop.f32.mrb[18].mxu1 }
 0x5a8   :  { %v1459_v25 = vrot.slane %v1454_v24, 1  ;;  %v6831_v26 = vpop.f32.mrb[19].mxu1  ;;  %v1462_v33 = vadd.f32 %v1454_v24, %v1249_v31 }
 0x5aa   :  { %v1463_v30 = vadd.f32 %v1459_v25, %v1250_v27  ;;  %v6292_v41 = vmul.f32 -1.442695, %v1462_v33 }
 0x5ac   :  { %7632 = vtanh.f32 %v1463_v30  ;;  %v6293_v40 = vmul.f32 -1.442695, %v1463_v30 }
 0x5ad   :  { %7634 = vtanh.f32 %v1462_v33 }
 0x5ae   :  { %v7629_v34 = vpop.eup %7628  ;;  %7636 = vpow2.f32 %v6290_v38 }
 0x5af   :  { %1354 = vrot.lane.b32.xlu1 %v7629_v34, %s8135_s8  ;;  %v7631_v35 = vpop.eup %7630  ;;  %7638 = vpow2.f32 %v6289_v39 }
 0x5b0   :  { %7640 = vpow2.f32 %v6293_v40 }
 0x5b1   :  { %7642 = vpow2.f32 %v6292_v41 }
 0x5b3   :  { %1352 = vrot.lane.b32.xlu1 %v7631_v35, %s8135_s8 }
 0x5b6   :  { %v7633_v36 = vpop.eup %7632 }
 0x5b7   :  { %1484 = vrot.lane.b32.xlu0 %v7633_v36, %s8135_s8  ;;  %v7635_v37 = vpop.eup %7634 }
 0x5b8   :  { %v7637_v42 = vpop.eup %7636 }
 0x5b9   :  { %v1341_v43 = vadd.f32 1.0, %v7637_v42  ;;  %v7639_v44 = vpop.eup %7638 }
 0x5ba   :  { %v1340_v47 = vadd.f32 1.0, %v7639_v44  ;;  %v7641_v48 = vpop.eup %7640 }
 0x5bb   :  { %1482 = vrot.lane.b32.xlu0 %v7635_v37, %s8135_s8  ;;  %7644 = vrcp.f32 %v1341_v43  ;;  %v1471_v50 = vadd.f32 1.0, %v7641_v48  ;;  %v7643_v51 = vpop.eup %7642  ;;  %v1533_v48 = vld [vmem:[#allocation2 + $0x22] ss:$0 sm:$0xff] }
 0x5bc   :  { %7646 = vrcp.f32 %v1340_v47  ;;  %v1470_v53 = vadd.f32 1.0, %v7643_v51  ;;  %v1532_v51 = vld [vmem:[#allocation2 + $0x2] ss:$0 sm:$0xff] }
 0x5bd   :  { %7648 = vrcp.f32 %v1471_v50 }
 0x5be   :  { %7650 = vrcp.f32 %v1470_v53 }
 0x5c5   :  { %v7645_v54 = vpop.eup %7644 }
 0x5c6   :  { %v7647_v58 = vpop.eup %7646  ;;  %v1349_v13 = vmul.f32 %v7645_v54, %v8539_v46 }
 0x5c7   :  { %v7649_v62 = vpop.eup %7648  ;;  %v1348_v17 = vmul.f32 %v7647_v58, %v8542_v49 }
 0x5c8   :  { %v7651_v4 = vpop.eup %7650  ;;  %v1479_v20 = vmul.f32 %v7649_v62, %v8545_v52 }
 0x5c9   :  { %v1478_v46 = vmul.f32 %v7651_v4, %v8548_v56 }
 0x621   :  { %v1355_v55 = vpop.permute.xlu1 %1354 }
 0x622   :  { %v1359_v57 = vmul.f32 %v7645_v54, %v1355_v55 }
 0x624   :  { %1364 = vrot.lane.b32.xlu1 %v1359_v57, %s8136_s14 }
 0x625   :  { %v1353_v59 = vpop.permute.xlu1 %1352 }
 0x626   :  { %v1358_v60 = vmul.f32 %v7647_v58, %v1353_v59 }
 0x628   :  { %1362 = vrot.lane.b32.xlu1 %v1358_v60, %s8136_s14  ;;  %v1534_v60 = vld [vmem:[#allocation2 + $0x1d] ss:$0 sm:$0xff] }
 0x629   :  { %v1485_v63 = vpop.permute.xlu0 %1484 }
 0x62a   :  { %v1489_v2 = vmul.f32 %v7649_v62, %v1485_v63 }
 0x62c   :  { %1494 = vrot.lane.b32.xlu0 %v1489_v2, %s8136_s14 }
 0x62d   :  { %v1483_v9 = vpop.permute.xlu0 %1482 }
 0x62e   :  { %v1488_v10 = vmul.f32 %v7651_v4, %v1483_v9 }
 0x630   :  { %1492 = vrot.lane.b32.xlu0 %v1488_v10, %s8136_s14 }
 0x696   :  { %v1365_v14 = vpop.permute.xlu1 %1364 }
 0x697   :  { %v8594_v15 = vadd.f32 %v1365_v14, %v1349_v13 }
 0x699   :  { %7652 = vtanh.f32 %v8594_v15 }
 0x69a   :  { %v1363_v18 = vpop.permute.xlu1 %1362 }
 0x69b   :  { %v8598_v19 = vadd.f32 %v1363_v18, %v1348_v17 }
 0x69d   :  { %7654 = vtanh.f32 %v8598_v19 }
 0x69e   :  { %v1495_v21 = vpop.permute.xlu0 %1494 }
 0x69f   :  { %v8602_v22 = vadd.f32 %v1495_v21, %v1479_v20 }
 0x6a1   :  { %7656 = vtanh.f32 %v8602_v22 }
 0x6a2   :  { %v1493_v23 = vpop.permute.xlu0 %1492 }
 0x6a3   :  { %v7653_v24 = vpop.eup %7652  ;;  %v8606_v25 = vadd.f32 %v1493_v23, %v1478_v46 }
 0x6a4   :  { %1376 = vrot.lane.b32.xlu1 %v7653_v24, %s8135_s8 }
 0x6a5   :  { %7658 = vtanh.f32 %v8606_v25 }
 0x6a7   :  { %v7655_v49 = vpop.eup %7654 }
 0x6a8   :  { %1374 = vrot.lane.b32.xlu1 %v7655_v49, %s8135_s8 }
 0x6ab   :  { %v7657_v26 = vpop.eup %7656 }
 0x6ac   :  { %1506 = vrot.lane.b32.xlu0 %v7657_v26, %s8135_s8 }
 0x6af   :  { %v7659_v52 = vpop.eup %7658 }
 0x6b0   :  { %1504 = vrot.lane.b32.xlu0 %v7659_v52, %s8135_s8 }
 0x716   :  { %v1377_v27 = vpop.permute.xlu1 %1376 }
 0x717   :  { %v8613_v30 = vmul.f32 %v7645_v54, %v1377_v27 }
 0x719   :  { %v1536_v31 = vrot.slane %v8613_v30, 7 }
 0x71a   :  { %v1375_v56 = vpop.permute.xlu1 %1374 }
 0x71b   :  { %v8616_v33 = vmul.f32 %v7647_v58, %v1375_v56  ;;  %v1535_v58 = vld [vmem:[#allocation2 + $0x3d] ss:$0 sm:$0xff] }
 0x71d   :  { %v1537_v34 = vsel %vm1252_vm10, %v1536_v31, %v8616_v33 }
 0x71e   :  { %v1507_v35 = vpop.permute.xlu0 %1506  ;;  %1538 = vrot.lane.b32.xlu1 %v1537_v34, %s8136_s14 }
 0x71f   :  { %v8621_v36 = vmul.f32 %v7649_v62, %v1507_v35 }
 0x721   :  { %v1666_v38 = vrot.slane %v8621_v36, 7 }
 0x722   :  { %v1505_v37 = vpop.permute.xlu0 %1504 }
 0x723   :  { %v8624_v39 = vmul.f32 %v7651_v4, %v1505_v37 }
 0x725   :  { %v1667_v40 = vsel %vm1252_vm10, %v1666_v38, %v8624_v39 }
 0x726   :  { %1668 = vrot.lane.b32.xlu0 %v1667_v40, %s8136_s14 }
 0x790   :  { %v1539_v41 = vpop.permute.xlu1 %1538 }
 0x791   :  { %6841 = vmatmul.mubr.msk.f32.vlgmr.msra.gmra.mrb[4].mxu0 %vm852_vm9, %v1539_v41 }
 0x792   :  { %7342 = vmatpush3.bf16.msra.mxu0 %v8463_v8  ;;  %6862 = vmatprep.mubr.msk.f32.mxu0 %vm8134_vm8, %v9814_v3 }
 0x793   :  { %7343 = vmatprep.subr.bf16.mxu0 %v9818_v7 }
 0x796   :  { %7345 = vmatpush3.bf16.msra.mxu0 %v8474_v11 }
 0x797   :  { %7352 = vmatprep.subr.bf16.mxu0 %v9818_v7 }
 0x798   :  { %v1669_v42 = vpop.permute.xlu0 %1668 }
 0x799   :  { %6852 = vmatmul.mubr.msk.f32.vlgmr.msra.gmra.mrb[20].mxu1 %vm852_vm9, %v1669_v42 }
 0x79a   :  { %7348 = vmatpush3.bf16.msra.mxu1 %v8502_v28  ;;  %6873 = vmatprep.mubr.msk.f32.mxu1 %vm8134_vm8, %v9814_v3 }
 0x79b   :  { %7349 = vmatprep.subr.bf16.mxu1 %v9818_v7 }
 0x79e   :  { %7351 = vmatpush3.bf16.msra.mxu1 %v8512_v32 }
 0x79f   :  { %7358 = vmatprep.subr.bf16.mxu1 %v9818_v7 }
 0x864   :  { %v1608_v43 = vpop.f32.mrb[4].mxu0 }
 0x865   :  { %v1613_v44 = vrot.slane %v1608_v43, 1  ;;  %v6842_v47 = vpop.f32.mrb[5].mxu0  ;;  %v1616_v53 = vadd.f32 %v1608_v43, %v1532_v51 }
 0x867   :  { %v1617_v50 = vadd.f32 %v1613_v44, %v1533_v48  ;;  %v6295_v13 = vmul.f32 -1.442695, %v1616_v53 }
 0x869   :  { %7660 = vtanh.f32 %v1617_v50  ;;  %v6296_v10 = vmul.f32 -1.442695, %v1617_v50 }
 0x86a   :  { %7662 = vtanh.f32 %v1616_v53 }
 0x86c   :  { %v1738_v54 = vpop.f32.mrb[20].mxu1 }
 0x86d   :  { %v1743_v55 = vrot.slane %v1738_v54, 1  ;;  %v6853_v57 = vpop.f32.mrb[21].mxu1  ;;  %v1746_v62 = vadd.f32 %v1738_v54, %v1534_v60 }
 0x86f   :  { %v1747_v59 = vadd.f32 %v1743_v55, %v1535_v58  ;;  %v6298_v17 = vmul.f32 -1.442695, %v1746_v62 }
 0x871   :  { %7664 = vtanh.f32 %v1747_v59  ;;  %v6299_v14 = vmul.f32 -1.442695, %v1747_v59 }
 0x872   :  { %7666 = vtanh.f32 %v1746_v62 }
 0x873   :  { %v7661_v63 = vpop.eup %7660  ;;  %7668 = vpow2.f32 %v6296_v10 }
 0x874   :  { %1638 = vrot.lane.b32.xlu1 %v7661_v63, %s8135_s8  ;;  %v7663_v2 = vpop.eup %7662  ;;  %7670 = vpow2.f32 %v6295_v13 }
 0x875   :  { %7672 = vpow2.f32 %v6299_v14 }
 0x876   :  { %7674 = vpow2.f32 %v6298_v17 }
 0x878   :  { %1636 = vrot.lane.b32.xlu1 %v7663_v2, %s8135_s8 }
 0x87b   :  { %v7665_v4 = vpop.eup %7664 }
 0x87c   :  { %1768 = vrot.lane.b32.xlu0 %v7665_v4, %s8135_s8  ;;  %v7667_v9 = vpop.eup %7666 }
 0x87d   :  { %v7669_v18 = vpop.eup %7668 }
 0x87e   :  { %v1625_v20 = vadd.f32 1.0, %v7669_v18  ;;  %v7671_v21 = vpop.eup %7670 }
 0x87f   :  { %v1624_v46 = vadd.f32 1.0, %v7671_v21  ;;  %v7673_v23 = vpop.eup %7672 }
 0x880   :  { %1766 = vrot.lane.b32.xlu0 %v7667_v9, %s8135_s8  ;;  %7676 = vrcp.f32 %v1625_v20  ;;  %v1755_v24 = vadd.f32 1.0, %v7673_v23  ;;  %v7675_v49 = vpop.eup %7674 }
 0x881   :  { %7678 = vrcp.f32 %v1624_v46  ;;  %v1754_v26 = vadd.f32 1.0, %v7675_v49 }
 0x882   :  { %7680 = vrcp.f32 %v1755_v24 }
 0x883   :  { %7682 = vrcp.f32 %v1754_v26 }
 0x88a   :  { %v7677_v52 = vpop.eup %7676 }
 0x88b   :  { %v7679_v31 = vpop.eup %7678  ;;  %v1633_v44 = vmul.f32 %v7677_v52, %v8594_v15 }
 0x88c   :  { %v7681_v37 = vpop.eup %7680  ;;  %v1632_v50 = vmul.f32 %v7679_v31, %v8598_v19 }
 0x88d   :  { %v7683_v41 = vpop.eup %7682  ;;  %v1763_v54 = vmul.f32 %v7681_v37, %v8602_v22 }
 0x88e   :  { %v1762_v15 = vmul.f32 %v7683_v41, %v8606_v25 }
 0x8e6   :  { %v1639_v27 = vpop.permute.xlu1 %1638 }
 0x8e7   :  { %v1643_v56 = vmul.f32 %v7677_v52, %v1639_v27 }
 0x8e9   :  { %1648 = vrot.lane.b32.xlu1 %v1643_v56, %s8136_s14  ;;  %v1816_v56 = vld [vmem:[#allocation2 + $0x3] ss:$0 sm:$0xff] }
 0x8ea   :  { %v1637_v34 = vpop.permute.xlu1 %1636 }
 0x8eb   :  { %v1642_v35 = vmul.f32 %v7679_v31, %v1637_v34 }
 0x8ed   :  { %1646 = vrot.lane.b32.xlu1 %v1642_v35, %s8136_s14 }
 0x8ee   :  { %v1769_v38 = vpop.permute.xlu0 %1768 }
 0x8ef   :  { %v1773_v40 = vmul.f32 %v7681_v37, %v1769_v38  ;;  %v1819_v38 = vld [vmem:[#allocation2 + $0x3c] ss:$0 sm:$0xff] }
 0x8f1   :  { %1778 = vrot.lane.b32.xlu0 %v1773_v40, %s8136_s14 }
 0x8f2   :  { %v1767_v42 = vpop.permute.xlu0 %1766 }
 0x8f3   :  { %v1772_v43 = vmul.f32 %v7683_v41, %v1767_v42 }
 0x8f5   :  { %1776 = vrot.lane.b32.xlu0 %v1772_v43, %s8136_s14 }
 0x95b   :  { %v1649_v47 = vpop.permute.xlu1 %1648 }
 0x95c   :  { %v8652_v48 = vadd.f32 %v1649_v47, %v1633_v44 }
 0x95e   :  { %7684 = vtanh.f32 %v8652_v48 }
 0x95f   :  { %v1647_v51 = vpop.permute.xlu1 %1646 }
 0x960   :  { %v8656_v53 = vadd.f32 %v1647_v51, %v1632_v50 }
 0x962   :  { %7686 = vtanh.f32 %v8656_v53 }
 0x963   :  { %v1779_v55 = vpop.permute.xlu0 %1778 }
 0x964   :  { %v8660_v57 = vadd.f32 %v1779_v55, %v1763_v54 }
 0x966   :  { %7688 = vtanh.f32 %v8660_v57 }
 0x967   :  { %v1777_v58 = vpop.permute.xlu0 %1776 }
 0x968   :  { %v7685_v59 = vpop.eup %7684  ;;  %v8664_v60 = vadd.f32 %v1777_v58, %v1762_v15 }
 0x969   :  { %1660 = vrot.lane.b32.xlu1 %v7685_v59, %s8135_s8 }
 0x96a   :  { %7690 = vtanh.f32 %v8664_v60 }
 0x96c   :  { %v7687_v19 = vpop.eup %7686 }
 0x96d   :  { %1658 = vrot.lane.b32.xlu1 %v7687_v19, %s8135_s8 }
 0x970   :  { %v7689_v62 = vpop.eup %7688 }
 0x971   :  { %1790 = vrot.lane.b32.xlu0 %v7689_v62, %s8135_s8 }
 0x974   :  { %v7691_v22 = vpop.eup %7690 }
 0x975   :  { %1788 = vrot.lane.b32.xlu0 %v7691_v22, %s8135_s8 }
 0x9db   :  { %v1661_v63 = vpop.permute.xlu1 %1660 }
 0x9dc   :  { %v8671_v2 = vmul.f32 %v7677_v52, %v1661_v63  ;;  %v1817_v52 = vld [vmem:[#allocation2 + $0x23] ss:$0 sm:$0xff] }
 0x9de   :  { %v1820_v4 = vrot.slane %v8671_v2, 7 }
 0x9df   :  { %v1659_v25 = vpop.permute.xlu1 %1658 }
 0x9e0   :  { %v8674_v9 = vmul.f32 %v7679_v31, %v1659_v25 }
 0x9e2   :  { %v1821_v10 = vsel %vm1252_vm10, %v1820_v4, %v8674_v9 }
 0x9e3   :  { %v1791_v13 = vpop.permute.xlu0 %1790  ;;  %1822 = vrot.lane.b32.xlu1 %v1821_v10, %s8136_s14 }
 0x9e4   :  { %v8679_v14 = vmul.f32 %v7681_v37, %v1791_v13 }
 0x9e6   :  { %v1950_v18 = vrot.slane %v8679_v14, 7 }
 0x9e7   :  { %v1789_v17 = vpop.permute.xlu0 %1788 }
 0x9e8   :  { %v8682_v20 = vmul.f32 %v7683_v41, %v1789_v17  ;;  %v1818_v41 = vld [vmem:[#allocation2 + $0x1c] ss:$0 sm:$0xff] }
 0x9ea   :  { %v1951_v21 = vsel %vm1252_vm10, %v1950_v18, %v8682_v20 }
 0x9eb   :  { %1952 = vrot.lane.b32.xlu0 %v1951_v21, %s8136_s14 }
 0xa55   :  { %v1823_v46 = vpop.permute.xlu1 %1822 }
 0xa56   :  { %6863 = vmatmul.mubr.msk.f32.vlgmr.msra.gmra.mrb[6].mxu0 %vm852_vm9, %v1823_v46 }
 0xa57   :  { %7354 = vmatpush3.bf16.msra.mxu0 %v8463_v8  ;;  %6884 = vmatprep.mubr.msk.f32.mxu0 %vm8134_vm8, %v9814_v3 }
 0xa58   :  { %7355 = vmatprep.subr.bf16.mxu0 %v9818_v7 }
 0xa5b   :  { %7357 = vmatpush3.bf16.msra.mxu0 %v8474_v11 }
 0xa5c   :  { %7364 = vmatprep.subr.bf16.mxu0 %v9818_v7 }
 0xa5d   :  { %v1953_v23 = vpop.permute.xlu0 %1952 }
 0xa5e   :  { %6874 = vmatmul.mubr.msk.f32.vlgmr.msra.gmra.mrb[22].mxu1 %vm852_vm9, %v1953_v23 }
 0xa5f   :  { %7360 = vmatpush3.bf16.msra.mxu1 %v8502_v28  ;;  %6895 = vmatprep.mubr.msk.f32.mxu1 %vm8134_vm8, %v9814_v3 }
 0xa60   :  { %7361 = vmatprep.subr.bf16.mxu1 %v9818_v7 }
 0xa63   :  { %7363 = vmatpush3.bf16.msra.mxu1 %v8512_v32 }
 0xa64   :  { %7370 = vmatprep.subr.bf16.mxu1 %v9818_v7 }
 0xb29   :  { %v1892_v24 = vpop.f32.mrb[6].mxu0 }
 0xb2a   :  { %v1897_v49 = vrot.slane %v1892_v24, 1  ;;  %v6864_v26 = vpop.f32.mrb[7].mxu0  ;;  %v1900_v31 = vadd.f32 %v1892_v24, %v1816_v56 }
 0xb2c   :  { %v1901_v27 = vadd.f32 %v1897_v49, %v1817_v52  ;;  %v6301_v54 = vmul.f32 -1.442695, %v1900_v31 }
 0xb2e   :  { %7692 = vtanh.f32 %v1901_v27  ;;  %v6302_v51 = vmul.f32 -1.442695, %v1901_v27 }
 0xb2f   :  { %7694 = vtanh.f32 %v1900_v31 }
 0xb31   :  { %v2022_v34 = vpop.f32.mrb[22].mxu1 }
 0xb32   :  { %v2027_v35 = vrot.slane %v2022_v34, 1  ;;  %v6875_v37 = vpop.f32.mrb[23].mxu1  ;;  %v2030_v42 = vadd.f32 %v2022_v34, %v1818_v41 }
 0xb34   :  { %v2031_v40 = vadd.f32 %v2027_v35, %v1819_v38  ;;  %v6304_v15 = vmul.f32 -1.442695, %v2030_v42 }
 0xb36   :  { %7696 = vtanh.f32 %v2031_v40  ;;  %v6305_v55 = vmul.f32 -1.442695, %v2031_v40 }
 0xb37   :  { %7698 = vtanh.f32 %v2030_v42 }
 0xb38   :  { %v7693_v43 = vpop.eup %7692  ;;  %7700 = vpow2.f32 %v6302_v51 }
 0xb39   :  { %1922 = vrot.lane.b32.xlu1 %v7693_v43, %s8135_s8  ;;  %v7695_v44 = vpop.eup %7694  ;;  %7702 = vpow2.f32 %v6301_v54 }
 0xb3a   :  { %7704 = vpow2.f32 %v6305_v55 }
 0xb3b   :  { %7706 = vpow2.f32 %v6304_v15 }
 0xb3d   :  { %1920 = vrot.lane.b32.xlu1 %v7695_v44, %s8135_s8 }
 0xb40   :  { %v7697_v47 = vpop.eup %7696 }
 0xb41   :  { %2052 = vrot.lane.b32.xlu0 %v7697_v47, %s8135_s8  ;;  %v7699_v50 = vpop.eup %7698 }
 0xb42   :  { %v7701_v58 = vpop.eup %7700 }
 0xb43   :  { %v1909_v59 = vadd.f32 1.0, %v7701_v58  ;;  %v7703_v19 = vpop.eup %7702 }
 0xb44   :  { %v1908_v62 = vadd.f32 1.0, %v7703_v19  ;;  %v7705_v22 = vpop.eup %7704 }
 0xb45   :  { %2050 = vrot.lane.b32.xlu0 %v7699_v50, %s8135_s8  ;;  %7708 = vrcp.f32 %v1909_v59  ;;  %v2039_v63 = vadd.f32 1.0, %v7705_v22  ;;  %v7707_v25 = vpop.eup %7706 }
 0xb46   :  { %7710 = vrcp.f32 %v1908_v62  ;;  %v2038_v4 = vadd.f32 1.0, %v7707_v25 }
 0xb47   :  { %7712 = vrcp.f32 %v2039_v63 }
 0xb48   :  { %7714 = vrcp.f32 %v2038_v4 }
 0xb4f   :  { %v7709_v10 = vpop.eup %7708 }
 0xb50   :  { %v7711_v18 = vpop.eup %7710  ;;  %v1917_v56 = vmul.f32 %v7709_v10, %v8652_v48 }
 0xb51   :  { %v7713_v23 = vpop.eup %7712  ;;  %v1916_v35 = vmul.f32 %v7711_v18, %v8656_v53 }
 0xb52   :  { %v7715_v26 = vpop.eup %7714  ;;  %v2047_v40 = vmul.f32 %v7713_v23, %v8660_v57 }
 0xb53   :  { %v2046_v48 = vmul.f32 %v7715_v26, %v8664_v60 }
 0xbab   :  { %v1923_v13 = vpop.permute.xlu1 %1922 }
 0xbac   :  { %v1927_v17 = vmul.f32 %v7709_v10, %v1923_v13 }
 0xbae   :  { %1932 = vrot.lane.b32.xlu1 %v1927_v17, %s8136_s14 }
 0xbaf   :  { %v1921_v21 = vpop.permute.xlu1 %1920 }
 0xbb0   :  { %v1926_v46 = vmul.f32 %v7711_v18, %v1921_v21  ;;  %v2101_v21 = vld [vmem:[#allocation2 + $0x24] ss:$0 sm:$0xff] }
 0xbb2   :  { %1930 = vrot.lane.b32.xlu1 %v1926_v46, %s8136_s14 }
 0xbb3   :  { %v2053_v24 = vpop.permute.xlu0 %2052 }
 0xbb4   :  { %v2057_v49 = vmul.f32 %v7713_v23, %v2053_v24 }
 0xbb6   :  { %2062 = vrot.lane.b32.xlu0 %v2057_v49, %s8136_s14 }
 0xbb7   :  { %v2051_v52 = vpop.permute.xlu0 %2050 }
 0xbb8   :  { %v2056_v27 = vmul.f32 %v7715_v26, %v2051_v52 }
 0xbba   :  { %2060 = vrot.lane.b32.xlu0 %v2056_v27, %s8136_s14  ;;  %v2103_v27 = vld [vmem:[#allocation2 + $0x3b] ss:$0 sm:$0xff] }
 0xc20   :  { %v1933_v31 = vpop.permute.xlu1 %1932 }
 0xc21   :  { %v8710_v34 = vadd.f32 %v1933_v31, %v1917_v56  ;;  %v2102_v31 = vld [vmem:[#allocation2 + $0x1b] ss:$0 sm:$0xff] }
 0xc23   :  { %7716 = vtanh.f32 %v8710_v34 }
 0xc24   :  { %v1931_v37 = vpop.permute.xlu1 %1930 }
 0xc25   :  { %v8714_v38 = vadd.f32 %v1931_v37, %v1916_v35 }
 0xc27   :  { %7718 = vtanh.f32 %v8714_v38 }
 0xc28   :  { %v2063_v41 = vpop.permute.xlu0 %2062 }
 0xc29   :  { %v8718_v42 = vadd.f32 %v2063_v41, %v2047_v40 }
 0xc2b   :  { %7720 = vtanh.f32 %v8718_v42 }
 0xc2c   :  { %v2061_v43 = vpop.permute.xlu0 %2060 }
 0xc2d   :  { %v7717_v44 = vpop.eup %7716  ;;  %v8722_v47 = vadd.f32 %v2061_v43, %v2046_v48 }
 0xc2e   :  { %1944 = vrot.lane.b32.xlu1 %v7717_v44, %s8135_s8 }
 0xc2f   :  { %7722 = vtanh.f32 %v8722_v47 }
 0xc31   :  { %v7719_v53 = vpop.eup %7718 }
 0xc32   :  { %1942 = vrot.lane.b32.xlu1 %v7719_v53, %s8135_s8 }
 0xc35   :  { %v7721_v50 = vpop.eup %7720 }
 0xc36   :  { %2074 = vrot.lane.b32.xlu0 %v7721_v50, %s8135_s8 }
 0xc39   :  { %v7723_v57 = vpop.eup %7722 }
 0xc3a   :  { %2072 = vrot.lane.b32.xlu0 %v7723_v57, %s8135_s8 }
 0xca0   :  { %v1945_v51 = vpop.permute.xlu1 %1944 }
 0xca1   :  { %v8729_v54 = vmul.f32 %v7709_v10, %v1945_v51 }
 0xca3   :  { %v2104_v55 = vrot.slane %v8729_v54, 7 }
 0xca4   :  { %v1943_v60 = vpop.permute.xlu1 %1942 }
 0xca5   :  { %v8732_v15 = vmul.f32 %v7711_v18, %v1943_v60 }
 0xca7   :  { %v2105_v58 = vsel %vm1252_vm10, %v2104_v55, %v8732_v15 }
 0xca8   :  { %v2075_v59 = vpop.permute.xlu0 %2074  ;;  %2106 = vrot.lane.b32.xlu1 %v2105_v58, %s8136_s14 }
 0xca9   :  { %v8737_v19 = vmul.f32 %v7713_v23, %v2075_v59  ;;  %v2100_v23 = vld [vmem:[#allocation2 + $0x4] ss:$0 sm:$0xff] }
 0xcab   :  { %v2234_v22 = vrot.slane %v8737_v19, 7 }
 0xcac   :  { %v2073_v62 = vpop.permute.xlu0 %2072 }
 0xcad   :  { %v8740_v63 = vmul.f32 %v7715_v26, %v2073_v62 }
 0xcaf   :  { %v2235_v25 = vsel %vm1252_vm10, %v2234_v22, %v8740_v63 }
 0xcb0   :  { %2236 = vrot.lane.b32.xlu0 %v2235_v25, %s8136_s14 }
 0xd1a   :  { %v2107_v4 = vpop.permute.xlu1 %2106 }
 0xd1b   :  { %6885 = vmatmul.mubr.msk.f32.vlgmr.msra.gmra.mrb[8].mxu0 %vm852_vm9, %v2107_v4 }
 0xd1c   :  { %7366 = vmatpush3.bf16.msra.mxu0 %v8463_v8  ;;  %6906 = vmatprep.mubr.msk.f32.mxu0 %vm8134_vm8, %v9814_v3 }
 0xd1d   :  { %7367 = vmatprep.subr.bf16.mxu0 %v9818_v7 }
 0xd20   :  { %7369 = vmatpush3.bf16.msra.mxu0 %v8474_v11 }
 0xd21   :  { %7376 = vmatprep.subr.bf16.mxu0 %v9818_v7 }
 0xd22   :  { %v2237_v10 = vpop.permute.xlu0 %2236 }
 0xd23   :  { %6896 = vmatmul.mubr.msk.f32.vlgmr.msra.gmra.mrb[24].mxu1 %vm852_vm9, %v2237_v10 }
 0xd24   :  { %7372 = vmatpush3.bf16.msra.mxu1 %v8502_v28  ;;  %6917 = vmatprep.mubr.msk.f32.mxu1 %vm8134_vm8, %v9814_v3 }
 0xd25   :  { %7373 = vmatprep.subr.bf16.mxu1 %v9818_v7 }
 0xd28   :  { %7375 = vmatpush3.bf16.msra.mxu1 %v8512_v32 }
 0xd29   :  { %7382 = vmatprep.subr.bf16.mxu1 %v9818_v7 }
 0xdee   :  { %v2176_v13 = vpop.f32.mrb[8].mxu0 }
 0xdef   :  { %v2181_v17 = vrot.slane %v2176_v13, 1  ;;  %v6886_v18 = vpop.f32.mrb[9].mxu0  ;;  %v2184_v24 = vadd.f32 %v2176_v13, %v2100_v23 }
 0xdf1   :  { %v2185_v46 = vadd.f32 %v2181_v17, %v2101_v21  ;;  %v6307_v44 = vmul.f32 -1.442695, %v2184_v24 }
 0xdf3   :  { %7724 = vtanh.f32 %v2185_v46  ;;  %v6308_v43 = vmul.f32 -1.442695, %v2185_v46 }
 0xdf4   :  { %7726 = vtanh.f32 %v2184_v24 }
 0xdf6   :  { %v2306_v49 = vpop.f32.mrb[24].mxu1 }
 0xdf7   :  { %v2311_v26 = vrot.slane %v2306_v49, 1  ;;  %v6897_v52 = vpop.f32.mrb[25].mxu1  ;;  %v2314_v35 = vadd.f32 %v2306_v49, %v2102_v31 }
 0xdf9   :  { %v2315_v56 = vadd.f32 %v2311_v26, %v2103_v27  ;;  %v6310_v50 = vmul.f32 -1.442695, %v2314_v35 }
 0xdfb   :  { %7728 = vtanh.f32 %v2315_v56  ;;  %v6311_v53 = vmul.f32 -1.442695, %v2315_v56 }
 0xdfc   :  { %7730 = vtanh.f32 %v2314_v35 }
 0xdfd   :  { %v7725_v37 = vpop.eup %7724  ;;  %7732 = vpow2.f32 %v6308_v43 }
 0xdfe   :  { %2206 = vrot.lane.b32.xlu1 %v7725_v37, %s8135_s8  ;;  %v7727_v40 = vpop.eup %7726  ;;  %7734 = vpow2.f32 %v6307_v44 }
 0xdff   :  { %7736 = vpow2.f32 %v6311_v53 }
 0xe00   :  { %7738 = vpow2.f32 %v6310_v50 }
 0xe02   :  { %2204 = vrot.lane.b32.xlu1 %v7727_v40, %s8135_s8 }
 0xe05   :  { %v7729_v41 = vpop.eup %7728 }
 0xe06   :  { %2336 = vrot.lane.b32.xlu0 %v7729_v41, %s8135_s8  ;;  %v7731_v48 = vpop.eup %7730 }
 0xe07   :  { %v7733_v57 = vpop.eup %7732 }
 0xe08   :  { %v2193_v51 = vadd.f32 1.0, %v7733_v57  ;;  %v7735_v60 = vpop.eup %7734 }
 0xe09   :  { %v2192_v55 = vadd.f32 1.0, %v7735_v60  ;;  %v7737_v58 = vpop.eup %7736 }
 0xe0a   :  { %2334 = vrot.lane.b32.xlu0 %v7731_v48, %s8135_s8  ;;  %7740 = vrcp.f32 %v2193_v51  ;;  %v2323_v59 = vadd.f32 1.0, %v7737_v58  ;;  %v7739_v62 = vpop.eup %7738 }
 0xe0b   :  { %7742 = vrcp.f32 %v2192_v55  ;;  %v2322_v22 = vadd.f32 1.0, %v7739_v62 }
 0xe0c   :  { %7744 = vrcp.f32 %v2323_v59 }
 0xe0d   :  { %7746 = vrcp.f32 %v2322_v22 }
 0xe14   :  { %v7741_v25 = vpop.eup %7740 }
 0xe15   :  { %v7743_v13 = vpop.eup %7742  ;;  %v2201_v52 = vmul.f32 %v7741_v25, %v8710_v34 }
 0xe16   :  { %v7745_v21 = vpop.eup %7744  ;;  %v2200_v31 = vmul.f32 %v7743_v13, %v8714_v38 }
 0xe17   :  { %v7747_v24 = vpop.eup %7746  ;;  %v2331_v40 = vmul.f32 %v7745_v21, %v8718_v42 }
 0xe18   :  { %v2330_v34 = vmul.f32 %v7747_v24, %v8722_v47 }
 0xe70   :  { %v2207_v4 = vpop.permute.xlu1 %2206 }
 0xe71   :  { %v2211_v10 = vmul.f32 %v7741_v25, %v2207_v4 }
 0xe73   :  { %2216 = vrot.lane.b32.xlu1 %v2211_v10, %s8136_s14 }
 0xe74   :  { %v2205_v17 = vpop.permute.xlu1 %2204 }
 0xe75   :  { %v2210_v18 = vmul.f32 %v7743_v13, %v2205_v17 }
 0xe77   :  { %2214 = vrot.lane.b32.xlu1 %v2210_v18, %s8136_s14 }
 0xe78   :  { %v2337_v46 = vpop.permute.xlu0 %2336 }
 0xe79   :  { %v2341_v23 = vmul.f32 %v7745_v21, %v2337_v46 }
 0xe7b   :  { %2346 = vrot.lane.b32.xlu0 %v2341_v23, %s8136_s14  ;;  %v2385_v23 = vld [vmem:[#allocation2 + $0x25] ss:$0 sm:$0xff] }
 0xe7c   :  { %v2335_v49 = vpop.permute.xlu0 %2334 }
 0xe7d   :  { %v2340_v26 = vmul.f32 %v7747_v24, %v2335_v49  ;;  %v2384_v49 = vld [vmem:[#allocation2 + $0x5] ss:$0 sm:$0xff] }
 0xe7f   :  { %2344 = vrot.lane.b32.xlu0 %v2340_v26, %s8136_s14 }
 0xee5   :  { %v2217_v27 = vpop.permute.xlu1 %2216 }
 0xee6   :  { %v8768_v56 = vadd.f32 %v2217_v27, %v2201_v52 }
 0xee8   :  { %7748 = vtanh.f32 %v8768_v56 }
 0xee9   :  { %v2215_v35 = vpop.permute.xlu1 %2214 }
 0xeea   :  { %v8772_v37 = vadd.f32 %v2215_v35, %v2200_v31  ;;  %v2387_v35 = vld [vmem:[#allocation2 + $0x3a] ss:$0 sm:$0xff] }
 0xeec   :  { %7750 = vtanh.f32 %v8772_v37 }
 0xeed   :  { %v2347_v41 = vpop.permute.xlu0 %2346 }
 0xeee   :  { %v8776_v48 = vadd.f32 %v2347_v41, %v2331_v40  ;;  %v2386_v41 = vld [vmem:[#allocation2 + $0x1a] ss:$0 sm:$0xff] }
 0xef0   :  { %7752 = vtanh.f32 %v8776_v48 }
 0xef1   :  { %v2345_v43 = vpop.permute.xlu0 %2344 }
 0xef2   :  { %v7749_v44 = vpop.eup %7748  ;;  %v8780_v53 = vadd.f32 %v2345_v43, %v2330_v34 }
 0xef3   :  { %2228 = vrot.lane.b32.xlu1 %v7749_v44, %s8135_s8 }
 0xef4   :  { %7754 = vtanh.f32 %v8780_v53 }
 0xef6   :  { %v7751_v38 = vpop.eup %7750 }
 0xef7   :  { %2226 = vrot.lane.b32.xlu1 %v7751_v38, %s8135_s8 }
 0xefa   :  { %v7753_v50 = vpop.eup %7752 }
 0xefb   :  { %2358 = vrot.lane.b32.xlu0 %v7753_v50, %s8135_s8 }
 0xefe   :  { %v7755_v42 = vpop.eup %7754 }
 0xeff   :  { %2356 = vrot.lane.b32.xlu0 %v7755_v42, %s8135_s8 }
 0xf65   :  { %v2229_v57 = vpop.permute.xlu1 %2228 }
 0xf66   :  { %v8787_v51 = vmul.f32 %v7741_v25, %v2229_v57 }
 0xf68   :  { %9859 = vst [vmem:[#allocation12_spill] sm:$0xff] %v8787_v51  ;;  %v2388_v60 = vrot.slane %v8787_v51, 7 }
 0xf69   :  { %v2227_v47 = vpop.permute.xlu1 %2226 }
 0xf6a   :  { %v8790_v55 = vmul.f32 %v7743_v13, %v2227_v47 }
 0xf6c   :  { %v2389_v58 = vsel %vm1252_vm10, %v2388_v60, %v8790_v55 }
 0xf6d   :  { %v2359_v59 = vpop.permute.xlu0 %2358  ;;  %2390 = vrot.lane.b32.xlu1 %v2389_v58, %s8136_s14 }
 0xf6e   :  { %v8795_v62 = vmul.f32 %v7745_v21, %v2359_v59 }
 0xf70   :  { %v2518_v4 = vrot.slane %v8795_v62, 7 }
 0xf71   :  { %v2357_v22 = vpop.permute.xlu0 %2356 }
 0xf72   :  { %v8798_v10 = vmul.f32 %v7747_v24, %v2357_v22 }
 0xf74   :  { %v2519_v25 = vsel %vm1252_vm10, %v2518_v4, %v8798_v10 }
 0xf75   :  { %2520 = vrot.lane.b32.xlu0 %v2519_v25, %s8136_s14 }
 0xfdf   :  { %v2391_v13 = vpop.permute.xlu1 %2390 }
 0xfe0   :  { %6907 = vmatmul.mubr.msk.f32.vlgmr.msra.gmra.mrb[10].mxu0 %vm852_vm9, %v2391_v13 }
 0xfe1   :  { %7378 = vmatpush3.bf16.msra.mxu0 %v8463_v8  ;;  %6928 = vmatprep.mubr.msk.f32.mxu0 %vm8134_vm8, %v9814_v3 }
 0xfe2   :  { %7379 = vmatprep.subr.bf16.mxu0 %v9818_v7 }
 0xfe5   :  { %7381 = vmatpush3.bf16.msra.mxu0 %v8474_v11 }
 0xfe6   :  { %7388 = vmatprep.subr.bf16.mxu0 %v9818_v7 }
 0xfe7   :  { %v2521_v17 = vpop.permute.xlu0 %2520 }
 0xfe8   :  { %6918 = vmatmul.mubr.msk.f32.vlgmr.msra.gmra.mrb[26].mxu1 %vm852_vm9, %v2521_v17 }
 0xfe9   :  { %7384 = vmatpush3.bf16.msra.mxu1 %v8502_v28  ;;  %6939 = vmatprep.mubr.msk.f32.mxu1 %vm8134_vm8, %v9814_v3 }
 0xfea   :  { %7385 = vmatprep.subr.bf16.mxu1 %v9818_v7 }
 0xfed   :  { %7387 = vmatpush3.bf16.msra.mxu1 %v8512_v32 }
 0xfee   :  { %7394 = vmatprep.subr.bf16.mxu1 %v9818_v7 }
0x10b3   :  { %v2460_v18 = vpop.f32.mrb[10].mxu0 }
0x10b4   :  { %v2465_v21 = vrot.slane %v2460_v18, 1  ;;  %v6908_v46 = vpop.f32.mrb[11].mxu0  ;;  %v2468_v26 = vadd.f32 %v2460_v18, %v2384_v49 }
0x10b6   :  { %v2469_v24 = vadd.f32 %v2465_v21, %v2385_v23  ;;  %v6313_v57 = vmul.f32 -1.442695, %v2468_v26 }
0x10b8   :  { %7756 = vtanh.f32 %v2469_v24  ;;  %v6314_v42 = vmul.f32 -1.442695, %v2469_v24 }
0x10b9   :  { %7758 = vtanh.f32 %v2468_v26 }
0x10bb   :  { %v2590_v52 = vpop.f32.mrb[26].mxu1 }
0x10bc   :  { %v2595_v27 = vrot.slane %v2590_v52, 1  ;;  %v6919_v31 = vpop.f32.mrb[27].mxu1  ;;  %v2598_v34 = vadd.f32 %v2590_v52, %v2386_v41 }
0x10be   :  { %v2599_v40 = vadd.f32 %v2595_v27, %v2387_v35  ;;  %v6316_v60 = vmul.f32 -1.442695, %v2598_v34 }
0x10c0   :  { %7760 = vtanh.f32 %v2599_v40  ;;  %v6317_v47 = vmul.f32 -1.442695, %v2599_v40 }
0x10c1   :  { %7762 = vtanh.f32 %v2598_v34 }
0x10c2   :  { %v7757_v43 = vpop.eup %7756  ;;  %7764 = vpow2.f32 %v6314_v42 }
0x10c3   :  { %2490 = vrot.lane.b32.xlu1 %v7757_v43, %s8135_s8  ;;  %v7759_v44 = vpop.eup %7758  ;;  %7766 = vpow2.f32 %v6313_v57 }
0x10c4   :  { %7768 = vpow2.f32 %v6317_v47 }
0x10c5   :  { %7770 = vpow2.f32 %v6316_v60 }
0x10c7   :  { %2488 = vrot.lane.b32.xlu1 %v7759_v44, %s8135_s8 }
0x10ca   :  { %v7761_v38 = vpop.eup %7760 }
0x10cb   :  { %2620 = vrot.lane.b32.xlu0 %v7761_v38, %s8135_s8  ;;  %v7763_v50 = vpop.eup %7762 }
0x10cc   :  { %v7765_v58 = vpop.eup %7764 }
0x10cd   :  { %v2477_v59 = vadd.f32 1.0, %v7765_v58  ;;  %v7767_v22 = vpop.eup %7766 }
0x10ce   :  { %v2476_v4 = vadd.f32 1.0, %v7767_v22  ;;  %v7769_v25 = vpop.eup %7768 }
0x10cf   :  { %2618 = vrot.lane.b32.xlu0 %v7763_v50, %s8135_s8  ;;  %7772 = vrcp.f32 %v2477_v59  ;;  %v2607_v13 = vadd.f32 1.0, %v7769_v25  ;;  %v7771_v17 = vpop.eup %7770 }
0x10d0   :  { %7774 = vrcp.f32 %v2476_v4  ;;  %v2606_v18 = vadd.f32 1.0, %v7771_v17 }
0x10d1   :  { %7776 = vrcp.f32 %v2607_v13 }
0x10d2   :  { %7778 = vrcp.f32 %v2606_v18 }
0x10d9   :  { %v7773_v21 = vpop.eup %7772 }
0x10da   :  { %v7775_v24 = vpop.eup %7774  ;;  %v2485_v34 = vmul.f32 %v7773_v21, %v8768_v56 }
0x10db   :  { %v7777_v52 = vpop.eup %7776  ;;  %v2484_v38 = vmul.f32 %v7775_v24, %v8772_v37 }
0x10dc   :  { %v7779_v35 = vpop.eup %7778  ;;  %v2615_v57 = vmul.f32 %v7777_v52, %v8776_v48 }
0x10dd   :  { %v2614_v56 = vmul.f32 %v7779_v35, %v8780_v53 }
0x1135   :  { %v2491_v46 = vpop.permute.xlu1 %2490 }
0x1136   :  { %v2495_v23 = vmul.f32 %v7773_v21, %v2491_v46 }
0x1138   :  { %2500 = vrot.lane.b32.xlu1 %v2495_v23, %s8136_s14 }
0x1139   :  { %v2489_v49 = vpop.permute.xlu1 %2488 }
0x113a   :  { %v2494_v26 = vmul.f32 %v7775_v24, %v2489_v49 }
0x113c   :  { %2498 = vrot.lane.b32.xlu1 %v2494_v26, %s8136_s14 }
0x113d   :  { %v2621_v27 = vpop.permute.xlu0 %2620 }
0x113e   :  { %v2625_v31 = vmul.f32 %v7777_v52, %v2621_v27 }
0x1140   :  { %2630 = vrot.lane.b32.xlu0 %v2625_v31, %s8136_s14 }
0x1141   :  { %v2619_v40 = vpop.permute.xlu0 %2618 }
0x1142   :  { %v2624_v41 = vmul.f32 %v7779_v35, %v2619_v40 }
0x1144   :  { %2628 = vrot.lane.b32.xlu0 %v2624_v41, %s8136_s14 }
0x11aa   :  { %v2501_v43 = vpop.permute.xlu1 %2500 }
0x11ab   :  { %v8826_v44 = vadd.f32 %v2501_v43, %v2485_v34  ;;  %v2669_v34 = vld [vmem:[#allocation2 + $0x26] ss:$0 sm:$0xff] }
0x11ad   :  { %7780 = vtanh.f32 %v8826_v44 }
0x11ae   :  { %v2499_v50 = vpop.permute.xlu1 %2498 }
0x11af   :  { %v8830_v42 = vadd.f32 %v2499_v50, %v2484_v38  ;;  %v2668_v38 = vld [vmem:[#allocation2 + $0x6] ss:$0 sm:$0xff] }
0x11b1   :  { %7782 = vtanh.f32 %v8830_v42 }
0x11b2   :  { %v2631_v47 = vpop.permute.xlu0 %2630 }
0x11b3   :  { %v8834_v60 = vadd.f32 %v2631_v47, %v2615_v57 }
0x11b5   :  { %7784 = vtanh.f32 %v8834_v60 }
0x11b6   :  { %v2629_v58 = vpop.permute.xlu0 %2628 }
0x11b7   :  { %v7781_v59 = vpop.eup %7780  ;;  %v8838_v22 = vadd.f32 %v2629_v58, %v2614_v56  ;;  %v2671_v58 = vld [vmem:[#allocation2 + $0x39] ss:$0 sm:$0xff] }
0x11b8   :  { %2512 = vrot.lane.b32.xlu1 %v7781_v59, %s8135_s8 }
0x11b9   :  { %7786 = vtanh.f32 %v8838_v22 }
0x11bb   :  { %v7783_v37 = vpop.eup %7782 }
0x11bc   :  { %2510 = vrot.lane.b32.xlu1 %v7783_v37, %s8135_s8  ;;  %v2670_v37 = vld [vmem:[#allocation2 + $0x19] ss:$0 sm:$0xff] }
0x11bf   :  { %v7785_v4 = vpop.eup %7784 }
0x11c0   :  { %2642 = vrot.lane.b32.xlu0 %v7785_v4, %s8135_s8 }
0x11c3   :  { %v7787_v48 = vpop.eup %7786 }
0x11c4   :  { %2640 = vrot.lane.b32.xlu0 %v7787_v48, %s8135_s8 }
0x122a   :  { %v2513_v25 = vpop.permute.xlu1 %2512 }
0x122b   :  { %v8845_v13 = vmul.f32 %v7773_v21, %v2513_v25 }
0x122d   :  { %9860 = vst [vmem:[#allocation13_spill] sm:$0xff] %v8845_v13  ;;  %v2672_v17 = vrot.slane %v8845_v13, 7 }
0x122e   :  { %v2511_v53 = vpop.permute.xlu1 %2510 }
0x122f   :  { %v8848_v18 = vmul.f32 %v7775_v24, %v2511_v53 }
0x1231   :  { %v2673_v46 = vsel %vm1252_vm10, %v2672_v17, %v8848_v18 }
0x1232   :  { %v2643_v23 = vpop.permute.xlu0 %2642  ;;  %2674 = vrot.lane.b32.xlu1 %v2673_v46, %s8136_s14 }
0x1233   :  { %v8853_v49 = vmul.f32 %v7777_v52, %v2643_v23 }
0x1235   :  { %v2802_v27 = vrot.slane %v8853_v49, 7 }
0x1236   :  { %v2641_v26 = vpop.permute.xlu0 %2640 }
0x1237   :  { %v8856_v31 = vmul.f32 %v7779_v35, %v2641_v26 }
0x1239   :  { %v2803_v21 = vsel %vm1252_vm10, %v2802_v27, %v8856_v31 }
0x123a   :  { %2804 = vrot.lane.b32.xlu0 %v2803_v21, %s8136_s14 }
0x12a4   :  { %v2675_v24 = vpop.permute.xlu1 %2674 }
0x12a5   :  { %6929 = vmatmul.mubr.msk.f32.vlgmr.msra.gmra.mrb[12].mxu0 %vm852_vm9, %v2675_v24 }
0x12a6   :  { %7390 = vmatpush3.bf16.msra.mxu0 %v8463_v8  ;;  %6950 = vmatprep.mubr.msk.f32.mxu0 %vm8134_vm8, %v9814_v3 }
0x12a7   :  { %7391 = vmatprep.subr.bf16.mxu0 %v9818_v7 }
0x12aa   :  { %7393 = vmatpush3.bf16.msra.mxu0 %v8474_v11 }
0x12ab   :  { %7400 = vmatprep.subr.bf16.mxu0 %v9818_v7 }
0x12ac   :  { %v2805_v52 = vpop.permute.xlu0 %2804 }
0x12ad   :  { %6940 = vmatmul.mubr.msk.f32.vlgmr.msra.gmra.mrb[28].mxu1 %vm852_vm9, %v2805_v52 }
0x12ae   :  { %7396 = vmatpush3.bf16.msra.mxu1 %v8502_v28  ;;  %6961 = vmatprep.mubr.msk.f32.mxu1 %vm8134_vm8, %v9814_v3 }
0x12af   :  { %7397 = vmatprep.subr.bf16.mxu1 %v9818_v7 }
0x12b2   :  { %7399 = vmatpush3.bf16.msra.mxu1 %v8512_v32 }
0x12b3   :  { %7406 = vmatprep.subr.bf16.mxu1 %v9818_v7 }
0x1378   :  { %v2744_v35 = vpop.f32.mrb[12].mxu0 }
0x1379   :  { %v2749_v40 = vrot.slane %v2744_v35, 1  ;;  %v6930_v41 = vpop.f32.mrb[13].mxu0  ;;  %v2752_v50 = vadd.f32 %v2744_v35, %v2668_v38 }
0x137b   :  { %v2753_v43 = vadd.f32 %v2749_v40, %v2669_v34  ;;  %v6319_v23 = vmul.f32 -1.442695, %v2752_v50 }
0x137d   :  { %7788 = vtanh.f32 %v2753_v43  ;;  %v6320_v46 = vmul.f32 -1.442695, %v2753_v43 }
0x137e   :  { %7790 = vtanh.f32 %v2752_v50 }
0x1380   :  { %v2874_v57 = vpop.f32.mrb[28].mxu1 }
0x1381   :  { %v2879_v47 = vrot.slane %v2874_v57, 1  ;;  %v6941_v56 = vpop.f32.mrb[29].mxu1  ;;  %v2882_v4 = vadd.f32 %v2874_v57, %v2670_v37 }
0x1383   :  { %v2883_v59 = vadd.f32 %v2879_v47, %v2671_v58  ;;  %v6322_v27 = vmul.f32 -1.442695, %v2882_v4 }
0x1385   :  { %7792 = vtanh.f32 %v2883_v59  ;;  %v6323_v26 = vmul.f32 -1.442695, %v2883_v59 }
0x1386   :  { %7794 = vtanh.f32 %v2882_v4 }
0x1387   :  { %v7789_v48 = vpop.eup %7788  ;;  %7796 = vpow2.f32 %v6320_v46 }
0x1388   :  { %2774 = vrot.lane.b32.xlu1 %v7789_v48, %s8135_s8  ;;  %v7791_v25 = vpop.eup %7790  ;;  %7798 = vpow2.f32 %v6319_v23 }
0x1389   :  { %7800 = vpow2.f32 %v6323_v26 }
0x138a   :  { %7802 = vpow2.f32 %v6322_v27 }
0x138c   :  { %2772 = vrot.lane.b32.xlu1 %v7791_v25, %s8135_s8 }
0x138f   :  { %v7793_v53 = vpop.eup %7792 }
0x1390   :  { %2904 = vrot.lane.b32.xlu0 %v7793_v53, %s8135_s8  ;;  %v7795_v17 = vpop.eup %7794 }
0x1391   :  { %v7797_v21 = vpop.eup %7796 }
0x1392   :  { %v2761_v24 = vadd.f32 1.0, %v7797_v21  ;;  %v7799_v52 = vpop.eup %7798 }
0x1393   :  { %v2760_v35 = vadd.f32 1.0, %v7799_v52  ;;  %v7801_v40 = vpop.eup %7800 }
0x1394   :  { %2902 = vrot.lane.b32.xlu0 %v7795_v17, %s8135_s8  ;;  %7804 = vrcp.f32 %v2761_v24  ;;  %v2891_v41 = vadd.f32 1.0, %v7801_v40  ;;  %v7803_v34 = vpop.eup %7802 }
0x1395   :  { %7806 = vrcp.f32 %v2760_v35  ;;  %v2890_v38 = vadd.f32 1.0, %v7803_v34 }
0x1396   :  { %7808 = vrcp.f32 %v2891_v41 }
0x1397   :  { %7810 = vrcp.f32 %v2890_v38 }
0x139e   :  { %v7805_v57 = vpop.eup %7804 }
0x139f   :  { %v7807_v47 = vpop.eup %7806  ;;  %v2769_v17 = vmul.f32 %v7805_v57, %v8826_v44 }
0x13a0   :  { %v7809_v59 = vpop.eup %7808  ;;  %v2768_v26 = vmul.f32 %v7807_v47, %v8830_v42 }
0x13a1   :  { %v7811_v48 = vpop.eup %7810  ;;  %v2899_v24 = vmul.f32 %v7809_v59, %v8834_v60 }
0x13a2   :  { %v2898_v44 = vmul.f32 %v7811_v48, %v8838_v22 }
0x13fa   :  { %v2775_v43 = vpop.permute.xlu1 %2774 }
0x13fb   :  { %v2779_v50 = vmul.f32 %v7805_v57, %v2775_v43 }
0x13fd   :  { %2784 = vrot.lane.b32.xlu1 %v2779_v50, %s8136_s14 }
0x13fe   :  { %v2773_v56 = vpop.permute.xlu1 %2772 }
0x13ff   :  { %v2778_v58 = vmul.f32 %v7807_v47, %v2773_v56 }
0x1401   :  { %2782 = vrot.lane.b32.xlu1 %v2778_v58, %s8136_s14 }
0x1402   :  { %v2905_v37 = vpop.permute.xlu0 %2904 }
0x1403   :  { %v2909_v4 = vmul.f32 %v7809_v59, %v2905_v37 }
0x1405   :  { %2914 = vrot.lane.b32.xlu0 %v2909_v4, %s8136_s14 }
0x1406   :  { %v2903_v25 = vpop.permute.xlu0 %2902 }
0x1407   :  { %v2908_v53 = vmul.f32 %v7811_v48, %v2903_v25 }
0x1409   :  { %2912 = vrot.lane.b32.xlu0 %v2908_v53, %s8136_s14 }
0x146f   :  { %v2785_v46 = vpop.permute.xlu1 %2784 }
0x1470   :  { %v8884_v23 = vadd.f32 %v2785_v46, %v2769_v17 }
0x1472   :  { %7812 = vtanh.f32 %v8884_v23 }
0x1473   :  { %v2783_v27 = vpop.permute.xlu1 %2782 }
0x1474   :  { %v8888_v21 = vadd.f32 %v2783_v27, %v2768_v26 }
0x1476   :  { %7814 = vtanh.f32 %v8888_v21 }
0x1477   :  { %v2915_v52 = vpop.permute.xlu0 %2914 }
0x1478   :  { %v8892_v35 = vadd.f32 %v2915_v52, %v2899_v24  ;;  %v2953_v24 = vld [vmem:[#allocation2 + $0x27] ss:$0 sm:$0xff] }
0x147a   :  { %7816 = vtanh.f32 %v8892_v35 }
0x147b   :  { %v2913_v40 = vpop.permute.xlu0 %2912 }
0x147c   :  { %v7813_v41 = vpop.eup %7812  ;;  %v8896_v34 = vadd.f32 %v2913_v40, %v2898_v44  ;;  %v2952_v44 = vld [vmem:[#allocation2 + $0x7] ss:$0 sm:$0xff] }
0x147d   :  { %2796 = vrot.lane.b32.xlu1 %v7813_v41, %s8135_s8 }
0x147e   :  { %7818 = vtanh.f32 %v8896_v34 }
0x1480   :  { %v7815_v42 = vpop.eup %7814 }
0x1481   :  { %2794 = vrot.lane.b32.xlu1 %v7815_v42, %s8135_s8 }
0x1484   :  { %v7817_v38 = vpop.eup %7816 }
0x1485   :  { %2926 = vrot.lane.b32.xlu0 %v7817_v38, %s8135_s8 }
0x1488   :  { %v7819_v60 = vpop.eup %7818 }
0x1489   :  { %2924 = vrot.lane.b32.xlu0 %v7819_v60, %s8135_s8  ;;  %v2955_v60 = vld [vmem:[#allocation2 + $0x38] ss:$0 sm:$0xff] }
0x14ef   :  { %v2797_v43 = vpop.permute.xlu1 %2796 }
0x14f0   :  { %v8903_v50 = vmul.f32 %v7805_v57, %v2797_v43 }
0x14f2   :  { %9861 = vst [vmem:[#allocation14_spill] sm:$0xff] %v8903_v50  ;;  %v2956_v56 = vrot.slane %v8903_v50, 7 }
0x14f3   :  { %v2795_v22 = vpop.permute.xlu1 %2794 }
0x14f4   :  { %v8906_v58 = vmul.f32 %v7807_v47, %v2795_v22  ;;  %v2954_v22 = vld [vmem:[#allocation2 + $0x18] ss:$0 sm:$0xff] }
0x14f6   :  { %v2957_v37 = vsel %vm1252_vm10, %v2956_v56, %v8906_v58 }
0x14f7   :  { %v2927_v4 = vpop.permute.xlu0 %2926  ;;  %2958 = vrot.lane.b32.xlu1 %v2957_v37, %s8136_s14 }
0x14f8   :  { %v8911_v25 = vmul.f32 %v7809_v59, %v2927_v4 }
0x14fa   :  { %v3086_v17 = vrot.slane %v8911_v25, 7 }
0x14fb   :  { %v2925_v53 = vpop.permute.xlu0 %2924 }
0x14fc   :  { %v8914_v46 = vmul.f32 %v7811_v48, %v2925_v53 }
0x14fe   :  { %v3087_v57 = vsel %vm1252_vm10, %v3086_v17, %v8914_v46 }
0x14ff   :  { %3088 = vrot.lane.b32.xlu0 %v3087_v57, %s8136_s14 }
0x1569   :  { %v2959_v47 = vpop.permute.xlu1 %2958 }
0x156a   :  { %6951 = vmatmul.mubr.msk.f32.vlgmr.msra.gmra.mrb[14].mxu0 %vm852_vm9, %v2959_v47 }
0x156b   :  { %7402 = vmatpush3.bf16.msra.mxu0 %v8463_v8  ;;  %6972 = vmatprep.mubr.msk.f32.mxu0 %vm8134_vm8, %v9814_v3 }
0x156c   :  { %7403 = vmatprep.subr.bf16.mxu0 %v9818_v7 }
0x156f   :  { %7405 = vmatpush3.bf16.msra.mxu0 %v8474_v11 }
0x1570   :  { %7412 = vmatprep.subr.bf16.mxu0 %v9818_v7 }
0x1571   :  { %v3089_v59 = vpop.permute.xlu0 %3088 }
0x1572   :  { %6962 = vmatmul.mubr.msk.f32.vlgmr.msra.gmra.mrb[30].mxu1 %vm852_vm9, %v3089_v59 }
0x1573   :  { %7408 = vmatpush3.bf16.msra.mxu1 %v8502_v28  ;;  %6983 = vmatprep.mubr.msk.f32.mxu1 %vm8134_vm8, %v9814_v3 }
0x1574   :  { %7409 = vmatprep.subr.bf16.mxu1 %v9818_v7 }
0x1577   :  { %7411 = vmatpush3.bf16.msra.mxu1 %v8512_v32 }
0x1578   :  { %7418 = vmatprep.subr.bf16.mxu1 %v9818_v7 }
0x163d   :  { %v3028_v48 = vpop.f32.mrb[14].mxu0 }
0x163e   :  { %v3033_v26 = vrot.slane %v3028_v48, 1  ;;  %v6952_v27 = vpop.f32.mrb[15].mxu0  ;;  %v3036_v40 = vadd.f32 %v3028_v48, %v2952_v44 }
0x1640   :  { %v3037_v52 = vadd.f32 %v3033_v26, %v2953_v24  ;;  %v6325_v47 = vmul.f32 -1.442695, %v3036_v40 }
0x1642   :  { %7820 = vtanh.f32 %v3037_v52  ;;  %v6326_v57 = vmul.f32 -1.442695, %v3037_v52 }
0x1643   :  { %7822 = vtanh.f32 %v3036_v40 }
0x1645   :  { %v3158_v41 = vpop.f32.mrb[30].mxu1 }
0x1646   :  { %v3163_v42 = vrot.slane %v3158_v41, 1  ;;  %v6963_v38 = vpop.f32.mrb[31].mxu1  ;;  %v3166_v56 = vadd.f32 %v3158_v41, %v2954_v22 }
0x1648   :  { %v3167_v43 = vadd.f32 %v3163_v42, %v2955_v60  ;;  %v6328_v48 = vmul.f32 -1.442695, %v3166_v56 }
0x164a   :  { %7824 = vtanh.f32 %v3167_v43  ;;  %v6329_v59 = vmul.f32 -1.442695, %v3167_v43 }
0x164b   :  { %7826 = vtanh.f32 %v3166_v56 }
0x164c   :  { %v7821_v37 = vpop.eup %7820  ;;  %7828 = vpow2.f32 %v6326_v57 }
0x164d   :  { %3058 = vrot.lane.b32.xlu1 %v7821_v37, %s8135_s8  ;;  %v7823_v4 = vpop.eup %7822  ;;  %7830 = vpow2.f32 %v6325_v47 }
0x164e   :  { %7832 = vpow2.f32 %v6329_v59 }
0x164f   :  { %7834 = vpow2.f32 %v6328_v48 }
0x1651   :  { %3056 = vrot.lane.b32.xlu1 %v7823_v4, %s8135_s8 }
0x1654   :  { %v7825_v53 = vpop.eup %7824 }
0x1655   :  { %3188 = vrot.lane.b32.xlu0 %v7825_v53, %s8135_s8  ;;  %v7827_v17 = vpop.eup %7826 }
0x1656   :  { %v7829_v26 = vpop.eup %7828 }
0x1657   :  { %v3045_v27 = vadd.f32 1.0, %v7829_v26  ;;  %v7831_v24 = vpop.eup %7830 }
0x1658   :  { %v3044_v44 = vadd.f32 1.0, %v7831_v24  ;;  %v7833_v41 = vpop.eup %7832 }
0x1659   :  { %3186 = vrot.lane.b32.xlu0 %v7827_v17, %s8135_s8  ;;  %7836 = vrcp.f32 %v3045_v27  ;;  %v3175_v42 = vadd.f32 1.0, %v7833_v41  ;;  %v7835_v38 = vpop.eup %7834 }
0x165a   :  { %7838 = vrcp.f32 %v3044_v44  ;;  %v3174_v60 = vadd.f32 1.0, %v7835_v38 }
0x165b   :  { %7840 = vrcp.f32 %v3175_v42 }
0x165c   :  { %7842 = vrcp.f32 %v3174_v60 }
0x1663   :  { %v7837_v22 = vpop.eup %7836 }
0x1664   :  { %v7839_v43 = vpop.eup %7838  ;;  %v3053_v48 = vmul.f32 %v7837_v22, %v8884_v23 }
0x1665   :  { %v7841_v4 = vpop.eup %7840  ;;  %v3052_v24 = vmul.f32 %v7839_v43, %v8888_v21 }
0x1666   :  { %v7843_v57 = vpop.eup %7842  ;;  %v3183_v42 = vmul.f32 %v7841_v4, %v8892_v35 }
0x1667   :  { %v3182_v23 = vmul.f32 %v7843_v57, %v8896_v34 }
0x16bf   :  { %v3059_v52 = vpop.permute.xlu1 %3058 }
0x16c0   :  { %v3063_v40 = vmul.f32 %v7837_v22, %v3059_v52 }
0x16c2   :  { %3068 = vrot.lane.b32.xlu1 %v3063_v40, %s8136_s14 }
0x16c3   :  { %v3057_v56 = vpop.permute.xlu1 %3056 }
0x16c4   :  { %v3062_v37 = vmul.f32 %v7839_v43, %v3057_v56 }
0x16c6   :  { %3066 = vrot.lane.b32.xlu1 %v3062_v37, %s8136_s14 }
0x16c7   :  { %v3189_v53 = vpop.permute.xlu0 %3188 }
0x16c8   :  { %v3193_v17 = vmul.f32 %v7841_v4, %v3189_v53 }
0x16ca   :  { %3198 = vrot.lane.b32.xlu0 %v3193_v17, %s8136_s14 }
0x16cb   :  { %v3187_v47 = vpop.permute.xlu0 %3186 }
0x16cc   :  { %v3192_v59 = vmul.f32 %v7843_v57, %v3187_v47 }
0x16ce   :  { %3196 = vrot.lane.b32.xlu0 %v3192_v59, %s8136_s14 }
0x1734   :  { %v3069_v26 = vpop.permute.xlu1 %3068 }
0x1735   :  { %v8942_v27 = vadd.f32 %v3069_v26, %v3053_v48 }
0x1737   :  { %7844 = vtanh.f32 %v8942_v27 }
0x1738   :  { %v3067_v44 = vpop.permute.xlu1 %3066 }
0x1739   :  { %v8946_v41 = vadd.f32 %v3067_v44, %v3052_v24 }
0x173b   :  { %7846 = vtanh.f32 %v8946_v41 }
0x173c   :  { %v3199_v38 = vpop.permute.xlu0 %3198 }
0x173d   :  { %v8950_v60 = vadd.f32 %v3199_v38, %v3183_v42 }
0x173f   :  { %7848 = vtanh.f32 %v8950_v60 }
0x1740   :  { %v3197_v52 = vpop.permute.xlu0 %3196 }
0x1741   :  { %v7845_v40 = vpop.eup %7844  ;;  %v8954_v56 = vadd.f32 %v3197_v52, %v3182_v23 }
0x1742   :  { %3080 = vrot.lane.b32.xlu1 %v7845_v40, %s8135_s8  ;;  %v3237_v40 = vld [vmem:[#allocation2 + $0x30] ss:$0 sm:$0xff] }
0x1743   :  { %7850 = vtanh.f32 %v8954_v56 }
0x1745   :  { %v7847_v21 = vpop.eup %7846 }
0x1746   :  { %3078 = vrot.lane.b32.xlu1 %v7847_v21, %s8135_s8 }
0x1749   :  { %v7849_v37 = vpop.eup %7848 }
0x174a   :  { %3210 = vrot.lane.b32.xlu0 %v7849_v37, %s8135_s8  ;;  %v3236_v37 = vld [vmem:[#allocation2 + $0x10] ss:$0 sm:$0xff] }
0x174d   :  { %v7851_v35 = vpop.eup %7850 }
0x174e   :  { %3208 = vrot.lane.b32.xlu0 %v7851_v35, %s8135_s8 }
0x17b4   :  { %v3081_v53 = vpop.permute.xlu1 %3080 }
0x17b5   :  { %v8961_v17 = vmul.f32 %v7837_v22, %v3081_v53 }
0x17b7   :  { %9862 = vst [vmem:[#allocation15_spill] sm:$0xff] %v8961_v17  ;;  %v3240_v47 = vrot.slane %v8961_v17, 7 }
0x17b8   :  { %v3079_v34 = vpop.permute.xlu1 %3078 }
0x17b9   :  { %v8964_v59 = vmul.f32 %v7839_v43, %v3079_v34 }
0x17bb   :  { %v3241_v48 = vsel %vm1252_vm10, %v3240_v47, %v8964_v59 }
0x17bc   :  { %v3211_v26 = vpop.permute.xlu0 %3210  ;;  %3242 = vrot.lane.b32.xlu1 %v3241_v48, %s8136_s14  ;;  %v3239_v48 = vld [vmem:[#allocation2 + $0x2f] ss:$0 sm:$0xff] }
0x17bd   :  { %v8969_v24 = vmul.f32 %v7841_v4, %v3211_v26 }
0x17bf   :  { %9863 = vst [vmem:[#allocation16_spill] sm:$0xff] %v8969_v24  ;;  %v3370_v42 = vrot.slane %v8969_v24, 7 }
0x17c0   :  { %v3209_v44 = vpop.permute.xlu0 %3208 }
0x17c1   :  { %v8972_v38 = vmul.f32 %v7843_v57, %v3209_v44  ;;  %v3238_v44 = vld [vmem:[#allocation2 + $0xf] ss:$0 sm:$0xff] }
0x17c3   :  { %v3371_v22 = vsel %vm1252_vm10, %v3370_v42, %v8972_v38 }
0x17c4   :  { %3372 = vrot.lane.b32.xlu0 %v3371_v22, %s8136_s14 }
0x182e   :  { %v3243_v43 = vpop.permute.xlu1 %3242 }
0x182f   :  { %6973 = vmatmul.mubr.msk.f32.vlgmr.msra.gmra.mrb[16].mxu0 %vm852_vm9, %v3243_v43 }
0x1830   :  { %7414 = vmatpush3.bf16.msra.mxu0 %v8463_v8  ;;  %6994 = vmatprep.mubr.msk.f32.mxu0 %vm8134_vm8, %v9814_v3 }
0x1831   :  { %7415 = vmatprep.subr.bf16.mxu0 %v9818_v7 }
0x1834   :  { %7417 = vmatpush3.bf16.msra.mxu0 %v8474_v11 }
0x1835   :  { %7424 = vmatprep.subr.bf16.mxu0 %v9818_v7 }
0x1836   :  { %v3373_v4 = vpop.permute.xlu0 %3372 }
0x1837   :  { %6984 = vmatmul.mubr.msk.f32.vlgmr.msra.gmra.mrb[32].mxu1 %vm852_vm9, %v3373_v4 }
0x1838   :  { %7420 = vmatpush3.bf16.msra.mxu1 %v8502_v28  ;;  %7005 = vmatprep.mubr.msk.f32.mxu1 %vm8134_vm8, %v9814_v3 }
0x1839   :  { %7421 = vmatprep.subr.bf16.mxu1 %v9818_v7 }
0x183c   :  { %7423 = vmatpush3.bf16.msra.mxu1 %v8512_v32 }
0x183d   :  { %7430 = vmatprep.subr.bf16.mxu1 %v9818_v7 }
0x1902   :  { %v3312_v57 = vpop.f32.mrb[16].mxu0 }
0x1903   :  { %v3317_v23 = vrot.slane %v3312_v57, 1  ;;  %v6974_v52 = vpop.f32.mrb[17].mxu0  ;;  %v3320_v35 = vadd.f32 %v3312_v57, %v3236_v37 }
0x1905   :  { %v3321_v21 = vadd.f32 %v3317_v23, %v3237_v40  ;;  %v6331_v52 = vmul.f32 -1.442695, %v3320_v35 }
0x1907   :  { %7852 = vtanh.f32 %v3321_v21  ;;  %v6332_v23 = vmul.f32 -1.442695, %v3321_v21 }
0x1908   :  { %7854 = vtanh.f32 %v3320_v35 }
0x190a   :  { %v3442_v53 = vpop.f32.mrb[32].mxu1 }
0x190b   :  { %v3447_v34 = vrot.slane %v3442_v53, 1  ;;  %v6985_v47 = vpop.f32.mrb[33].mxu1  ;;  %v3450_v42 = vadd.f32 %v3442_v53, %v3238_v44 }
0x190d   :  { %v3451_v26 = vadd.f32 %v3447_v34, %v3239_v48  ;;  %v6334_v37 = vmul.f32 -1.442695, %v3450_v42 }
0x190f   :  { %7856 = vtanh.f32 %v3451_v26  ;;  %v6335_v40 = vmul.f32 -1.442695, %v3451_v26 }
0x1910   :  { %7858 = vtanh.f32 %v3450_v42 }
0x1911   :  { %v7853_v22 = vpop.eup %7852  ;;  %7860 = vpow2.f32 %v6332_v23 }
0x1912   :  { %3342 = vrot.lane.b32.xlu1 %v7853_v22, %s8135_s8  ;;  %v7855_v43 = vpop.eup %7854  ;;  %7862 = vpow2.f32 %v6331_v52 }
0x1913   :  { %7864 = vpow2.f32 %v6335_v40 }
0x1914   :  { %7866 = vpow2.f32 %v6334_v37 }
0x1916   :  { %3340 = vrot.lane.b32.xlu1 %v7855_v43, %s8135_s8 }
0x1919   :  { %v7857_v4 = vpop.eup %7856 }
0x191a   :  { %3472 = vrot.lane.b32.xlu0 %v7857_v4, %s8135_s8  ;;  %v7859_v57 = vpop.eup %7858 }
0x191b   :  { %v7861_v53 = vpop.eup %7860 }
0x191c   :  { %v3329_v34 = vadd.f32 1.0, %v7861_v53  ;;  %v7863_v47 = vpop.eup %7862 }
0x191d   :  { %v3328_v48 = vadd.f32 1.0, %v7863_v47  ;;  %v7865_v44 = vpop.eup %7864 }
0x191e   :  { %3470 = vrot.lane.b32.xlu0 %v7859_v57, %s8135_s8  ;;  %7868 = vrcp.f32 %v3329_v34  ;;  %v3459_v22 = vadd.f32 1.0, %v7865_v44  ;;  %v7867_v43 = vpop.eup %7866 }
0x191f   :  { %7870 = vrcp.f32 %v3328_v48  ;;  %v3458_v4 = vadd.f32 1.0, %v7867_v43 }
0x1920   :  { %7872 = vrcp.f32 %v3459_v22 }
0x1921   :  { %7874 = vrcp.f32 %v3458_v4 }
0x1928   :  { %v7869_v57 = vpop.eup %7868 }
0x1929   :  { %v7871_v26 = vpop.eup %7870  ;;  %v3337_v48 = vmul.f32 %v7869_v57, %v8942_v27 }
0x192a   :  { %v7873_v52 = vpop.eup %7872  ;;  %v3336_v43 = vmul.f32 %v7871_v26, %v8946_v41 }
0x192b   :  { %v7875_v53 = vpop.eup %7874 }
0x192c   :  { %v3466_v27 = vmul.f32 %v7875_v53, %v8954_v56 }
0x1984   :  { %v3343_v21 = vpop.permute.xlu1 %3342 }
0x1985   :  { %v3347_v35 = vmul.f32 %v7869_v57, %v3343_v21 }
0x1987   :  { %3352 = vrot.lane.b32.xlu1 %v3347_v35, %s8136_s14  ;;  %v3467_v35 = vmul.f32 %v7873_v52, %v8950_v60 }
0x1988   :  { %v3341_v42 = vpop.permute.xlu1 %3340 }
0x1989   :  { %v3346_v23 = vmul.f32 %v7871_v26, %v3341_v42 }
0x198b   :  { %3350 = vrot.lane.b32.xlu1 %v3346_v23, %s8136_s14 }
0x198c   :  { %v3473_v40 = vpop.permute.xlu0 %3472 }
0x198d   :  { %v3477_v37 = vmul.f32 %v7873_v52, %v3473_v40 }
0x198f   :  { %3482 = vrot.lane.b32.xlu0 %v3477_v37, %s8136_s14 }
0x1990   :  { %v3471_v34 = vpop.permute.xlu0 %3470 }
0x1991   :  { %v3476_v47 = vmul.f32 %v7875_v53, %v3471_v34 }
0x1993   :  { %3480 = vrot.lane.b32.xlu0 %v3476_v47, %s8136_s14 }
0x19f9   :  { %v3353_v44 = vpop.permute.xlu1 %3352 }
0x19fa   :  { %v9000_v22 = vadd.f32 %v3353_v44, %v3337_v48 }
0x19fc   :  { %7876 = vtanh.f32 %v9000_v22 }
0x19fd   :  { %v3351_v4 = vpop.permute.xlu1 %3350 }
0x19fe   :  { %v9004_v21 = vadd.f32 %v3351_v4, %v3336_v43 }
0x1a00   :  { %7878 = vtanh.f32 %v9004_v21 }
0x1a01   :  { %v3483_v42 = vpop.permute.xlu0 %3482 }
0x1a02   :  { %v9008_v23 = vadd.f32 %v3483_v42, %v3467_v35 }
0x1a04   :  { %7880 = vtanh.f32 %v9008_v23 }
0x1a05   :  { %v3481_v40 = vpop.permute.xlu0 %3480 }
0x1a06   :  { %v7877_v37 = vpop.eup %7876  ;;  %v9012_v34 = vadd.f32 %v3481_v40, %v3466_v27 }
0x1a07   :  { %3364 = vrot.lane.b32.xlu1 %v7877_v37, %s8135_s8 }
0x1a08   :  { %7882 = vtanh.f32 %v9012_v34 }
0x1a0a   :  { %v7879_v41 = vpop.eup %7878 }
0x1a0b   :  { %3362 = vrot.lane.b32.xlu1 %v7879_v41, %s8135_s8 }
0x1a0e   :  { %v7881_v47 = vpop.eup %7880 }
0x1a0f   :  { %3494 = vrot.lane.b32.xlu0 %v7881_v47, %s8135_s8 }
0x1a12   :  { %v7883_v60 = vpop.eup %7882 }
0x1a13   :  { %3492 = vrot.lane.b32.xlu0 %v7883_v60, %s8135_s8 }
0x1a79   :  { %v3365_v48 = vpop.permute.xlu1 %3364 }
0x1a7a   :  { %v9019_v44 = vmul.f32 %v7869_v57, %v3365_v48  ;;  %v3521_v48 = vld [vmem:[#allocation2 + $0x31] ss:$0 sm:$0xff] }
0x1a7c   :  { %9864 = vst [vmem:[#allocation17_spill] sm:$0xff] %v9019_v44  ;;  %v3524_v43 = vrot.slane %v9019_v44, 7 }
0x1a7d   :  { %v3363_v56 = vpop.permute.xlu1 %3362 }
0x1a7e   :  { %v9022_v4 = vmul.f32 %v7871_v26, %v3363_v56 }
0x1a80   :  { %v3525_v35 = vsel %vm1252_vm10, %v3524_v43, %v9022_v4  ;;  %v3520_v43 = vld [vmem:[#allocation2 + $0x11] ss:$0 sm:$0xff] }
0x1a81   :  { %v3495_v42 = vpop.permute.xlu0 %3494  ;;  %3526 = vrot.lane.b32.xlu1 %v3525_v35, %s8136_s14 }
0x1a82   :  { %v9027_v27 = vmul.f32 %v7873_v52, %v3495_v42 }
0x1a84   :  { %9865 = vst [vmem:[#allocation18_spill] sm:$0xff] %v9027_v27  ;;  %v3654_v37 = vrot.slane %v9027_v27, 7 }
0x1a85   :  { %v3493_v40 = vpop.permute.xlu0 %3492 }
0x1a86   :  { %v9030_v41 = vmul.f32 %v7875_v53, %v3493_v40 }
0x1a88   :  { %v3655_v57 = vsel %vm1252_vm10, %v3654_v37, %v9030_v41 }
0x1a89   :  { %3656 = vrot.lane.b32.xlu0 %v3655_v57, %s8136_s14  ;;  %v3523_v57 = vld [vmem:[#allocation2 + $0x2e] ss:$0 sm:$0xff] }
0x1af3   :  { %v3527_v26 = vpop.permute.xlu1 %3526 }
0x1af4   :  { %6995 = vmatmul.mubr.msk.f32.vlgmr.msra.gmra.mrb[18].mxu0 %vm852_vm9, %v3527_v26 }
0x1af5   :  { %7426 = vmatpush3.bf16.msra.mxu0 %v8463_v8  ;;  %7016 = vmatprep.mubr.msk.f32.mxu0 %vm8134_vm8, %v9814_v3 }
0x1af6   :  { %7427 = vmatprep.subr.bf16.mxu0 %v9818_v7 }
0x1af9   :  { %7429 = vmatpush3.bf16.msra.mxu0 %v8474_v11 }
0x1afa   :  { %7436 = vmatprep.subr.bf16.mxu0 %v9818_v7 }
0x1afb   :  { %v3657_v52 = vpop.permute.xlu0 %3656 }
0x1afc   :  { %7006 = vmatmul.mubr.msk.f32.vlgmr.msra.gmra.mrb[34].mxu1 %vm852_vm9, %v3657_v52  ;;  %v3522_v52 = vld [vmem:[#allocation2 + $0xe] ss:$0 sm:$0xff] }
0x1afd   :  { %7432 = vmatpush3.bf16.msra.mxu1 %v8502_v28  ;;  %7027 = vmatprep.mubr.msk.f32.mxu1 %vm8134_vm8, %v9814_v3 }
0x1afe   :  { %7433 = vmatprep.subr.bf16.mxu1 %v9818_v7 }
0x1b01   :  { %7435 = vmatpush3.bf16.msra.mxu1 %v8512_v32 }
0x1b02   :  { %7442 = vmatprep.subr.bf16.mxu1 %v9818_v7 }
0x1bc7   :  { %v3596_v53 = vpop.f32.mrb[18].mxu0 }
0x1bc8   :  { %v3601_v47 = vrot.slane %v3596_v53, 1  ;;  %v6996_v60 = vpop.f32.mrb[19].mxu0  ;;  %v3604_v35 = vadd.f32 %v3596_v53, %v3520_v43 }
0x1bca   :  { %v3605_v56 = vadd.f32 %v3601_v47, %v3521_v48  ;;  %v6337_v48 = vmul.f32 -1.442695, %v3604_v35 }
0x1bcc   :  { %7884 = vtanh.f32 %v3605_v56  ;;  %v6338_v60 = vmul.f32 -1.442695, %v3605_v56 }
0x1bcd   :  { %7886 = vtanh.f32 %v3604_v35 }
0x1bcf   :  { %v3726_v42 = vpop.f32.mrb[34].mxu1 }
0x1bd0   :  { %v3731_v40 = vrot.slane %v3726_v42, 1  ;;  %v7007_v37 = vpop.f32.mrb[35].mxu1  ;;  %v3734_v3 = vadd.f32 %v3726_v42, %v3522_v52 }
0x1bd2   :  { %v3735_v26 = vadd.f32 %v3731_v40, %v3523_v57  ;;  %v6340_v42 = vmul.f32 -1.442695, %v3734_v3 }
0x1bd4   :  { %7888 = vtanh.f32 %v3735_v26  ;;  %v6341_v43 = vmul.f32 -1.442695, %v3735_v26 }
0x1bd5   :  { %7890 = vtanh.f32 %v3734_v3 }
0x1bd6   :  { %v7885_v6 = vpop.eup %7884  ;;  %7892 = vpow2.f32 %v6338_v60 }
0x1bd7   :  { %3626 = vrot.lane.b32.xlu1 %v7885_v6, %s8135_s8  ;;  %v7887_v7 = vpop.eup %7886  ;;  %7894 = vpow2.f32 %v6337_v48 }
0x1bd8   :  { %7896 = vpow2.f32 %v6341_v43 }
0x1bd9   :  { %7898 = vpow2.f32 %v6340_v42 }
0x1bdb   :  { %3624 = vrot.lane.b32.xlu1 %v7887_v7, %s8135_s8 }
0x1bde   :  { %v7889_v47 = vpop.eup %7888 }
0x1bdf   :  { %3756 = vrot.lane.b32.xlu0 %v7889_v47, %s8135_s8  ;;  %v7891_v53 = vpop.eup %7890 }
0x1be0   :  { %v7893_v40 = vpop.eup %7892 }
0x1be1   :  { %v3613_v6 = vadd.f32 1.0, %v7893_v40  ;;  %v7895_v37 = vpop.eup %7894 }
0x1be2   :  { %v3612_v57 = vadd.f32 1.0, %v7895_v37  ;;  %v7897_v7 = vpop.eup %7896 }
0x1be3   :  { %3754 = vrot.lane.b32.xlu0 %v7891_v53, %s8135_s8  ;;  %7900 = vrcp.f32 %v3613_v6  ;;  %v3743_v52 = vadd.f32 1.0, %v7897_v7  ;;  %v7899_v47 = vpop.eup %7898 }
0x1be4   :  { %7902 = vrcp.f32 %v3612_v57  ;;  %v3742_v1 = vadd.f32 1.0, %v7899_v47 }
0x1be5   :  { %7904 = vrcp.f32 %v3743_v52 }
0x1be6   :  { %7906 = vrcp.f32 %v3742_v1 }
0x1bed   :  { %v7901_v53 = vpop.eup %7900 }
0x1bee   :  { %v7903_v3 = vpop.eup %7902  ;;  %v3621_v57 = vmul.f32 %v7901_v53, %v9000_v22 }
0x1bef   :  { %v7905_v48 = vpop.eup %7904  ;;  %v3620_v52 = vmul.f32 %v7903_v3, %v9004_v21 }
0x1bf0   :  { %v7907_v40 = vpop.eup %7906 }
0x1bf1   :  { %v3750_v22 = vmul.f32 %v7907_v40, %v9012_v34 }
0x1c49   :  { %v3627_v56 = vpop.permute.xlu1 %3626 }
0x1c4a   :  { %v3631_v35 = vmul.f32 %v7901_v53, %v3627_v56 }
0x1c4c   :  { %3636 = vrot.lane.b32.xlu1 %v3631_v35, %s8136_s14  ;;  %v3751_v35 = vmul.f32 %v7905_v48, %v9008_v23 }
0x1c4d   :  { %v3625_v26 = vpop.permute.xlu1 %3624 }
0x1c4e   :  { %v3630_v60 = vmul.f32 %v7903_v3, %v3625_v26 }
0x1c50   :  { %3634 = vrot.lane.b32.xlu1 %v3630_v60, %s8136_s14 }
0x1c51   :  { %v3757_v43 = vpop.permute.xlu0 %3756 }
0x1c52   :  { %v3761_v42 = vmul.f32 %v7905_v48, %v3757_v43 }
0x1c54   :  { %3766 = vrot.lane.b32.xlu0 %v3761_v42, %s8136_s14 }
0x1c55   :  { %v3755_v6 = vpop.permute.xlu0 %3754 }
0x1c56   :  { %v3760_v37 = vmul.f32 %v7907_v40, %v3755_v6 }
0x1c58   :  { %3764 = vrot.lane.b32.xlu0 %v3760_v37, %s8136_s14 }
0x1cbe   :  { %v3637_v1 = vpop.permute.xlu1 %3636 }
0x1cbf   :  { %v9058_v7 = vadd.f32 %v3637_v1, %v3621_v57 }
0x1cc1   :  { %7908 = vtanh.f32 %v9058_v7 }
0x1cc2   :  { %v3635_v47 = vpop.permute.xlu1 %3634 }
0x1cc3   :  { %v9062_v56 = vadd.f32 %v3635_v47, %v3620_v52 }
0x1cc5   :  { %7910 = vtanh.f32 %v9062_v56 }
0x1cc6   :  { %v3767_v26 = vpop.permute.xlu0 %3766 }
0x1cc7   :  { %v9066_v60 = vadd.f32 %v3767_v26, %v3751_v35 }
0x1cc9   :  { %7912 = vtanh.f32 %v9066_v60 }
0x1cca   :  { %v3765_v43 = vpop.permute.xlu0 %3764 }
0x1ccb   :  { %v7909_v42 = vpop.eup %7908  ;;  %v9070_v6 = vadd.f32 %v3765_v43, %v3750_v22 }
0x1ccc   :  { %3648 = vrot.lane.b32.xlu1 %v7909_v42, %s8135_s8 }
0x1ccd   :  { %7914 = vtanh.f32 %v9070_v6 }
0x1ccf   :  { %v7911_v21 = vpop.eup %7910 }
0x1cd0   :  { %3646 = vrot.lane.b32.xlu1 %v7911_v21, %s8135_s8 }
0x1cd3   :  { %v7913_v37 = vpop.eup %7912 }
0x1cd4   :  { %3778 = vrot.lane.b32.xlu0 %v7913_v37, %s8135_s8  ;;  %v9868_v37 = vmov 0.0  }
0x1cd7   :  { %v7915_v23 = vpop.eup %7914 }
0x1cd8   :  { %3776 = vrot.lane.b32.xlu0 %v7915_v23, %s8135_s8 }
0x1d3e   :  { %v3649_v57 = vpop.permute.xlu1 %3648 }
0x1d3f   :  { %v9077_v1 = vmul.f32 %v7901_v53, %v3649_v57 }
0x1d41   :  { %9866 = vst [vmem:[#allocation19_spill] sm:$0xff] %v9077_v1  ;;  %v3808_v52 = vrot.slane %v9077_v1, 7 }
0x1d42   :  { %v3647_v34 = vpop.permute.xlu1 %3646 }
0x1d43   :  { %v9080_v47 = vmul.f32 %v7903_v3, %v3647_v34 }
0x1d45   :  { %v3809_v35 = vsel %vm1252_vm10, %v3808_v52, %v9080_v47  ;;  %v3805_v52 = vld [vmem:[#allocation2 + $0x32] ss:$0 sm:$0xff] }
0x1d46   :  { %v3779_v26 = vpop.permute.xlu0 %3778  ;;  %3810 = vrot.lane.b32.xlu1 %v3809_v35, %s8136_s14 }
0x1d47   :  { %v9085_v22 = vmul.f32 %v7905_v48, %v3779_v26  ;;  %v9869_v48 = vmov 0.0|0.0   ;;  %v3804_v26 = vld [vmem:[#allocation2 + $0x12] ss:$0 sm:$0xff] }
0x1d49   :  { %9867 = vst [vmem:[#allocation20_spill] sm:$0xff] %v9085_v22  ;;  %v3938_v42 = vrot.slane %v9085_v22, 7 }
0x1d4a   :  { %v3777_v43 = vpop.permute.xlu0 %3776 }
0x1d4b   :  { %v9088_v21 = vmul.f32 %v7907_v40, %v3777_v43 }
0x1d4d   :  { %v3939_v53 = vsel %vm1252_vm10, %v3938_v42, %v9088_v21 }
0x1d4e   :  { %3940 = vrot.lane.b32.xlu0 %v3939_v53, %s8136_s14 }
0x1db8   :  { %v3811_v3 = vpop.permute.xlu1 %3810 }
0x1db9   :  { %7017 = vmatmul.mubr.msk.f32.vlgmr.msra.gmra.mrb[20].mxu0 %vm852_vm9, %v3811_v3 }
0x1dba   :  { %7438 = vmatpush3.bf16.msra.mxu0 %v8463_v8  ;;  %7038 = vmatprep.mubr.msk.f32.mxu0 %vm8134_vm8, %v9868_v37 }
0x1dbb   :  { %7439 = vmatprep.subr.bf16.mxu0 %v9869_v48 }
0x1dbe   :  { %7441 = vmatpush3.bf16.msra.mxu0 %v8474_v11 }
0x1dbf   :  { %7448 = vmatprep.subr.bf16.mxu0 %v9869_v48 }
0x1dc0   :  { %v3941_v40 = vpop.permute.xlu0 %3940 }
0x1dc1   :  { %7028 = vmatmul.mubr.msk.f32.vlgmr.msra.gmra.mrb[36].mxu1 %vm852_vm9, %v3941_v40  ;;  %v3807_v40 = vld [vmem:[#allocation2 + $0x2d] ss:$0 sm:$0xff] }
0x1dc2   :  { %7444 = vmatpush3.bf16.msra.mxu1 %v8502_v28  ;;  %7049 = vmatprep.mubr.msk.f32.mxu1 %vm8134_vm8, %v9868_v37 }
0x1dc3   :  { %7445 = vmatprep.subr.bf16.mxu1 %v9869_v48 }
0x1dc6   :  { %7447 = vmatpush3.bf16.msra.mxu1 %v8512_v32 }
0x1dc7   :  { %7454 = vmatprep.subr.bf16.mxu1 %v9869_v48 }
0x1e8c   :  { %v3880_v23 = vpop.f32.mrb[20].mxu0 }
0x1e8d   :  { %v3885_v57 = vrot.slane %v3880_v23, 1  ;;  %v7018_v34 = vpop.f32.mrb[21].mxu0  ;;  %v3888_v43 = vadd.f32 %v3880_v23, %v3804_v26 }
0x1e8f   :  { %v3889_v35 = vadd.f32 %v3885_v57, %v3805_v52  ;;  %v6343_v52 = vmul.f32 -1.442695, %v3888_v43 }
0x1e91   :  { %7916 = vtanh.f32 %v3889_v35  ;;  %v6344_v34 = vmul.f32 -1.442695, %v3889_v35 }
0x1e92   :  { %7918 = vtanh.f32 %v3888_v43 }
0x1e94   :  { %v4010_v42 = vpop.f32.mrb[36].mxu1 }
0x1e95   :  { %v4015_v53 = vrot.slane %v4010_v42, 1  ;;  %v7029_v3 = vpop.f32.mrb[37].mxu1  ;;  %v4018_v16 = vadd.f32 %v4010_v42, %v3806_v29 }
0x1e97   :  { %v4019_v45 = vadd.f32 %v4015_v53, %v3807_v40  ;;  %v6346_v29 = vmul.f32 -1.442695, %v4018_v16 }
0x1e99   :  { %7920 = vtanh.f32 %v4019_v45  ;;  %v6347_v26 = vmul.f32 -1.442695, %v4019_v45 }
0x1e9a   :  { %7922 = vtanh.f32 %v4018_v16 }
0x1e9b   :  { %v7917_v1 = vpop.eup %7916  ;;  %7924 = vpow2.f32 %v6344_v34 }
0x1e9c   :  { %3910 = vrot.lane.b32.xlu1 %v7917_v1, %s8135_s8  ;;  %v7919_v44 = vpop.eup %7918  ;;  %7926 = vpow2.f32 %v6343_v52 }
0x1e9d   :  { %7928 = vpow2.f32 %v6347_v26 }
0x1e9e   :  { %7930 = vpow2.f32 %v6346_v29 }
0x1ea0   :  { %3908 = vrot.lane.b32.xlu1 %v7919_v44, %s8135_s8 }
0x1ea3   :  { %v7921_v57 = vpop.eup %7920 }
0x1ea4   :  { %4040 = vrot.lane.b32.xlu0 %v7921_v57, %s8135_s8  ;;  %v7923_v23 = vpop.eup %7922 }
0x1ea5   :  { %v7925_v42 = vpop.eup %7924 }
0x1ea6   :  { %v3897_v1 = vadd.f32 1.0, %v7925_v42  ;;  %v7927_v53 = vpop.eup %7926 }
0x1ea7   :  { %v3896_v3 = vadd.f32 1.0, %v7927_v53  ;;  %v7929_v44 = vpop.eup %7928 }
0x1ea8   :  { %4038 = vrot.lane.b32.xlu0 %v7923_v23, %s8135_s8  ;;  %7932 = vrcp.f32 %v3897_v1  ;;  %v4027_v40 = vadd.f32 1.0, %v7929_v44  ;;  %v7931_v57 = vpop.eup %7930 }
0x1ea9   :  { %7934 = vrcp.f32 %v3896_v3  ;;  %v4026_v17 = vadd.f32 1.0, %v7931_v57 }
0x1eaa   :  { %7936 = vrcp.f32 %v4027_v40 }
0x1eab   :  { %7938 = vrcp.f32 %v4026_v17 }
0x1eb2   :  { %v7933_v23 = vpop.eup %7932 }
0x1eb3   :  { %v7935_v16 = vpop.eup %7934  ;;  %v3905_v3 = vmul.f32 %v7933_v23, %v9058_v7 }
0x1eb4   :  { %v7937_v52 = vpop.eup %7936  ;;  %v3904_v40 = vmul.f32 %v7935_v16, %v9062_v56 }
0x1eb5   :  { %v7939_v42 = vpop.eup %7938 }
0x1eb6   :  { %v4034_v7 = vmul.f32 %v7939_v42, %v9070_v6 }
0x1f0e   :  { %v3911_v35 = vpop.permute.xlu1 %3910 }
0x1f0f   :  { %v3915_v43 = vmul.f32 %v7933_v23, %v3911_v35 }
0x1f11   :  { %3920 = vrot.lane.b32.xlu1 %v3915_v43, %s8136_s14  ;;  %v4035_v43 = vmul.f32 %v7937_v52, %v9066_v60 }
0x1f12   :  { %v3909_v45 = vpop.permute.xlu1 %3908 }
0x1f13   :  { %v3914_v34 = vmul.f32 %v7935_v16, %v3909_v45 }
0x1f15   :  { %3918 = vrot.lane.b32.xlu1 %v3914_v34, %s8136_s14 }
0x1f16   :  { %v4041_v26 = vpop.permute.xlu0 %4040 }
0x1f17   :  { %v4045_v29 = vmul.f32 %v7937_v52, %v4041_v26 }
0x1f19   :  { %4050 = vrot.lane.b32.xlu0 %v4045_v29, %s8136_s14 }
0x1f1a   :  { %v4039_v1 = vpop.permute.xlu0 %4038 }
0x1f1b   :  { %v4044_v53 = vmul.f32 %v7939_v42, %v4039_v1 }
0x1f1d   :  { %4048 = vrot.lane.b32.xlu0 %v4044_v53, %s8136_s14 }
0x1f83   :  { %v3921_v17 = vpop.permute.xlu1 %3920 }
0x1f84   :  { %v9116_v44 = vadd.f32 %v3921_v17, %v3905_v3 }
0x1f86   :  { %7940 = vtanh.f32 %v9116_v44 }
0x1f87   :  { %v3919_v57 = vpop.permute.xlu1 %3918 }
0x1f88   :  { %v9120_v35 = vadd.f32 %v3919_v57, %v3904_v40 }
0x1f8a   :  { %7942 = vtanh.f32 %v9120_v35 }
0x1f8b   :  { %v4051_v45 = vpop.permute.xlu0 %4050 }
0x1f8c   :  { %v9124_v34 = vadd.f32 %v4051_v45, %v4035_v43 }
0x1f8e   :  { %7944 = vtanh.f32 %v9124_v34 }
0x1f8f   :  { %v4049_v26 = vpop.permute.xlu0 %4048 }
0x1f90   :  { %v7941_v29 = vpop.eup %7940  ;;  %v9128_v1 = vadd.f32 %v4049_v26, %v4034_v7 }
0x1f91   :  { %3932 = vrot.lane.b32.xlu1 %v7941_v29, %s8135_s8 }
0x1f92   :  { %7946 = vtanh.f32 %v9128_v1 }
0x1f94   :  { %v7943_v56 = vpop.eup %7942 }
0x1f95   :  { %3930 = vrot.lane.b32.xlu1 %v7943_v56, %s8135_s8 }
0x1f98   :  { %v7945_v53 = vpop.eup %7944 }
0x1f99   :  { %4062 = vrot.lane.b32.xlu0 %v7945_v53, %s8135_s8 }
0x1f9c   :  { %v7947_v60 = vpop.eup %7946 }
0x1f9d   :  { %4060 = vrot.lane.b32.xlu0 %v7947_v60, %s8135_s8 }
0x2003   :  { %v3933_v3 = vpop.permute.xlu1 %3932 }
0x2004   :  { %v9135_v17 = vmul.f32 %v7933_v23, %v3933_v3  ;;  %v4089_v3 = vld [vmem:[#allocation2 + $0x33] ss:$0 sm:$0xff] }
0x2006   :  { %9870 = vst [vmem:[#allocation21_spill] sm:$0xff] %v9135_v17  ;;  %v4092_v40 = vrot.slane %v9135_v17, 7 }
0x2007   :  { %v3931_v6 = vpop.permute.xlu1 %3930 }
0x2008   :  { %v9138_v57 = vmul.f32 %v7935_v16, %v3931_v6 }
0x200a   :  { %v4093_v43 = vsel %vm1252_vm10, %v4092_v40, %v9138_v57  ;;  %v4088_v40 = vld [vmem:[#allocation2 + $0x13] ss:$0 sm:$0xff] }
0x200b   :  { %v4063_v45 = vpop.permute.xlu0 %4062  ;;  %4094 = vrot.lane.b32.xlu1 %v4093_v43, %s8136_s14 }
0x200c   :  { %v9143_v7 = vmul.f32 %v7937_v52, %v4063_v45 }
0x200e   :  { %9871 = vst [vmem:[#allocation22_spill] sm:$0xff] %v9143_v7  ;;  %v4222_v29 = vrot.slane %v9143_v7, 7 }
0x200f   :  { %v4061_v26 = vpop.permute.xlu0 %4060 }
0x2010   :  { %v9146_v56 = vmul.f32 %v7939_v42, %v4061_v26 }
0x2012   :  { %v4223_v23 = vsel %vm1252_vm10, %v4222_v29, %v9146_v56 }
0x2013   :  { %4224 = vrot.lane.b32.xlu0 %v4223_v23, %s8136_s14  ;;  %v4091_v23 = vld [vmem:[#allocation2 + $0x2c] ss:$0 sm:$0xff] }
0x207d   :  { %v4095_v16 = vpop.permute.xlu1 %4094 }
0x207e   :  { %7039 = vmatmul.mubr.msk.f32.vlgmr.msra.gmra.mrb[22].mxu0 %vm852_vm9, %v4095_v16 }
0x207f   :  { %7450 = vmatpush3.bf16.msra.mxu0 %v8463_v8  ;;  %7060 = vmatprep.mubr.msk.f32.mxu0 %vm8134_vm8, %v9868_v37 }
0x2080   :  { %7451 = vmatprep.subr.bf16.mxu0 %v9869_v48 }
0x2083   :  { %7453 = vmatpush3.bf16.msra.mxu0 %v8474_v11 }
0x2084   :  { %7460 = vmatprep.subr.bf16.mxu0 %v9869_v48 }
0x2085   :  { %v4225_v52 = vpop.permute.xlu0 %4224 }
0x2086   :  { %7050 = vmatmul.mubr.msk.f32.vlgmr.msra.gmra.mrb[38].mxu1 %vm852_vm9, %v4225_v52  ;;  %v4090_v52 = vld [vmem:[#allocation2 + $0xc] ss:$0 sm:$0xff] }
0x2087   :  { %7456 = vmatpush3.bf16.msra.mxu1 %v8502_v28  ;;  %7071 = vmatprep.mubr.msk.f32.mxu1 %vm8134_vm8, %v9868_v37 }
0x2088   :  { %7457 = vmatprep.subr.bf16.mxu1 %v9869_v48 }
0x208b   :  { %7459 = vmatpush3.bf16.msra.mxu1 %v8512_v32 }
0x208c   :  { %7466 = vmatprep.subr.bf16.mxu1 %v9869_v48 }
0x2151   :  { %v4164_v42 = vpop.f32.mrb[22].mxu0 }
0x2152   :  { %v4169_v53 = vrot.slane %v4164_v42, 1  ;;  %v7040_v60 = vpop.f32.mrb[23].mxu0  ;;  %v4172_v43 = vadd.f32 %v4164_v42, %v4088_v40 }
0x2154   :  { %v4173_v6 = vadd.f32 %v4169_v53, %v4089_v3  ;;  %v6349_v3 = vmul.f32 -1.442695, %v4172_v43 }
0x2156   :  { %7948 = vtanh.f32 %v4173_v6  ;;  %v6350_v60 = vmul.f32 -1.442695, %v4173_v6 }
0x2157   :  { %7950 = vtanh.f32 %v4172_v43 }
0x2159   :  { %v4294_v45 = vpop.f32.mrb[38].mxu1 }
0x215a   :  { %v4299_v26 = vrot.slane %v4294_v45, 1  ;;  %v7051_v29 = vpop.f32.mrb[39].mxu1  ;;  %v4302_v17 = vadd.f32 %v4294_v45, %v4090_v52 }
0x215c   :  { %v4303_v16 = vadd.f32 %v4299_v26, %v4091_v23  ;;  %v6352_v45 = vmul.f32 -1.442695, %v4302_v17 }
0x215e   :  { %7952 = vtanh.f32 %v4303_v16  ;;  %v6353_v40 = vmul.f32 -1.442695, %v4303_v16 }
0x215f   :  { %7954 = vtanh.f32 %v4302_v17 }
0x2160   :  { %v7949_v7 = vpop.eup %7948  ;;  %7956 = vpow2.f32 %v6350_v60 }
0x2161   :  { %4194 = vrot.lane.b32.xlu1 %v7949_v7, %s8135_s8  ;;  %v7951_v50 = vpop.eup %7950  ;;  %7958 = vpow2.f32 %v6349_v3 }
0x2162   :  { %7960 = vpow2.f32 %v6353_v40 }
0x2163   :  { %7962 = vpow2.f32 %v6352_v45 }
0x2165   :  { %4192 = vrot.lane.b32.xlu1 %v7951_v50, %s8135_s8 }
0x2168   :  { %v7953_v53 = vpop.eup %7952 }
0x2169   :  { %4324 = vrot.lane.b32.xlu0 %v7953_v53, %s8135_s8  ;;  %v7955_v42 = vpop.eup %7954 }
0x216a   :  { %v7957_v26 = vpop.eup %7956 }
0x216b   :  { %v4181_v7 = vadd.f32 1.0, %v7957_v26  ;;  %v7959_v29 = vpop.eup %7958 }
0x216c   :  { %v4180_v23 = vadd.f32 1.0, %v7959_v29  ;;  %v7961_v50 = vpop.eup %7960 }
0x216d   :  { %4322 = vrot.lane.b32.xlu0 %v7955_v42, %s8135_s8  ;;  %7964 = vrcp.f32 %v4181_v7  ;;  %v4311_v52 = vadd.f32 1.0, %v7961_v50  ;;  %v7963_v53 = vpop.eup %7962 }
0x216e   :  { %7966 = vrcp.f32 %v4180_v23  ;;  %v4310_v22 = vadd.f32 1.0, %v7963_v53 }
0x216f   :  { %7968 = vrcp.f32 %v4311_v52 }
0x2170   :  { %7970 = vrcp.f32 %v4310_v22 }
0x2177   :  { %v7965_v42 = vpop.eup %7964 }
0x2178   :  { %v7967_v17 = vpop.eup %7966  ;;  %v4189_v23 = vmul.f32 %v7965_v42, %v9116_v44 }
0x2179   :  { %v7969_v3 = vpop.eup %7968  ;;  %v4188_v52 = vmul.f32 %v7967_v17, %v9120_v35 }
0x217a   :  { %v7971_v26 = vpop.eup %7970 }
0x217b   :  { %v4318_v44 = vmul.f32 %v7971_v26, %v9128_v1 }
0x21d3   :  { %v4195_v6 = vpop.permute.xlu1 %4194 }
0x21d4   :  { %v4199_v43 = vmul.f32 %v7965_v42, %v4195_v6 }
0x21d6   :  { %4204 = vrot.lane.b32.xlu1 %v4199_v43, %s8136_s14  ;;  %v4319_v43 = vmul.f32 %v7969_v3, %v9124_v34 }
0x21d7   :  { %v4193_v16 = vpop.permute.xlu1 %4192 }
0x21d8   :  { %v4198_v60 = vmul.f32 %v7967_v17, %v4193_v16 }
0x21da   :  { %4202 = vrot.lane.b32.xlu1 %v4198_v60, %s8136_s14 }
0x21db   :  { %v4325_v40 = vpop.permute.xlu0 %4324 }
0x21dc   :  { %v4329_v45 = vmul.f32 %v7969_v3, %v4325_v40 }
0x21de   :  { %4334 = vrot.lane.b32.xlu0 %v4329_v45, %s8136_s14 }
0x21df   :  { %v4323_v7 = vpop.permute.xlu0 %4322 }
0x21e0   :  { %v4328_v29 = vmul.f32 %v7971_v26, %v4323_v7 }
0x21e2   :  { %4332 = vrot.lane.b32.xlu0 %v4328_v29, %s8136_s14 }
0x2248   :  { %v4205_v22 = vpop.permute.xlu1 %4204 }
0x2249   :  { %v9174_v50 = vadd.f32 %v4205_v22, %v4189_v23 }
0x224b   :  { %7972 = vtanh.f32 %v9174_v50 }
0x224c   :  { %v4203_v53 = vpop.permute.xlu1 %4202 }
0x224d   :  { %v9178_v6 = vadd.f32 %v4203_v53, %v4188_v52 }
0x224f   :  { %7974 = vtanh.f32 %v9178_v6 }
0x2250   :  { %v4335_v16 = vpop.permute.xlu0 %4334 }
0x2251   :  { %v9182_v60 = vadd.f32 %v4335_v16, %v4319_v43 }
0x2253   :  { %7976 = vtanh.f32 %v9182_v60 }
0x2254   :  { %v4333_v40 = vpop.permute.xlu0 %4332 }
0x2255   :  { %v7973_v45 = vpop.eup %7972  ;;  %v9186_v7 = vadd.f32 %v4333_v40, %v4318_v44 }
0x2256   :  { %4216 = vrot.lane.b32.xlu1 %v7973_v45, %s8135_s8 }
0x2257   :  { %7978 = vtanh.f32 %v9186_v7 }
0x2259   :  { %v7975_v35 = vpop.eup %7974 }
0x225a   :  { %4214 = vrot.lane.b32.xlu1 %v7975_v35, %s8135_s8 }
0x225d   :  { %v7977_v29 = vpop.eup %7976 }
0x225e   :  { %4346 = vrot.lane.b32.xlu0 %v7977_v29, %s8135_s8 }
0x2261   :  { %v7979_v34 = vpop.eup %7978 }
0x2262   :  { %4344 = vrot.lane.b32.xlu0 %v7979_v34, %s8135_s8 }
0x22c8   :  { %v4217_v23 = vpop.permute.xlu1 %4216 }
0x22c9   :  { %v9193_v22 = vmul.f32 %v7965_v42, %v4217_v23  ;;  %v4373_v23 = vld [vmem:[#allocation2 + $0x34] ss:$0 sm:$0xff] }
0x22cb   :  { %9872 = vst [vmem:[#allocation23_spill] sm:$0xff] %v9193_v22  ;;  %v4376_v52 = vrot.slane %v9193_v22, 7 }
0x22cc   :  { %v4215_v1 = vpop.permute.xlu1 %4214 }
0x22cd   :  { %v9196_v53 = vmul.f32 %v7967_v17, %v4215_v1 }
0x22cf   :  { %v4377_v43 = vsel %vm1252_vm10, %v4376_v52, %v9196_v53  ;;  %v4372_v52 = vld [vmem:[#allocation2 + $0x14] ss:$0 sm:$0xff] }
0x22d0   :  { %v4347_v16 = vpop.permute.xlu0 %4346  ;;  %4378 = vrot.lane.b32.xlu1 %v4377_v43, %s8136_s14 }
0x22d1   :  { %v9201_v44 = vmul.f32 %v7969_v3, %v4347_v16 }
0x22d3   :  { %9873 = vst [vmem:[#allocation24_spill] sm:$0xff] %v9201_v44  ;;  %v4506_v45 = vrot.slane %v9201_v44, 7 }
0x22d4   :  { %v4345_v40 = vpop.permute.xlu0 %4344 }
0x22d5   :  { %v9204_v35 = vmul.f32 %v7971_v26, %v4345_v40 }
0x22d7   :  { %v4507_v42 = vsel %vm1252_vm10, %v4506_v45, %v9204_v35 }
0x22d8   :  { %4508 = vrot.lane.b32.xlu0 %v4507_v42, %s8136_s14  ;;  %v4375_v42 = vld [vmem:[#allocation2 + $0x2b] ss:$0 sm:$0xff] }
0x2342   :  { %v4379_v17 = vpop.permute.xlu1 %4378 }
0x2343   :  { %7061 = vmatmul.mubr.msk.f32.vlgmr.msra.gmra.mrb[24].mxu0 %vm852_vm9, %v4379_v17 }
0x2344   :  { %7462 = vmatpush3.bf16.msra.mxu0 %v8463_v8  ;;  %7082 = vmatprep.mubr.msk.f32.mxu0 %vm8134_vm8, %v9868_v37 }
0x2345   :  { %7463 = vmatprep.subr.bf16.mxu0 %v9869_v48 }
0x2348   :  { %7465 = vmatpush3.bf16.msra.mxu0 %v8474_v11 }
0x2349   :  { %7472 = vmatprep.subr.bf16.mxu0 %v9869_v48 }
0x234a   :  { %v4509_v3 = vpop.permute.xlu0 %4508 }
0x234b   :  { %7072 = vmatmul.mubr.msk.f32.vlgmr.msra.gmra.mrb[40].mxu1 %vm852_vm9, %v4509_v3  ;;  %v4374_v3 = vld [vmem:[#allocation2 + $0xb] ss:$0 sm:$0xff] }
0x234c   :  { %7468 = vmatpush3.bf16.msra.mxu1 %v8502_v28  ;;  %7093 = vmatprep.mubr.msk.f32.mxu1 %vm8134_vm8, %v9868_v37 }
0x234d   :  { %7469 = vmatprep.subr.bf16.mxu1 %v9869_v48 }
0x2350   :  { %7471 = vmatpush3.bf16.msra.mxu1 %v8512_v32 }
0x2351   :  { %7478 = vmatprep.subr.bf16.mxu1 %v9869_v48 }
0x2416   :  { %v4448_v26 = vpop.f32.mrb[24].mxu0 }
0x2417   :  { %v4453_v29 = vrot.slane %v4448_v26, 1  ;;  %v7062_v34 = vpop.f32.mrb[25].mxu0  ;;  %v4456_v43 = vadd.f32 %v4448_v26, %v4372_v52 }
0x2419   :  { %v4457_v1 = vadd.f32 %v4453_v29, %v4373_v23  ;;  %v6355_v23 = vmul.f32 -1.442695, %v4456_v43 }
0x241b   :  { %7980 = vtanh.f32 %v4457_v1  ;;  %v6356_v34 = vmul.f32 -1.442695, %v4457_v1 }
0x241c   :  { %7982 = vtanh.f32 %v4456_v43 }
0x241e   :  { %v4578_v16 = vpop.f32.mrb[40].mxu1 }
0x241f   :  { %v4583_v40 = vrot.slane %v4578_v16, 1  ;;  %v7073_v45 = vpop.f32.mrb[41].mxu1  ;;  %v4586_v22 = vadd.f32 %v4578_v16, %v4374_v3 }
0x2421   :  { %v4587_v17 = vadd.f32 %v4583_v40, %v4375_v42  ;;  %v6358_v16 = vmul.f32 -1.442695, %v4586_v22 }
0x2423   :  { %7984 = vtanh.f32 %v4587_v17  ;;  %v6359_v52 = vmul.f32 -1.442695, %v4587_v17 }
0x2424   :  { %7986 = vtanh.f32 %v4586_v22 }
0x2425   :  { %v7981_v44 = vpop.eup %7980  ;;  %7988 = vpow2.f32 %v6356_v34 }
0x2426   :  { %4478 = vrot.lane.b32.xlu1 %v7981_v44, %s8135_s8  ;;  %v7983_v13 = vpop.eup %7982  ;;  %7990 = vpow2.f32 %v6355_v23 }
0x2427   :  { %7992 = vpow2.f32 %v6359_v52 }
0x2428   :  { %7994 = vpow2.f32 %v6358_v16 }
0x242a   :  { %4476 = vrot.lane.b32.xlu1 %v7983_v13, %s8135_s8 }
0x242d   :  { %v7985_v29 = vpop.eup %7984 }
0x242e   :  { %4608 = vrot.lane.b32.xlu0 %v7985_v29, %s8135_s8  ;;  %v7987_v26 = vpop.eup %7986 }
0x242f   :  { %v7989_v40 = vpop.eup %7988 }
0x2430   :  { %v4465_v44 = vadd.f32 1.0, %v7989_v40  ;;  %v7991_v45 = vpop.eup %7990 }
0x2431   :  { %v4464_v42 = vadd.f32 1.0, %v7991_v45  ;;  %v7993_v13 = vpop.eup %7992 }
0x2432   :  { %4606 = vrot.lane.b32.xlu0 %v7987_v26, %s8135_s8  ;;  %7996 = vrcp.f32 %v4465_v44  ;;  %v4595_v3 = vadd.f32 1.0, %v7993_v13  ;;  %v7995_v29 = vpop.eup %7994 }
0x2433   :  { %7998 = vrcp.f32 %v4464_v42  ;;  %v4594_v27 = vadd.f32 1.0, %v7995_v29 }
0x2434   :  { %8000 = vrcp.f32 %v4595_v3 }
0x2435   :  { %8002 = vrcp.f32 %v4594_v27 }
0x243c   :  { %v7997_v26 = vpop.eup %7996 }
0x243d   :  { %v7999_v22 = vpop.eup %7998  ;;  %v4473_v42 = vmul.f32 %v7997_v26, %v9174_v50 }
0x243e   :  { %v8001_v23 = vpop.eup %8000  ;;  %v4472_v3 = vmul.f32 %v7999_v22, %v9178_v6 }
0x243f   :  { %v8003_v40 = vpop.eup %8002 }
0x2440   :  { %v4602_v50 = vmul.f32 %v8003_v40, %v9186_v7 }
0x2498   :  { %v4479_v1 = vpop.permute.xlu1 %4478 }
0x2499   :  { %v4483_v43 = vmul.f32 %v7997_v26, %v4479_v1 }
0x249b   :  { %4488 = vrot.lane.b32.xlu1 %v4483_v43, %s8136_s14  ;;  %v4603_v43 = vmul.f32 %v8001_v23, %v9182_v60 }
0x249c   :  { %v4477_v17 = vpop.permute.xlu1 %4476 }
0x249d   :  { %v4482_v34 = vmul.f32 %v7999_v22, %v4477_v17 }
0x249f   :  { %4486 = vrot.lane.b32.xlu1 %v4482_v34, %s8136_s14 }
0x24a0   :  { %v4609_v52 = vpop.permute.xlu0 %4608 }
0x24a1   :  { %v4613_v16 = vmul.f32 %v8001_v23, %v4609_v52 }
0x24a3   :  { %4618 = vrot.lane.b32.xlu0 %v4613_v16, %s8136_s14 }
0x24a4   :  { %v4607_v44 = vpop.permute.xlu0 %4606 }
0x24a5   :  { %v4612_v45 = vmul.f32 %v8003_v40, %v4607_v44 }
0x24a7   :  { %4616 = vrot.lane.b32.xlu0 %v4612_v45, %s8136_s14 }
0x250d   :  { %v4489_v27 = vpop.permute.xlu1 %4488 }
0x250e   :  { %v9232_v13 = vadd.f32 %v4489_v27, %v4473_v42 }
0x2510   :  { %8004 = vtanh.f32 %v9232_v13 }
0x2511   :  { %v4487_v29 = vpop.permute.xlu1 %4486 }
0x2512   :  { %v9236_v1 = vadd.f32 %v4487_v29, %v4472_v3 }
0x2514   :  { %8006 = vtanh.f32 %v9236_v1 }
0x2515   :  { %v4619_v17 = vpop.permute.xlu0 %4618 }
0x2516   :  { %v9240_v34 = vadd.f32 %v4619_v17, %v4603_v43 }
0x2518   :  { %8008 = vtanh.f32 %v9240_v34 }
0x2519   :  { %v4617_v52 = vpop.permute.xlu0 %4616 }
0x251a   :  { %v8005_v16 = vpop.eup %8004  ;;  %v9244_v44 = vadd.f32 %v4617_v52, %v4602_v50 }
0x251b   :  { %4500 = vrot.lane.b32.xlu1 %v8005_v16, %s8135_s8 }
0x251c   :  { %8010 = vtanh.f32 %v9244_v44 }
0x251e   :  { %v8007_v6 = vpop.eup %8006 }
0x251f   :  { %4498 = vrot.lane.b32.xlu1 %v8007_v6, %s8135_s8 }
0x2522   :  { %v8009_v45 = vpop.eup %8008 }
0x2523   :  { %4630 = vrot.lane.b32.xlu0 %v8009_v45, %s8135_s8 }
0x2526   :  { %v8011_v60 = vpop.eup %8010 }
0x2527   :  { %4628 = vrot.lane.b32.xlu0 %v8011_v60, %s8135_s8 }
0x258d   :  { %v4501_v42 = vpop.permute.xlu1 %4500 }
0x258e   :  { %v9251_v27 = vmul.f32 %v7997_v26, %v4501_v42  ;;  %v4657_v42 = vld [vmem:[#allocation2 + $0x35] ss:$0 sm:$0xff] }
0x2590   :  { %9874 = vst [vmem:[#allocation25_spill] sm:$0xff] %v9251_v27  ;;  %v4660_v3 = vrot.slane %v9251_v27, 7 }
0x2591   :  { %v4499_v7 = vpop.permute.xlu1 %4498 }
0x2592   :  { %v9254_v29 = vmul.f32 %v7999_v22, %v4499_v7 }
0x2594   :  { %v4661_v43 = vsel %vm1252_vm10, %v4660_v3, %v9254_v29  ;;  %v4656_v3 = vld [vmem:[#allocation2 + $0x15] ss:$0 sm:$0xff] }
0x2595   :  { %v4631_v17 = vpop.permute.xlu0 %4630  ;;  %4662 = vrot.lane.b32.xlu1 %v4661_v43, %s8136_s14 }
0x2596   :  { %v9259_v50 = vmul.f32 %v8001_v23, %v4631_v17 }
0x2598   :  { %9875 = vst [vmem:[#allocation26_spill] sm:$0xff] %v9259_v50  ;;  %v4790_v16 = vrot.slane %v9259_v50, 7 }
0x2599   :  { %v4629_v52 = vpop.permute.xlu0 %4628 }
0x259a   :  { %v9262_v6 = vmul.f32 %v8003_v40, %v4629_v52 }
0x259c   :  { %v4791_v26 = vsel %vm1252_vm10, %v4790_v16, %v9262_v6 }
0x259d   :  { %4792 = vrot.lane.b32.xlu0 %v4791_v26, %s8136_s14  ;;  %v4659_v26 = vld [vmem:[#allocation2 + $0x2a] ss:$0 sm:$0xff] }
0x2607   :  { %v4663_v22 = vpop.permute.xlu1 %4662 }
0x2608   :  { %7083 = vmatmul.mubr.msk.f32.vlgmr.msra.gmra.mrb[26].mxu0 %vm852_vm9, %v4663_v22 }
0x2609   :  { %7474 = vmatpush3.bf16.msra.mxu0 %v8463_v8  ;;  %7104 = vmatprep.mubr.msk.f32.mxu0 %vm8134_vm8, %v9868_v37 }
0x260a   :  { %7475 = vmatprep.subr.bf16.mxu0 %v9869_v48 }
0x260d   :  { %7477 = vmatpush3.bf16.msra.mxu0 %v8474_v11 }
0x260e   :  { %7484 = vmatprep.subr.bf16.mxu0 %v9869_v48 }
0x260f   :  { %v4793_v23 = vpop.permute.xlu0 %4792 }
0x2610   :  { %7094 = vmatmul.mubr.msk.f32.vlgmr.msra.gmra.mrb[42].mxu1 %vm852_vm9, %v4793_v23  ;;  %v4658_v23 = vld [vmem:[#allocation2 + $0xa] ss:$0 sm:$0xff] }
0x2611   :  { %7480 = vmatpush3.bf16.msra.mxu1 %v8502_v28  ;;  %7115 = vmatprep.mubr.msk.f32.mxu1 %vm8134_vm8, %v9868_v37 }
0x2612   :  { %7481 = vmatprep.subr.bf16.mxu1 %v9869_v48 }
0x2615   :  { %7483 = vmatpush3.bf16.msra.mxu1 %v8512_v32 }
0x2616   :  { %7490 = vmatprep.subr.bf16.mxu1 %v9869_v48 }
0x26db   :  { %v4732_v40 = vpop.f32.mrb[26].mxu0 }
0x26dc   :  { %v4737_v45 = vrot.slane %v4732_v40, 1  ;;  %v7084_v60 = vpop.f32.mrb[27].mxu0  ;;  %v4740_v43 = vadd.f32 %v4732_v40, %v4656_v3 }
0x26de   :  { %v4741_v7 = vadd.f32 %v4737_v45, %v4657_v42  ;;  %v6361_v42 = vmul.f32 -1.442695, %v4740_v43 }
0x26e0   :  { %8012 = vtanh.f32 %v4741_v7  ;;  %v6362_v60 = vmul.f32 -1.442695, %v4741_v7 }
0x26e1   :  { %8014 = vtanh.f32 %v4740_v43 }
0x26e3   :  { %v4862_v17 = vpop.f32.mrb[42].mxu1 }
0x26e4   :  { %v4867_v52 = vrot.slane %v4862_v17, 1  ;;  %v7095_v16 = vpop.f32.mrb[43].mxu1  ;;  %v4870_v27 = vadd.f32 %v4862_v17, %v4658_v23 }
0x26e6   :  { %v4871_v22 = vadd.f32 %v4867_v52, %v4659_v26  ;;  %v6364_v17 = vmul.f32 -1.442695, %v4870_v27 }
0x26e8   :  { %8016 = vtanh.f32 %v4871_v22  ;;  %v6365_v3 = vmul.f32 -1.442695, %v4871_v22 }
0x26e9   :  { %8018 = vtanh.f32 %v4870_v27 }
0x26ea   :  { %v8013_v50 = vpop.eup %8012  ;;  %8020 = vpow2.f32 %v6362_v60 }
0x26eb   :  { %4762 = vrot.lane.b32.xlu1 %v8013_v50, %s8135_s8  ;;  %v8015_v51 = vpop.eup %8014  ;;  %8022 = vpow2.f32 %v6361_v42 }
0x26ec   :  { %8024 = vpow2.f32 %v6365_v3 }
0x26ed   :  { %8026 = vpow2.f32 %v6364_v17 }
0x26ef   :  { %4760 = vrot.lane.b32.xlu1 %v8015_v51, %s8135_s8 }
0x26f2   :  { %v8017_v45 = vpop.eup %8016 }
0x26f3   :  { %4892 = vrot.lane.b32.xlu0 %v8017_v45, %s8135_s8  ;;  %v8019_v40 = vpop.eup %8018 }
0x26f4   :  { %v8021_v52 = vpop.eup %8020 }
0x26f5   :  { %v4749_v50 = vadd.f32 1.0, %v8021_v52  ;;  %v8023_v16 = vpop.eup %8022 }
0x26f6   :  { %v4748_v26 = vadd.f32 1.0, %v8023_v16  ;;  %v8025_v51 = vpop.eup %8024 }
0x26f7   :  { %4890 = vrot.lane.b32.xlu0 %v8019_v40, %s8135_s8  ;;  %8028 = vrcp.f32 %v4749_v50  ;;  %v4879_v23 = vadd.f32 1.0, %v8025_v51  ;;  %v8027_v45 = vpop.eup %8026 }
0x26f8   :  { %8030 = vrcp.f32 %v4748_v26  ;;  %v4878_v24 = vadd.f32 1.0, %v8027_v45 }
0x26f9   :  { %8032 = vrcp.f32 %v4879_v23 }
0x26fa   :  { %8034 = vrcp.f32 %v4878_v24 }
0x2701   :  { %v8029_v40 = vpop.eup %8028 }
0x2702   :  { %v8031_v27 = vpop.eup %8030  ;;  %v4757_v26 = vmul.f32 %v8029_v40, %v9232_v13 }
0x2703   :  { %v8033_v42 = vpop.eup %8032  ;;  %v4756_v23 = vmul.f32 %v8031_v27, %v9236_v1 }
0x2704   :  { %v8035_v52 = vpop.eup %8034 }
0x2705   :  { %v4886_v13 = vmul.f32 %v8035_v52, %v9244_v44 }
0x275d   :  { %v4763_v7 = vpop.permute.xlu1 %4762 }
0x275e   :  { %v4767_v43 = vmul.f32 %v8029_v40, %v4763_v7 }
0x2760   :  { %4772 = vrot.lane.b32.xlu1 %v4767_v43, %s8136_s14  ;;  %v4887_v43 = vmul.f32 %v8033_v42, %v9240_v34 }
0x2761   :  { %v4761_v22 = vpop.permute.xlu1 %4760 }
0x2762   :  { %v4766_v60 = vmul.f32 %v8031_v27, %v4761_v22 }
0x2764   :  { %4770 = vrot.lane.b32.xlu1 %v4766_v60, %s8136_s14 }
0x2765   :  { %v4893_v3 = vpop.permute.xlu0 %4892 }
0x2766   :  { %v4897_v17 = vmul.f32 %v8033_v42, %v4893_v3 }
0x2768   :  { %4902 = vrot.lane.b32.xlu0 %v4897_v17, %s8136_s14 }
0x2769   :  { %v4891_v50 = vpop.permute.xlu0 %4890 }
0x276a   :  { %v4896_v16 = vmul.f32 %v8035_v52, %v4891_v50 }
0x276c   :  { %4900 = vrot.lane.b32.xlu0 %v4896_v16, %s8136_s14 }
0x27d2   :  { %v4773_v24 = vpop.permute.xlu1 %4772 }
0x27d3   :  { %v9290_v51 = vadd.f32 %v4773_v24, %v4757_v26 }
0x27d5   :  { %8036 = vtanh.f32 %v9290_v51 }
0x27d6   :  { %v4771_v45 = vpop.permute.xlu1 %4770 }
0x27d7   :  { %v9294_v7 = vadd.f32 %v4771_v45, %v4756_v23 }
0x27d9   :  { %8038 = vtanh.f32 %v9294_v7 }
0x27da   :  { %v4903_v22 = vpop.permute.xlu0 %4902 }
0x27db   :  { %v9298_v60 = vadd.f32 %v4903_v22, %v4887_v43 }
0x27dd   :  { %8040 = vtanh.f32 %v9298_v60 }
0x27de   :  { %v4901_v3 = vpop.permute.xlu0 %4900 }
0x27df   :  { %v8037_v17 = vpop.eup %8036  ;;  %v9302_v50 = vadd.f32 %v4901_v3, %v4886_v13 }
0x27e0   :  { %4784 = vrot.lane.b32.xlu1 %v8037_v17, %s8135_s8 }
0x27e1   :  { %8042 = vtanh.f32 %v9302_v50 }
0x27e3   :  { %v8039_v1 = vpop.eup %8038 }
0x27e4   :  { %4782 = vrot.lane.b32.xlu1 %v8039_v1, %s8135_s8 }
0x27e7   :  { %v8041_v16 = vpop.eup %8040 }
0x27e8   :  { %4914 = vrot.lane.b32.xlu0 %v8041_v16, %s8135_s8 }
0x27eb   :  { %v8043_v34 = vpop.eup %8042 }
0x27ec   :  { %4912 = vrot.lane.b32.xlu0 %v8043_v34, %s8135_s8  ;;  %v4941_v34 = vld [vmem:[#allocation2 + $0x36] ss:$0 sm:$0xff] }
0x2852   :  { %v4785_v26 = vpop.permute.xlu1 %4784 }
0x2853   :  { %v9309_v24 = vmul.f32 %v8029_v40, %v4785_v26 }
0x2855   :  { %v4944_v23 = vrot.slane %v9309_v24, 7 }
0x2856   :  { %v4783_v44 = vpop.permute.xlu1 %4782 }
0x2857   :  { %v9312_v45 = vmul.f32 %v8031_v27, %v4783_v44  ;;  %v4940_v44 = vld [vmem:[#allocation2 + $0x16] ss:$0 sm:$0xff] }
0x2859   :  { %v4945_v43 = vsel %vm1252_vm10, %v4944_v23, %v9312_v45 }
0x285a   :  { %v4915_v22 = vpop.permute.xlu0 %4914  ;;  %4946 = vrot.lane.b32.xlu1 %v4945_v43, %s8136_s14 }
0x285b   :  { %v9317_v13 = vmul.f32 %v8033_v42, %v4915_v22 }
0x285d   :  { %9876 = vst [vmem:[#allocation27_spill] sm:$0xff] %v9317_v13  ;;  %v5074_v17 = vrot.slane %v9317_v13, 7 }
0x285e   :  { %v4913_v3 = vpop.permute.xlu0 %4912 }
0x285f   :  { %v9320_v1 = vmul.f32 %v8035_v52, %v4913_v3 }
0x2861   :  { %v5075_v40 = vsel %vm1252_vm10, %v5074_v17, %v9320_v1  ;;  %v4942_v17 = vld [vmem:[#allocation2 + $0x9] ss:$0 sm:$0xff] }
0x2862   :  { %5076 = vrot.lane.b32.xlu0 %v5075_v40, %s8136_s14 }
0x28cc   :  { %v4947_v27 = vpop.permute.xlu1 %4946 }
0x28cd   :  { %7105 = vmatmul.mubr.msk.f32.vlgmr.msra.gmra.mrb[28].mxu0 %vm852_vm9, %v4947_v27 }
0x28ce   :  { %7486 = vmatpush3.bf16.msra.mxu0 %v8463_v8  ;;  %7126 = vmatprep.mubr.msk.f32.mxu0 %vm8134_vm8, %v9868_v37 }
0x28cf   :  { %7487 = vmatprep.subr.bf16.mxu0 %v9869_v48 }
0x28d2   :  { %7489 = vmatpush3.bf16.msra.mxu0 %v8474_v11 }
0x28d4   :  { %v5077_v42 = vpop.permute.xlu0 %5076 }
0x28d5   :  { %7116 = vmatmul.mubr.msk.f32.vlgmr.msra.gmra.mrb[44].mxu1 %vm852_vm9, %v5077_v42 }
0x28d6   :  { %7492 = vmatpush3.bf16.msra.mxu1 %v8502_v28  ;;  %7137 = vmatprep.mubr.msk.f32.mxu1 %vm8134_vm8, %v9868_v37  ;;  %v4943_v28 = vld [vmem:[#allocation2 + $0x29] ss:$0 sm:$0xff] }
0x28d7   :  { %7493 = vmatprep.subr.bf16.mxu1 %v9869_v48 }
0x28da   :  { %7495 = vmatpush3.bf16.msra.mxu1 %v8512_v32 }
0x29a0   :  { %v5016_v8 = vpop.f32.mrb[28].mxu0 }
0x29a1   :  { %v5021_v52 = vrot.slane %v5016_v8, 1  ;;  %v7106_v16 = vpop.f32.mrb[29].mxu0  ;;  %v5024_v23 = vadd.f32 %v5016_v8, %v4940_v44 }
0x29a3   :  { %v5025_v26 = vadd.f32 %v5021_v52, %v4941_v34  ;;  %v6367_v8 = vmul.f32 -1.442695, %v5024_v23 }
0x29a5   :  { %8044 = vtanh.f32 %v5025_v26  ;;  %v6368_v42 = vmul.f32 -1.442695, %v5025_v26 }
0x29a6   :  { %8046 = vtanh.f32 %v5024_v23 }
0x29a8   :  { %v5146_v11 = vpop.f32.mrb[44].mxu1 }
0x29a9   :  { %v5151_v43 = vrot.slane %v5146_v11, 1  ;;  %v7117_v22 = vpop.f32.mrb[45].mxu1  ;;  %v5154_v37 = vadd.f32 %v5146_v11, %v4942_v17 }
0x29ab   :  { %v5155_v3 = vadd.f32 %v5151_v43, %v4943_v28  ;;  %v6370_v16 = vmul.f32 -1.442695, %v5154_v37 }
0x29ad   :  { %8048 = vtanh.f32 %v5155_v3  ;;  %v6371_v52 = vmul.f32 -1.442695, %v5155_v3 }
0x29ae   :  { %8050 = vtanh.f32 %v5154_v37 }
0x29af   :  { %v8045_v48 = vpop.eup %8044  ;;  %8052 = vpow2.f32 %v6368_v42 }
0x29b0   :  { %5046 = vrot.lane.b32.xlu1 %v8045_v48, %s8135_s8  ;;  %v8047_v32 = vpop.eup %8046  ;;  %8054 = vpow2.f32 %v6367_v8 }
0x29b1   :  { %8056 = vpow2.f32 %v6371_v52 }
0x29b2   :  { %8058 = vpow2.f32 %v6370_v16 }
0x29b4   :  { %5044 = vrot.lane.b32.xlu1 %v8047_v32, %s8135_s8 }
0x29b7   :  { %v8049_v40 = vpop.eup %8048 }
0x29b8   :  { %5176 = vrot.lane.b32.xlu0 %v8049_v40, %s8135_s8  ;;  %v8051_v27 = vpop.eup %8050 }
0x29b9   :  { %v8053_v34 = vpop.eup %8052 }
0x29ba   :  { %v5033_v44 = vadd.f32 1.0, %v8053_v34  ;;  %v8055_v11 = vpop.eup %8054 }
0x29bb   :  { %v5032_v43 = vadd.f32 1.0, %v8055_v11  ;;  %v8057_v22 = vpop.eup %8056 }
0x29bc   :  { %5174 = vrot.lane.b32.xlu0 %v8051_v27, %s8135_s8  ;;  %8060 = vrcp.f32 %v5033_v44  ;;  %v5163_v28 = vadd.f32 1.0, %v8057_v22  ;;  %v8059_v17 = vpop.eup %8058 }
0x29bd   :  { %8062 = vrcp.f32 %v5032_v43  ;;  %v5162_v48 = vadd.f32 1.0, %v8059_v17 }
0x29be   :  { %8064 = vrcp.f32 %v5163_v28 }
0x29bf   :  { %8066 = vrcp.f32 %v5162_v48 }
0x29c6   :  { %v8061_v32 = vpop.eup %8060 }
0x29c7   :  { %v8063_v3 = vpop.eup %8062  ;;  %v5041_v44 = vmul.f32 %v8061_v32, %v9290_v51 }
0x29c8   :  { %v8065_v27 = vpop.eup %8064  ;;  %v5040_v22 = vmul.f32 %v8063_v3, %v9294_v7 }
0x29c9   :  { %v8067_v52 = vpop.eup %8066  ;;  %v5171_v48 = vmul.f32 %v8065_v27, %v9298_v60 }
0x29ca   :  { %v5170_v51 = vmul.f32 %v8067_v52, %v9302_v50 }
0x2a22   :  { %v5047_v26 = vpop.permute.xlu1 %5046 }
0x2a23   :  { %v5051_v23 = vmul.f32 %v8061_v32, %v5047_v26 }
0x2a25   :  { %5056 = vrot.lane.b32.xlu1 %v5051_v23, %s8136_s14 }
0x2a26   :  { %v5045_v37 = vpop.permute.xlu1 %5044 }
0x2a27   :  { %v5050_v40 = vmul.f32 %v8063_v3, %v5045_v37 }
0x2a29   :  { %5054 = vrot.lane.b32.xlu1 %v5050_v40, %s8136_s14 }
0x2a2a   :  { %v5177_v42 = vpop.permute.xlu0 %5176 }
0x2a2b   :  { %v5181_v8 = vmul.f32 %v8065_v27, %v5177_v42 }
0x2a2d   :  { %5186 = vrot.lane.b32.xlu0 %v5181_v8, %s8136_s14 }
0x2a2e   :  { %v5175_v16 = vpop.permute.xlu0 %5174 }
0x2a2f   :  { %v5180_v34 = vmul.f32 %v8067_v52, %v5175_v16 }
0x2a31   :  { %5184 = vrot.lane.b32.xlu0 %v5180_v34, %s8136_s14 }
0x2a97   :  { %v5057_v11 = vpop.permute.xlu1 %5056 }
0x2a98   :  { %v9346_v43 = vadd.f32 %v5057_v11, %v5041_v44 }
0x2a9a   :  { %8068 = vtanh.f32 %v9346_v43 }
0x2a9b   :  { %v5055_v28 = vpop.permute.xlu1 %5054 }
0x2a9c   :  { %v9350_v17 = vadd.f32 %v5055_v28, %v5040_v22 }
0x2a9e   :  { %8070 = vtanh.f32 %v9350_v17 }
0x2a9f   :  { %v5187_v26 = vpop.permute.xlu0 %5186 }
0x2aa0   :  { %v9354_v23 = vadd.f32 %v5187_v26, %v5171_v48 }
0x2aa2   :  { %8072 = vtanh.f32 %v9354_v23 }
0x2aa3   :  { %v5185_v37 = vpop.permute.xlu0 %5184 }
0x2aa4   :  { %v8069_v40 = vpop.eup %8068  ;;  %v9358_v42 = vadd.f32 %v5185_v37, %v5170_v51 }
0x2aa5   :  { %5068 = vrot.lane.b32.xlu1 %v8069_v40, %s8135_s8 }
0x2aa6   :  { %8074 = vtanh.f32 %v9358_v42 }
0x2aa8   :  { %v8071_v7 = vpop.eup %8070 }
0x2aa9   :  { %5066 = vrot.lane.b32.xlu1 %v8071_v7, %s8135_s8  ;;  %v5224_v7 = vld [vmem:[#allocation2 + $0x17] ss:$0 sm:$0xff] }
0x2aac   :  { %v8073_v8 = vpop.eup %8072 }
0x2aad   :  { %5198 = vrot.lane.b32.xlu0 %v8073_v8, %s8135_s8 }
0x2ab0   :  { %v8075_v60 = vpop.eup %8074 }
0x2ab1   :  { %5196 = vrot.lane.b32.xlu0 %v8075_v60, %s8135_s8 }
0x2b17   :  { %v5069_v16 = vpop.permute.xlu1 %5068 }
0x2b18   :  { %v9365_v34 = vmul.f32 %v8061_v32, %v5069_v16 }
0x2b1a   :  { %9877 = vst [vmem:[#allocation28_spill] sm:$0xff] %v9365_v34  ;;  %v5228_v44 = vrot.slane %v9365_v34, 7 }
0x2b1b   :  { %v5067_v50 = vpop.permute.xlu1 %5066 }
0x2b1c   :  { %v9368_v11 = vmul.f32 %v8063_v3, %v5067_v50  ;;  %v5226_v50 = vld [vmem:[#allocation2 + $0x8] ss:$0 sm:$0xff] }
0x2b1e   :  { %v5229_v22 = vsel %vm1252_vm10, %v5228_v44, %v9368_v11 }
0x2b1f   :  { %v5199_v28 = vpop.permute.xlu0 %5198  ;;  %5230 = vrot.lane.b32.xlu1 %v5229_v22, %s8136_s14 }
0x2b20   :  { %v9373_v48 = vmul.f32 %v8065_v27, %v5199_v28 }
0x2b22   :  { %9878 = vst [vmem:[#allocation29_spill] sm:$0xff] %v9373_v48  ;;  %v5358_v51 = vrot.slane %v9373_v48, 7 }
0x2b23   :  { %v5197_v26 = vpop.permute.xlu0 %5196 }
0x2b24   :  { %v9376_v37 = vmul.f32 %v8067_v52, %v5197_v26  ;;  %v5225_v26 = vld [vmem:[#allocation2 + $0x37] ss:$0 sm:$0xff] }
0x2b26   :  { %v5359_v32 = vsel %vm1252_vm10, %v5358_v51, %v9376_v37  ;;  %v5227_v51 = vld [vmem:[#allocation2 + $0x28] ss:$0 sm:$0xff] }
0x2b27   :  { %5360 = vrot.lane.b32.xlu0 %v5359_v32, %s8136_s14 }
0x2b91   :  { %v5231_v3 = vpop.permute.xlu1 %5230 }
0x2b92   :  { %7127 = vmatmul.mubr.msk.f32.vlgmr.msra.gmra.mrb[30].mxu0 %vm852_vm9, %v5231_v3 }
0x2b99   :  { %v5361_v40 = vpop.permute.xlu0 %5360 }
0x2b9a   :  { %7138 = vmatmul.mubr.msk.f32.vlgmr.msra.gmra.mrb[46].mxu1 %vm852_vm9, %v5361_v40 }
0x2c65   :  { %v5300_v8 = vpop.f32.mrb[30].mxu0 }
0x2c66   :  { %v5308_v27 = vadd.f32 %v5300_v8, %v5224_v7  ;;  %v7128_v60 = vpop.f32.mrb[31].mxu0  ;;  %v5305_v16 = vrot.slane %v5300_v8, 1 }
0x2c68   :  { %8076 = vtanh.f32 %v5308_v27  ;;  %v5309_v32 = vadd.f32 %v5305_v16, %v5225_v26  ;;  %v6373_v60 = vmul.f32 -1.442695, %v5308_v27 }
0x2c6d   :  { %v5430_v52 = vpop.f32.mrb[46].mxu1 }
0x2c6e   :  { %v5435_v44 = vrot.slane %v5430_v52, 1  ;;  %v5438_v22 = vadd.f32 %v5430_v52, %v5226_v50  ;;  %v7139_v28 = vpop.f32.mrb[47].mxu1  ;;  %v6374_v52 = vmul.f32 -1.442695, %v5309_v32 }
0x2c70   :  { %v5439_v48 = vadd.f32 %v5435_v44, %v5227_v51  ;;  %8078 = vtanh.f32 %v5438_v22  ;;  %v6376_v50 = vmul.f32 -1.442695, %v5438_v22 }
0x2c72   :  { %v8077_v3 = vpop.eup %8076  ;;  %8080 = vtanh.f32 %v5439_v48  ;;  %v6377_v16 = vmul.f32 -1.442695, %v5439_v48 }
0x2c73   :  { %5328 = vrot.lane.b32.xlu1 %v8077_v3, %s8135_s8  ;;  %8082 = vtanh.f32 %v5309_v32 }
0x2c74   :  { %8084 = vpow2.f32 %v6373_v60 }
0x2c75   :  { %8086 = vpow2.f32 %v6376_v50 }
0x2c76   :  { %8088 = vpow2.f32 %v6377_v16 }
0x2c77   :  { %8090 = vpow2.f32 %v6374_v52 }
0x2c7a   :  { %v8079_v40 = vpop.eup %8078 }
0x2c7b   :  { %5458 = vrot.lane.b32.xlu0 %v8079_v40, %s8135_s8 }
0x2c7c   :  { %v8081_v7 = vpop.eup %8080 }
0x2c7d   :  { %v8083_v8 = vpop.eup %8082  ;;  %5460 = vrot.lane.b32.xlu1 %v8081_v7, %s8135_s8 }
0x2c7e   :  { %v8085_v44 = vpop.eup %8084 }
0x2c7f   :  { %5330 = vrot.lane.b32.xlu0 %v8083_v8, %s8135_s8  ;;  %v5316_v28 = vadd.f32 1.0, %v8085_v44  ;;  %v8087_v26 = vpop.eup %8086  ;;  %v9883_v44 = vld [vmem:[#allocation20_spill] sm:$0xff] }
0x2c80   :  { %v8089_v51 = vpop.eup %8088  ;;  %v5446_v3 = vadd.f32 1.0, %v8087_v26  ;;  %v9884_v26 = vld [vmem:[#allocation14_spill] sm:$0xff] }
0x2c81   :  { %8092 = vrcp.f32 %v5316_v28  ;;  %v8091_v40 = vpop.eup %8090  ;;  %v5447_v13 = vadd.f32 1.0, %v8089_v51  ;;  %v9885_v51 = vld [vmem:[#allocation22_spill] sm:$0xff] }
0x2c82   :  { %v5317_v34 = vadd.f32 1.0, %v8091_v40  ;;  %8094 = vrcp.f32 %v5446_v3  ;;  %v9886_v40 = vld [vmem:[#allocation15_spill] sm:$0xff] }
0x2c83   :  { %8096 = vrcp.f32 %v5447_v13 }
0x2c84   :  { %8098 = vrcp.f32 %v5317_v34 }
0x2c8b   :  { %v9387_v7 = vpop.eup %8092 }
0x2c8c   :  { %v9393_v22 = vpop.eup %8094 }
0x2c8d   :  { %v9396_v60 = vpop.eup %8096 }
0x2c8e   :  { %v9399_v16 = vpop.eup %8098 }
0x2ce5   :  { %v5329_v27 = vpop.permute.xlu1 %5328 }
0x2ce6   :  { %v5334_v48 = vmul.f32 %v9387_v7, %v5329_v27  ;;  %v9887_v27 = vld [vmem:[#allocation24_spill] sm:$0xff] }
0x2ce8   :  { %5338 = vrot.lane.b32.xlu1 %v5334_v48, %s8136_s14  ;;  %v9888_v48 = vld [vmem:[#allocation17_spill] sm:$0xff] }
0x2cec   :  { %1514 = vrot.lane.b32.xlu1 %v8616_v33, %s8136_s14 }
0x2ced   :  { %v5459_v32 = vpop.permute.xlu0 %5458 }
0x2cee   :  { %v5464_v8 = vmul.f32 %v9393_v22, %v5459_v32  ;;  %v9889_v32 = vld [vmem:[#allocation26_spill] sm:$0xff] }
0x2cef   :  { %v5461_v50 = vpop.permute.xlu1 %5460 }
0x2cf0   :  { %5468 = vrot.lane.b32.xlu0 %v5464_v8, %s8136_s14  ;;  %v5465_v13 = vmul.f32 %v9396_v60, %v5461_v50  ;;  %v9890_v8 = vld [vmem:[#allocation19_spill] sm:$0xff]  ;;  %v9891_v50 = vld [vmem:[#allocation21_spill] sm:$0xff] }
0x2cf1   :  { %v5331_v34 = vpop.permute.xlu0 %5330 }
0x2cf2   :  { %v5335_v52 = vmul.f32 %v9399_v16, %v5331_v34  ;;  %5470 = vrot.lane.b32.xlu1 %v5465_v13, %s8136_s14  ;;  %v9892_v13 = vld [vmem:[#allocation23_spill] sm:$0xff]  ;;  %v9893_v34 = vld [vmem:[#allocation25_spill] sm:$0xff] }
0x2cf4   :  { %5340 = vrot.lane.b32.xlu0 %v5335_v52, %s8136_s14  ;;  %v9894_v52 = vld [vmem:[#allocation28_spill] sm:$0xff] }
0x2cf6   :  { %2082 = vrot.lane.b32.xlu1 %v8732_v15, %s8136_s14  ;;  %v5325_v15 = vmul.f32 %v9399_v16, %v9346_v43 }
0x2cf8   :  { %1227 = vrot.lane.b32.xlu0 %v8558_v0, %s8136_s14  ;;  %v5324_v0 = vmul.f32 %v9387_v7, %v9350_v17 }
0x2cfa   :  { %2650 = vrot.lane.b32.xlu1 %v8848_v18, %s8136_s14 }
0x2cfc   :  { %1798 = vrot.lane.b32.xlu0 %v8674_v9, %s8136_s14 }
0x2cfe   :  { %3218 = vrot.lane.b32.xlu1 %v8964_v59, %s8136_s14  ;;  %v5455_v59 = vmul.f32 %v9396_v60, %v9354_v23 }
0x2d00   :  { %2366 = vrot.lane.b32.xlu0 %v8790_v55, %s8136_s14 }
0x2d02   :  { %1524 = vrot.lane.b32.xlu1 %v8624_v39, %s8135_s8 }
0x2d04   :  { %2934 = vrot.lane.b32.xlu0 %v8906_v58, %s8136_s14 }
0x2d06   :  { %2092 = vrot.lane.b32.xlu1 %v8740_v63, %s8135_s8 }
0x2d08   :  { %1238 = vrot.lane.b32.xlu0 %v8566_v12, %s8135_s8 }
0x2d0a   :  { %2660 = vrot.lane.b32.xlu1 %v8856_v31, %s8135_s8 }
0x2d0c   :  { %1808 = vrot.lane.b32.xlu0 %v8682_v20, %s8135_s8 }
0x2d0e   :  { %3228 = vrot.lane.b32.xlu1 %v8972_v38, %s8135_s8 }
0x2d10   :  { %2376 = vrot.lane.b32.xlu0 %v8798_v10, %s8135_s8  ;;  %v5454_v10 = vmul.f32 %v9393_v22, %v9358_v42 }
0x2d12   :  { %3796 = vrot.lane.b32.xlu1 %v9088_v21, %s8135_s8 }
0x2d14   :  { %2944 = vrot.lane.b32.xlu0 %v8914_v46, %s8135_s8 }
0x2d16   :  { %4364 = vrot.lane.b32.xlu1 %v9204_v35, %s8135_s8 }
0x2d18   :  { %3512 = vrot.lane.b32.xlu0 %v9030_v41, %s8135_s8 }
0x2d1a   :  { %4932 = vrot.lane.b32.xlu1 %v9320_v1, %s8135_s8 }
0x2d1c   :  { %4080 = vrot.lane.b32.xlu0 %v9146_v56, %s8135_s8 }
0x2d1e   :  { %3786 = vrot.lane.b32.xlu1 %v9080_v47, %s8136_s14 }
0x2d20   :  { %4648 = vrot.lane.b32.xlu0 %v9262_v6, %s8135_s8 }
0x2d22   :  { %4354 = vrot.lane.b32.xlu1 %v9196_v53, %s8136_s14 }
0x2d24   :  { %5216 = vrot.lane.b32.xlu0 %v9376_v37, %s8135_s8 }
0x2d28   :  { %3502 = vrot.lane.b32.xlu0 %v9022_v4, %s8136_s14 }
0x2d2c   :  { %4070 = vrot.lane.b32.xlu0 %v9138_v57, %s8136_s14 }
0x2d5a   :  { %v5339_v12 = vpop.permute.xlu1 %5338 }
0x2d5b   :  { %v5344_v33 = vadd.f32 %v5339_v12, %v5324_v0  ;;  %v6378_v0 = vld [vmem:[%s9809_s9 + $0x40] sm:$0xff]  ;;  %v6379_v12 = vld [vmem:[%s9809_s9 + $0x48] sm:$0xff] }
0x2d5d   :  { %8100 = vtanh.f32 %v5344_v33  ;;  %v7496_v33 = vpack.c.bf16 %v6379_v12, %v6378_v0 }
0x2d5e   :  { %v1515_v39 = vpop.permute.xlu1 %1514 }
0x2d5f   :  { %1520 = vst.msk [vmem:[#allocation3 + $0x1] sm:$0x1] %vm1233_vm11, %v1515_v39  ;;  %7497 = vmatprep.subr.bf16.mxu0 %v7496_v33 }
0x2d60   :  { %7499 = vmatpush3.bf16.msra.mxu0 %v7496_v33  ;;  %v5540_v33 = vld [vmem:[%s9809_s9 + $0x20] sm:$0xff] }
0x2d62   :  { %v5469_v9 = vpop.permute.xlu0 %5468 }
0x2d63   :  { %v5474_v31 = vadd.f32 %v5469_v9, %v5454_v10 }
0x2d64   :  { %v5471_v20 = vpop.permute.xlu1 %5470 }
0x2d65   :  { %v5475_v38 = vadd.f32 %v5471_v20, %v5455_v59  ;;  %v6381_v20 = vld [vmem:[%s9809_s9 + $0x58] sm:$0xff] }
0x2d66   :  { %v5341_v63 = vpop.permute.xlu0 %5340 }
0x2d67   :  { %v8101_v55 = vpop.eup %8100  ;;  %v5345_v18 = vadd.f32 %v5341_v63, %v5325_v15 }
0x2d68   :  { %5350 = vrot.lane.b32.xlu1 %v8101_v55, %s8135_s8  ;;  %v2083_v58 = vpop.permute.xlu1 %2082  ;;  %v6383_v55 = vld [vmem:[%s9809_s9 + $0x68] sm:$0xff] }
0x2d69   :  { %8102 = vtanh.f32 %v5345_v18  ;;  %2088 = vst.msk [vmem:[#allocation3 + $0x3] sm:$0x1] %vm1233_vm11, %v2083_v58  ;;  %v6385_v58 = vld [vmem:[%s9809_s9 + $0x78] sm:$0xff] }
0x2d6a   :  { %v1228_v46 = vpop.permute.xlu0 %1227  ;;  %8104 = vtanh.f32 %v5474_v31  ;;  %v6384_v31 = vld [vmem:[%s9809_s9 + $0x70] sm:$0xff] }
0x2d6b   :  { %1234 = vst.msk [vmem:[#allocation3] sm:$0x1] %vm1233_vm11, %v1228_v46  ;;  %8106 = vtanh.f32 %v5475_v38  ;;  %v7508_v46 = vpack.c.bf16 %v6385_v58, %v6384_v31  ;;  %v6395_v31 = vld [vmem:[%s9809_s9 + $0x88] sm:$0xff] }
0x2d6c   :  { %4922 = vrot.lane.b32.xlu1 %v9312_v45, %s8136_s14  ;;  %v2651_v4 = vpop.permute.xlu1 %2650 }
0x2d6d   :  { %2656 = vst.msk [vmem:[#allocation3 + $0x5] sm:$0x1] %vm1233_vm11, %v2651_v4 }
0x2d6e   :  { %v1799_v41 = vpop.permute.xlu0 %1798 }
0x2d6f   :  { %1804 = vst.msk [vmem:[#allocation3 + $0x2] sm:$0x1] %vm1233_vm11, %v1799_v41  ;;  %v5536_v41 = vld [vmem:[%s9809_s9] sm:$0xff] }
0x2d70   :  { %1240 = vrot.lane.b32.xlu1 %v8563_v5, %s8135_s8  ;;  %v3219_v47 = vpop.permute.xlu1 %3218 }
0x2d71   :  { %3224 = vst.msk [vmem:[#allocation3 + $0x7] sm:$0x1] %vm1233_vm11, %v3219_v47  ;;  %v5537_v47 = vld [vmem:[%s9809_s9 + $0x8] sm:$0xff] }
0x2d72   :  { %v2367_v21 = vpop.permute.xlu0 %2366 }
0x2d73   :  { %v8103_v57 = vpop.eup %8102  ;;  %2372 = vst.msk [vmem:[#allocation3 + $0x4] sm:$0x1] %vm1233_vm11, %v2367_v21  ;;  %v9595_v21 = vpack.c.bf16 %v5537_v47, %v5536_v41  ;;  %v6396_v47 = vld [vmem:[%s9809_s9 + $0x90] sm:$0xff] }
0x2d74   :  { %5352 = vrot.lane.b32.xlu0 %v8103_v57, %s8135_s8  ;;  %1526 = vrot.lane.b32.xlu1 %v8621_v36, %s8135_s8  ;;  %v1525_v56 = vpop.permute.xlu1 %1524  ;;  %v8105_v35 = vpop.eup %8104 }
0x2d75   :  { %1530 = vst.msk [vmem:[#allocation3 + $0xe] sm:$0x1] %vm1244_vm12, %v1525_v56  ;;  %v8107_v45 = vpop.eup %8106 }
0x2d76   :  { %v2935_v53 = vpop.permute.xlu0 %2934 }
0x2d77   :  { %2940 = vst.msk [vmem:[#allocation3 + $0x6] sm:$0x1] %vm1233_vm11, %v2935_v53 }
0x2d78   :  { %5480 = vrot.lane.b32.xlu0 %v8105_v35, %s8135_s8  ;;  %1810 = vrot.lane.b32.xlu1 %v8679_v14, %s8135_s8  ;;  %v2093_v5 = vpop.permute.xlu1 %2092 }
0x2d79   :  { %2098 = vst.msk [vmem:[#allocation3 + $0xc] sm:$0x1] %vm1244_vm12, %v2093_v5  ;;  %v9895_v5 = vld [vmem:[#allocation27_spill] sm:$0xff] }
0x2d7a   :  { %v1239_v6 = vpop.permute.xlu0 %1238 }
0x2d7b   :  { %1245 = vst.msk [vmem:[#allocation3 + $0xf] sm:$0x1] %vm1244_vm12, %v1239_v6 }
0x2d7c   :  { %4638 = vrot.lane.b32.xlu0 %v9254_v29, %s8136_s14  ;;  %5482 = vrot.lane.b32.xlu1 %v8107_v45, %s8135_s8  ;;  %v2661_v36 = vpop.permute.xlu1 %2660 }
0x2d7d   :  { %2666 = vst.msk [vmem:[#allocation3 + $0xa] sm:$0x1] %vm1244_vm12, %v2661_v36 }
0x2d7e   :  { %v1809_v1 = vpop.permute.xlu0 %1808 }
0x2d7f   :  { %1814 = vst.msk [vmem:[#allocation3 + $0xd] sm:$0x1] %vm1244_vm12, %v1809_v1 }
0x2d80   :  { %5206 = vrot.lane.b32.xlu0 %v9368_v11, %s8136_s14  ;;  %2094 = vrot.lane.b32.xlu1 %v8737_v19, %s8135_s8  ;;  %v3229_v14 = vpop.permute.xlu1 %3228 }
0x2d81   :  { %3234 = vst.msk [vmem:[#allocation3 + $0x8] sm:$0x1] %vm1244_vm12, %v3229_v14 }
0x2d82   :  { %v2377_v43 = vpop.permute.xlu0 %2376 }
0x2d83   :  { %2382 = vst.msk [vmem:[#allocation3 + $0xb] sm:$0x1] %vm1244_vm12, %v2377_v43 }
0x2d84   :  { %1229 = vrot.lane.b32.xlu0 %v8555_v61, %s8136_s14  ;;  %2378 = vrot.lane.b32.xlu1 %v8795_v62, %s8135_s8  ;;  %v3797_v29 = vpop.permute.xlu1 %3796 }
0x2d85   :  { %3802 = vst.msk [vmem:[#allocation3 + $0x6] sm:$0x1] %vm1244_vm12, %v3797_v29 }
0x2d86   :  { %v2945_v17 = vpop.permute.xlu0 %2944 }
0x2d87   :  { %2950 = vst.msk [vmem:[#allocation3 + $0x9] sm:$0x1] %vm1244_vm12, %v2945_v17 }
0x2d88   :  { %1516 = vrot.lane.b32.xlu0 %v8613_v30, %s8136_s14  ;;  %2662 = vrot.lane.b32.xlu1 %v8853_v49, %s8135_s8  ;;  %v4365_v19 = vpop.permute.xlu1 %4364  ;;  %v9879_v30 = vld [vmem:[#allocation16_spill] sm:$0xff] }
0x2d89   :  { %4370 = vst.msk [vmem:[#allocation3 + $0x4] sm:$0x1] %vm1244_vm12, %v4365_v19 }
0x2d8a   :  { %v3513_v23 = vpop.permute.xlu0 %3512 }
0x2d8b   :  { %3518 = vst.msk [vmem:[#allocation3 + $0x7] sm:$0x1] %vm1244_vm12, %v3513_v23 }
0x2d8c   :  { %1800 = vrot.lane.b32.xlu0 %v8671_v2, %s8136_s14  ;;  %2946 = vrot.lane.b32.xlu1 %v8911_v25, %s8135_s8  ;;  %v4933_v61 = vpop.permute.xlu1 %4932  ;;  %v9880_v2 = vld [vmem:[#allocation12_spill] sm:$0xff]  ;;  %v9881_v25 = vld [vmem:[#allocation18_spill] sm:$0xff] }
0x2d8d   :  { %4938 = vst.msk [vmem:[#allocation3 + $0x2] sm:$0x1] %vm1244_vm12, %v4933_v61 }
0x2d8e   :  { %v4081_v62 = vpop.permute.xlu0 %4080 }
0x2d8f   :  { %4086 = vst.msk [vmem:[#allocation3 + $0x5] sm:$0x1] %vm1244_vm12, %v4081_v62 }
0x2d90   :  { %2084 = vrot.lane.b32.xlu0 %v8729_v54, %s8136_s14  ;;  %3230 = vrot.lane.b32.xlu1 %v9879_v30, %s8135_s8  ;;  %v3787_v49 = vpop.permute.xlu1 %3786  ;;  %v9882_v54 = vld [vmem:[#allocation13_spill] sm:$0xff] }
0x2d91   :  { %3792 = vst.msk [vmem:[#allocation3 + $0x9] sm:$0x1] %vm1233_vm11, %v3787_v49 }
0x2d92   :  { %v4649_v42 = vpop.permute.xlu0 %4648 }
0x2d93   :  { %4654 = vst.msk [vmem:[#allocation3 + $0x3] sm:$0x1] %vm1244_vm12, %v4649_v42 }
0x2d94   :  { %2368 = vrot.lane.b32.xlu0 %v9880_v2, %s8136_s14  ;;  %3514 = vrot.lane.b32.xlu1 %v9881_v25, %s8135_s8  ;;  %v4355_v11 = vpop.permute.xlu1 %4354 }
0x2d95   :  { %4360 = vst.msk [vmem:[#allocation3 + $0xb] sm:$0x1] %vm1233_vm11, %v4355_v11 }
0x2d96   :  { %v5217_v37 = vpop.permute.xlu0 %5216 }
0x2d97   :  { %5222 = vst.msk [vmem:[#allocation3 + $0x1] sm:$0x1] %vm1244_vm12, %v5217_v37 }
0x2d98   :  { %2652 = vrot.lane.b32.xlu0 %v9882_v54, %s8136_s14  ;;  %3798 = vrot.lane.b32.xlu1 %v9883_v44, %s8135_s8 }
0x2d9a   :  { %v3503_v28 = vpop.permute.xlu0 %3502 }
0x2d9b   :  { %3508 = vst.msk [vmem:[#allocation3 + $0x8] sm:$0x1] %vm1233_vm11, %v3503_v28 }
0x2d9c   :  { %2936 = vrot.lane.b32.xlu0 %v9884_v26, %s8136_s14  ;;  %4082 = vrot.lane.b32.xlu1 %v9885_v51, %s8135_s8 }
0x2d9e   :  { %v4071_v3 = vpop.permute.xlu0 %4070 }
0x2d9f   :  { %4076 = vst.msk [vmem:[#allocation3 + $0xa] sm:$0x1] %vm1233_vm11, %v4071_v3 }
0x2da0   :  { %3220 = vrot.lane.b32.xlu0 %v9886_v40, %s8136_s14  ;;  %4366 = vrot.lane.b32.xlu1 %v9887_v27, %s8135_s8 }
0x2da4   :  { %3504 = vrot.lane.b32.xlu0 %v9888_v48, %s8136_s14  ;;  %4650 = vrot.lane.b32.xlu1 %v9889_v32, %s8135_s8 }
0x2da8   :  { %3788 = vrot.lane.b32.xlu0 %v9890_v8, %s8136_s14 }
0x2dac   :  { %4072 = vrot.lane.b32.xlu0 %v9891_v50, %s8136_s14  ;;  %v5538_v50 = vld [vmem:[%s9809_s9 + $0x10] sm:$0xff] }
0x2db0   :  { %4356 = vrot.lane.b32.xlu0 %v9892_v13, %s8136_s14  ;;  %v5539_v13 = vld [vmem:[%s9809_s9 + $0x18] sm:$0xff] }
0x2db1   :  { %v7516_v0 = vpack.c.bf16 %v5539_v13, %v5538_v50  ;;  %v6418_v50 = vld [vmem:[%s9811_s11 + $0x28] sm:$0xff] }
0x2db4   :  { %4640 = vrot.lane.b32.xlu0 %v9893_v34, %s8136_s14 }
0x2db8   :  { %4924 = vrot.lane.b32.xlu0 %v9309_v24, %s8136_s14  ;;  %v6380_v24 = vld [vmem:[%s9809_s9 + $0x50] sm:$0xff] }
0x2db9   :  { %v7500_v15 = vpack.c.bf16 %v6381_v20, %v6380_v24  ;;  %v5542_v20 = vld [vmem:[%s9809_s9 + $0x30] sm:$0xff] }
0x2dbb   :  { %7501 = vmatprep.subr.bf16.mxu0 %v7500_v15 }
0x2dbc   :  { %5208 = vrot.lane.b32.xlu0 %v9894_v52, %s8136_s14  ;;  %7503 = vmatpush3.bf16.msra.mxu0 %v7500_v15  ;;  %v5543_v15 = vld [vmem:[%s9809_s9 + $0x38] sm:$0xff] }
0x2dda   :  { %v5351_v39 = vpop.permute.xlu1 %5350 }
0x2ddb   :  { %v5356_v9 = vmul.f32 %v9387_v7, %v5351_v39  ;;  %v6382_v7 = vld [vmem:[%s9809_s9 + $0x60] sm:$0xff]  ;;  %v5541_v39 = vld [vmem:[%s9809_s9 + $0x28] sm:$0xff] }
0x2ddc   :  { %v7504_v10 = vpack.c.bf16 %v6383_v55, %v6382_v7  ;;  %v7520_v24 = vpack.c.bf16 %v5541_v39, %v5540_v33  ;;  %v7524_v55 = vpack.c.bf16 %v5543_v15, %v5542_v20 }
0x2ddd   :  { %5490 = vrot.lane.b32.xlu1 %v5356_v9, %s8136_s14 }
0x2dde   :  { %v4923_v63 = vpop.permute.xlu1 %4922  ;;  %7505 = vmatprep.subr.bf16.mxu0 %v7504_v10 }
0x2ddf   :  { %4928 = vst.msk [vmem:[#allocation3 + $0xd] sm:$0x1] %vm1233_vm11, %v4923_v63  ;;  %7507 = vmatpush3.bf16.msra.mxu0 %v7504_v10 }
0x2de0   :  { %7509 = vmatprep.subr.bf16.mxu0 %v7508_v46 }
0x2de2   :  { %v1241_v18 = vpop.permute.xlu1 %1240 }
0x2de3   :  { %1246 = vst.msk [vmem:[#allocation3 + $0x1f] sm:$0x1] %vm1244_vm12, %v1241_v18  ;;  %7511 = vmatpush3.bf16.msra.mxu0 %v7508_v46  ;;  %v6394_v18 = vld [vmem:[%s9809_s9 + $0x80] sm:$0xff] }
0x2de4   :  { %7513 = vmatprep.subr.bf16.mxu0 %v9595_v21 }
0x2de6   :  { %v5353_v59 = vpop.permute.xlu0 %5352  ;;  %v1527_v38 = vpop.permute.xlu1 %1526 }
0x2de7   :  { %v5357_v4 = vmul.f32 %v9399_v16, %v5353_v59  ;;  %1531 = vst.msk [vmem:[#allocation3 + $0x1e] sm:$0x1] %vm1244_vm12, %v1527_v38  ;;  %v7528_v38 = vpack.c.bf16 %v6395_v31, %v6394_v18 }
0x2de9   :  { %5492 = vrot.lane.b32.xlu0 %v5357_v4, %s8136_s14 }
0x2dea   :  { %v5481_v57 = vpop.permute.xlu0 %5480  ;;  %v1811_v56 = vpop.permute.xlu1 %1810 }
0x2deb   :  { %v5486_v16 = vmul.f32 %v9393_v22, %v5481_v57  ;;  %1815 = vst.msk [vmem:[#allocation3 + $0x1d] sm:$0x1] %vm1244_vm12, %v1811_v56  ;;  %v9896_v22 = vld [vmem:[#allocation29_spill] sm:$0xff] }
0x2ded   :  { %5500 = vrot.lane.b32.xlu1 %v5486_v16, %s8135_s8 }
0x2dee   :  { %v4639_v53 = vpop.permute.xlu0 %4638  ;;  %v5483_v35 = vpop.permute.xlu1 %5482 }
0x2def   :  { %4644 = vst.msk [vmem:[#allocation3 + $0xc] sm:$0x1] %vm1233_vm11, %v4639_v53  ;;  %v5487_v14 = vmul.f32 %v9396_v60, %v5483_v35 }
0x2df1   :  { %4934 = vrot.lane.b32.xlu1 %v9895_v5, %s8135_s8  ;;  %v6398_v5 = vld [vmem:[%s9809_s9 + $0xa0] sm:$0xff] }
0x2df2   :  { %v5207_v6 = vpop.permute.xlu0 %5206  ;;  %v2095_v45 = vpop.permute.xlu1 %2094 }
0x2df3   :  { %5212 = vst.msk [vmem:[#allocation3 + $0xe] sm:$0x1] %vm1233_vm11, %v5207_v6  ;;  %v6399_v6 = vld [vmem:[%s9809_s9 + $0xa8] sm:$0xff] }
0x2df4   :  { %2099 = vst.msk [vmem:[#allocation3 + $0x1c] sm:$0x1] %vm1244_vm12, %v2095_v45 }
0x2df5   :  { %5218 = vrot.lane.b32.xlu1 %v9896_v22, %s8135_s8 }
0x2df6   :  { %v1230_v36 = vpop.permute.xlu0 %1229  ;;  %v2379_v1 = vpop.permute.xlu1 %2378 }
0x2df7   :  { %1235 = vst.msk [vmem:[#allocation3 + $0x10] sm:$0x1] %vm1233_vm11, %v1230_v36 }
0x2df8   :  { %2383 = vst.msk [vmem:[#allocation3 + $0x1b] sm:$0x1] %vm1244_vm12, %v2379_v1 }
0x2df9   :  { %5502 = vrot.lane.b32.xlu1 %v5487_v14, %s8135_s8  ;;  %v7536_v14 = vpack.c.bf16 %v6399_v6, %v6398_v5 }
0x2dfa   :  { %v1517_v43 = vpop.permute.xlu0 %1516  ;;  %v2663_v29 = vpop.permute.xlu1 %2662 }
0x2dfb   :  { %1521 = vst.msk [vmem:[#allocation3 + $0x11] sm:$0x1] %vm1233_vm11, %v1517_v43 }
0x2dfc   :  { %2667 = vst.msk [vmem:[#allocation3 + $0x1a] sm:$0x1] %vm1244_vm12, %v2663_v29  ;;  %v6400_v29 = vld [vmem:[%s9809_s9 + $0xb0] sm:$0xff] }
0x2dfe   :  { %v1801_v17 = vpop.permute.xlu0 %1800  ;;  %v2947_v19 = vpop.permute.xlu1 %2946 }
0x2dff   :  { %1805 = vst.msk [vmem:[#allocation3 + $0x12] sm:$0x1] %vm1233_vm11, %v1801_v17  ;;  %v6401_v17 = vld [vmem:[%s9809_s9 + $0xb8] sm:$0xff] }
0x2e00   :  { %2951 = vst.msk [vmem:[#allocation3 + $0x19] sm:$0x1] %vm1244_vm12, %v2947_v19 }
0x2e02   :  { %v2085_v23 = vpop.permute.xlu0 %2084  ;;  %v3231_v60 = vpop.permute.xlu1 %3230 }
0x2e03   :  { %2089 = vst.msk [vmem:[#allocation3 + $0x13] sm:$0x1] %vm1233_vm11, %v2085_v23  ;;  %v7540_v23 = vpack.c.bf16 %v6401_v17, %v6400_v29 }
0x2e04   :  { %3235 = vst.msk [vmem:[#allocation3 + $0x18] sm:$0x1] %vm1244_vm12, %v3231_v60 }
0x2e06   :  { %v2369_v61 = vpop.permute.xlu0 %2368  ;;  %v3515_v62 = vpop.permute.xlu1 %3514 }
0x2e07   :  { %2373 = vst.msk [vmem:[#allocation3 + $0x14] sm:$0x1] %vm1233_vm11, %v2369_v61 }
0x2e0a   :  { %v2653_v30 = vpop.permute.xlu0 %2652  ;;  %v3799_v49 = vpop.permute.xlu1 %3798 }
0x2e0b   :  { %2657 = vst.msk [vmem:[#allocation3 + $0x15] sm:$0x1] %vm1233_vm11, %v2653_v30 }
0x2e0e   :  { %v2937_v42 = vpop.permute.xlu0 %2936  ;;  %v4083_v2 = vpop.permute.xlu1 %4082 }
0x2e0f   :  { %2941 = vst.msk [vmem:[#allocation3 + $0x16] sm:$0x1] %vm1233_vm11, %v2937_v42 }
0x2e10   :  { %4087 = vst.msk [vmem:[#allocation3 + $0x15] sm:$0x1] %vm1244_vm12, %v4083_v2  ;;  %3803 = vst.msk [vmem:[#allocation3 + $0x16] sm:$0x1] %vm1244_vm12, %v3799_v49 }
0x2e12   :  { %v3221_v25 = vpop.permute.xlu0 %3220  ;;  %v4367_v11 = vpop.permute.xlu1 %4366 }
0x2e13   :  { %3225 = vst.msk [vmem:[#allocation3 + $0x17] sm:$0x1] %vm1233_vm11, %v3221_v25 }
0x2e14   :  { %4371 = vst.msk [vmem:[#allocation3 + $0x14] sm:$0x1] %vm1244_vm12, %v4367_v11  ;;  %3519 = vst.msk [vmem:[#allocation3 + $0x17] sm:$0x1] %vm1244_vm12, %v3515_v62 }
0x2e16   :  { %v3505_v37 = vpop.permute.xlu0 %3504  ;;  %v4651_v54 = vpop.permute.xlu1 %4650 }
0x2e17   :  { %3509 = vst.msk [vmem:[#allocation3 + $0x18] sm:$0x1] %vm1233_vm11, %v3505_v37  ;;  %v6407_v37 = vld [vmem:[%s9811_s11 + $0x10] sm:$0xff] }
0x2e18   :  { %4655 = vst.msk [vmem:[#allocation3 + $0x13] sm:$0x1] %vm1244_vm12, %v4651_v54  ;;  %v6408_v54 = vld [vmem:[%s9811_s11 + $0x18] sm:$0xff] }
0x2e1a   :  { %v3789_v44 = vpop.permute.xlu0 %3788 }
0x2e1b   :  { %3793 = vst.msk [vmem:[#allocation3 + $0x19] sm:$0x1] %vm1233_vm11, %v3789_v44  ;;  %v7544_v44 = vpack.c.bf16 %v6408_v54, %v6407_v37 }
0x2e1d   :  { %7545 = vmatprep.subr.bf16.mxu1 %v7544_v44 }
0x2e1e   :  { %v4073_v28 = vpop.permute.xlu0 %4072  ;;  %7547 = vmatpush3.bf16.msra.mxu1 %v7544_v44 }
0x2e1f   :  { %4077 = vst.msk [vmem:[#allocation3 + $0x1a] sm:$0x1] %vm1233_vm11, %v4073_v28  ;;  %v5896_v28 = vld [vmem:[%s9811_s11] sm:$0xff] }
0x2e22   :  { %v4357_v26 = vpop.permute.xlu0 %4356 }
0x2e23   :  { %4361 = vst.msk [vmem:[#allocation3 + $0x1b] sm:$0x1] %vm1233_vm11, %v4357_v26  ;;  %v5897_v26 = vld [vmem:[%s9811_s11 + $0x8] sm:$0xff] }
0x2e26   :  { %v4641_v51 = vpop.permute.xlu0 %4640 }
0x2e27   :  { %4645 = vst.msk [vmem:[#allocation3 + $0x1c] sm:$0x1] %vm1233_vm11, %v4641_v51  ;;  %v7548_v51 = vpack.c.bf16 %v5897_v26, %v5896_v28 }
0x2e29   :  { %7549 = vmatprep.subr.bf16.mxu1 %v7548_v51 }
0x2e2a   :  { %v4925_v3 = vpop.permute.xlu0 %4924 }
0x2e2b   :  { %4929 = vst.msk [vmem:[#allocation3 + $0x1d] sm:$0x1] %vm1233_vm11, %v4925_v3  ;;  %v6406_v3 = vld [vmem:[%s9810_s10] ss:$0 sm:$0xff] }
0x2e2e   :  { %v5209_v40 = vpop.permute.xlu0 %5208 }
0x2e2f   :  { %5213 = vst.msk [vmem:[#allocation3 + $0x1e] sm:$0x1] %vm1233_vm11, %v5209_v40 }
0x2e4f   :  { %v5491_v27 = vpop.permute.xlu1 %5490 }
0x2e50   :  { %5496 = vst.msk [vmem:[#allocation3 + $0xf] sm:$0x1] %vm1233_vm11, %v5491_v27 }
0x2e57   :  { %v5509_v12 = vld [vmem:[#allocation3 + $0x8] sm:$0xff] }
0x2e58   :  { %v5513_v4 = vrot.slane %v5509_v12, 7  ;;  %v5525_v1 = vrot.slane %v5509_v12, 1 }
0x2e5b   :  { %v5493_v48 = vpop.permute.xlu0 %5492 }
0x2e5c   :  { %5497 = vst.msk [vmem:[#allocation3 + $0x1f] sm:$0x1] %vm1233_vm11, %v5493_v48 }
0x2e5f   :  { %v5501_v32 = vpop.permute.xlu1 %5500 }
0x2e60   :  { %5506 = vst.msk [vmem:[#allocation3] sm:$0x1] %vm1244_vm12, %v5501_v32 }
0x2e63   :  { %v4935_v8 = vpop.permute.xlu1 %4934  ;;  %v5511_v63 = vld [vmem:[#allocation3 + $0x18] sm:$0xff] }
0x2e64   :  { %4939 = vst.msk [vmem:[#allocation3 + $0x12] sm:$0x1] %vm1244_vm12, %v4935_v8  ;;  %v5515_v10 = vrot.slane %v5511_v63, 7  ;;  %v5527_v62 = vrot.slane %v5511_v63, 1  ;;  %v6417_v8 = vld [vmem:[%s9811_s11 + $0x20] sm:$0xff] }
0x2e67   :  { %v5219_v34 = vpop.permute.xlu1 %5218  ;;  %v9644_v52 = vld [vmem:[#allocation3] sm:$0xff] }
0x2e68   :  { %5223 = vst.msk [vmem:[#allocation3 + $0x11] sm:$0x1] %vm1244_vm12, %v5219_v34  ;;  %7156 = vmatprep.mubr.msk.f32.mxu0 %vm169_vm0, %v9644_v52  ;;  %v5512_v7 = vrot.slane %v9644_v52, 7  ;;  %v5524_v45 = vrot.slane %v9644_v52, 1 }
0x2e69   :  { %7157 = vmatmul.mubr.msk.f32.vlgmr.msra.gmra.mrb[32].mxu0 %vm169_vm0, %v5509_v12 }
0x2e6a   :  { %7515 = vmatpush3.bf16.msra.mxu0 %v9595_v21  ;;  %v5519_v46 = vsel %vm110_vm1, %v5515_v10, %v5512_v7  ;;  %v6397_v21 = vld [vmem:[%s9809_s9 + $0x98] sm:$0xff]  ;;  %v5518_v35 = vsel %vm110_vm1, %v5512_v7, %v5513_v4  ;;  %v5530_v19 = vsel %vm135_vm4, %v5524_v45, %v5525_v1  ;;  %v5531_v2 = vsel %vm135_vm4, %v5527_v62, %v5524_v45 }
0x2e6b   :  { %v5503_v9 = vpop.permute.xlu1 %5502  ;;  %7517 = vmatprep.subr.bf16.mxu0 %v7516_v0  ;;  %v5520_v56 = vsel %vm8280_vm2, 0.0, %v5519_v46  ;;  %v7532_v53 = vpack.c.bf16 %v6397_v21, %v6396_v47  ;;  %v5535_v11 = vsel %vm8363_vm6, 0.0, %v5531_v2 }
0x2e6c   :  { %5507 = vst.msk [vmem:[#allocation3 + $0x10] sm:$0x1] %vm1244_vm12, %v5503_v9  ;;  %v7552_v9 = vpack.c.bf16 %v6418_v50, %v6417_v8 }
0x2e6e   :  { %7519 = vmatpush3.bf16.msra.mxu0 %v7516_v0 }
0x2e6f   :  { %7521 = vmatprep.subr.bf16.mxu0 %v7520_v24 }
0x2e72   :  { %7523 = vmatpush3.bf16.msra.mxu0 %v7520_v24 }
0x2e73   :  { %v5510_v59 = vld [vmem:[#allocation3 + $0x10] sm:$0xff]  ;;  %7525 = vmatprep.subr.bf16.mxu0 %v7524_v55 }
0x2e74   :  { %v5514_v41 = vrot.slane %v5510_v59, 7  ;;  %7159 = vmatprep.mubr.msk.f32.mxu0 %vm169_vm0, %v5510_v59  ;;  %v5526_v60 = vrot.slane %v5510_v59, 1 }
0x2e75   :  { %7160 = vmatmul.mubr.msk.f32.gmra.mrb[34].mxu0 %vm169_vm0, %v5511_v63 }
0x2e76   :  { %7527 = vmatpush3.bf16.msra.mxu0 %v7524_v55  ;;  %7178 = vmatprep.mubr.msk.f32.mxu0 %vm169_vm0, %v5520_v56  ;;  %v5517_v16 = vsel %vm110_vm1, %v5513_v4, %v5514_v41  ;;  %v5516_v43 = vsel %vm110_vm1, %v5514_v41, %v5515_v10  ;;  %v5529_v61 = vsel %vm135_vm4, %v5525_v1, %v5526_v60 }
0x2e77   :  { %7529 = vmatprep.subr.bf16.mxu0 %v7528_v38  ;;  %v5522_v36 = vsel %vm8316_vm3, 0.0, %v5517_v16  ;;  %v5533_v49 = vsel %vm8353_vm5, 0.0, %v5529_v61  ;;  %v5528_v42 = vsel %vm135_vm4, %v5526_v60, %v5527_v62 }
0x2e79   :  { %7179 = vmatmul.mubr.msk.f32.vlgmr.msra.gmra.mrb[32].mxu0 %vm169_vm0, %v5518_v35  ;;  %v6423_v35 = vld [vmem:[%s9812_s12] ss:$0 sm:$0xff]  ;;  %s8108_s12 = scalar_lea.vmem %s6224_s2, 512 }
0x2e7a   :  { %7531 = vmatpush3.bf16.msra.mxu0 %v7528_v38  ;;  %7181 = vmatprep.mubr.msk.f32.mxu0 %vm169_vm0, %v5522_v36  ;;  %p8109_p0 = scmp.ne.s32.totalorder %s6224_s2, %s8108_s12  ;;  %p8114_p2 = scmp.lt.s32.totalorder %s8108_s12, %s8108_s12 }
0x2e7b   :  { %7533 = vmatprep.subr.bf16.mxu0 %v7532_v53 }
0x2e7c   :  { %p8115_p3 = por %p8114_p2, %p8113_p1 }
0x2e7d   :  { %7182 = vmatmul.mubr.msk.f32.gmra.mrb[34].mxu0 %vm169_vm0, %v5516_v43 }
0x2e7e   :  { %7535 = vmatpush3.bf16.msra.mxu0 %v7532_v53  ;;  %7200 = vmatprep.mubr.msk.f32.mxu0 %vm169_vm0, %v5530_v19  ;;  %p8116_p4 = pnand %p8115_p3, %p8109_p0 }
0x2e7f   :  { %7537 = vmatprep.subr.bf16.mxu0 %v7536_v14 }
0x2e82   :  { %7539 = vmatpush3.bf16.msra.mxu0 %v7536_v14 }
0x2e83   :  { %7541 = vmatprep.subr.bf16.mxu0 %v7540_v23 }
0x2e86   :  { %7543 = vmatpush3.bf16.msra.mxu0 %v7540_v23 }
0x2e89   :  { %7201 = vmatmul.mubr.msk.f32.vlgmr.msra.gmra.mrb[32].mxu0 %vm169_vm0, %v5533_v49 }
0x2e8a   :  { %7203 = vmatprep.mubr.msk.f32.mxu0 %vm169_vm0, %v5528_v42 }
0x2e8d   :  { %7204 = vmatmul.mubr.msk.f32.gmra.mrb[34].mxu0 %vm169_vm0, %v5535_v11 }
0x2f5c   :  { %v7202_v40 = vpop.f32.mrb[32].mxu0 }
0x2f5d   :  { %v5865_v27 = vadd.f32 %v7202_v40, %v6406_v3  ;;  %v5834_v48 = vpop.f32.mrb[33].mxu0 }
0x2f5e   :  { %v5864_v32 = vadd.f32 %v6406_v3, %v5834_v48 }
0x2f5f   :  { %v5869_v13 = vmax.f32 %v5865_v27, 0.0 }
0x2f60   :  { %v5868_v34 = vmax.f32 %v5864_v32, 0.0  ;;  %v7205_v52 = vpop.f32.mrb[34].mxu0 }
0x2f61   :  { %v5873_v0 = vrot.slane %v5869_v13, 7  ;;  %v5885_v12 = vrot.slane %v5869_v13, 1  ;;  %v5867_v33 = vadd.f32 %v7205_v52, %v6406_v3  ;;  %v5844_v39 = vpop.f32.mrb[35].mxu0 }
0x2f62   :  { %v5872_v24 = vrot.slane %v5868_v34, 7  ;;  %v5884_v20 = vrot.slane %v5868_v34, 1  ;;  %v5866_v15 = vadd.f32 %v6406_v3, %v5844_v39  ;;  %7210 = vmatprep.mubr.msk.f32.mxu1 %vm518_vm7, %v5868_v34 }
0x2f63   :  { %v5871_v63 = vmax.f32 %v5867_v33, 0.0  ;;  %7211 = vmatmul.mubr.msk.f32.vlgmr.msra.gmra.mrb[48].mxu1 %vm518_vm7, %v5869_v13 }
0x2f64   :  { %v5870_v7 = vmax.f32 %v5866_v15, 0.0  ;;  %7551 = vmatpush3.bf16.msra.mxu1 %v7548_v51  ;;  %v5878_v55 = vsel %vm110_vm1, %v5872_v24, %v5873_v0  ;;  %v5890_v10 = vsel %vm135_vm4, %v5884_v20, %v5885_v12 }
0x2f65   :  { %v5875_v18 = vrot.slane %v5871_v63, 7  ;;  %v5887_v31 = vrot.slane %v5871_v63, 1  ;;  %7553 = vmatprep.subr.bf16.mxu1 %v7552_v9 }
0x2f66   :  { %v5874_v46 = vrot.slane %v5870_v7, 7  ;;  %v5886_v59 = vrot.slane %v5870_v7, 1  ;;  %7213 = vmatprep.mubr.msk.f32.mxu1 %vm518_vm7, %v5870_v7 }
0x2f67   :  { %7214 = vmatmul.mubr.msk.f32.gmra.mrb[50].mxu1 %vm518_vm7, %v5871_v63  ;;  %v5879_v38 = vsel %vm110_vm1, %v5875_v18, %v5872_v24  ;;  %v5891_v4 = vsel %vm135_vm4, %v5887_v31, %v5884_v20 }
0x2f68   :  { %v5880_v41 = vsel %vm8280_vm2, 0.0, %v5879_v38  ;;  %v5877_v47 = vsel %vm110_vm1, %v5873_v0, %v5874_v46  ;;  %v5876_v21 = vsel %vm110_vm1, %v5874_v46, %v5875_v18  ;;  %v5889_v56 = vsel %vm135_vm4, %v5885_v12, %v5886_v59 }
0x2f69   :  { %7220 = vmatprep.mubr.msk.f32.mxu1 %vm518_vm7, %v5880_v41  ;;  %v5888_v16 = vsel %vm135_vm4, %v5886_v59, %v5887_v31  ;;  %v5882_v57 = vsel %vm8316_vm3, 0.0, %v5877_v47  ;;  %v5893_v53 = vsel %vm8353_vm5, 0.0, %v5889_v56  ;;  %v5895_v58 = vsel %vm8363_vm6, 0.0, %v5891_v4 }
0x2f6b   :  { %7221 = vmatmul.mubr.msk.f32.vlgmr.msra.gmra.mrb[48].mxu1 %vm518_vm7, %v5878_v55 }
0x2f6c   :  { %7555 = vmatpush3.bf16.msra.mxu1 %v7552_v9  ;;  %7223 = vmatprep.mubr.msk.f32.mxu1 %vm518_vm7, %v5882_v57 }
0x2f6f   :  { %7224 = vmatmul.mubr.msk.f32.gmra.mrb[50].mxu1 %vm518_vm7, %v5876_v21 }
0x2f70   :  { %7230 = vmatprep.mubr.msk.f32.mxu1 %vm518_vm7, %v5890_v10 }
0x2f73   :  { %7231 = vmatmul.mubr.msk.f32.vlgmr.msra.gmra.mrb[48].mxu1 %vm518_vm7, %v5893_v53 }
0x2f74   :  { %7233 = vmatprep.mubr.msk.f32.mxu1 %vm518_vm7, %v5888_v16 }
0x2f77   :  { %7234 = vmatmul.mubr.msk.f32.gmra.mrb[50].mxu1 %vm518_vm7, %v5895_v58 }
0x3046   :  { %v7232_v5 = vpop.f32.mrb[48].mxu1 }
0x3047   :  { %v6207_v6 = vadd.f32 %v7232_v5, %v6423_v35  ;;  %v6176_v45 = vpop.f32.mrb[49].mxu1 }
0x3048   :  { %v6206_v22 = vadd.f32 %v6423_v35, %v6176_v45 }
0x3049   :  { %v6211_v36 = vmax.f32 %v6207_v6, 0.0 }
0x304a   :  { %v6210_v1 = vmax.f32 %v6206_v22, 0.0  ;;  %v7235_v14 = vpop.f32.mrb[50].mxu1 }
0x304b   :  { %6215 = vst.msk [vmem:[#allocation4 + $0x8] sm:$0xff] %vm169_vm0, %v6211_v36  ;;  %v6209_v43 = vadd.f32 %v7235_v14, %v6423_v35  ;;  %v6186_v29 = vpop.f32.mrb[51].mxu1 }
0x304c   :  { %6214 = vst.msk [vmem:[#allocation4] sm:$0xff] %vm169_vm0, %v6210_v1  ;;  %v6208_v17 = vadd.f32 %v6423_v35, %v6186_v29 }
0x304d   :  { %v6213_v19 = vmax.f32 %v6209_v43, 0.0 }
0x304e   :  { %v6212_v23 = vmax.f32 %v6208_v17, 0.0 }
0x304f   :  { %6217 = vst.msk [vmem:[#allocation4 + $0x18] sm:$0xff] %vm169_vm0, %v6213_v19 }
0x3050   :  { %6216 = vst.msk [vmem:[#allocation4 + $0x10] sm:$0xff] %vm169_vm0, %v6212_v23 }
0x3051   :  { %8119 = shalt.err (!%p8116_p4)
}
0x3052   :  { %s8120_s25 = scalar_lea.hbm %s9813_s13, 512 }
0x3053   :  { %p8121_p5 = scmp.ne.s32.totalorder %s9813_s13, %s8120_s25  ;;  %p8124_p6 = scmp.lt.u32.totalorder %s8120_s25, %s9813_s13 }
0x3055   :  { %p8126_p7 = pnand %p8124_p6, %p8121_p5 }
0x3057   :  { %8129 = shalt.err (!%p8126_p7)
}
0x3058   :  { %s8138_s27 = smov 128   ;;  %s8139_s1 = smov 8  }
0x3059   :  { %6229 = dma.vmem_to_hbm [thread:$0]  %s6224_s2, 512, %s9813_s13, [#allocation5], %s8138_s27, %s8138_s27, %s8139_s1  }
0x305a   :  { %8130 = dma.done.wait [#allocation5], 512  }
0x305b   :  { %8131 = vsyncadd [#allocation5], 4294966784 }
0x305c   :  { %6233 = vsyncpa [#allocation5], 1 }

</bundles_post_ra>
